<compile_context>
chip_gen: v7x
topology: tpu7x:2x2x1
jax: 0.10.0
libtpu: 0.0.40
codegen_flags: <defaults>
</compile_context>

<pallas_src>
import functools

import jax
import jax.numpy as jnp
from jax import lax
from jax.experimental import pallas as pl
from jax.experimental.pallas import tpu as pltpu

_EPS = 1e-5                      # nn.BatchNorm2d default eps
_VMEM_LIMIT = 48 * 1024 * 1024   # > v5e 16 MiB default scope, < v7x 64 MiB physical


def _round_up(x, m):
    return (x + m - 1) // m * m


def _cost(flops, bytes_accessed):
    return pl.CostEstimate(flops=int(flops), transcendentals=0,
                           bytes_accessed=int(bytes_accessed))


def _valid_mask(M, Wp, W, C):
    # Width-padded row layout: the last (Wp - W) columns of each image row are junk.
    # Built in-kernel (a few VPU ops) instead of DMAing a 1/128-lane-dense mask array.
    row = lax.broadcasted_iota(jnp.int32, (M, C), 0)
    return (row % Wp) < W


def _fill_slab(src_ref, slab_ref, *, M, Wp, C):
    # In-VMEM im2col: write the 9 shifted slices of the zero-padded plane side by side so the
    # 3x3 conv becomes a single MXU matmul with contraction depth K = 9*C.
    for t in range(9):
        off = (t // 3) * Wp + (t % 3)
        slab_ref[:, t * C:(t + 1) * C] = src_ref[off:off + M, :]


# ----------------------------- Pallas kernels -----------------------------

def _stage1_kernel(xf_ref, w1_ref, wd_ref, y1_ref, r_ref, st1_ref, std_ref,
                   slab_ref, *, Wp, W):
    """conv1 (3x3) and 1x1 downsample conv on the padded input plane + partial BN moments.

    xf_ref : (LPAD, Cpi) bf16   zero-padded flattened image (row p = ph*Wp + pw)
    w1_ref : (9*Cpi, Cpo) bf16  conv1 weights, taps flattened into the contraction dim
    wd_ref : (Cpi, Cpo)   bf16  1x1 downsample weights
    y1/r   : (M, Cpo)     bf16  conv outputs in width-padded row layout (junk cols zeroed)
    st*    : (2, Cpo)     f32   row0 = sum, row1 = sum of squares (valid positions only)
    """
    M, C = y1_ref.shape
    mask = _valid_mask(M, Wp, W, C)

    _fill_slab(xf_ref, slab_ref, M=M, Wp=Wp, C=xf_ref.shape[1])
    acc = jnp.dot(slab_ref[...], w1_ref[...], preferred_element_type=jnp.float32)
    acc = jnp.where(mask, acc, 0.0)
    y1b = acc.astype(jnp.bfloat16)
    y1_ref[...] = y1b
    y1f = y1b.astype(jnp.float32)                 # moments of the value actually stored
    st1_ref[0:1, :] = jnp.sum(y1f, axis=0, keepdims=True)
    st1_ref[1:2, :] = jnp.sum(y1f * y1f, axis=0, keepdims=True)

    # 1x1 downsample: valid pixels are one shifted slice of the same resident plane.
    r = jnp.dot(xf_ref[Wp + 1:Wp + 1 + M, :], wd_ref[...],
                preferred_element_type=jnp.float32)
    r = jnp.where(mask, r, 0.0)
    rb = r.astype(jnp.bfloat16)
    r_ref[...] = rb
    rf = rb.astype(jnp.float32)
    std_ref[0:1, :] = jnp.sum(rf, axis=0, keepdims=True)
    std_ref[1:2, :] = jnp.sum(rf * rf, axis=0, keepdims=True)


def _stage2_kernel(y1_ref, s1_ref, t1_ref, w2_ref, y2_ref, st2_ref,
                   apad_ref, slab_ref, *, Wp, W):
    """Fused bn1-apply + ReLU -> conv2 (3x3, single MXU dot) + partial BN moments."""
    M, C = y2_ref.shape
    LPAD = apad_ref.shape[0]
    mask = _valid_mask(M, Wp, W, C)

    # bn1 apply + ReLU; junk columns forced back to exact zero so they land as zeros on the
    # pad positions of the rebuilt plane.
    a = jnp.maximum(y1_ref[...].astype(jnp.float32) * s1_ref[...] + t1_ref[...], 0.0)
    a = jnp.where(mask, a, 0.0)

    # Rebuild the zero-padded activation plane in bf16 VMEM scratch.  Only the border rows are
    # zeroed each step (the interior is fully overwritten).  Not gated on program_id==0: with
    # megacore sharding the second core never sees b == 0.
    apad_ref[0:Wp + 1, :] = jnp.zeros((Wp + 1, C), jnp.bfloat16)
    apad_ref[Wp + 1 + M:, :] = jnp.zeros((LPAD - (Wp + 1 + M), C), jnp.bfloat16)
    apad_ref[Wp + 1:Wp + 1 + M, :] = a.astype(jnp.bfloat16)

    _fill_slab(apad_ref, slab_ref, M=M, Wp=Wp, C=C)
    acc = jnp.dot(slab_ref[...], w2_ref[...], preferred_element_type=jnp.float32)
    acc = jnp.where(mask, acc, 0.0)
    y2b = acc.astype(jnp.bfloat16)
    y2_ref[...] = y2b
    y2f = y2b.astype(jnp.float32)
    st2_ref[0:1, :] = jnp.sum(y2f, axis=0, keepdims=True)
    st2_ref[1:2, :] = jnp.sum(y2f * y2f, axis=0, keepdims=True)


def _stage3_kernel(y2_ref, r_ref, s2_ref, t2_ref, sd_ref, td_ref, o_ref, *, Wp):
    """bn2 + shortcut-BN + residual add + ReLU; compact away junk columns -> (hb, W, Cpo)."""
    hb, W, _ = o_ref.shape
    out = y2_ref[...].astype(jnp.float32) * s2_ref[...] + t2_ref[...]
    res = r_ref[...].astype(jnp.float32) * sd_ref[...] + td_ref[...]
    v = jnp.maximum(out + res, 0.0)                    # (hb*Wp, Cpo) width-padded layout
    for h in range(hb):                                # drop the 2 junk columns per image row
        o_ref[h] = v[h * Wp:h * Wp + W, :]


# ----------------------------- wrapper (glue) ------------------------------

def _affine_from_stats(stats, gamma, beta, count):
    """(B, 2, Cp) partial moments -> per-channel scale/shift (training-mode BatchNorm)."""
    total = jnp.sum(stats[:, 0, :], axis=0)
    total_sq = jnp.sum(stats[:, 1, :], axis=0)
    mean = total / count
    var = jnp.maximum(total_sq / count - mean * mean, 0.0)   # biased batch variance
    scale = gamma * lax.rsqrt(var + _EPS)
    shift = beta - mean * scale
    return scale.reshape(1, -1), shift.reshape(1, -1)


def _pick_row_tiles(H, Wp):
    # give each TensorCore more than one pipelined grid step (v7x megacore) when geometry allows
    for nt in (4, 2):
        if H % nt == 0 and ((H // nt) * Wp) % 8 == 0:
            return nt
    return 1


def basic_block_forward(x_nchw, params):
    """BasicBlock forward with in_channels != out_channels (1x1 downsample shortcut, stride 1)."""
    B, Cin, H, W = x_nchw.shape
    Cout = params["w1"].shape[-1]
    Cpi = _round_up(Cin, 128)        # lane-dense channel padding (zero-filled channels)
    Cpo = _round_up(Cout, 128)
    Hp, Wp = H + 2, W + 2
    M = H * Wp                       # rows per image in the width-padded output layout
    LPAD = _round_up(Hp * Wp + 2, 8) # flattened padded plane + shifted-slice headroom
    count = B * H * W

    # NCHW -> NHWC -> zero-pad space + channels -> flatten (row p = ph*Wp + pw) -> bf16
    x = jnp.transpose(x_nchw, (0, 2, 3, 1)).astype(jnp.float32)
    xp = jnp.pad(x, ((0, 0), (1, 1), (1, 1), (0, Cpi - Cin)))
    xf = jnp.pad(xp.reshape(B, Hp * Wp, Cpi),
                 ((0, 0), (0, LPAD - Hp * Wp), (0, 0))).astype(jnp.bfloat16)

    # Weights: zero-pad channels, flatten the 9 taps into the contraction dim, bf16.
    # Conv biases (b1/b2/bd) are intentionally NOT applied: a per-channel constant added before
    # training-mode BatchNorm is exactly cancelled by the mean subtraction.
    w1 = jnp.pad(params["w1"], ((0, 0), (0, 0), (0, Cpi - Cin), (0, Cpo - Cout))
                 ).reshape(9 * Cpi, Cpo).astype(jnp.bfloat16)
    w2 = jnp.pad(params["w2"], ((0, 0), (0, 0), (0, Cpo - Cout), (0, Cpo - Cout))
                 ).reshape(9 * Cpo, Cpo).astype(jnp.bfloat16)
    wd = jnp.pad(params["wd"], ((0, Cpi - Cin), (0, Cpo - Cout))).astype(jnp.bfloat16)

    padc = lambda v: jnp.pad(v.reshape(-1), (0, Cpo - Cout))   # zero gamma/beta on pad channels
    g1, be1 = padc(params["g1"]), padc(params["be1"])
    g2, be2 = padc(params["g2"]), padc(params["be2"])
    gd, bed = padc(params["gd"]), padc(params["bed"])

    cparams = pltpu.CompilerParams(dimension_semantics=("parallel",),
                                   vmem_limit_bytes=_VMEM_LIMIT)

    # ---- stage 1: conv1 + 1x1 downsample, partial BN moments ----------------------------
    y1, r, st1, std = pl.pallas_call(
        functools.partial(_stage1_kernel, Wp=Wp, W=W),
        grid=(B,),
        in_specs=[
            pl.BlockSpec((None, LPAD, Cpi), lambda b: (b, 0, 0)),
            pl.BlockSpec((9 * Cpi, Cpo), lambda b: (0, 0)),
            pl.BlockSpec((Cpi, Cpo), lambda b: (0, 0)),
        ],
        out_specs=[
            pl.BlockSpec((None, M, Cpo), lambda b: (b, 0, 0)),
            pl.BlockSpec((None, M, Cpo), lambda b: (b, 0, 0)),
            pl.BlockSpec((None, 2, Cpo), lambda b: (b, 0, 0)),
            pl.BlockSpec((None, 2, Cpo), lambda b: (b, 0, 0)),
        ],
        out_shape=[
            jax.ShapeDtypeStruct((B, M, Cpo), jnp.bfloat16),
            jax.ShapeDtypeStruct((B, M, Cpo), jnp.bfloat16),
            jax.ShapeDtypeStruct((B, 2, Cpo), jnp.float32),
            jax.ShapeDtypeStruct((B, 2, Cpo), jnp.float32),
        ],
        scratch_shapes=[pltpu.VMEM((M, 9 * Cpi), jnp.bfloat16)],
        compiler_params=cparams,
        cost_estimate=_cost(
            flops=2 * B * M * Cpo * (9 * Cpi + Cpi) + 10 * B * M * Cpo,
            bytes_accessed=2 * B * LPAD * Cpi + 2 * (9 * Cpi + Cpi) * Cpo
                           + 2 * 2 * B * M * Cpo + 4 * 4 * B * Cpo),
    )(xf, w1, wd)

    scale1, shift1 = _affine_from_stats(st1, g1, be1, count)
    scaled, shiftd = _affine_from_stats(std, gd, bed, count)

    # ---- stage 2: fused bn1+relu -> conv2, partial BN moments ---------------------------
    y2, st2 = pl.pallas_call(
        functools.partial(_stage2_kernel, Wp=Wp, W=W),
        grid=(B,),
        in_specs=[
            pl.BlockSpec((None, M, Cpo), lambda b: (b, 0, 0)),   # y1
            pl.BlockSpec((1, Cpo), lambda b: (0, 0)),            # scale1
            pl.BlockSpec((1, Cpo), lambda b: (0, 0)),            # shift1
            pl.BlockSpec((9 * Cpo, Cpo), lambda b: (0, 0)),      # w2
        ],
        out_specs=[
            pl.BlockSpec((None, M, Cpo), lambda b: (b, 0, 0)),
            pl.BlockSpec((None, 2, Cpo), lambda b: (b, 0, 0)),
        ],
        out_shape=[
            jax.ShapeDtypeStruct((B, M, Cpo), jnp.bfloat16),
            jax.ShapeDtypeStruct((B, 2, Cpo), jnp.float32),
        ],
        scratch_shapes=[pltpu.VMEM((LPAD, Cpo), jnp.bfloat16),     # padded activation plane
                        pltpu.VMEM((M, 9 * Cpo), jnp.bfloat16)],   # im2col slab
        compiler_params=cparams,
        cost_estimate=_cost(
            flops=2 * B * M * Cpo * 9 * Cpo + 12 * B * M * Cpo,
            bytes_accessed=2 * 2 * B * M * Cpo + 2 * 9 * Cpo * Cpo + 4 * 2 * B * Cpo),
    )(y1, scale1, shift1, w2)

    scale2, shift2 = _affine_from_stats(st2, g2, be2, count)

    # ---- stage 3: bn2 / shortcut-BN + residual add + relu, junk-column compaction -------
    nt = _pick_row_tiles(H, Wp)
    hb = H // nt
    out_nhwc = pl.pallas_call(
        functools.partial(_stage3_kernel, Wp=Wp),
        grid=(B, nt),
        in_specs=[
            pl.BlockSpec((None, hb * Wp, Cpo), lambda b, t: (b, t, 0)),
            pl.BlockSpec((None, hb * Wp, Cpo), lambda b, t: (b, t, 0)),
            pl.BlockSpec((1, Cpo), lambda b, t: (0, 0)),
            pl.BlockSpec((1, Cpo), lambda b, t: (0, 0)),
            pl.BlockSpec((1, Cpo), lambda b, t: (0, 0)),
            pl.BlockSpec((1, Cpo), lambda b, t: (0, 0)),
        ],
        out_specs=pl.BlockSpec((None, hb, W, Cpo), lambda b, t: (b, t, 0, 0)),
        out_shape=jax.ShapeDtypeStruct((B, H, W, Cpo), jnp.float32),
        compiler_params=pltpu.CompilerParams(
            dimension_semantics=("parallel", "parallel"),
            vmem_limit_bytes=_VMEM_LIMIT),
        cost_estimate=_cost(flops=7 * B * M * Cpo,
                            bytes_accessed=2 * 2 * B * M * Cpo + 4 * B * H * W * Cpo),
    )(y2, r, scale2, shift2, scaled, shiftd)

    # TODO(synk): a fused NHWC consumer would use out_nhwc[..., :Cout] directly; the channel
    # slice + NCHW transpose below is kept only to match the PyTorch interface.
    return jnp.transpose(out_nhwc[..., :Cout], (0, 3, 1, 2))


# ------------------------ deterministic parameters -------------------------

def init_params(key, cin, cout):
    ks = jax.random.split(key, 12)
    f32 = jnp.float32
    return {
        "w1": 0.1 * jax.random.normal(ks[0], (3, 3, cin, cout), f32),   # conv1 (HWIO)
        "b1": 0.05 * jax.random.normal(ks[1], (cout,), f32),            # cancelled by bn1
        "g1": 1.0 + 0.1 * jax.random.normal(ks[2], (cout,), f32),
        "be1": 0.1 * jax.random.normal(ks[3], (cout,), f32),
        "w2": 0.1 * jax.random.normal(ks[4], (3, 3, cout, cout), f32),  # conv2 (HWIO)
        "b2": 0.05 * jax.random.normal(ks[5], (cout,), f32),            # cancelled by bn2
        "g2": 1.0 + 0.1 * jax.random.normal(ks[6], (cout,), f32),
        "be2": 0.1 * jax.random.normal(ks[7], (cout,), f32),
        "wd": 0.1 * jax.random.normal(ks[8], (cin, cout), f32),         # 1x1 downsample
        "bd": 0.05 * jax.random.normal(ks[9], (cout,), f32),            # cancelled by bn_d
        "gd": 1.0 + 0.1 * jax.random.normal(ks[10], (cout,), f32),
        "bed": 0.1 * jax.random.normal(ks[11], (cout,), f32),
    }


# ------------------------------ pure-JAX ref --------------------------------

def _q(t):   # matches the kernels' bf16 storage of intermediate activations
    return t.astype(jnp.bfloat16).astype(jnp.float32)


def _ref_bn(y, g, b):
    mean = jnp.mean(y, axis=(0, 1, 2), keepdims=True)
    var = jnp.maximum(jnp.mean(y * y, axis=(0, 1, 2), keepdims=True) - mean * mean, 0.0)
    scale = g.reshape(1, 1, 1, -1) * lax.rsqrt(var + _EPS)
    return y * scale + (b.reshape(1, 1, 1, -1) - mean * scale)


def basic_block_reference(x_nchw, p):
    """Pure-JAX reference with the kernels' precision policy (bf16 conv inputs, bf16 storage of
    intermediates, f32 BN).  Conv biases are omitted: a per-channel constant before
    training-mode BatchNorm is exactly cancelled by the mean subtraction."""
    x = jnp.transpose(x_nchw, (0, 2, 3, 1))
    dn = ("NHWC", "HWIO", "NHWC")

    def conv(v, w, pad):
        return lax.conv_general_dilated(v.astype(jnp.bfloat16), w.astype(jnp.bfloat16),
                                        (1, 1), pad, dimension_numbers=dn,
                                        preferred_element_type=jnp.float32)

    y1 = _q(conv(x, p["w1"], "SAME"))
    a = jax.nn.relu(_ref_bn(y1, p["g1"], p["be1"]))
    y2 = _q(conv(a, p["w2"], "SAME"))
    out = _ref_bn(y2, p["g2"], p["be2"])
    wd = p["wd"].reshape(1, 1, *p["wd"].shape)
    res = _ref_bn(_q(conv(x, wd, "VALID")), p["gd"], p["bed"])
    return jnp.transpose(jax.nn.relu(out + res), (0, 3, 1, 2))


# ---------------------------------- main ------------------------------------

if __name__ == "__main__":
    B, Cin, Cout, H, W = 2, 4, 8, 16, 16
    key = jax.random.PRNGKey(0)
    kx, kp = jax.random.split(key)
    x = jax.random.normal(kx, (B, Cin, H, W), jnp.float32)
    params = init_params(kp, Cin, Cout)

    fwd = jax.jit(basic_block_forward)
    y = jax.block_until_ready(fwd(x, params))
    assert y.shape == (B, Cout, H, W), y.shape

    y_ref = basic_block_reference(x, params)
    max_err = float(jnp.max(jnp.abs(y - y_ref)))
    # Intermediates are stored in bf16 (per perf guidance); tolerance covers a couple of bf16
    # ULPs of rounding-tie divergence between the Pallas dots and the XLA conv reference.
    if max_err > 2e-2:
        raise AssertionError(f"mismatch vs reference: max abs err {max_err}")
    print("KERNEL_OK")
</pallas_src>

<mosaic_0001>
module attributes {stable_mosaic.version = 11 : i64} {
  func.func @_stage1_kernel(%arg0: i32, %arg1: memref<1x328x128xbf16, #tpu.memory_space<vmem>>, %arg2: memref<1152x128xbf16, #tpu.memory_space<vmem>>, %arg3: memref<128x128xbf16, #tpu.memory_space<vmem>>, %arg4: memref<1x288x128xbf16, #tpu.memory_space<vmem>>, %arg5: memref<1x288x128xbf16, #tpu.memory_space<vmem>>, %arg6: memref<1x2x128xf32, #tpu.memory_space<vmem>>, %arg7: memref<1x2x128xf32, #tpu.memory_space<vmem>>, %arg8: memref<288x1152xbf16, #tpu.memory_space<vmem>>) attributes {dimension_semantics = [#tpu.dimension_semantics<parallel>], iteration_bounds = array<i64: 2>, scalar_prefetch = 0 : i64, scratch_operands = 1 : i64, tpu.core_type = #tpu.core_type<tc>, window_params = [{transform_indices = @transform_0, window_bounds = array<i64: 1, 328, 128>}, {pipeline_mode = #tpu.pipeline_mode<synchronous>, transform_indices = @transform_1, window_bounds = array<i64: 1152, 128>}, {pipeline_mode = #tpu.pipeline_mode<synchronous>, transform_indices = @transform_2, window_bounds = array<i64: 128, 128>}, {transform_indices = @transform_3, window_bounds = array<i64: 1, 288, 128>}, {transform_indices = @transform_4, window_bounds = array<i64: 1, 288, 128>}, {transform_indices = @transform_5, window_bounds = array<i64: 1, 2, 128>}, {transform_indices = @transform_6, window_bounds = array<i64: 1, 2, 128>}]} {
    %0 = tpu.iota {dimensions = array<i32: 0>} : vector<288x128xi32>
    %c18_i32 = arith.constant 18 : i32
    %c0_i32 = arith.constant 0 : i32
    %1 = arith.cmpi eq, %c18_i32, %c0_i32 : i32
    %c1_i32 = arith.constant 1 : i32
    %2 = arith.select %1, %c1_i32, %c18_i32 : i32
    %3 = vector.broadcast %2 : i32 to vector<288x128xi32>
    %4 = arith.remsi %0, %3 : vector<288x128xi32>
    %c0_i32_0 = arith.constant 0 : i32
    %5 = vector.broadcast %c0_i32_0 : i32 to vector<288x128xi32>
    %6 = arith.cmpi ne, %4, %5 : vector<288x128xi32>
    %c0_i32_1 = arith.constant 0 : i32
    %7 = vector.broadcast %c0_i32_1 : i32 to vector<288x128xi32>
    %8 = arith.cmpi slt, %4, %7 : vector<288x128xi32>
    %c0_i32_2 = arith.constant 0 : i32
    %9 = arith.cmpi slt, %2, %c0_i32_2 : i32
    %10 = vector.broadcast %9 : i1 to vector<288x128xi1>
    %11 = vector.broadcast %10 : vector<288x128xi1> to vector<288x128xi1>
    %12 = arith.xori %8, %11 : vector<288x128xi1>
    %13 = arith.andi %12, %6 : vector<288x128xi1>
    %14 = vector.broadcast %2 : i32 to vector<288x128xi32>
    %15 = arith.addi %4, %14 : vector<288x128xi32>
    %16 = arith.select %13, %15, %4 : vector<288x128xi1>, vector<288x128xi32>
    %c16_i32 = arith.constant 16 : i32
    %17 = vector.broadcast %c16_i32 : i32 to vector<288x128xi32>
    %18 = arith.cmpi slt, %16, %17 : vector<288x128xi32>
    %c0 = arith.constant 0 : index
    %c0_3 = arith.constant 0 : index
    %c0_4 = arith.constant 0 : index
    %19 = vector.load %arg1[%c0, %c0_3, %c0_4] : memref<1x328x128xbf16, #tpu.memory_space<vmem>>, vector<1x288x128xbf16>
    %20 = vector.shape_cast %19 : vector<1x288x128xbf16> to vector<288x128xbf16>
    %c0_5 = arith.constant 0 : index
    %c0_6 = arith.constant 0 : index
    %21 = vector.load %arg8[%c0_5, %c0_6] : memref<288x1152xbf16, #tpu.memory_space<vmem>>, vector<288x128xbf16>
    tpu.vector_store %arg8[%c0_5, %c0_6], %20 {strides = array<i32>} : memref<288x1152xbf16, #tpu.memory_space<vmem>>, vector<288x128xbf16>,
    %c0_7 = arith.constant 0 : index
    %c1 = arith.constant 1 : index
    %c0_8 = arith.constant 0 : index
    %22 = vector.load %arg1[%c0_7, %c1, %c0_8] : memref<1x328x128xbf16, #tpu.memory_space<vmem>>, vector<1x288x128xbf16>
    %23 = vector.shape_cast %22 : vector<1x288x128xbf16> to vector<288x128xbf16>
    %c0_9 = arith.constant 0 : index
    %c128 = arith.constant 128 : index
    %24 = vector.load %arg8[%c0_9, %c128] : memref<288x1152xbf16, #tpu.memory_space<vmem>>, vector<288x128xbf16>
    tpu.vector_store %arg8[%c0_9, %c128], %23 {strides = array<i32>} : memref<288x1152xbf16, #tpu.memory_space<vmem>>, vector<288x128xbf16>,
    %c0_10 = arith.constant 0 : index
    %c2 = arith.constant 2 : index
    %c0_11 = arith.constant 0 : index
    %25 = vector.load %arg1[%c0_10, %c2, %c0_11] : memref<1x328x128xbf16, #tpu.memory_space<vmem>>, vector<1x288x128xbf16>
    %26 = vector.shape_cast %25 : vector<1x288x128xbf16> to vector<288x128xbf16>
    %c0_12 = arith.constant 0 : index
    %c256 = arith.constant 256 : index
    %27 = vector.load %arg8[%c0_12, %c256] : memref<288x1152xbf16, #tpu.memory_space<vmem>>, vector<288x128xbf16>
    tpu.vector_store %arg8[%c0_12, %c256], %26 {strides = array<i32>} : memref<288x1152xbf16, #tpu.memory_space<vmem>>, vector<288x128xbf16>,
    %c0_13 = arith.constant 0 : index
    %c18 = arith.constant 18 : index
    %c0_14 = arith.constant 0 : index
    %28 = vector.load %arg1[%c0_13, %c18, %c0_14] : memref<1x328x128xbf16, #tpu.memory_space<vmem>>, vector<1x288x128xbf16>
    %29 = vector.shape_cast %28 : vector<1x288x128xbf16> to vector<288x128xbf16>
    %c0_15 = arith.constant 0 : index
    %c384 = arith.constant 384 : index
    %30 = vector.load %arg8[%c0_15, %c384] : memref<288x1152xbf16, #tpu.memory_space<vmem>>, vector<288x128xbf16>
    tpu.vector_store %arg8[%c0_15, %c384], %29 {strides = array<i32>} : memref<288x1152xbf16, #tpu.memory_space<vmem>>, vector<288x128xbf16>,
    %c0_16 = arith.constant 0 : index
    %c19 = arith.constant 19 : index
    %c0_17 = arith.constant 0 : index
    %31 = vector.load %arg1[%c0_16, %c19, %c0_17] : memref<1x328x128xbf16, #tpu.memory_space<vmem>>, vector<1x288x128xbf16>
    %32 = vector.shape_cast %31 : vector<1x288x128xbf16> to vector<288x128xbf16>
    %c0_18 = arith.constant 0 : index
    %c512 = arith.constant 512 : index
    %33 = vector.load %arg8[%c0_18, %c512] : memref<288x1152xbf16, #tpu.memory_space<vmem>>, vector<288x128xbf16>
    tpu.vector_store %arg8[%c0_18, %c512], %32 {strides = array<i32>} : memref<288x1152xbf16, #tpu.memory_space<vmem>>, vector<288x128xbf16>,
    %c0_19 = arith.constant 0 : index
    %c20 = arith.constant 20 : index
    %c0_20 = arith.constant 0 : index
    %34 = vector.load %arg1[%c0_19, %c20, %c0_20] : memref<1x328x128xbf16, #tpu.memory_space<vmem>>, vector<1x288x128xbf16>
    %35 = vector.shape_cast %34 : vector<1x288x128xbf16> to vector<288x128xbf16>
    %c0_21 = arith.constant 0 : index
    %c640 = arith.constant 640 : index
    %36 = vector.load %arg8[%c0_21, %c640] : memref<288x1152xbf16, #tpu.memory_space<vmem>>, vector<288x128xbf16>
    tpu.vector_store %arg8[%c0_21, %c640], %35 {strides = array<i32>} : memref<288x1152xbf16, #tpu.memory_space<vmem>>, vector<288x128xbf16>,
    %c0_22 = arith.constant 0 : index
    %c36 = arith.constant 36 : index
    %c0_23 = arith.constant 0 : index
    %37 = vector.load %arg1[%c0_22, %c36, %c0_23] : memref<1x328x128xbf16, #tpu.memory_space<vmem>>, vector<1x288x128xbf16>
    %38 = vector.shape_cast %37 : vector<1x288x128xbf16> to vector<288x128xbf16>
    %c0_24 = arith.constant 0 : index
    %c768 = arith.constant 768 : index
    %39 = vector.load %arg8[%c0_24, %c768] : memref<288x1152xbf16, #tpu.memory_space<vmem>>, vector<288x128xbf16>
    tpu.vector_store %arg8[%c0_24, %c768], %38 {strides = array<i32>} : memref<288x1152xbf16, #tpu.memory_space<vmem>>, vector<288x128xbf16>,
    %c0_25 = arith.constant 0 : index
    %c37 = arith.constant 37 : index
    %c0_26 = arith.constant 0 : index
    %40 = vector.load %arg1[%c0_25, %c37, %c0_26] : memref<1x328x128xbf16, #tpu.memory_space<vmem>>, vector<1x288x128xbf16>
    %41 = vector.shape_cast %40 : vector<1x288x128xbf16> to vector<288x128xbf16>
    %c0_27 = arith.constant 0 : index
    %c896 = arith.constant 896 : index
    %42 = vector.load %arg8[%c0_27, %c896] : memref<288x1152xbf16, #tpu.memory_space<vmem>>, vector<288x128xbf16>
    tpu.vector_store %arg8[%c0_27, %c896], %41 {strides = array<i32>} : memref<288x1152xbf16, #tpu.memory_space<vmem>>, vector<288x128xbf16>,
    %c0_28 = arith.constant 0 : index
    %c38 = arith.constant 38 : index
    %c0_29 = arith.constant 0 : index
    %43 = vector.load %arg1[%c0_28, %c38, %c0_29] : memref<1x328x128xbf16, #tpu.memory_space<vmem>>, vector<1x288x128xbf16>
    %44 = vector.shape_cast %43 : vector<1x288x128xbf16> to vector<288x128xbf16>
    %c0_30 = arith.constant 0 : index
    %c1024 = arith.constant 1024 : index
    %45 = vector.load %arg8[%c0_30, %c1024] : memref<288x1152xbf16, #tpu.memory_space<vmem>>, vector<288x128xbf16>
    tpu.vector_store %arg8[%c0_30, %c1024], %44 {strides = array<i32>} : memref<288x1152xbf16, #tpu.memory_space<vmem>>, vector<288x128xbf16>,
    %c0_31 = arith.constant 0 : index
    %c0_32 = arith.constant 0 : index
    %46 = vector.load %arg8[%c0_31, %c0_32] : memref<288x1152xbf16, #tpu.memory_space<vmem>>, vector<288x1152xbf16>
    %c0_33 = arith.constant 0 : index
    %c0_34 = arith.constant 0 : index
    %47 = vector.load %arg2[%c0_33, %c0_34] : memref<1152x128xbf16, #tpu.memory_space<vmem>>, vector<1152x128xbf16>
    %cst = arith.constant dense<0.000000e+00> : vector<288x128xf32>
    %48 = tpu.matmul %46, %47, %cst {dimension_numbers = #tpu.dot_dimension_numbers<[1], [0], [0], [1], [0, 0, 1, 1], [], []>} : vector<288x1152xbf16>, vector<1152x128xbf16>, vector<288x128xf32> -> vector<288x128xf32>
    %cst_35 = arith.constant 0.000000e+00 : f32
    %49 = vector.broadcast %cst_35 : f32 to vector<288x128xf32>
    %50 = arith.select %18, %48, %49 : vector<288x128xi1>, vector<288x128xf32>
    %51 = arith.truncf %50 : vector<288x128xf32> to vector<288x128xbf16>
    %c0_36 = arith.constant 0 : index
    %c0_37 = arith.constant 0 : index
    %c0_38 = arith.constant 0 : index
    %52 = vector.load %arg4[%c0_36, %c0_37, %c0_38] : memref<1x288x128xbf16, #tpu.memory_space<vmem>>, vector<1x288x128xbf16>
    %53 = vector.shape_cast %52 : vector<1x288x128xbf16> to vector<288x128xbf16>
    %54 = vector.shape_cast %51 : vector<288x128xbf16> to vector<1x288x128xbf16>
    tpu.vector_store %arg4[%c0_36, %c0_37, %c0_38], %54 {strides = array<i32>} : memref<1x288x128xbf16, #tpu.memory_space<vmem>>, vector<1x288x128xbf16>,
    %55 = arith.extf %51 : vector<288x128xbf16> to vector<288x128xf32>
    %cst_39 = arith.constant dense<0.000000e+00> : vector<128xf32>
    %56 = vector.multi_reduction <add>, %55, %cst_39 [0] : vector<288x128xf32> to vector<128xf32>
    %57 = vector.shape_cast %56 : vector<128xf32> to vector<1x128xf32>
    %c0_40 = arith.constant 0 : index
    %c0_41 = arith.constant 0 : index
    %c0_42 = arith.constant 0 : index
    %58 = vector.load %arg6[%c0_40, %c0_41, %c0_42] : memref<1x2x128xf32, #tpu.memory_space<vmem>>, vector<1x1x128xf32>
    %59 = vector.shape_cast %58 : vector<1x1x128xf32> to vector<1x128xf32>
    %60 = vector.shape_cast %57 : vector<1x128xf32> to vector<1x1x128xf32>
    tpu.vector_store %arg6[%c0_40, %c0_41, %c0_42], %60 {strides = array<i32>} : memref<1x2x128xf32, #tpu.memory_space<vmem>>, vector<1x1x128xf32>,
    %61 = arith.mulf %55, %55 : vector<288x128xf32>
    %cst_43 = arith.constant dense<0.000000e+00> : vector<128xf32>
    %62 = vector.multi_reduction <add>, %61, %cst_43 [0] : vector<288x128xf32> to vector<128xf32>
    %63 = vector.shape_cast %62 : vector<128xf32> to vector<1x128xf32>
    %c0_44 = arith.constant 0 : index
    %c1_45 = arith.constant 1 : index
    %c0_46 = arith.constant 0 : index
    %64 = vector.load %arg6[%c0_44, %c1_45, %c0_46] : memref<1x2x128xf32, #tpu.memory_space<vmem>>, vector<1x1x128xf32>
    %65 = vector.shape_cast %64 : vector<1x1x128xf32> to vector<1x128xf32>
    %66 = vector.shape_cast %63 : vector<1x128xf32> to vector<1x1x128xf32>
    tpu.vector_store %arg6[%c0_44, %c1_45, %c0_46], %66 {strides = array<i32>} : memref<1x2x128xf32, #tpu.memory_space<vmem>>, vector<1x1x128xf32>,
    %c0_47 = arith.constant 0 : index
    %c19_48 = arith.constant 19 : index
    %c0_49 = arith.constant 0 : index
    %67 = vector.load %arg1[%c0_47, %c19_48, %c0_49] : memref<1x328x128xbf16, #tpu.memory_space<vmem>>, vector<1x288x128xbf16>
    %68 = vector.shape_cast %67 : vector<1x288x128xbf16> to vector<288x128xbf16>
    %c0_50 = arith.constant 0 : index
    %c0_51 = arith.constant 0 : index
    %69 = vector.load %arg3[%c0_50, %c0_51] : memref<128x128xbf16, #tpu.memory_space<vmem>>, vector<128x128xbf16>
    %cst_52 = arith.constant dense<0.000000e+00> : vector<288x128xf32>
    %70 = tpu.matmul %68, %69, %cst_52 {dimension_numbers = #tpu.dot_dimension_numbers<[1], [0], [0], [1], [0, 0, 1, 1], [], []>} : vector<288x128xbf16>, vector<128x128xbf16>, vector<288x128xf32> -> vector<288x128xf32>
    %cst_53 = arith.constant 0.000000e+00 : f32
    %71 = vector.broadcast %cst_53 : f32 to vector<288x128xf32>
    %72 = arith.select %18, %70, %71 : vector<288x128xi1>, vector<288x128xf32>
    %73 = arith.truncf %72 : vector<288x128xf32> to vector<288x128xbf16>
    %c0_54 = arith.constant 0 : index
    %c0_55 = arith.constant 0 : index
    %c0_56 = arith.constant 0 : index
    %74 = vector.load %arg5[%c0_54, %c0_55, %c0_56] : memref<1x288x128xbf16, #tpu.memory_space<vmem>>, vector<1x288x128xbf16>
    %75 = vector.shape_cast %74 : vector<1x288x128xbf16> to vector<288x128xbf16>
    %76 = vector.shape_cast %73 : vector<288x128xbf16> to vector<1x288x128xbf16>
    tpu.vector_store %arg5[%c0_54, %c0_55, %c0_56], %76 {strides = array<i32>} : memref<1x288x128xbf16, #tpu.memory_space<vmem>>, vector<1x288x128xbf16>,
    %77 = arith.extf %73 : vector<288x128xbf16> to vector<288x128xf32>
    %cst_57 = arith.constant dense<0.000000e+00> : vector<128xf32>
    %78 = vector.multi_reduction <add>, %77, %cst_57 [0] : vector<288x128xf32> to vector<128xf32>
    %79 = vector.shape_cast %78 : vector<128xf32> to vector<1x128xf32>
    %c0_58 = arith.constant 0 : index
    %c0_59 = arith.constant 0 : index
    %c0_60 = arith.constant 0 : index
    %80 = vector.load %arg7[%c0_58, %c0_59, %c0_60] : memref<1x2x128xf32, #tpu.memory_space<vmem>>, vector<1x1x128xf32>
    %81 = vector.shape_cast %80 : vector<1x1x128xf32> to vector<1x128xf32>
    %82 = vector.shape_cast %79 : vector<1x128xf32> to vector<1x1x128xf32>
    tpu.vector_store %arg7[%c0_58, %c0_59, %c0_60], %82 {strides = array<i32>} : memref<1x2x128xf32, #tpu.memory_space<vmem>>, vector<1x1x128xf32>,
    %83 = arith.mulf %77, %77 : vector<288x128xf32>
    %cst_61 = arith.constant dense<0.000000e+00> : vector<128xf32>
    %84 = vector.multi_reduction <add>, %83, %cst_61 [0] : vector<288x128xf32> to vector<128xf32>
    %85 = vector.shape_cast %84 : vector<128xf32> to vector<1x128xf32>
    %c0_62 = arith.constant 0 : index
    %c1_63 = arith.constant 1 : index
    %c0_64 = arith.constant 0 : index
    %86 = vector.load %arg7[%c0_62, %c1_63, %c0_64] : memref<1x2x128xf32, #tpu.memory_space<vmem>>, vector<1x1x128xf32>
    %87 = vector.shape_cast %86 : vector<1x1x128xf32> to vector<1x128xf32>
    %88 = vector.shape_cast %85 : vector<1x128xf32> to vector<1x1x128xf32>
    tpu.vector_store %arg7[%c0_62, %c1_63, %c0_64], %88 {strides = array<i32>} : memref<1x2x128xf32, #tpu.memory_space<vmem>>, vector<1x1x128xf32>,
    return
  }
  func.func @transform_0(%arg0: i32) -> (i32, i32, i32) {
    %c0_i32 = arith.constant 0 : i32
    %c0_i32_0 = arith.constant 0 : i32
    %c0_i32_1 = arith.constant 0 : i32
    return %arg0, %c0_i32, %c0_i32_0 : i32, i32, i32
  }
  func.func @transform_1(%arg0: i32) -> (i32, i32) {
    %c0_i32 = arith.constant 0 : i32
    %c0_i32_0 = arith.constant 0 : i32
    %c0_i32_1 = arith.constant 0 : i32
    return %c0_i32, %c0_i32_0 : i32, i32
  }
  func.func @transform_2(%arg0: i32) -> (i32, i32) {
    %c0_i32 = arith.constant 0 : i32
    %c0_i32_0 = arith.constant 0 : i32
    %c0_i32_1 = arith.constant 0 : i32
    return %c0_i32, %c0_i32_0 : i32, i32
  }
  func.func @transform_3(%arg0: i32) -> (i32, i32, i32) {
    %c0_i32 = arith.constant 0 : i32
    %c0_i32_0 = arith.constant 0 : i32
    %c0_i32_1 = arith.constant 0 : i32
    return %arg0, %c0_i32, %c0_i32_0 : i32, i32, i32
  }
  func.func @transform_4(%arg0: i32) -> (i32, i32, i32) {
    %c0_i32 = arith.constant 0 : i32
    %c0_i32_0 = arith.constant 0 : i32
    %c0_i32_1 = arith.constant 0 : i32
    return %arg0, %c0_i32, %c0_i32_0 : i32, i32, i32
  }
  func.func @transform_5(%arg0: i32) -> (i32, i32, i32) {
    %c0_i32 = arith.constant 0 : i32
    %c0_i32_0 = arith.constant 0 : i32
    %c0_i32_1 = arith.constant 0 : i32
    return %arg0, %c0_i32, %c0_i32_0 : i32, i32, i32
  }
  func.func @transform_6(%arg0: i32) -> (i32, i32, i32) {
    %c0_i32 = arith.constant 0 : i32
    %c0_i32_0 = arith.constant 0 : i32
    %c0_i32_1 = arith.constant 0 : i32
    return %arg0, %c0_i32, %c0_i32_0 : i32, i32, i32
  }
}

module attributes {stable_mosaic.version = 11 : i64} {
  func.func @_stage2_kernel(%arg0: i32, %arg1: memref<1x288x128xbf16, #tpu.memory_space<vmem>>, %arg2: memref<1x128xf32, #tpu.memory_space<vmem>>, %arg3: memref<1x128xf32, #tpu.memory_space<vmem>>, %arg4: memref<1152x128xbf16, #tpu.memory_space<vmem>>, %arg5: memref<1x288x128xbf16, #tpu.memory_space<vmem>>, %arg6: memref<1x2x128xf32, #tpu.memory_space<vmem>>, %arg7: memref<328x128xbf16, #tpu.memory_space<vmem>>, %arg8: memref<288x1152xbf16, #tpu.memory_space<vmem>>) attributes {dimension_semantics = [#tpu.dimension_semantics<parallel>], iteration_bounds = array<i64: 2>, scalar_prefetch = 0 : i64, scratch_operands = 2 : i64, tpu.core_type = #tpu.core_type<tc>, window_params = [{transform_indices = @transform_0, window_bounds = array<i64: 1, 288, 128>}, {pipeline_mode = #tpu.pipeline_mode<synchronous>, transform_indices = @transform_1, window_bounds = array<i64: 1, 128>}, {pipeline_mode = #tpu.pipeline_mode<synchronous>, transform_indices = @transform_2, window_bounds = array<i64: 1, 128>}, {pipeline_mode = #tpu.pipeline_mode<synchronous>, transform_indices = @transform_3, window_bounds = array<i64: 1152, 128>}, {transform_indices = @transform_4, window_bounds = array<i64: 1, 288, 128>}, {transform_indices = @transform_5, window_bounds = array<i64: 1, 2, 128>}]} {
    %0 = tpu.iota {dimensions = array<i32: 0>} : vector<288x128xi32>
    %c18_i32 = arith.constant 18 : i32
    %c0_i32 = arith.constant 0 : i32
    %1 = arith.cmpi eq, %c18_i32, %c0_i32 : i32
    %c1_i32 = arith.constant 1 : i32
    %2 = arith.select %1, %c1_i32, %c18_i32 : i32
    %3 = vector.broadcast %2 : i32 to vector<288x128xi32>
    %4 = arith.remsi %0, %3 : vector<288x128xi32>
    %c0_i32_0 = arith.constant 0 : i32
    %5 = vector.broadcast %c0_i32_0 : i32 to vector<288x128xi32>
    %6 = arith.cmpi ne, %4, %5 : vector<288x128xi32>
    %c0_i32_1 = arith.constant 0 : i32
    %7 = vector.broadcast %c0_i32_1 : i32 to vector<288x128xi32>
    %8 = arith.cmpi slt, %4, %7 : vector<288x128xi32>
    %c0_i32_2 = arith.constant 0 : i32
    %9 = arith.cmpi slt, %2, %c0_i32_2 : i32
    %10 = vector.broadcast %9 : i1 to vector<288x128xi1>
    %11 = vector.broadcast %10 : vector<288x128xi1> to vector<288x128xi1>
    %12 = arith.xori %8, %11 : vector<288x128xi1>
    %13 = arith.andi %12, %6 : vector<288x128xi1>
    %14 = vector.broadcast %2 : i32 to vector<288x128xi32>
    %15 = arith.addi %4, %14 : vector<288x128xi32>
    %16 = arith.select %13, %15, %4 : vector<288x128xi1>, vector<288x128xi32>
    %c16_i32 = arith.constant 16 : i32
    %17 = vector.broadcast %c16_i32 : i32 to vector<288x128xi32>
    %18 = arith.cmpi slt, %16, %17 : vector<288x128xi32>
    %c0 = arith.constant 0 : index
    %c0_3 = arith.constant 0 : index
    %c0_4 = arith.constant 0 : index
    %19 = vector.load %arg1[%c0, %c0_3, %c0_4] : memref<1x288x128xbf16, #tpu.memory_space<vmem>>, vector<1x288x128xbf16>
    %20 = vector.shape_cast %19 : vector<1x288x128xbf16> to vector<288x128xbf16>
    %21 = arith.extf %20 : vector<288x128xbf16> to vector<288x128xf32>
    %c0_5 = arith.constant 0 : index
    %c0_6 = arith.constant 0 : index
    %22 = vector.load %arg2[%c0_5, %c0_6] : memref<1x128xf32, #tpu.memory_space<vmem>>, vector<1x128xf32>
    %23 = vector.broadcast %22 : vector<1x128xf32> to vector<288x128xf32>
    %24 = arith.mulf %21, %23 : vector<288x128xf32>
    %c0_7 = arith.constant 0 : index
    %c0_8 = arith.constant 0 : index
    %25 = vector.load %arg3[%c0_7, %c0_8] : memref<1x128xf32, #tpu.memory_space<vmem>>, vector<1x128xf32>
    %26 = vector.broadcast %25 : vector<1x128xf32> to vector<288x128xf32>
    %27 = arith.addf %24, %26 : vector<288x128xf32>
    %cst = arith.constant 0.000000e+00 : f32
    %28 = vector.broadcast %cst : f32 to vector<288x128xf32>
    %29 = arith.maximumf %27, %28 : vector<288x128xf32>
    %cst_9 = arith.constant 0.000000e+00 : f32
    %30 = vector.broadcast %cst_9 : f32 to vector<288x128xf32>
    %31 = arith.select %18, %29, %30 : vector<288x128xi1>, vector<288x128xf32>
    %cst_10 = arith.constant 0.000000e+00 : bf16
    %32 = vector.broadcast %cst_10 : bf16 to vector<19x128xbf16>
    %c0_11 = arith.constant 0 : index
    %c0_12 = arith.constant 0 : index
    %33 = vector.load %arg7[%c0_11, %c0_12] : memref<328x128xbf16, #tpu.memory_space<vmem>>, vector<19x128xbf16>
    tpu.vector_store %arg7[%c0_11, %c0_12], %32 {strides = array<i32>} : memref<328x128xbf16, #tpu.memory_space<vmem>>, vector<19x128xbf16>,
    %cst_13 = arith.constant 0.000000e+00 : bf16
    %34 = vector.broadcast %cst_13 : bf16 to vector<21x128xbf16>
    %c307 = arith.constant 307 : index
    %c0_14 = arith.constant 0 : index
    %35 = vector.load %arg7[%c307, %c0_14] : memref<328x128xbf16, #tpu.memory_space<vmem>>, vector<21x128xbf16>
    tpu.vector_store %arg7[%c307, %c0_14], %34 {strides = array<i32>} : memref<328x128xbf16, #tpu.memory_space<vmem>>, vector<21x128xbf16>,
    %36 = arith.truncf %31 : vector<288x128xf32> to vector<288x128xbf16>
    %c19 = arith.constant 19 : index
    %c0_15 = arith.constant 0 : index
    %37 = vector.load %arg7[%c19, %c0_15] : memref<328x128xbf16, #tpu.memory_space<vmem>>, vector<288x128xbf16>
    tpu.vector_store %arg7[%c19, %c0_15], %36 {strides = array<i32>} : memref<328x128xbf16, #tpu.memory_space<vmem>>, vector<288x128xbf16>,
    %c0_16 = arith.constant 0 : index
    %c0_17 = arith.constant 0 : index
    %38 = vector.load %arg7[%c0_16, %c0_17] : memref<328x128xbf16, #tpu.memory_space<vmem>>, vector<288x128xbf16>
    %c0_18 = arith.constant 0 : index
    %c0_19 = arith.constant 0 : index
    %39 = vector.load %arg8[%c0_18, %c0_19] : memref<288x1152xbf16, #tpu.memory_space<vmem>>, vector<288x128xbf16>
    tpu.vector_store %arg8[%c0_18, %c0_19], %38 {strides = array<i32>} : memref<288x1152xbf16, #tpu.memory_space<vmem>>, vector<288x128xbf16>,
    %c1 = arith.constant 1 : index
    %c0_20 = arith.constant 0 : index
    %40 = vector.load %arg7[%c1, %c0_20] : memref<328x128xbf16, #tpu.memory_space<vmem>>, vector<288x128xbf16>
    %c0_21 = arith.constant 0 : index
    %c128 = arith.constant 128 : index
    %41 = vector.load %arg8[%c0_21, %c128] : memref<288x1152xbf16, #tpu.memory_space<vmem>>, vector<288x128xbf16>
    tpu.vector_store %arg8[%c0_21, %c128], %40 {strides = array<i32>} : memref<288x1152xbf16, #tpu.memory_space<vmem>>, vector<288x128xbf16>,
    %c2 = arith.constant 2 : index
    %c0_22 = arith.constant 0 : index
    %42 = vector.load %arg7[%c2, %c0_22] : memref<328x128xbf16, #tpu.memory_space<vmem>>, vector<288x128xbf16>
    %c0_23 = arith.constant 0 : index
    %c256 = arith.constant 256 : index
    %43 = vector.load %arg8[%c0_23, %c256] : memref<288x1152xbf16, #tpu.memory_space<vmem>>, vector<288x128xbf16>
    tpu.vector_store %arg8[%c0_23, %c256], %42 {strides = array<i32>} : memref<288x1152xbf16, #tpu.memory_space<vmem>>, vector<288x128xbf16>,
    %c18 = arith.constant 18 : index
    %c0_24 = arith.constant 0 : index
    %44 = vector.load %arg7[%c18, %c0_24] : memref<328x128xbf16, #tpu.memory_space<vmem>>, vector<288x128xbf16>
    %c0_25 = arith.constant 0 : index
    %c384 = arith.constant 384 : index
    %45 = vector.load %arg8[%c0_25, %c384] : memref<288x1152xbf16, #tpu.memory_space<vmem>>, vector<288x128xbf16>
    tpu.vector_store %arg8[%c0_25, %c384], %44 {strides = array<i32>} : memref<288x1152xbf16, #tpu.memory_space<vmem>>, vector<288x128xbf16>,
    %c19_26 = arith.constant 19 : index
    %c0_27 = arith.constant 0 : index
    %46 = vector.load %arg7[%c19_26, %c0_27] : memref<328x128xbf16, #tpu.memory_space<vmem>>, vector<288x128xbf16>
    %c0_28 = arith.constant 0 : index
    %c512 = arith.constant 512 : index
    %47 = vector.load %arg8[%c0_28, %c512] : memref<288x1152xbf16, #tpu.memory_space<vmem>>, vector<288x128xbf16>
    tpu.vector_store %arg8[%c0_28, %c512], %46 {strides = array<i32>} : memref<288x1152xbf16, #tpu.memory_space<vmem>>, vector<288x128xbf16>,
    %c20 = arith.constant 20 : index
    %c0_29 = arith.constant 0 : index
    %48 = vector.load %arg7[%c20, %c0_29] : memref<328x128xbf16, #tpu.memory_space<vmem>>, vector<288x128xbf16>
    %c0_30 = arith.constant 0 : index
    %c640 = arith.constant 640 : index
    %49 = vector.load %arg8[%c0_30, %c640] : memref<288x1152xbf16, #tpu.memory_space<vmem>>, vector<288x128xbf16>
    tpu.vector_store %arg8[%c0_30, %c640], %48 {strides = array<i32>} : memref<288x1152xbf16, #tpu.memory_space<vmem>>, vector<288x128xbf16>,
    %c36 = arith.constant 36 : index
    %c0_31 = arith.constant 0 : index
    %50 = vector.load %arg7[%c36, %c0_31] : memref<328x128xbf16, #tpu.memory_space<vmem>>, vector<288x128xbf16>
    %c0_32 = arith.constant 0 : index
    %c768 = arith.constant 768 : index
    %51 = vector.load %arg8[%c0_32, %c768] : memref<288x1152xbf16, #tpu.memory_space<vmem>>, vector<288x128xbf16>
    tpu.vector_store %arg8[%c0_32, %c768], %50 {strides = array<i32>} : memref<288x1152xbf16, #tpu.memory_space<vmem>>, vector<288x128xbf16>,
    %c37 = arith.constant 37 : index
    %c0_33 = arith.constant 0 : index
    %52 = vector.load %arg7[%c37, %c0_33] : memref<328x128xbf16, #tpu.memory_space<vmem>>, vector<288x128xbf16>
    %c0_34 = arith.constant 0 : index
    %c896 = arith.constant 896 : index
    %53 = vector.load %arg8[%c0_34, %c896] : memref<288x1152xbf16, #tpu.memory_space<vmem>>, vector<288x128xbf16>
    tpu.vector_store %arg8[%c0_34, %c896], %52 {strides = array<i32>} : memref<288x1152xbf16, #tpu.memory_space<vmem>>, vector<288x128xbf16>,
    %c38 = arith.constant 38 : index
    %c0_35 = arith.constant 0 : index
    %54 = vector.load %arg7[%c38, %c0_35] : memref<328x128xbf16, #tpu.memory_space<vmem>>, vector<288x128xbf16>
    %c0_36 = arith.constant 0 : index
    %c1024 = arith.constant 1024 : index
    %55 = vector.load %arg8[%c0_36, %c1024] : memref<288x1152xbf16, #tpu.memory_space<vmem>>, vector<288x128xbf16>
    tpu.vector_store %arg8[%c0_36, %c1024], %54 {strides = array<i32>} : memref<288x1152xbf16, #tpu.memory_space<vmem>>, vector<288x128xbf16>,
    %c0_37 = arith.constant 0 : index
    %c0_38 = arith.constant 0 : index
    %56 = vector.load %arg8[%c0_37, %c0_38] : memref<288x1152xbf16, #tpu.memory_space<vmem>>, vector<288x1152xbf16>
    %c0_39 = arith.constant 0 : index
    %c0_40 = arith.constant 0 : index
    %57 = vector.load %arg4[%c0_39, %c0_40] : memref<1152x128xbf16, #tpu.memory_space<vmem>>, vector<1152x128xbf16>
    %cst_41 = arith.constant dense<0.000000e+00> : vector<288x128xf32>
    %58 = tpu.matmul %56, %57, %cst_41 {dimension_numbers = #tpu.dot_dimension_numbers<[1], [0], [0], [1], [0, 0, 1, 1], [], []>} : vector<288x1152xbf16>, vector<1152x128xbf16>, vector<288x128xf32> -> vector<288x128xf32>
    %cst_42 = arith.constant 0.000000e+00 : f32
    %59 = vector.broadcast %cst_42 : f32 to vector<288x128xf32>
    %60 = arith.select %18, %58, %59 : vector<288x128xi1>, vector<288x128xf32>
    %61 = arith.truncf %60 : vector<288x128xf32> to vector<288x128xbf16>
    %c0_43 = arith.constant 0 : index
    %c0_44 = arith.constant 0 : index
    %c0_45 = arith.constant 0 : index
    %62 = vector.load %arg5[%c0_43, %c0_44, %c0_45] : memref<1x288x128xbf16, #tpu.memory_space<vmem>>, vector<1x288x128xbf16>
    %63 = vector.shape_cast %62 : vector<1x288x128xbf16> to vector<288x128xbf16>
    %64 = vector.shape_cast %61 : vector<288x128xbf16> to vector<1x288x128xbf16>
    tpu.vector_store %arg5[%c0_43, %c0_44, %c0_45], %64 {strides = array<i32>} : memref<1x288x128xbf16, #tpu.memory_space<vmem>>, vector<1x288x128xbf16>,
    %65 = arith.extf %61 : vector<288x128xbf16> to vector<288x128xf32>
    %cst_46 = arith.constant dense<0.000000e+00> : vector<128xf32>
    %66 = vector.multi_reduction <add>, %65, %cst_46 [0] : vector<288x128xf32> to vector<128xf32>
    %67 = vector.shape_cast %66 : vector<128xf32> to vector<1x128xf32>
    %c0_47 = arith.constant 0 : index
    %c0_48 = arith.constant 0 : index
    %c0_49 = arith.constant 0 : index
    %68 = vector.load %arg6[%c0_47, %c0_48, %c0_49] : memref<1x2x128xf32, #tpu.memory_space<vmem>>, vector<1x1x128xf32>
    %69 = vector.shape_cast %68 : vector<1x1x128xf32> to vector<1x128xf32>
    %70 = vector.shape_cast %67 : vector<1x128xf32> to vector<1x1x128xf32>
    tpu.vector_store %arg6[%c0_47, %c0_48, %c0_49], %70 {strides = array<i32>} : memref<1x2x128xf32, #tpu.memory_space<vmem>>, vector<1x1x128xf32>,
    %71 = arith.mulf %65, %65 : vector<288x128xf32>
    %cst_50 = arith.constant dense<0.000000e+00> : vector<128xf32>
    %72 = vector.multi_reduction <add>, %71, %cst_50 [0] : vector<288x128xf32> to vector<128xf32>
    %73 = vector.shape_cast %72 : vector<128xf32> to vector<1x128xf32>
    %c0_51 = arith.constant 0 : index
    %c1_52 = arith.constant 1 : index
    %c0_53 = arith.constant 0 : index
    %74 = vector.load %arg6[%c0_51, %c1_52, %c0_53] : memref<1x2x128xf32, #tpu.memory_space<vmem>>, vector<1x1x128xf32>
    %75 = vector.shape_cast %74 : vector<1x1x128xf32> to vector<1x128xf32>
    %76 = vector.shape_cast %73 : vector<1x128xf32> to vector<1x1x128xf32>
    tpu.vector_store %arg6[%c0_51, %c1_52, %c0_53], %76 {strides = array<i32>} : memref<1x2x128xf32, #tpu.memory_space<vmem>>, vector<1x1x128xf32>,
    return
  }
  func.func @transform_0(%arg0: i32) -> (i32, i32, i32) {
    %c0_i32 = arith.constant 0 : i32
    %c0_i32_0 = arith.constant 0 : i32
    %c0_i32_1 = arith.constant 0 : i32
    return %arg0, %c0_i32, %c0_i32_0 : i32, i32, i32
  }
  func.func @transform_1(%arg0: i32) -> (i32, i32) {
    %c0_i32 = arith.constant 0 : i32
    %c0_i32_0 = arith.constant 0 : i32
    %c0_i32_1 = arith.constant 0 : i32
    return %c0_i32, %c0_i32_0 : i32, i32
  }
  func.func @transform_2(%arg0: i32) -> (i32, i32) {
    %c0_i32 = arith.constant 0 : i32
    %c0_i32_0 = arith.constant 0 : i32
    %c0_i32_1 = arith.constant 0 : i32
    return %c0_i32, %c0_i32_0 : i32, i32
  }
  func.func @transform_3(%arg0: i32) -> (i32, i32) {
    %c0_i32 = arith.constant 0 : i32
    %c0_i32_0 = arith.constant 0 : i32
    %c0_i32_1 = arith.constant 0 : i32
    return %c0_i32, %c0_i32_0 : i32, i32
  }
  func.func @transform_4(%arg0: i32) -> (i32, i32, i32) {
    %c0_i32 = arith.constant 0 : i32
    %c0_i32_0 = arith.constant 0 : i32
    %c0_i32_1 = arith.constant 0 : i32
    return %arg0, %c0_i32, %c0_i32_0 : i32, i32, i32
  }
  func.func @transform_5(%arg0: i32) -> (i32, i32, i32) {
    %c0_i32 = arith.constant 0 : i32
    %c0_i32_0 = arith.constant 0 : i32
    %c0_i32_1 = arith.constant 0 : i32
    return %arg0, %c0_i32, %c0_i32_0 : i32, i32, i32
  }
}

module attributes {stable_mosaic.version = 11 : i64} {
  func.func @_stage3_kernel(%arg0: i32, %arg1: i32, %arg2: memref<1x72x128xbf16, #tpu.memory_space<vmem>>, %arg3: memref<1x72x128xbf16, #tpu.memory_space<vmem>>, %arg4: memref<1x128xf32, #tpu.memory_space<vmem>>, %arg5: memref<1x128xf32, #tpu.memory_space<vmem>>, %arg6: memref<1x128xf32, #tpu.memory_space<vmem>>, %arg7: memref<1x128xf32, #tpu.memory_space<vmem>>, %arg8: memref<1x4x16x128xf32, #tpu.memory_space<vmem>>) attributes {dimension_semantics = [#tpu.dimension_semantics<parallel>, #tpu.dimension_semantics<parallel>], iteration_bounds = array<i64: 2, 4>, scalar_prefetch = 0 : i64, scratch_operands = 0 : i64, tpu.core_type = #tpu.core_type<tc>, window_params = [{transform_indices = @transform_0, window_bounds = array<i64: 1, 72, 128>}, {transform_indices = @transform_1, window_bounds = array<i64: 1, 72, 128>}, {pipeline_mode = #tpu.pipeline_mode<synchronous>, transform_indices = @transform_2, window_bounds = array<i64: 1, 128>}, {pipeline_mode = #tpu.pipeline_mode<synchronous>, transform_indices = @transform_3, window_bounds = array<i64: 1, 128>}, {pipeline_mode = #tpu.pipeline_mode<synchronous>, transform_indices = @transform_4, window_bounds = array<i64: 1, 128>}, {pipeline_mode = #tpu.pipeline_mode<synchronous>, transform_indices = @transform_5, window_bounds = array<i64: 1, 128>}, {transform_indices = @transform_6, window_bounds = array<i64: 1, 4, 16, 128>}]} {
    %c0 = arith.constant 0 : index
    %c0_0 = arith.constant 0 : index
    %c0_1 = arith.constant 0 : index
    %0 = vector.load %arg2[%c0, %c0_0, %c0_1] : memref<1x72x128xbf16, #tpu.memory_space<vmem>>, vector<1x72x128xbf16>
    %1 = vector.shape_cast %0 : vector<1x72x128xbf16> to vector<72x128xbf16>
    %2 = arith.extf %1 : vector<72x128xbf16> to vector<72x128xf32>
    %c0_2 = arith.constant 0 : index
    %c0_3 = arith.constant 0 : index
    %3 = vector.load %arg4[%c0_2, %c0_3] : memref<1x128xf32, #tpu.memory_space<vmem>>, vector<1x128xf32>
    %4 = vector.broadcast %3 : vector<1x128xf32> to vector<72x128xf32>
    %5 = arith.mulf %2, %4 : vector<72x128xf32>
    %c0_4 = arith.constant 0 : index
    %c0_5 = arith.constant 0 : index
    %6 = vector.load %arg5[%c0_4, %c0_5] : memref<1x128xf32, #tpu.memory_space<vmem>>, vector<1x128xf32>
    %7 = vector.broadcast %6 : vector<1x128xf32> to vector<72x128xf32>
    %8 = arith.addf %5, %7 : vector<72x128xf32>
    %c0_6 = arith.constant 0 : index
    %c0_7 = arith.constant 0 : index
    %c0_8 = arith.constant 0 : index
    %9 = vector.load %arg3[%c0_6, %c0_7, %c0_8] : memref<1x72x128xbf16, #tpu.memory_space<vmem>>, vector<1x72x128xbf16>
    %10 = vector.shape_cast %9 : vector<1x72x128xbf16> to vector<72x128xbf16>
    %11 = arith.extf %10 : vector<72x128xbf16> to vector<72x128xf32>
    %c0_9 = arith.constant 0 : index
    %c0_10 = arith.constant 0 : index
    %12 = vector.load %arg6[%c0_9, %c0_10] : memref<1x128xf32, #tpu.memory_space<vmem>>, vector<1x128xf32>
    %13 = vector.broadcast %12 : vector<1x128xf32> to vector<72x128xf32>
    %14 = arith.mulf %11, %13 : vector<72x128xf32>
    %c0_11 = arith.constant 0 : index
    %c0_12 = arith.constant 0 : index
    %15 = vector.load %arg7[%c0_11, %c0_12] : memref<1x128xf32, #tpu.memory_space<vmem>>, vector<1x128xf32>
    %16 = vector.broadcast %15 : vector<1x128xf32> to vector<72x128xf32>
    %17 = arith.addf %14, %16 : vector<72x128xf32>
    %18 = arith.addf %8, %17 : vector<72x128xf32>
    %cst = arith.constant 0.000000e+00 : f32
    %19 = vector.broadcast %cst : f32 to vector<72x128xf32>
    %20 = arith.maximumf %18, %19 : vector<72x128xf32>
    %21 = vector.extract_strided_slice %20 {offsets = [0, 0], sizes = [16, 128], strides = [1, 1]} : vector<72x128xf32> to vector<16x128xf32>
    %c0_13 = arith.constant 0 : index
    %c0_14 = arith.constant 0 : index
    %c0_15 = arith.constant 0 : index
    %c0_16 = arith.constant 0 : index
    %22 = vector.load %arg8[%c0_13, %c0_14, %c0_15, %c0_16] : memref<1x4x16x128xf32, #tpu.memory_space<vmem>>, vector<1x1x16x128xf32>
    %23 = vector.shape_cast %22 : vector<1x1x16x128xf32> to vector<16x128xf32>
    %24 = vector.shape_cast %21 : vector<16x128xf32> to vector<1x1x16x128xf32>
    tpu.vector_store %arg8[%c0_13, %c0_14, %c0_15, %c0_16], %24 {strides = array<i32>} : memref<1x4x16x128xf32, #tpu.memory_space<vmem>>, vector<1x1x16x128xf32>,
    %25 = vector.extract_strided_slice %20 {offsets = [18, 0], sizes = [16, 128], strides = [1, 1]} : vector<72x128xf32> to vector<16x128xf32>
    %c0_17 = arith.constant 0 : index
    %c1 = arith.constant 1 : index
    %c0_18 = arith.constant 0 : index
    %c0_19 = arith.constant 0 : index
    %26 = vector.load %arg8[%c0_17, %c1, %c0_18, %c0_19] : memref<1x4x16x128xf32, #tpu.memory_space<vmem>>, vector<1x1x16x128xf32>
    %27 = vector.shape_cast %26 : vector<1x1x16x128xf32> to vector<16x128xf32>
    %28 = vector.shape_cast %25 : vector<16x128xf32> to vector<1x1x16x128xf32>
    tpu.vector_store %arg8[%c0_17, %c1, %c0_18, %c0_19], %28 {strides = array<i32>} : memref<1x4x16x128xf32, #tpu.memory_space<vmem>>, vector<1x1x16x128xf32>,
    %29 = vector.extract_strided_slice %20 {offsets = [36, 0], sizes = [16, 128], strides = [1, 1]} : vector<72x128xf32> to vector<16x128xf32>
    %c0_20 = arith.constant 0 : index
    %c2 = arith.constant 2 : index
    %c0_21 = arith.constant 0 : index
    %c0_22 = arith.constant 0 : index
    %30 = vector.load %arg8[%c0_20, %c2, %c0_21, %c0_22] : memref<1x4x16x128xf32, #tpu.memory_space<vmem>>, vector<1x1x16x128xf32>
    %31 = vector.shape_cast %30 : vector<1x1x16x128xf32> to vector<16x128xf32>
    %32 = vector.shape_cast %29 : vector<16x128xf32> to vector<1x1x16x128xf32>
    tpu.vector_store %arg8[%c0_20, %c2, %c0_21, %c0_22], %32 {strides = array<i32>} : memref<1x4x16x128xf32, #tpu.memory_space<vmem>>, vector<1x1x16x128xf32>,
    %33 = vector.extract_strided_slice %20 {offsets = [54, 0], sizes = [16, 128], strides = [1, 1]} : vector<72x128xf32> to vector<16x128xf32>
    %c0_23 = arith.constant 0 : index
    %c3 = arith.constant 3 : index
    %c0_24 = arith.constant 0 : index
    %c0_25 = arith.constant 0 : index
    %34 = vector.load %arg8[%c0_23, %c3, %c0_24, %c0_25] : memref<1x4x16x128xf32, #tpu.memory_space<vmem>>, vector<1x1x16x128xf32>
    %35 = vector.shape_cast %34 : vector<1x1x16x128xf32> to vector<16x128xf32>
    %36 = vector.shape_cast %33 : vector<16x128xf32> to vector<1x1x16x128xf32>
    tpu.vector_store %arg8[%c0_23, %c3, %c0_24, %c0_25], %36 {strides = array<i32>} : memref<1x4x16x128xf32, #tpu.memory_space<vmem>>, vector<1x1x16x128xf32>,
    return
  }
  func.func @transform_0(%arg0: i32, %arg1: i32) -> (i32, i32, i32) {
    %c0_i32 = arith.constant 0 : i32
    %c0_i32_0 = arith.constant 0 : i32
    return %arg0, %arg1, %c0_i32 : i32, i32, i32
  }
  func.func @transform_1(%arg0: i32, %arg1: i32) -> (i32, i32, i32) {
    %c0_i32 = arith.constant 0 : i32
    %c0_i32_0 = arith.constant 0 : i32
    return %arg0, %arg1, %c0_i32 : i32, i32, i32
  }
  func.func @transform_2(%arg0: i32, %arg1: i32) -> (i32, i32) {
    %c0_i32 = arith.constant 0 : i32
    %c0_i32_0 = arith.constant 0 : i32
    %c0_i32_1 = arith.constant 0 : i32
    return %c0_i32, %c0_i32_0 : i32, i32
  }
  func.func @transform_3(%arg0: i32, %arg1: i32) -> (i32, i32) {
    %c0_i32 = arith.constant 0 : i32
    %c0_i32_0 = arith.constant 0 : i32
    %c0_i32_1 = arith.constant 0 : i32
    return %c0_i32, %c0_i32_0 : i32, i32
  }
  func.func @transform_4(%arg0: i32, %arg1: i32) -> (i32, i32) {
    %c0_i32 = arith.constant 0 : i32
    %c0_i32_0 = arith.constant 0 : i32
    %c0_i32_1 = arith.constant 0 : i32
    return %c0_i32, %c0_i32_0 : i32, i32
  }
  func.func @transform_5(%arg0: i32, %arg1: i32) -> (i32, i32) {
    %c0_i32 = arith.constant 0 : i32
    %c0_i32_0 = arith.constant 0 : i32
    %c0_i32_1 = arith.constant 0 : i32
    return %c0_i32, %c0_i32_0 : i32, i32
  }
  func.func @transform_6(%arg0: i32, %arg1: i32) -> (i32, i32, i32, i32) {
    %c0_i32 = arith.constant 0 : i32
    %c0_i32_0 = arith.constant 0 : i32
    %c0_i32_1 = arith.constant 0 : i32
    return %arg0, %arg1, %c0_i32, %c0_i32_0 : i32, i32, i32, i32
  }
}

</mosaic_0001>

<bundles_post_ra>
// kernel: basic_block_forward.5
= control target key start
LH: loop header
LB: loop body
LE: loop exit
PB: predicated region body
PF: predicated region fallthrough
CT: control target
= control target key end

     0   :  { %s755_s21 = smov 0   ;;  %s757_s22 = smov 0   ;;  %s895_s0 = inlined_call_operand.vmem [shape: bf16[2,288,128], index: 0, kind: input, shape index: {}]   ;;  %s896_s1 = inlined_call_operand.vmem [shape: bf16[2,288,128], index: 1, kind: input, shape index: {}]   ;;  %s897_s2 = inlined_call_operand.vmem [shape: f32[1,128], index: 2, kind: input, shape index: {}]   ;;  %s898_s3 = inlined_call_operand.vmem [shape: f32[1,128], index: 3, kind: input, shape index: {}]   ;;  %s899_s4 = inlined_call_operand.vmem [shape: f32[1,128], index: 4, kind: input, shape index: {}]   ;;  %s900_s5 = inlined_call_operand.vmem [shape: f32[1,128], index: 5, kind: input, shape index: {}]   ;;  %s901_s6 = inlined_call_operand.vmem [shape: f32[2,16,16,128], index: 6, kind: output, shape index: {}]  }
   0x1   :  { %s759_s23 = smov 0   ;;  %s761_s24 = smov 0  }
   0x2   :  { %s763_s25 = smov 0  }
   0x3 LB: > { %s25_s26 = sadd.s32 1, %s710_s23  ;;  %s28_s27 = sadd.s32 1, %s714_s24  ;;  %s718_s25 = sphi %s763_s25, %s16_s25   ;;  %s714_s24 = sphi %s761_s24, %s905_s24   ;;  %s710_s23 = sphi %s759_s23, %s904_s23   ;;  %s706_s22 = sphi %s757_s22, %s903_s22   ;;  %s702_s21 = sphi %s755_s21, %s902_s21  }
   0x4   : > { %p26_p0 = scmp.ge.s32.totalorder %s25_s26, 4  ;;  %p579_p1 = scmp.ge.s32.totalorder %s718_s25, 1 }
   0x5   : > { %p250_p2 = scmp.lt.s32.totalorder %s718_s25, 9 }
   0x6   : > { %s907_s26 = smov (%p26_p0, %s25_s26), 0  ;;  %s909_s27 = smov (!%p26_p0, %s28_s27), %s714_s24 }
   0x7   : > { %p251_p3 = pnand %p579_p1, %p250_p2  ;;  %p30_p4 = scmp.ge.s32.totalorder %s909_s27, 2 }
   0x8   : > { %s298_s28 = smul.u32 (!%p251_p3), 9, %s702_s21  ;;  %p299_p5 = scmp.lt.s32.totalorder (!%p251_p3), %s706_s22, 1  ;;  %v798_v0 = vld [vmem:[%s897_s2] ss:$0 sm:$0xff] (!%p251_p3) }
   0x9   : > { %s911_s27 = smov (%p30_p4, %s909_s27), 0  ;;  %254 = sbr.rel (%p251_p3) target bundleno = 47 (0x2f), region = 44 }
   0xa   : > { %s582_s29 = sshll.u32 (!%p251_p3), %s702_s21, 2  ;;  %p301_p6 = scmp.lt.s32.totalorder (!%p251_p3), %s298_s28, 35  ;;  %v803_v1 = vld [vmem:[%s899_s4] ss:$0 sm:$0xff] (!%p251_p3) }
   0xb   : > { %p321_p7 = scmp.lt.s32.totalorder (!%p251_p3), %s582_s29, 15  ;;  %v814_v10 = vld [vmem:[%s898_s3] ss:$0 sm:$0xff] (!%p251_p3) }
   0xc   : > { %v819_v11 = vld [vmem:[%s900_s5] ss:$0 sm:$0xff] (!%p251_p3) }
  0x10   : > { %s913_s22 = smov (!%p299_p5, %s706_s22), 1  ;;  %s915_s28 = smov (!%p301_p6, %s298_s28), 35 }
  0x11   : > { %s639_s30 = smul.u32 36, %s913_s22  ;;  %s917_s29 = smov (!%p321_p7, %s582_s29), 15 }
  0x12   : > { %s584_s8 = sshll.u32 %s913_s22, 5  ;;  %s583_s10 = sshll.u32 %s917_s29, 1 }
  0x13   : > { %s304_s7 = sadd.s32 %s639_s30, %s915_s28  ;;  %s809_s21 = sadd.s32 %s584_s8, %s583_s10 }
  0x14   : > { %s580_s9 = sshll.u32 %s304_s7, 2  ;;  %s585_s7 = sshll.u32 %s809_s21, 3 }
  0x15   : > { %s788_s13 = scalar_lea.vmem %s895_s0, %s580_s9  ;;  %s793_s16 = scalar_lea.vmem %s896_s1, %s580_s9 }
  0x16   : > { %v602_v2 = vld [vmem:[%s788_s13] sm:$0xff]   ;;  %v633_v4 = vld [vmem:[%s788_s13 + $0x8] sm:$0xff]   ;;  %v634_v24 = vld [vmem:[%s788_s13 + $0x10] sm:$0xff]   ;;  %s843_s10 = scalar_lea.vmem %s901_s6, %s585_s7 }
  0x17   : > { %v618_v3 = vld [vmem:[%s793_s16] sm:$0xff]   ;;  %v603_v5 = vunpack.c.l.bf16 %v602_v2  ;;  %v604_v7 = vunpack.c.h.bf16 %v602_v2  ;;  %v636_v9 = vld [vmem:[%s793_s16 + $0x8] sm:$0xff]   ;;  %v607_v12 = vunpack.c.l.bf16 %v633_v4  ;;  %v608_v14 = vunpack.c.h.bf16 %v633_v4  ;;  %v637_v25 = vld [vmem:[%s793_s16 + $0x10] sm:$0xff]  }
  0x18   : > { %v619_v6 = vunpack.c.l.bf16 %v618_v3  ;;  %v620_v8 = vunpack.c.h.bf16 %v618_v3  ;;  %v623_v13 = vunpack.c.l.bf16 %v636_v9  ;;  %v624_v15 = vunpack.c.h.bf16 %v636_v9  ;;  %v635_v42 = vld [vmem:[%s788_s13 + $0x18] sm:$0xff]   ;;  %v337_v52 = vld [vmem:[%s788_s13 + $0x20] sm:$0xf] }
  0x19   : > { %v354_v16 = vmul.f32 %v603_v5, %v798_v0  ;;  %v355_v18 = vmul.f32 %v604_v7, %v798_v0  ;;  %v356_v20 = vmul.f32 %v607_v12, %v798_v0  ;;  %v357_v22 = vmul.f32 %v608_v14, %v798_v0  ;;  %v638_v43 = vld [vmem:[%s793_s16 + $0x18] sm:$0xff]   ;;  %v387_v57 = vld [vmem:[%s793_s16 + $0x20] sm:$0xf] }
  0x1a   : > { %v404_v17 = vmul.f32 %v619_v6, %v803_v1  ;;  %v405_v19 = vmul.f32 %v620_v8, %v803_v1  ;;  %v406_v21 = vmul.f32 %v623_v13, %v803_v1  ;;  %v407_v23 = vmul.f32 %v624_v15, %v803_v1 }
  0x1b   : > { %v370_v26 = vadd.f32 %v814_v10, %v354_v16  ;;  %v371_v28 = vadd.f32 %v814_v10, %v355_v18  ;;  %v372_v30 = vadd.f32 %v814_v10, %v356_v20  ;;  %v373_v32 = vadd.f32 %v814_v10, %v357_v22 }
  0x1c   : > { %v420_v27 = vadd.f32 %v819_v11, %v404_v17  ;;  %v421_v29 = vadd.f32 %v819_v11, %v405_v19  ;;  %v422_v31 = vadd.f32 %v819_v11, %v406_v21  ;;  %v423_v33 = vadd.f32 %v819_v11, %v407_v23 }
  0x1d   : > { %v611_v36 = vunpack.c.l.bf16 %v634_v24  ;;  %v627_v37 = vunpack.c.l.bf16 %v637_v25  ;;  %v612_v40 = vunpack.c.h.bf16 %v634_v24  ;;  %v628_v41 = vunpack.c.h.bf16 %v637_v25 }
  0x1e   : > { %v429_v34 = vadd.f32 %v420_v27, %v370_v26  ;;  %v430_v35 = vadd.f32 %v421_v29, %v371_v28  ;;  %v431_v38 = vadd.f32 %v422_v31, %v372_v30  ;;  %v432_v39 = vadd.f32 %v423_v33, %v373_v32 }
  0x1f   : > { %v358_v46 = vmul.f32 %v611_v36, %v798_v0  ;;  %v408_v47 = vmul.f32 %v627_v37, %v803_v1  ;;  %v359_v50 = vmul.f32 %v612_v40, %v798_v0  ;;  %v409_v51 = vmul.f32 %v628_v41, %v803_v1 }
  0x20   : > { %v438_v44 = vmax.f32 %v429_v34, 0.0  ;;  %v439_v45 = vmax.f32 %v430_v35, 0.0  ;;  %v440_v48 = vmax.f32 %v431_v38, 0.0  ;;  %v441_v49 = vmax.f32 %v432_v39, 0.0 }
  0x21   : > { %v374_v53 = vadd.f32 %v814_v10, %v358_v46  ;;  %v424_v54 = vadd.f32 %v819_v11, %v408_v47  ;;  %v615_v55 = vunpack.c.l.bf16 %v635_v42  ;;  %v631_v56 = vunpack.c.l.bf16 %v638_v43 }
  0x22   : > { %447 = vst [vmem:[%s843_s10] sm:$0xff] %v438_v44  ;;  %448 = vst [vmem:[%s843_s10 + $0x8] sm:$0xff] %v439_v45  ;;  %v375_v58 = vadd.f32 %v814_v10, %v359_v50  ;;  %v425_v59 = vadd.f32 %v819_v11, %v409_v51  ;;  %v616_v60 = vunpack.c.h.bf16 %v635_v42  ;;  %v632_v61 = vunpack.c.h.bf16 %v638_v43 }
  0x23   : > { %590 = vst [vmem:[%s843_s10 + $0xe] sm:$0xfc] %v440_v48  ;;  %591 = vst [vmem:[%s843_s10 + $0x16] sm:$0xff] %v441_v49  ;;  %v433_v62 = vadd.f32 %v424_v54, %v374_v53  ;;  %v360_v63 = vmul.f32 %v615_v55, %v798_v0  ;;  %v410_v2 = vmul.f32 %v631_v56, %v803_v1  ;;  %v346_v3 = vunpack.c.l.bf16 %v337_v52 }
  0x24   : > { %v434_v4 = vadd.f32 %v425_v59, %v375_v58  ;;  %v361_v5 = vmul.f32 %v616_v60, %v798_v0  ;;  %v411_v6 = vmul.f32 %v632_v61, %v803_v1  ;;  %v396_v7 = vunpack.c.l.bf16 %v387_v57 }
  0x25   : > { %v442_v8 = vmax.f32 %v433_v62, 0.0  ;;  %v376_v9 = vadd.f32 %v814_v10, %v360_v63  ;;  %v426_v12 = vadd.f32 %v819_v11, %v410_v2  ;;  %v362_v13 = vmul.f32 %v798_v0, %v346_v3 }
  0x26   : > { %v443_v14 = vmax.f32 %v434_v4, 0.0  ;;  %v377_v15 = vadd.f32 %v814_v10, %v361_v5  ;;  %v427_v16 = vadd.f32 %v819_v11, %v411_v6  ;;  %v412_v17 = vmul.f32 %v803_v1, %v396_v7 }
  0x27   : > { %592 = vst [vmem:[%s843_s10 + $0x1e] sm:$0x3] %v442_v8  ;;  %593 = vst [vmem:[%s843_s10 + $0x1c] sm:$0xf0] %v442_v8  ;;  %v435_v18 = vadd.f32 %v426_v12, %v376_v9  ;;  %v378_v19 = vadd.f32 %v814_v10, %v362_v13 }
  0x28   : > { %594 = vst [vmem:[%s843_s10 + $0x24] sm:$0xff] %v443_v14  ;;  %v436_v20 = vadd.f32 %v427_v16, %v377_v15  ;;  %v428_v21 = vadd.f32 %v819_v11, %v412_v17 }
  0x29   : > { %v444_v0 = vmax.f32 %v435_v18, 0.0 }
  0x2a   : > { %v445_v22 = vmax.f32 %v436_v20, 0.0  ;;  %v437_v23 = vadd.f32 %v428_v21, %v378_v19 }
  0x2b   : > { %595 = vst [vmem:[%s843_s10 + $0x2c] sm:$0xf] %v444_v0  ;;  %596 = vst [vmem:[%s843_s10 + $0x2a] sm:$0xc0] %v444_v0 }
  0x2c   : > { %597 = vst [vmem:[%s843_s10 + $0x32] sm:$0xff] %v445_v22  ;;  %v446_v24 = vmax.f32 %v437_v23, 0.0 }
  0x2e   : > { %598 = vst [vmem:[%s843_s10 + $0x3a] sm:$0x3f] %v446_v24 }
  0x2f PF: > { %s16_s25 = sadd.s32 1, %s718_s25   ;;  %s902_s21 = smov %s710_s23 }
  0x30   : > { %p13_p8 = scmp.ge.s32.totalorder %s16_s25, 10   ;;  %s903_s22 = smov %s714_s24 }
  0x31   : > { %s904_s23 = smov %s907_s26  ;;  %s905_s24 = smov %s911_s27 }
  0x32   :  { %15 = sbr.rel (!%p13_p8) target bundleno = 3 (0x3), region = 80 }

// kernel: basic_block_forward.3
= control target key start
LH: loop header
LB: loop body
LE: loop exit
PB: predicated region body
PF: predicated region fallthrough
CT: control target
= control target key end

     0   :  { %s7583_s21 = smov 0   ;;  %s10205_s0 = inlined_call_operand.vmem [shape: bf16[2,328,128], index: 0, kind: input, shape index: {}]   ;;  %s10206_s1 = inlined_call_operand.vmem [shape: bf16[1152,128], index: 1, kind: input, shape index: {}]   ;;  %s10207_s2 = inlined_call_operand.vmem [shape: bf16[128,128], index: 2, kind: input, shape index: {}]   ;;  %s10208_s3 = inlined_call_operand.vmem [shape: bf16[2,288,128], index: 3, kind: output, shape index: {0}]   ;;  %s10209_s4 = inlined_call_operand.vmem [shape: bf16[2,288,128], index: 4, kind: output, shape index: {1}]   ;;  %s10210_s5 = inlined_call_operand.vmem [shape: f32[2,2,128], index: 5, kind: output, shape index: {2}]   ;;  %s10211_s6 = inlined_call_operand.vmem [shape: f32[2,2,128], index: 6, kind: output, shape index: {3}]  }
   0x1 LB: > { %s6180_s22 = sadd.s32 4294967295, %s7545_s21   ;;  %p6184_p0 = scmp.ge.s32.totalorder %s7545_s21, 1  ;;  %s7545_s21 = sphi %s7583_s21, %s17_s21  }
   0x2   : > { %p219_p1 = scmp.lt.s32.totalorder %s7545_s21, 3 }
   0x4   : > { %p220_p2 = pnand %p6184_p0, %p219_p1 }
   0x6   : > { %223 = sbr.rel (%p220_p2) target bundleno = 716 (0x2cc), region = 32 }
   0xd   : > { %v7270_v0 = vld [vmem:[%s10206_s1] sm:$0xff]   ;;  %v7547_v1 = vmov 0   ;;  %v7272_v3 = vld [vmem:[%s10206_s1 + $0x8] sm:$0xff]   ;;  %v7274_v5 = vld [vmem:[%s10206_s1 + $0x10] sm:$0xff]   ;;  %p262_p3 = scmp.lt.s32.totalorder %s6180_s22, 1  ;;  %vm1542_vm1 = vcmask 1046528  }
   0xe   : > { %3842 = vmatprep.subr.bf16.mxu1 %v7547_v1  ;;  %4019 = vmatprep.subr.bf16.mxu0 %v7547_v1  ;;  %v7599_v2 = vld [vmem:[%s10206_s1 + $0x80] sm:$0xff]   ;;  %v7609_v4 = vld [vmem:[%s10206_s1 + $0x88] sm:$0xff]   ;;  %v7620_v6 = vld [vmem:[%s10206_s1 + $0x90] sm:$0xff]   ;;  %vm1227_vm0 = vsmask.f32 7424  ;;  %vm2286_vm2 = vcmask 1045504  }
   0xf   : > { %3843 = vmatpush1.bf16.msra.mxu1 %v7270_v0  ;;  %4020 = vmatpush1.bf16.msra.mxu0 %v7599_v2  ;;  %v7276_v7 = vld [vmem:[%s10206_s1 + $0x18] sm:$0xff]   ;;  %v7278_v9 = vld [vmem:[%s10206_s1 + $0x20] sm:$0xff]   ;;  %v7280_v11 = vld [vmem:[%s10206_s1 + $0x28] sm:$0xff]   ;;  %s10763_s22 = smov (!%p262_p3, %s6180_s22), 1  ;;  %vm1949_vm3 = vsmask.f32 6400 }
  0x10   : > { %3844 = vmatprep.subr.bf16.mxu1 %v7547_v1  ;;  %4021 = vmatprep.subr.bf16.mxu0 %v7547_v1  ;;  %v7631_v8 = vld [vmem:[%s10206_s1 + $0x98] sm:$0xff]   ;;  %v7642_v10 = vld [vmem:[%s10206_s1 + $0xa0] sm:$0xff]   ;;  %v7655_v12 = vld [vmem:[%s10206_s1 + $0xa8] sm:$0xff]   ;;  %s7187_s7 = smul.u32 164, %s10763_s22  ;;  %vm3030_vm4 = vcmask 1044480   ;;  %s6188_s23 = sshll.u32 %s10763_s22, 1 }
  0x11   : > { %v7282_v13 = vld [vmem:[%s10206_s1 + $0x30] sm:$0xff]   ;;  %v7284_v15 = vld [vmem:[%s10206_s1 + $0x38] sm:$0xff]   ;;  %v7286_v17 = vld [vmem:[%s10206_s1 + $0x40] sm:$0xff]   ;;  %vm2693_vm5 = vsmask.f32 5376  ;;  %s280_s26 = scalar_lea.vmem %s10210_s5, %s6188_s23 }
  0x12   : > { %v7670_v14 = vld [vmem:[%s10206_s1 + $0xb0] sm:$0xff]   ;;  %v7682_v16 = vld [vmem:[%s10206_s1 + $0xb8] sm:$0xff]   ;;  %s7691_s14 = scalar_lea.vmem %s10205_s0, %s7187_s7  ;;  %v7698_v18 = vld [vmem:[%s10206_s1 + $0xc0] sm:$0xff]  }
  0x13   : > { %3845 = vmatpush1.bf16.msra.mxu1 %v7272_v3  ;;  %4022 = vmatpush1.bf16.msra.mxu0 %v7609_v4  ;;  %v7288_v19 = vld [vmem:[%s10206_s1 + $0x48] sm:$0xff]   ;;  %v7302_v21 = vld [vmem:[%s7691_s14] sm:$0xff]   ;;  %v7717_v26 = vld [vmem:[%s7691_s14 + $0x10] sm:$0xff]  }
  0x14   : > { %3846 = vmatprep.subr.bf16.mxu1 %v7547_v1  ;;  %4023 = vmatprep.subr.bf16.mxu0 %v7547_v1  ;;  %v7707_v20 = vld [vmem:[%s10206_s1 + $0xc8] sm:$0xff]   ;;  %v1229_v23 = vshrl.u32 %v7302_v21, 16  ;;  %v1231_v24 = vshll.u32 %v7302_v21, 16  ;;  %v1747_v30 = vrot.slane %v7717_v26, 1  ;;  %v7290_v31 = vld [vmem:[%s10206_s1 + $0x50] sm:$0xff]   ;;  %v7292_v36 = vld [vmem:[%s10206_s1 + $0x58] sm:$0xff]  }
  0x15   : > { %v7711_v22 = vld [vmem:[%s7691_s14 + $0x8] sm:$0xff]   ;;  %v7730_v33 = vld [vmem:[%s10206_s1 + $0xd0] sm:$0xff]   ;;  %v7745_v38 = vld [vmem:[%s10206_s1 + $0xd8] sm:$0xff]  }
  0x16   : > { %v1236_v25 = vshll.u32 %v7711_v22, 16  ;;  %v7304_v27 = vld [vmem:[%s7691_s14 + $0x8] sm:$0xfe]   ;;  %v1233_v28 = vrot.slane %v1231_v24, 1  ;;  %v7294_v39 = vld [vmem:[%s10206_s1 + $0x60] sm:$0xff]   ;;  %v7298_v43 = vld [vmem:[%s10206_s1 + $0x70] sm:$0xff]  }
  0x17   : > { %3847 = vmatpush1.bf16.msra.mxu1 %v7274_v5  ;;  %4024 = vmatpush1.bf16.msra.mxu0 %v7620_v6  ;;  %v1746_v32 = vrot.slane %v7304_v27, 1  ;;  %v7756_v40 = vld [vmem:[%s10206_s1 + $0xe0] sm:$0xff]   ;;  %v7296_v41 = vld [vmem:[%s10206_s1 + $0x68] sm:$0xff]   ;;  %v7310_v44 = vld [vmem:[%s7691_s14 + $0x10] sm:$0xff]   ;;  %v1240_v49 = vshrl.u32 %v7711_v22, 16 }
  0x18   : > { %3848 = vmatprep.subr.bf16.mxu1 %v7547_v1  ;;  %4025 = vmatprep.subr.bf16.mxu0 %v7547_v1  ;;  %v1238_v29 = vrot.slane %v1236_v25, 1  ;;  %v1234_v34 = vor.u32 %v1233_v28, %v1229_v23  ;;  %v7767_v42 = vld [vmem:[%s10206_s1 + $0xe8] sm:$0xff]   ;;  %v7777_v45 = vld [vmem:[%s10206_s1 + $0xf0] sm:$0xff]   ;;  %v7307_v47 = vld [vmem:[%s7691_s14] sm:$0xfe]   ;;  %v1244_v50 = vshll.u32 %v7310_v44, 16 }
  0x19   : > { %v1748_v35 = vsel %vm1542_vm1, %v1746_v32, %v1747_v30  ;;  %v7308_v46 = vld [vmem:[%s7691_s14 + $0x8] sm:$0xff]   ;;  %v7300_v48 = vld [vmem:[%s10206_s1 + $0x78] sm:$0xff]   ;;  %v1543_v54 = vrot.slane %v7307_v47, 1  ;;  %v7306_v56 = vld [vmem:[%s7691_s14] sm:$0xff]   ;;  %v1248_v63 = vshrl.u32 %v7310_v44, 16 }
  0x1a   : > { %v1239_v37 = vsel %vm1227_vm0, %v1234_v34, %v1238_v29  ;;  %4051 = vmatprep.mubr.bf16.mxu0 %v1748_v35  ;;  %v7311_v51 = vld [vmem:[%s7691_s14 + $0x18] sm:$0xff]   ;;  %v1544_v53 = vrot.slane %v7308_v46, 1  ;;  %v1242_v57 = vor.u32 %v1240_v49, %v1238_v29  ;;  %v1246_v58 = vrot.slane %v1244_v50, 1  ;;  %v7309_v59 = vld [vmem:[%s10206_s1 + $0x100] sm:$0xff]   ;;  %v7314_v61 = vld [vmem:[%s7691_s14 + $0x10] sm:$0xff]  }
  0x1b   : > { %3849 = vmatpush1.bf16.msra.mxu1 %v7276_v7  ;;  %4026 = vmatpush1.bf16.msra.mxu0 %v7631_v8  ;;  %v7792_v52 = vld [vmem:[%s10206_s1 + $0xf8] sm:$0xff]   ;;  %v1749_v60 = vrot.slane %v7311_v51, 1  ;;  %v7317_v5 = vld [vmem:[%s7691_s14 + $0x20] sm:$0xff]   ;;  %v7313_v21 = vld [vmem:[%s7691_s14 + $0x8] sm:$0xff]  }
  0x1c   : > { %3850 = vmatprep.subr.bf16.mxu1 %v7547_v1  ;;  %4027 = vmatprep.subr.bf16.mxu0 %v7547_v1  ;;  %v7316_v55 = vld [vmem:[%s7691_s14 + $0x18] sm:$0xff]   ;;  %v1545_v62 = vsel %vm1542_vm1, %v1543_v54, %v1544_v53  ;;  %v1247_v3 = vsel %vm1227_vm0, %v1242_v57, %v1246_v58  ;;  %v7323_v27 = vld [vmem:[%s7691_s14 + $0x28] sm:$0xff]   ;;  %v7318_v34 = vld [vmem:[%s7691_s14 + $0x10] sm:$0xff]  }
  0x1d   : > { %3874 = vmatprep.mubr.bf16.mxu1 %v1239_v37  ;;  %v1252_v0 = vshll.u32 %v7316_v55, 16  ;;  %v1750_v7 = vsel %vm1542_vm1, %v1747_v30, %v1749_v60  ;;  %v7319_v22 = vld [vmem:[%s7691_s14 + $0x18] sm:$0xff]   ;;  %v1256_v23 = vshrl.u32 %v7316_v55, 16  ;;  %v7328_v32 = vld [vmem:[%s7691_s14 + $0x28] sm:$0xff]   ;;  %v1753_v35 = vrot.slane %v7323_v27, 1  ;;  %v7325_v37 = vld [vmem:[%s7691_s14 + $0x20] sm:$0xff]  }
  0x1e   : > { %v1548_v28 = vrot.slane %v7319_v22, 1  ;;  %v7320_v29 = vld [vmem:[%s10206_s1 + $0x118] sm:$0xff]   ;;  %v1268_v44 = vshll.u32 %v7328_v32, 16  ;;  %v7329_v46 = vld [vmem:[%s7691_s14 + $0x30] sm:$0xff]   ;;  %v1550_v47 = vrot.slane %v7325_v37, 1  ;;  %v7331_v55 = vld [vmem:[%s7691_s14 + $0x28] sm:$0xff]  }
  0x1f   : > { %3851 = vmatpush1.bf16.msra.mxu1 %v7278_v9  ;;  %4028 = vmatpush1.bf16.msra.mxu0 %v7642_v10  ;;  %v7312_v9 = vld [vmem:[%s10206_s1 + $0x108] sm:$0xff]   ;;  %v7334_v51 = vld [vmem:[%s7691_s14 + $0x30] sm:$0xff]  }
  0x20   : > { %3852 = vmatprep.subr.bf16.mxu1 %v7547_v1  ;;  %4029 = vmatprep.subr.bf16.mxu0 %v7547_v1  ;;  %v1270_v50 = vrot.slane %v1268_v44, 1  ;;  %v7327_v54 = vld [vmem:[%s10206_s1 + $0x130] sm:$0xff]   ;;  %v7351_v37 = vld [vmem:[%s7691_s14 + $0x48] sm:$0xff]  }
  0x23   : > { %3853 = vmatpush1.bf16.msra.mxu1 %v7280_v11  ;;  %4030 = vmatpush1.bf16.msra.mxu0 %v7655_v12  ;;  %v7322_v11 = vld [vmem:[%s7691_s14 + $0x20] sm:$0xff]  }
  0x24   : > { %3854 = vmatprep.subr.bf16.mxu1 %v7547_v1  ;;  %4031 = vmatprep.subr.bf16.mxu0 %v7547_v1  ;;  %v1260_v24 = vshll.u32 %v7322_v11, 16 }
  0x27   : > { %3855 = vmatpush1.bf16.msra.mxu1 %v7282_v13  ;;  %4032 = vmatpush1.bf16.msra.mxu0 %v7670_v14  ;;  %v1546_v13 = vrot.slane %v7314_v61, 1  ;;  %v1552_v61 = vrot.slane %v7331_v55, 1 }
  0x28   : > { %3856 = vmatprep.subr.bf16.mxu1 %v7547_v1  ;;  %4033 = vmatprep.subr.bf16.mxu0 %v7547_v1 }
  0x29   : > { %v1547_v25 = vsel %vm1542_vm1, %v1544_v53, %v1546_v13  ;;  %v7324_v53 = vld [vmem:[%s7691_s14 + $0x18] sm:$0xff]  }
  0x2b   : > { %3857 = vmatpush1.bf16.msra.mxu1 %v7284_v15  ;;  %4034 = vmatpush1.bf16.msra.mxu0 %v7682_v16  ;;  %v1250_v15 = vor.u32 %v1248_v63, %v1246_v58  ;;  %v1272_v58 = vshrl.u32 %v7328_v32, 16 }
  0x2c   : > { %3858 = vmatprep.subr.bf16.mxu1 %v7547_v1  ;;  %4035 = vmatprep.subr.bf16.mxu0 %v7547_v1 }
  0x2d   : > { %v1274_v63 = vor.u32 %v1272_v58, %v1270_v50  ;;  %v7355_v58 = vld [vmem:[%s10206_s1 + $0x170] sm:$0xff]  }
  0x2f   : > { %3859 = vmatpush1.bf16.msra.mxu1 %v7286_v17  ;;  %4036 = vmatpush1.bf16.msra.mxu0 %v7698_v18  ;;  %v1254_v17 = vrot.slane %v1252_v0, 1 }
  0x30   : > { %3860 = vmatprep.subr.bf16.mxu1 %v7547_v1  ;;  %4037 = vmatprep.subr.bf16.mxu0 %v7547_v1 }
  0x31   : > { %v1255_v26 = vsel %vm1227_vm0, %v1250_v15, %v1254_v17  ;;  %v1258_v30 = vor.u32 %v1256_v23, %v1254_v17  ;;  %v1280_v17 = vshrl.u32 %v7334_v51, 16 }
  0x33   : > { %3861 = vmatpush1.bf16.msra.mxu1 %v7288_v19  ;;  %4038 = vmatpush1.bf16.msra.mxu0 %v7707_v20  ;;  %v1751_v19 = vrot.slane %v7317_v5, 1  ;;  %v7330_v5 = vld [vmem:[%s7691_s14 + $0x20] sm:$0xff]  }
  0x34   : > { %3862 = vmatprep.subr.bf16.mxu1 %v7547_v1  ;;  %4039 = vmatprep.subr.bf16.mxu0 %v7547_v1 }
  0x37   : > { %3863 = vmatpush1.bf16.msra.mxu1 %v7290_v31  ;;  %4040 = vmatpush1.bf16.msra.mxu0 %v7730_v33  ;;  %v1262_v31 = vrot.slane %v1260_v24, 1 }
  0x38   : > { %3864 = vmatprep.subr.bf16.mxu1 %v7547_v1  ;;  %4041 = vmatprep.subr.bf16.mxu0 %v7547_v1 }
  0x3b   : > { %3865 = vmatpush1.bf16.msra.mxu1 %v7292_v36  ;;  %4042 = vmatpush1.bf16.msra.mxu0 %v7745_v38  ;;  %v7321_v36 = vld [vmem:[%s10206_s1 + $0x120] sm:$0xff]  }
  0x3c   : > { %3866 = vmatprep.subr.bf16.mxu1 %v7547_v1  ;;  %4043 = vmatprep.subr.bf16.mxu0 %v7547_v1 }
  0x3f   : > { %3867 = vmatpush1.bf16.msra.mxu1 %v7294_v39  ;;  %4044 = vmatpush1.bf16.msra.mxu0 %v7756_v40  ;;  %v1549_v39 = vsel %vm1542_vm1, %v1546_v13, %v1548_v28  ;;  %v7333_v13 = vld [vmem:[%s10206_s1 + $0x140] sm:$0xff]  }
  0x40   : > { %3868 = vmatprep.subr.bf16.mxu1 %v7547_v1  ;;  %4045 = vmatprep.subr.bf16.mxu0 %v7547_v1 }
  0x43   : > { %3869 = vmatpush1.bf16.msra.mxu1 %v7296_v41  ;;  %4046 = vmatpush1.bf16.msra.mxu0 %v7767_v42  ;;  %v1263_v41 = vsel %vm1227_vm0, %v1258_v30, %v1262_v31 }
  0x44   : > { %3870 = vmatprep.subr.bf16.mxu1 %v7547_v1  ;;  %4047 = vmatprep.subr.bf16.mxu0 %v7547_v1 }
  0x47   : > { %3871 = vmatpush1.bf16.msra.mxu1 %v7298_v43  ;;  %4048 = vmatpush1.bf16.msra.mxu0 %v7777_v45  ;;  %v1264_v43 = vshrl.u32 %v7322_v11, 16  ;;  %v1553_v11 = vsel %vm1542_vm1, %v1550_v47, %v1552_v61 }
  0x48   : > { %3872 = vmatprep.subr.bf16.mxu1 %v7547_v1  ;;  %4049 = vmatprep.subr.bf16.mxu0 %v7547_v1 }
  0x49   : > { %v1266_v49 = vor.u32 %v1264_v43, %v1262_v31  ;;  %v7346_v31 = vld [vmem:[%s7691_s14 + $0x48] sm:$0xff]  }
  0x4b   : > { %3873 = vmatpush1.bf16.msra.mxu1 %v7300_v48  ;;  %4050 = vmatpush1.bf16.msra.mxu0 %v7792_v52  ;;  %v7326_v48 = vld [vmem:[%s10206_s1 + $0x128] sm:$0xff]   ;;  %v1271_v57 = vsel %vm1227_vm0, %v1266_v49, %v1270_v50  ;;  %v7939_v50 = vld [vmem:[%s7691_s14 + $0x50] sm:$0xff]  }
  0x4c   : > { %6975 = vmatprep.subr.bf16.mxu1 %v7547_v1  ;;  %4196 = vmatprep.subr.bf16.mxu0 %v7547_v1  ;;  %v7936_v49 = vld [vmem:[%s7691_s14 + $0x48] sm:$0xff]  }
  0x4e   : > { %3875 = vmatmul.mubr.bf16.vlgmr.msra.gmra.mrb[0].mxu1 %v7306_v56  ;;  %4052 = vmatmul.mubr.bf16.vlgmr.msra.gmra.mrb[0].mxu0 %v1545_v62  ;;  %v1551_v56 = vsel %vm1542_vm1, %v1548_v28, %v1550_v47  ;;  %v7332_v62 = vld [vmem:[%s10206_s1 + $0x138] sm:$0xff]   ;;  %v7341_v28 = vld [vmem:[%s10206_s1 + $0x150] sm:$0xff]   ;;  %v1300_v47 = vshll.u32 %v7351_v37, 16 }
  0x4f   : > { %6991 = vmatpush1.bf16.msra.mxu1 %v7599_v2  ;;  %4197 = vmatpush1.bf16.msra.mxu0 %v7309_v59  ;;  %v7315_v2 = vld [vmem:[%s10206_s1 + $0x110] sm:$0xff]   ;;  %v1276_v59 = vshll.u32 %v7334_v51, 16  ;;  %v7347_v51 = vld [vmem:[%s7691_s14 + $0x38] sm:$0xff]  }
  0x50   : > { %3882 = vmatprep.mubr.bf16.mxu1 %v1247_v3  ;;  %4198 = vmatprep.subr.bf16.mxu0 %v7547_v1  ;;  %v7339_v3 = vld [vmem:[%s7691_s14 + $0x38] sm:$0xff]  }
  0x51   : > { %4059 = vmatprep.mubr.bf16.mxu0 %v1750_v7  ;;  %6976 = vmatprep.subr.bf16.mxu1 %v7547_v1  ;;  %v1278_v0 = vrot.slane %v1276_v59, 1  ;;  %v7337_v7 = vld [vmem:[%s7691_s14 + $0x30] sm:$0xff]   ;;  %v7361_v59 = vld [vmem:[%s7691_s14 + $0x8] sm:$0xfe]  }
  0x53   : > { %6992 = vmatpush1.bf16.msra.mxu1 %v7609_v4  ;;  %4199 = vmatpush1.bf16.msra.mxu0 %v7312_v9  ;;  %v1752_v4 = vsel %vm1542_vm1, %v1749_v60, %v1751_v19  ;;  %v7879_v9 = vld [vmem:[%s7691_s14 + $0x40] sm:$0xff]   ;;  %v1279_v15 = vsel %vm1227_vm0, %v1274_v63, %v1278_v0  ;;  %v1282_v23 = vor.u32 %v1280_v17, %v1278_v0  ;;  %v7358_v63 = vld [vmem:[%s7691_s14 + $0x8] sm:$0xfc]   ;;  %v7359_v0 = vld [vmem:[%s7691_s14 + $0x10] sm:$0xff]  }
  0x54   : > { %6977 = vmatprep.subr.bf16.mxu1 %v7547_v1  ;;  %4200 = vmatprep.subr.bf16.mxu0 %v7547_v1  ;;  %v1759_v22 = vrot.slane %v7879_v9, 1  ;;  %v7969_v9 = vld [vmem:[%s7691_s14 + $0x58] sm:$0xff]   ;;  %v2288_v17 = vrot.slane %v7359_v0, 2  ;;  %v7377_v0 = vld [vmem:[%s7691_s14 + $0x28] sm:$0xff]  }
  0x56   : > { %3883 = vmatmul.mubr.bf16.gmra.mrb[4].mxu1 %v7313_v21  ;;  %4060 = vmatmul.mubr.bf16.gmra.mrb[4].mxu0 %v1547_v25  ;;  %v7338_v21 = vld [vmem:[%s10206_s1 + $0x148] sm:$0xff]   ;;  %v7345_v25 = vld [vmem:[%s7691_s14 + $0x40] sm:$0xff]  }
  0x57   : > { %3890 = vmatprep.mubr.bf16.mxu1 %v1255_v26  ;;  %4201 = vmatpush1.bf16.msra.mxu0 %v7315_v2  ;;  %v1554_v2 = vrot.slane %v7337_v7, 1  ;;  %v7900_v26 = vld [vmem:[%s7691_s14 + $0x38] sm:$0xff]   ;;  %v1292_v30 = vshll.u32 %v7345_v25, 16 }
  0x58   : > { %4067 = vmatprep.mubr.bf16.mxu0 %v1752_v4  ;;  %4202 = vmatprep.subr.bf16.mxu0 %v7547_v1  ;;  %v1556_v32 = vrot.slane %v7900_v26, 1 }
  0x59   : > { %6993 = vmatpush1.bf16.msra.mxu1 %v7620_v6  ;;  %v1754_v6 = vsel %vm1542_vm1, %v1751_v19, %v1753_v35  ;;  %v1284_v19 = vshll.u32 %v7339_v3, 16  ;;  %v1555_v4 = vsel %vm1542_vm1, %v1552_v61, %v1554_v2 }
  0x5a   : > { %6978 = vmatprep.subr.bf16.mxu1 %v7547_v1  ;;  %v1557_v43 = vsel %vm1542_vm1, %v1554_v2, %v1556_v32 }
  0x5b   : > { %4203 = vmatpush1.bf16.msra.mxu0 %v7320_v29  ;;  %v1286_v24 = vrot.slane %v1284_v19, 1  ;;  %v1288_v29 = vshrl.u32 %v7339_v3, 16  ;;  %v7353_v19 = vld [vmem:[%s7691_s14 + $0x40] sm:$0xff]  }
  0x5c   : > { %4204 = vmatprep.subr.bf16.mxu0 %v7547_v1 }
  0x5d   : > { %6994 = vmatpush1.bf16.msra.mxu1 %v7631_v8  ;;  %v1755_v8 = vrot.slane %v7329_v46, 1  ;;  %v1287_v27 = vsel %vm1227_vm0, %v1282_v23, %v1286_v24  ;;  %v1296_v46 = vshrl.u32 %v7345_v25, 16  ;;  %v1316_v23 = vshll.u32 %v7969_v9, 16 }
  0x5e   : > { %3891 = vmatmul.mubr.bf16.gmra.mrb[8].mxu1 %v7318_v34  ;;  %6979 = vmatprep.subr.bf16.mxu1 %v7547_v1  ;;  %v7344_v34 = vld [vmem:[%s10206_s1 + $0x158] sm:$0xff]  }
  0x5f   : > { %4068 = vmatmul.mubr.bf16.gmra.mrb[8].mxu0 %v1549_v39  ;;  %3898 = vmatprep.mubr.bf16.mxu1 %v1263_v41  ;;  %v1756_v60 = vsel %vm1542_vm1, %v1753_v35, %v1755_v8  ;;  %v1290_v35 = vor.u32 %v1288_v29, %v1286_v24  ;;  %v7342_v39 = vld [vmem:[%s7691_s14 + $0x30] sm:$0xff]   ;;  %v7922_v41 = vld [vmem:[%s7691_s14 + $0x40] sm:$0xff]   ;;  %v1318_v29 = vrot.slane %v1316_v23, 1 }
  0x60   : > { %4205 = vmatpush1.bf16.msra.mxu0 %v7321_v36  ;;  %4075 = vmatprep.mubr.bf16.mxu0 %v1754_v6  ;;  %v1294_v36 = vrot.slane %v1292_v30, 1  ;;  %v7349_v6 = vld [vmem:[%s10206_s1 + $0x160] sm:$0xff]  }
  0x61   : > { %4206 = vmatprep.subr.bf16.mxu0 %v7547_v1  ;;  %6995 = vmatpush1.bf16.msra.mxu1 %v7642_v10  ;;  %v7335_v10 = vld [vmem:[%s7691_s14 + $0x38] sm:$0xff]   ;;  %v7369_v30 = vld [vmem:[%s7691_s14 + $0x60] sm:$0xff]  }
  0x62   : > { %6980 = vmatprep.subr.bf16.mxu1 %v7547_v1  ;;  %v1295_v44 = vsel %vm1227_vm0, %v1290_v35, %v1294_v36  ;;  %v7372_v35 = vld [vmem:[%s7691_s14 + $0x20] sm:$0xff]  }
  0x64   : > { %4207 = vmatpush1.bf16.msra.mxu0 %v7326_v48  ;;  %v7930_v48 = vld [vmem:[%s7691_s14 + $0x50] sm:$0xff]  }
  0x65   : > { %4208 = vmatprep.subr.bf16.mxu0 %v7547_v1  ;;  %6996 = vmatpush1.bf16.msra.mxu1 %v7655_v12  ;;  %v1757_v12 = vrot.slane %v7335_v10, 1  ;;  %v1763_v55 = vrot.slane %v7930_v48, 1  ;;  %v1308_v10 = vshll.u32 %v7939_v50, 16 }
  0x66   : > { %3899 = vmatmul.mubr.bf16.gmra.mrb[12].mxu1 %v7324_v53  ;;  %6981 = vmatprep.subr.bf16.mxu1 %v7547_v1  ;;  %v1558_v53 = vrot.slane %v7922_v41, 1 }
  0x67   : > { %4076 = vmatmul.mubr.bf16.gmra.mrb[12].mxu0 %v1551_v56  ;;  %3906 = vmatprep.mubr.bf16.mxu1 %v1271_v57  ;;  %v7362_v56 = vld [vmem:[%s7691_s14 + $0x10] sm:$0xff]   ;;  %v1560_v57 = vrot.slane %v7936_v49, 1 }
  0x68   : > { %4209 = vmatpush1.bf16.msra.mxu0 %v7327_v54  ;;  %4083 = vmatprep.mubr.bf16.mxu0 %v1756_v60  ;;  %v1302_v54 = vrot.slane %v1300_v47, 1  ;;  %v1304_v60 = vshrl.u32 %v7351_v37, 16  ;;  %v1559_v61 = vsel %vm1542_vm1, %v1556_v32, %v1558_v53  ;;  %v1959_v3 = vshrl.u32 %v7362_v56, 16 }
  0x69   : > { %4210 = vmatprep.subr.bf16.mxu0 %v7547_v1  ;;  %6997 = vmatpush1.bf16.msra.mxu1 %v7670_v14  ;;  %v1758_v14 = vsel %vm1542_vm1, %v1755_v8, %v1757_v12  ;;  %v7350_v8 = vld [vmem:[%s10206_s1 + $0x168] sm:$0xff]   ;;  %v1962_v7 = vshll.u32 %v7362_v56, 16  ;;  %v1561_v24 = vsel %vm1542_vm1, %v1558_v53, %v1560_v57  ;;  %v1977_v47 = vshrl.u32 %v7372_v35, 16 }
  0x6a   : > { %6982 = vmatprep.subr.bf16.mxu1 %v7547_v1  ;;  %v7374_v53 = vld [vmem:[%s7691_s14 + $0x68] sm:$0xff]  }
  0x6c   : > { %4211 = vmatpush1.bf16.msra.mxu0 %v7332_v62 }
  0x6d   : > { %4212 = vmatprep.subr.bf16.mxu0 %v7547_v1  ;;  %6998 = vmatpush1.bf16.msra.mxu1 %v7682_v16  ;;  %v7336_v16 = vld [vmem:[%s7691_s14 + $0x28] sm:$0xff]  }
  0x6e   : > { %3907 = vmatmul.mubr.bf16.gmra.mrb[16].mxu1 %v7330_v5  ;;  %6983 = vmatprep.subr.bf16.mxu1 %v7547_v1  ;;  %v1954_v5 = vshll.u32 %v7361_v59, 16 }
  0x6f   : > { %4084 = vmatmul.mubr.bf16.gmra.mrb[16].mxu0 %v1553_v11  ;;  %3914 = vmatprep.mubr.bf16.mxu1 %v1279_v15  ;;  %v7356_v11 = vld [vmem:[%s10206_s1 + $0x178] sm:$0xff]   ;;  %v1310_v15 = vrot.slane %v1308_v10, 1 }
  0x70   : > { %4213 = vmatpush1.bf16.msra.mxu0 %v7333_v13  ;;  %4091 = vmatprep.mubr.bf16.mxu0 %v1758_v14  ;;  %v1306_v13 = vor.u32 %v1304_v60, %v1302_v54  ;;  %v1961_v14 = vrot.slane %v1959_v3, 1  ;;  %v1956_v2 = vrot.slane %v1954_v5, 2  ;;  %v7373_v60 = vld [vmem:[%s10206_s1 + $0x190] sm:$0xff]  }
  0x71   : > { %4214 = vmatprep.subr.bf16.mxu0 %v7547_v1  ;;  %6999 = vmatpush1.bf16.msra.mxu1 %v7698_v18  ;;  %v1760_v18 = vsel %vm1542_vm1, %v1757_v12, %v1759_v22  ;;  %v1951_v12 = vshrl.u32 %v7361_v59, 16  ;;  %v1328_v59 = vshrl.u32 %v7369_v30, 16  ;;  %v8023_v5 = vld [vmem:[%s7691_s14 + $0x70] sm:$0xff]  }
  0x72   : > { %6984 = vmatprep.subr.bf16.mxu1 %v7547_v1  ;;  %v1311_v25 = vsel %vm1227_vm0, %v1306_v13, %v1310_v15  ;;  %v1986_v13 = vshrl.u32 %v7377_v0, 16 }
  0x74   : > { %4215 = vmatpush1.bf16.msra.mxu0 %v7338_v21  ;;  %v1953_v21 = vrot.slane %v1951_v12, 1  ;;  %v8020_v12 = vld [vmem:[%s10206_s1 + $0x200] sm:$0xff]  }
  0x75   : > { %4216 = vmatprep.subr.bf16.mxu0 %v7547_v1  ;;  %7000 = vmatpush1.bf16.msra.mxu1 %v7707_v20  ;;  %v1761_v20 = vrot.slane %v7346_v31, 1 }
  0x76   : > { %3915 = vmatmul.mubr.bf16.gmra.mrb[20].mxu1 %v7336_v16  ;;  %6985 = vmatprep.subr.bf16.mxu1 %v7547_v1  ;;  %v1312_v16 = vshrl.u32 %v7939_v50, 16 }
  0x77   : > { %4092 = vmatmul.mubr.bf16.gmra.mrb[20].mxu0 %v1555_v4  ;;  %3922 = vmatprep.mubr.bf16.mxu1 %v1287_v27  ;;  %v7365_v4 = vld [vmem:[%s7691_s14 + $0x18] sm:$0xff]   ;;  %v1957_v27 = vor.u32 %v1956_v2, %v1953_v21  ;;  %v1340_v21 = vshll.u32 %v8023_v5, 16  ;;  %v7382_v2 = vld [vmem:[%s7691_s14 + $0x30] sm:$0xff]  }
  0x78   : > { %4099 = vmatprep.mubr.bf16.mxu0 %v1760_v18  ;;  %4217 = vmatpush1.bf16.msra.mxu0 %v7341_v28  ;;  %v1314_v18 = vor.u32 %v1312_v16, %v1310_v15  ;;  %v1989_v15 = vshll.u32 %v7377_v0, 16  ;;  %v7380_v16 = vld [vmem:[%s7691_s14 + $0x30] sm:$0xff]   ;;  %v7389_v0 = vld [vmem:[%s7691_s14 + $0x40] sm:$0xff]  }
  0x79   : > { %4218 = vmatprep.subr.bf16.mxu0 %v7547_v1  ;;  %7001 = vmatpush1.bf16.msra.mxu1 %v7730_v33  ;;  %v1762_v33 = vsel %vm1542_vm1, %v1759_v22, %v1761_v20  ;;  %v1964_v22 = vrot.slane %v1962_v7, 2 }
  0x7a   : > { %6986 = vmatprep.subr.bf16.mxu1 %v7547_v1 }
  0x7b   : > { %v1965_v28 = vor.u32 %v1964_v22, %v1961_v14  ;;  %v1336_v14 = vshrl.u32 %v7374_v53, 16 }
  0x7c   : > { %4219 = vmatpush1.bf16.msra.mxu0 %v7344_v34  ;;  %v2290_v34 = vrot.slane %v7365_v4, 2  ;;  %v8043_v4 = vld [vmem:[%s7691_s14 + $0x78] sm:$0xff]  }
  0x7d   : > { %4220 = vmatprep.subr.bf16.mxu0 %v7547_v1  ;;  %7002 = vmatpush1.bf16.msra.mxu1 %v7745_v38  ;;  %v1298_v38 = vor.u32 %v1296_v46, %v1294_v36  ;;  %v7360_v36 = vld [vmem:[%s7691_s14 + $0x48] sm:$0xff]   ;;  %v1966_v37 = vsel %vm1949_vm3, %v1957_v27, %v1965_v28  ;;  %v7370_v46 = vld [vmem:[%s7691_s14 + $0x20] sm:$0xff]   ;;  %v1342_v27 = vrot.slane %v1340_v21, 1 }
  0x7e   : > { %3923 = vmatmul.mubr.bf16.gmra.mrb[24].mxu1 %v7342_v39  ;;  %6987 = vmatprep.subr.bf16.mxu1 %v7547_v1  ;;  %v1319_v39 = vsel %vm1227_vm0, %v1314_v18, %v1318_v29  ;;  %v2292_v56 = vrot.slane %v7370_v46, 2  ;;  %v1998_v18 = vshll.u32 %v7382_v2, 16 }
  0x7f   : > { %4100 = vmatmul.mubr.bf16.gmra.mrb[24].mxu0 %v1557_v43  ;;  %3930 = vmatprep.mubr.bf16.mxu1 %v1295_v44  ;;  %v1303_v62 = vsel %vm1227_vm0, %v1298_v38, %v1302_v54  ;;  %v1320_v44 = vshrl.u32 %v7969_v9, 16  ;;  %v7366_v54 = vld [vmem:[%s7691_s14 + $0x50] sm:$0xff]  }
  0x80   : > { %4107 = vmatprep.mubr.bf16.mxu0 %v1762_v33  ;;  %4221 = vmatpush1.bf16.msra.mxu0 %v7349_v6  ;;  %v2291_v6 = vsel %vm2286_vm2, %v2288_v17, %v2290_v34  ;;  %v7368_v33 = vld [vmem:[%s10206_s1 + $0x188] sm:$0xff]   ;;  %v2293_v3 = vsel %vm2286_vm2, %v2290_v34, %v2292_v56  ;;  %v2296_v34 = vrot.slane %v7380_v16, 2 }
  0x81   : > { %4222 = vmatprep.subr.bf16.mxu0 %v7547_v1  ;;  %7003 = vmatpush1.bf16.msra.mxu1 %v7756_v40  ;;  %v1764_v40 = vsel %vm1542_vm1, %v1761_v20, %v1763_v55  ;;  %v7363_v20 = vld [vmem:[%s10206_s1 + $0x180] sm:$0xff]   ;;  %v1322_v38 = vor.u32 %v1320_v44, %v1318_v29 }
  0x82   : > { %6988 = vmatprep.subr.bf16.mxu1 %v7547_v1  ;;  %v8057_v44 = vld [vmem:[%s7691_s14 + $0x80] sm:$0xff]  }
  0x84   : > { %4223 = vmatpush1.bf16.msra.mxu0 %v7350_v8 }
  0x85   : > { %4224 = vmatprep.subr.bf16.mxu0 %v7547_v1  ;;  %7004 = vmatpush1.bf16.msra.mxu1 %v7767_v42  ;;  %v2287_v42 = vrot.slane %v7358_v63, 2 }
  0x86   : > { %3931 = vmatmul.mubr.bf16.gmra.mrb[28].mxu1 %v7347_v51  ;;  %6989 = vmatprep.subr.bf16.mxu1 %v7547_v1  ;;  %v1980_v51 = vshll.u32 %v7372_v35, 16  ;;  %v1348_v35 = vshll.u32 %v8043_v4, 16 }
  0x87   : > { %4108 = vmatmul.mubr.bf16.gmra.mrb[28].mxu0 %v1559_v61  ;;  %3938 = vmatprep.mubr.bf16.mxu1 %v1303_v62  ;;  %v2289_v26 = vsel %vm2286_vm2, %v2287_v42, %v2288_v17  ;;  %v8010_v61 = vld [vmem:[%s7691_s14 + $0x28] sm:$0xff]   ;;  %v7378_v42 = vld [vmem:[%s10206_s1 + $0x198] sm:$0xff]  }
  0x88   : > { %4115 = vmatprep.mubr.bf16.mxu0 %v1764_v40  ;;  %4225 = vmatpush1.bf16.msra.mxu0 %v7355_v58  ;;  %v1979_v58 = vrot.slane %v1977_v47, 1  ;;  %v1982_v10 = vrot.slane %v1980_v51, 2  ;;  %v1332_v40 = vshll.u32 %v7374_v53, 16  ;;  %v2294_v17 = vrot.slane %v8010_v61, 2 }
  0x89   : > { %4226 = vmatprep.subr.bf16.mxu0 %v7547_v1  ;;  %7005 = vmatpush1.bf16.msra.mxu1 %v7777_v45  ;;  %v7367_v45 = vld [vmem:[%s7691_s14 + $0x18] sm:$0xff]   ;;  %v1350_v47 = vrot.slane %v1348_v35, 1 }
  0x8a   : > { %6990 = vmatprep.subr.bf16.mxu1 %v7547_v1  ;;  %v1968_v31 = vshrl.u32 %v7367_v45, 16  ;;  %v1971_v32 = vshll.u32 %v7367_v45, 16  ;;  %v1983_v9 = vor.u32 %v1982_v10, %v1979_v58  ;;  %v7383_v45 = vld [vmem:[%s10206_s1 + $0x1a0] sm:$0xff]   ;;  %v2297_v46 = vsel %vm2286_vm2, %v2294_v17, %v2296_v34 }
  0x8c   : > { %4227 = vmatpush1.bf16.msra.mxu0 %v7356_v11  ;;  %v1970_v41 = vrot.slane %v1968_v31, 1  ;;  %v1973_v43 = vrot.slane %v1971_v32, 2  ;;  %v1334_v11 = vrot.slane %v1332_v40, 1  ;;  %v7390_v31 = vld [vmem:[%s10206_s1 + $0x1a8] sm:$0xff]   ;;  %v7376_v32 = vld [vmem:[%s7691_s14 + $0x60] sm:$0xff]  }
  0x8d   : > { %4373 = vmatprep.subr.bf16.mxu0 %v7547_v1  ;;  %7006 = vmatpush1.bf16.msra.mxu1 %v7792_v52  ;;  %v1324_v52 = vshll.u32 %v7369_v30, 16 }
  0x8e   : > { %3939 = vmatmul.mubr.bf16.gmra.mrb[32].mxu1 %v7353_v19  ;;  %v1974_v8 = vor.u32 %v1973_v43, %v1970_v41  ;;  %6871 = vmatprep.subr.bf16.mxu1 %v8020_v12  ;;  %v7371_v19 = vld [vmem:[%s7691_s14 + $0x58] sm:$0xff]   ;;  %v1338_v30 = vor.u32 %v1336_v14, %v1334_v11  ;;  %v2000_v43 = vrot.slane %v1998_v18, 2  ;;  %v7396_v14 = vld [vmem:[%s7691_s14 + $0x48] sm:$0xff]  }
  0x8f   : > { %4116 = vmatmul.mubr.bf16.gmra.mrb[32].mxu0 %v1561_v24  ;;  %3946 = vmatprep.mubr.bf16.mxu1 %v1311_v25  ;;  %v1326_v50 = vrot.slane %v1324_v52, 1  ;;  %v1988_v24 = vrot.slane %v1986_v13, 1  ;;  %v1991_v25 = vrot.slane %v1989_v15, 2  ;;  %v7385_v52 = vld [vmem:[%s7691_s14 + $0x38] sm:$0xff]  }
  0x90   : > { %4228 = vmatprep.mubr.bf16.mxu0 %v2289_v26  ;;  %v1975_v62 = vsel %vm1949_vm3, %v1965_v28, %v1974_v8  ;;  %v1984_v22 = vsel %vm1949_vm3, %v1974_v8, %v1983_v9  ;;  %v2295_v26 = vsel %vm2286_vm2, %v2292_v56, %v2294_v17  ;;  %v1995_v28 = vshrl.u32 %v7382_v2, 16  ;;  %v7402_v8 = vld [vmem:[%s10206_s1 + $0x1b8] sm:$0xff]  }
  0x91   : > { %v1327_v63 = vsel %vm1227_vm0, %v1322_v38, %v1326_v50  ;;  %v1330_v7 = vor.u32 %v1328_v59, %v1326_v50  ;;  %v1992_v29 = vor.u32 %v1991_v25, %v1988_v24  ;;  %v7381_v38 = vld [vmem:[%s7691_s14 + $0x68] sm:$0xff]   ;;  %v1356_v56 = vshll.u32 %v8057_v44, 16  ;;  %v7420_v25 = vld [vmem:[%s10206_s1 + $0x1d0] sm:$0xff]   ;;  %v7426_v18 = vld [vmem:[%s10206_s1 + $0x1d8] sm:$0xff]  }
  0x92   : > { %v1997_v41 = vrot.slane %v1995_v28, 1  ;;  %v1352_v59 = vshrl.u32 %v8043_v4, 16  ;;  %v2300_v17 = vrot.slane %v7389_v0, 2 }
  0x93   : > { %v1335_v23 = vsel %vm1227_vm0, %v1330_v7, %v1334_v11  ;;  %v7414_v11 = vld [vmem:[%s10206_s1 + $0x1c8] sm:$0xff]  }
  0x94   : > { %v2001_v50 = vor.u32 %v2000_v43, %v1997_v41  ;;  %v1354_v15 = vor.u32 %v1352_v59, %v1350_v47  ;;  %v7432_v41 = vld [vmem:[%s10206_s1 + $0x1e0] sm:$0xff]  }
  0x96   : > { %3947 = vmatmul.mubr.bf16.gmra.mrb[36].mxu1 %v7360_v36  ;;  %v7387_v36 = vld [vmem:[%s7691_s14 + $0x38] sm:$0xff]   ;;  %v2002_v10 = vsel %vm1949_vm3, %v1992_v29, %v2001_v50 }
  0x97   : > { %4229 = vmatmul.mubr.bf16.vlgmr.msra.gmra.mrb[0].mxu0 %v1966_v37  ;;  %3954 = vmatprep.mubr.bf16.mxu1 %v1319_v39  ;;  %v1344_v37 = vshrl.u32 %v8023_v5, 16  ;;  %v1343_v39 = vsel %vm1227_vm0, %v1338_v30, %v1342_v27  ;;  %v2007_v53 = vshll.u32 %v7387_v36, 16  ;;  %v2025_v30 = vshll.u32 %v7396_v14, 16 }
  0x98   : > { %4374 = vmatpush1.bf16.msra.mxu0 %v7363_v20  ;;  %4236 = vmatprep.mubr.bf16.mxu0 %v2291_v6  ;;  %v1993_v20 = vsel %vm1949_vm3, %v1983_v9, %v1992_v29  ;;  %v7397_v6 = vld [vmem:[%s10206_s1 + $0x1b0] sm:$0xff]   ;;  %v7393_v9 = vld [vmem:[%s7691_s14 + $0x88] sm:$0xff]  }
  0x99   : > { %4375 = vmatprep.subr.bf16.mxu0 %v7547_v1  ;;  %v1346_v51 = vor.u32 %v1344_v37, %v1342_v27  ;;  %v1364_v2 = vshll.u32 %v7393_v9, 16  ;;  %v7398_v27 = vld [vmem:[%s7691_s14 + $0x90] ss:$0 sps:$4 sm:$0x11]   ;;  %v1368_v35 = vshrl.u32 %v7393_v9, 16 }
  0x9a   : > { %v7401_v37 = vld [vmem:[%s7691_s14 + $0x50] sm:$0xff]  }
  0x9b   : > { %v1351_v61 = vsel %vm1227_vm0, %v1346_v51, %v1350_v47  ;;  %v1366_v4 = vrot.slane %v1364_v2, 1  ;;  %v7440_v51 = vld [vmem:[%s10206_s1 + $0x1e8] sm:$0xff]   ;;  %v7410_v2 = vld [vmem:[%s7691_s14 + $0x60] sm:$0xff]  }
  0x9c   : > { %4376 = vmatpush1.bf16.msra.mxu0 %v7368_v33  ;;  %v2004_v33 = vshrl.u32 %v7387_v36, 16  ;;  %v1372_v36 = vshll.u32 %v7398_v27, 16 }
  0x9d   : > { %4377 = vmatprep.subr.bf16.mxu0 %v7547_v1 }
  0x9e   : > { %3955 = vmatmul.mubr.bf16.gmra.mrb[40].mxu1 %v7366_v54  ;;  %v2298_v54 = vrot.slane %v7385_v52, 2  ;;  %v2006_v58 = vrot.slane %v2004_v33, 1  ;;  %v1370_v33 = vor.u32 %v1368_v35, %v1366_v4 }
  0x9f   : > { %4237 = vmatmul.mubr.bf16.gmra.mrb[4].mxu0 %v1975_v62  ;;  %3962 = vmatprep.mubr.bf16.mxu1 %v1327_v63  ;;  %v2009_v62 = vrot.slane %v2007_v53, 2  ;;  %v7408_v63 = vld [vmem:[%s10206_s1 + $0x1c0] sm:$0xff]  }
  0xa0   : > { %4244 = vmatprep.mubr.bf16.mxu0 %v2293_v3  ;;  %4378 = vmatpush1.bf16.msra.mxu0 %v7373_v60  ;;  %v7392_v60 = vld [vmem:[%s7691_s14 + $0x40] sm:$0xff]   ;;  %v2299_v40 = vsel %vm2286_vm2, %v2296_v34, %v2298_v54  ;;  %v1358_v3 = vrot.slane %v1356_v56, 1  ;;  %v2301_v16 = vsel %vm2286_vm2, %v2298_v54, %v2300_v17  ;;  %v7406_v54 = vld [vmem:[%s7691_s14 + $0x58] sm:$0xff]  }
  0xa1   : > { %4379 = vmatprep.subr.bf16.mxu0 %v7547_v1  ;;  %v2013_v5 = vshrl.u32 %v7392_v60, 16  ;;  %v2016_v7 = vshll.u32 %v7392_v60, 16  ;;  %v2010_v13 = vor.u32 %v2009_v62, %v2006_v58  ;;  %v7404_v62 = vld [vmem:[%s7691_s14 + $0x58] sm:$0xff]  }
  0xa2   : > { %v2306_v9 = vrot.slane %v7404_v62, 2 }
  0xa3   : > { %v2015_v21 = vrot.slane %v2013_v5, 1  ;;  %v2018_v24 = vrot.slane %v2016_v7, 2  ;;  %v7454_v5 = vld [vmem:[%s10206_s1 + $0x1f8] sm:$0xff]   ;;  %v7400_v7 = vld [vmem:[%s7691_s14 + $0x88] sm:$0xff]  }
  0xa4   : > { %4380 = vmatpush1.bf16.msra.mxu0 %v7378_v42  ;;  %v7386_v42 = vld [vmem:[%s7691_s14 + $0x70] sm:$0xff]  }
  0xa5   : > { %4381 = vmatprep.subr.bf16.mxu0 %v7547_v1  ;;  %v2019_v28 = vor.u32 %v2018_v24, %v2015_v21  ;;  %v2308_v24 = vrot.slane %v7410_v2, 2 }
  0xa6   : > { %3963 = vmatmul.mubr.bf16.gmra.mrb[44].mxu1 %v7371_v19  ;;  %v1360_v19 = vshrl.u32 %v8057_v44, 16  ;;  %v7399_v44 = vld [vmem:[%s7691_s14 + $0x50] sm:$0xff]  }
  0xa7   : > { %4245 = vmatmul.mubr.bf16.gmra.mrb[8].mxu0 %v1984_v22  ;;  %3970 = vmatprep.mubr.bf16.mxu1 %v1335_v23  ;;  %v2011_v22 = vsel %vm1949_vm3, %v2001_v50, %v2010_v13  ;;  %v1359_v23 = vsel %vm1227_vm0, %v1354_v15, %v1358_v3  ;;  %v2020_v52 = vsel %vm1949_vm3, %v2010_v13, %v2019_v28  ;;  %v2034_v50 = vshll.u32 %v7401_v37, 16  ;;  %v7409_v13 = vld [vmem:[%s7691_s14 + $0x60] sm:$0xff]  }
  0xa8   : > { %4252 = vmatprep.mubr.bf16.mxu0 %v2295_v26  ;;  %4382 = vmatpush1.bf16.msra.mxu0 %v7383_v45  ;;  %v7394_v45 = vld [vmem:[%s7691_s14 + $0x48] sm:$0xff]   ;;  %v2022_v26 = vshrl.u32 %v7396_v14, 16  ;;  %v1362_v29 = vor.u32 %v1360_v19, %v1358_v3  ;;  %v2304_v53 = vrot.slane %v7399_v44, 2  ;;  %v2043_v3 = vshll.u32 %v7406_v54, 16  ;;  %v7412_v14 = vld [vmem:[%s7691_s14 + $0x60] sm:$0xff]  }
  0xa9   : > { %4383 = vmatprep.subr.bf16.mxu0 %v7547_v1  ;;  %v2036_v60 = vrot.slane %v2034_v50, 2 }
  0xaa   : > { %v2024_v34 = vrot.slane %v2022_v26, 1  ;;  %v2045_v19 = vrot.slane %v2043_v3, 2  ;;  %v2307_v21 = vsel %vm2286_vm2, %v2304_v53, %v2306_v9  ;;  %v7418_v26 = vld [vmem:[%s7691_s14 + $0x68] sm:$0xff]  }
  0xab   : > { %v2061_v35 = vshll.u32 %v7418_v26, 16 }
  0xac   : > { %4384 = vmatpush1.bf16.msra.mxu0 %v7390_v31  ;;  %v7391_v31 = vld [vmem:[%s7691_s14 + $0x78] sm:$0xff]  }
  0xad   : > { %4385 = vmatprep.subr.bf16.mxu0 %v7547_v1 }
  0xae   : > { %3971 = vmatmul.mubr.bf16.gmra.mrb[48].mxu1 %v7376_v32  ;;  %v2302_v32 = vrot.slane %v7394_v45, 2 }
  0xaf   : > { %4253 = vmatmul.mubr.bf16.gmra.mrb[12].mxu0 %v1993_v20  ;;  %3978 = vmatprep.mubr.bf16.mxu1 %v1343_v39  ;;  %v1367_v20 = vsel %vm1227_vm0, %v1362_v29, %v1366_v4  ;;  %v2027_v39 = vrot.slane %v2025_v30, 2  ;;  %v7413_v29 = vld [vmem:[%s10206_s1 + $0x208] sm:$0xff]  }
  0xb0   : > { %4260 = vmatprep.mubr.bf16.mxu0 %v2297_v46  ;;  %4386 = vmatpush1.bf16.msra.mxu0 %v7397_v6  ;;  %v2303_v43 = vsel %vm2286_vm2, %v2300_v17, %v2302_v32  ;;  %v1374_v6 = vrot.slane %v1372_v36, 1  ;;  %v2031_v46 = vshrl.u32 %v7401_v37, 16  ;;  %v7419_v36 = vld [vmem:[%s10206_s1 + $0x210] sm:$0xff]  }
  0xb1   : > { %4387 = vmatprep.subr.bf16.mxu0 %v7547_v1  ;;  %v2028_v47 = vor.u32 %v2027_v39, %v2024_v34 }
  0xb2   : > { %v1375_v58 = vsel %vm1227_vm0, %v1370_v33, %v1374_v6  ;;  %v2033_v59 = vrot.slane %v2031_v46, 1  ;;  %v2063_v6 = vrot.slane %v2061_v35, 2  ;;  %v7422_v46 = vld [vmem:[%s7691_s14 + $0x70] sm:$0xff]   ;;  %v7425_v33 = vld [vmem:[%s10206_s1 + $0x218] sm:$0xff]   ;;  %v7442_v35 = vld [vmem:[%s7691_s14 + $0x88] sm:$0xff]  }
  0xb3   : > { %v2029_v56 = vsel %vm1949_vm3, %v2019_v28, %v2028_v47 }
  0xb4   : > { %4388 = vmatpush1.bf16.msra.mxu0 %v7402_v8  ;;  %v7395_v8 = vld [vmem:[%s7691_s14 + $0x80] sm:$0xff]   ;;  %v2037_v0 = vor.u32 %v2036_v60, %v2033_v59  ;;  %v7427_v59 = vld [vmem:[%s7691_s14 + $0x78] sm:$0xff]  }
  0xb5   : > { %4389 = vmatprep.subr.bf16.mxu0 %v7547_v1 }
  0xb6   : > { %3979 = vmatmul.mubr.bf16.gmra.mrb[52].mxu1 %v7381_v38  ;;  %v7403_v38 = vld [vmem:[%s7691_s14 + $0x58] sm:$0xff]   ;;  %v2038_v15 = vsel %vm1949_vm3, %v2028_v47, %v2037_v0 }
  0xb7   : > { %4261 = vmatmul.mubr.bf16.gmra.mrb[16].mxu0 %v2002_v10  ;;  %3986 = vmatprep.mubr.bf16.mxu1 %v1351_v61  ;;  %v7448_v10 = vld [vmem:[%s10206_s1 + $0x1f0] sm:$0xff]   ;;  %v2305_v61 = vsel %vm2286_vm2, %v2302_v32, %v2304_v53 }
  0xb8   : > { %4268 = vmatprep.mubr.bf16.mxu0 %v2299_v40  ;;  %4390 = vmatpush1.bf16.msra.mxu0 %v7408_v63  ;;  %v1765_v63 = vrot.slane %v7403_v38, 1  ;;  %v2040_v40 = vshrl.u32 %v7406_v54, 16  ;;  %v2312_v54 = vrot.slane %v7422_v46, 2  ;;  %v7447_v46 = vld [vmem:[%s7691_s14 + $0x90] sm:$0xff]  }
  0xb9   : > { %4391 = vmatprep.subr.bf16.mxu0 %v7547_v1 }
  0xba   : > { %v2042_v17 = vrot.slane %v2040_v40, 1 }
  0xbc   : > { %4392 = vmatpush1.bf16.msra.mxu0 %v7414_v11  ;;  %v7405_v11 = vld [vmem:[%s7691_s14 + $0x50] sm:$0xff]   ;;  %v2046_v48 = vor.u32 %v2045_v19, %v2042_v17 }
  0xbd   : > { %4393 = vmatprep.subr.bf16.mxu0 %v7547_v1  ;;  %v7443_v17 = vld [vmem:[%s10206_s1 + $0x230] sm:$0xff]  }
  0xbe   : > { %3987 = vmatmul.mubr.bf16.gmra.mrb[56].mxu1 %v7386_v42  ;;  %v1766_v42 = vsel %vm1542_vm1, %v1763_v55, %v1765_v63  ;;  %v2052_v55 = vshll.u32 %v7412_v14, 16  ;;  %v2047_v4 = vsel %vm1949_vm3, %v2037_v0, %v2046_v48  ;;  %v7430_v0 = vld [vmem:[%s7691_s14 + $0x78] sm:$0xff]   ;;  %v7429_v19 = vld [vmem:[%s7691_s14 + $0x70] sm:$0xff]  }
  0xbf   : > { %4269 = vmatmul.mubr.bf16.gmra.mrb[20].mxu0 %v2011_v22  ;;  %3994 = vmatprep.mubr.bf16.mxu1 %v1359_v23  ;;  %v1767_v22 = vrot.slane %v7409_v13, 1  ;;  %v2049_v23 = vshrl.u32 %v7412_v14, 16  ;;  %v2076_v13 = vshrl.u32 %v7430_v0, 16 }
  0xc0   : > { %4276 = vmatprep.mubr.bf16.mxu0 %v2301_v16  ;;  %4394 = vmatpush1.bf16.msra.mxu0 %v7420_v25  ;;  %v7411_v25 = vld [vmem:[%s7691_s14 + $0x58] sm:$0xff]   ;;  %v7415_v16 = vld [vmem:[%s7691_s14 + $0x68] sm:$0xff]   ;;  %v2054_v28 = vrot.slane %v2052_v55, 2  ;;  %v7434_v55 = vld [vmem:[%s7691_s14 + $0x80] sm:$0xff]  }
  0xc1   : > { %4395 = vmatprep.subr.bf16.mxu0 %v7547_v1  ;;  %v2051_v27 = vrot.slane %v2049_v23, 1  ;;  %v1768_v30 = vsel %vm1542_vm1, %v1765_v63, %v1767_v22  ;;  %v1564_v32 = vrot.slane %v7411_v25, 1  ;;  %v1769_v49 = vrot.slane %v7415_v16, 1  ;;  %v7433_v23 = vld [vmem:[%s7691_s14 + $0x80] sm:$0xff]   ;;  %v7451_v25 = vld [vmem:[%s10206_s1 + $0x238] sm:$0xff]  }
  0xc2   : > { %v1570_v16 = vrot.slane %v7429_v19, 1 }
  0xc3   : > { %v2055_v34 = vor.u32 %v2054_v28, %v2051_v27  ;;  %v1770_v44 = vsel %vm1542_vm1, %v1767_v22, %v1769_v49  ;;  %v2078_v22 = vrot.slane %v2076_v13, 1  ;;  %v2316_v28 = vrot.slane %v7434_v55, 2  ;;  %v7456_v13 = vld [vmem:[%s7691_s14 + $0x18] sm:$0xff]  }
  0xc4   : > { %4396 = vmatpush1.bf16.msra.mxu0 %v7426_v18  ;;  %v2309_v18 = vsel %vm2286_vm2, %v2306_v9, %v2308_v24  ;;  %v1773_v9 = vrot.slane %v7427_v59, 1  ;;  %v2706_v55 = vshll.u32 %v7456_v13, 16 }
  0xc5   : > { %4397 = vmatprep.subr.bf16.mxu0 %v7547_v1 }
  0xc6   : > { %3995 = vmatmul.mubr.bf16.gmra.mrb[60].mxu1 %v7391_v31  ;;  %v7416_v31 = vld [vmem:[%s7691_s14 + $0x68] sm:$0xff]  }
  0xc7   : > { %4277 = vmatmul.mubr.bf16.gmra.mrb[24].mxu0 %v2020_v52  ;;  %4002 = vmatprep.mubr.bf16.mxu1 %v1367_v20  ;;  %v2310_v37 = vrot.slane %v7416_v31, 2  ;;  %v7417_v52 = vld [vmem:[%s7691_s14 + $0x60] sm:$0xff]  }
  0xc8   : > { %4284 = vmatprep.mubr.bf16.mxu0 %v2303_v43  ;;  %4398 = vmatpush1.bf16.msra.mxu0 %v7432_v41  ;;  %v7421_v41 = vld [vmem:[%s7691_s14 + $0x70] sm:$0xff]   ;;  %v2056_v43 = vsel %vm1949_vm3, %v2046_v48, %v2055_v34  ;;  %v1566_v50 = vrot.slane %v7417_v52, 1 }
  0xc9   : > { %4399 = vmatprep.subr.bf16.mxu0 %v7547_v1  ;;  %v2311_v47 = vsel %vm2286_vm2, %v2308_v24, %v2310_v37  ;;  %v2313_v3 = vsel %vm2286_vm2, %v2310_v37, %v2312_v54  ;;  %v7439_v37 = vld [vmem:[%s7691_s14 + $0x88] sm:$0xff]  }
  0xca   : > { %v1567_v60 = vsel %vm1542_vm1, %v1564_v32, %v1566_v50 }
  0xcc   : > { %4400 = vmatpush1.bf16.msra.mxu0 %v7440_v51 }
  0xcd   : > { %4401 = vmatprep.subr.bf16.mxu0 %v7547_v1 }
  0xce   : > { %4003 = vmatmul.mubr.bf16.gmra.mrb[64].mxu1 %v7395_v8  ;;  %v1771_v8 = vrot.slane %v7421_v41, 1  ;;  %v2094_v41 = vshrl.u32 %v7442_v35, 16 }
  0xcf   : > { %4285 = vmatmul.mubr.bf16.gmra.mrb[28].mxu0 %v2029_v56  ;;  %4010 = vmatprep.mubr.bf16.mxu1 %v1375_v58  ;;  %v7423_v56 = vld [vmem:[%s7691_s14 + $0x68] sm:$0xff]   ;;  %v7431_v58 = vld [vmem:[%s10206_s1 + $0x220] sm:$0xff]  }
  0xd0   : > { %4292 = vmatprep.mubr.bf16.mxu0 %v2305_v61  ;;  %4402 = vmatpush1.bf16.msra.mxu0 %v7448_v10  ;;  %v7428_v61 = vld [vmem:[%s7691_s14 + $0x78] sm:$0xff]   ;;  %v1772_v63 = vsel %vm1542_vm1, %v1769_v49, %v1771_v8 }
  0xd1   : > { %4403 = vmatprep.subr.bf16.mxu0 %v7547_v1  ;;  %v1562_v1 = vrot.slane %v7405_v11, 1 }
  0xd3   : > { %v1563_v45 = vsel %vm1542_vm1, %v1560_v57, %v1562_v1  ;;  %v2058_v57 = vshrl.u32 %v7418_v26, 16  ;;  %v1565_v20 = vsel %vm1542_vm1, %v1562_v1, %v1564_v32  ;;  %v1774_v1 = vsel %vm1542_vm1, %v1771_v8, %v1773_v9  ;;  %v7438_v32 = vld [vmem:[%s7691_s14 + $0x88] sm:$0xff]  }
  0xd4   : > { %4404 = vmatpush1.bf16.msra.mxu0 %v7454_v5  ;;  %v7437_v5 = vld [vmem:[%s10206_s1 + $0x228] sm:$0xff]  }
  0xd5   : > { %v2060_v39 = vrot.slane %v2058_v57, 1 }
  0xd6   : > { %4011 = vmatmul.mubr.bf16.gmra.mrb[68].mxu1 %v7400_v7  ;;  %v1568_v7 = vrot.slane %v7423_v56, 1  ;;  %v2103_v56 = vshrl.u32 %v7447_v46, 16 }
  0xd7   : > { %4293 = vmatmul.mubr.bf16.gmra.mrb[32].mxu0 %v2038_v15  ;;  %4123 = vmatprep.mubr.bf16.mxu1 %v1766_v42  ;;  %v2064_v53 = vor.u32 %v2063_v6, %v2060_v39  ;;  %v2079_v15 = vshll.u32 %v7430_v0, 16  ;;  %v2314_v42 = vrot.slane %v7428_v61, 2  ;;  %v1777_v39 = vrot.slane %v7438_v32, 1  ;;  %v7449_v61 = vld [vmem:[%s7691_s14 + $0x98] ss:$0 sps:$4 sm:$0x11]  }
  0xd8   : > { %4300 = vmatprep.mubr.bf16.mxu0 %v2307_v21  ;;  %v1569_v14 = vsel %vm1542_vm1, %v1566_v50, %v1568_v7  ;;  %v7436_v21 = vld [vmem:[%s7691_s14 + $0x80] sm:$0xff]   ;;  %v2096_v50 = vrot.slane %v2094_v41, 1  ;;  %v2105_v0 = vrot.slane %v2103_v56, 1  ;;  %v2708_v32 = vrot.slane %v2706_v55, 3  ;;  %v7459_v41 = vld [vmem:[%s7691_s14 + $0x10] sm:$0xfc]  }
  0xd9   : > { %v2065_v62 = vsel %vm1949_vm3, %v2055_v34, %v2064_v53  ;;  %v2081_v48 = vrot.slane %v2079_v15, 2  ;;  %v2315_v24 = vsel %vm2286_vm2, %v2312_v54, %v2314_v42  ;;  %v2088_v27 = vshll.u32 %v7436_v21, 16 }
  0xdb   : > { %v2082_v26 = vor.u32 %v2081_v48, %v2078_v22  ;;  %v2090_v34 = vrot.slane %v2088_v27, 2  ;;  %v2703_v22 = vshrl.u32 %v7456_v13, 16  ;;  %v7467_v13 = vld [vmem:[%s10207_s2 + $0x8] sm:$0xff]  }
  0xde   : > { %4124 = vmatmul.mubr.bf16.vlgmr.msra.gmra.mrb[36].mxu1 %v1563_v45  ;;  %v2085_v45 = vshrl.u32 %v7436_v21, 16 }
  0xdf   : > { %4301 = vmatmul.mubr.bf16.gmra.mrb[36].mxu0 %v2047_v4  ;;  %6872 = vmatpush3.bf16.msra.mxu1 %v8020_v12  ;;  %v7424_v12 = vld [vmem:[%s7691_s14 + $0x70] sm:$0xff]   ;;  %v1775_v4 = vrot.slane %v7433_v23, 1 }
  0xe0   : > { %4131 = vmatprep.mubr.bf16.mxu1 %v1768_v30  ;;  %4308 = vmatprep.mubr.bf16.mxu0 %v2309_v18  ;;  %v2067_v51 = vshrl.u32 %v7424_v12, 16  ;;  %v2070_v38 = vshll.u32 %v7424_v12, 16  ;;  %v7435_v30 = vld [vmem:[%s7691_s14 + $0x78] sm:$0xff]   ;;  %v1571_v18 = vsel %vm1542_vm1, %v1568_v7, %v1570_v16  ;;  %v2087_v31 = vrot.slane %v2085_v45, 1 }
  0xe1   : > { %6873 = vmatprep.subr.bf16.mxu1 %v7413_v29  ;;  %v1776_v57 = vsel %vm1542_vm1, %v1773_v9, %v1775_v4  ;;  %v1572_v52 = vrot.slane %v7435_v30, 1  ;;  %v2097_v12 = vshll.u32 %v7442_v35, 16  ;;  %v7452_v23 = vld [vmem:[%s7691_s14 + $0x90] ss:$0 sps:$4 sm:$0x11]   ;;  %v2705_v30 = vrot.slane %v2703_v22, 2 }
  0xe2   : > { %v2069_v10 = vrot.slane %v2067_v51, 1  ;;  %v2072_v40 = vrot.slane %v2070_v38, 2  ;;  %v7445_v38 = vld [vmem:[%s7691_s14 + $0x90] sm:$0xff]  }
  0xe3   : > { %6874 = vmatpush3.bf16.msra.mxu1 %v7413_v29  ;;  %v8199_v29 = vld [vmem:[%s10207_s2] sm:$0xff]   ;;  %v1573_v6 = vsel %vm1542_vm1, %v1570_v16, %v1572_v52  ;;  %v2099_v51 = vrot.slane %v2097_v12, 2  ;;  %v7460_v12 = vld [vmem:[%s7691_s14 + $0x18] sm:$0xff]  }
  0xe4   : > { %6875 = vmatprep.subr.bf16.mxu1 %v7419_v36  ;;  %v2073_v11 = vor.u32 %v2072_v40, %v2069_v10  ;;  %v2320_v10 = vrot.slane %v7445_v38, 2  ;;  %v2490_v38 = vrot.slane %v7459_v41, 2 }
  0xe5   : > { %v2100_v59 = vor.u32 %v2099_v51, %v2096_v50 }
  0xe6   : > { %4132 = vmatmul.mubr.bf16.gmra.mrb[40].mxu1 %v1565_v20  ;;  %v2074_v2 = vsel %vm1949_vm3, %v2064_v53, %v2073_v11  ;;  %v2083_v49 = vsel %vm1949_vm3, %v2073_v11, %v2082_v26  ;;  %v2091_v20 = vor.u32 %v2090_v34, %v2087_v31  ;;  %v7444_v53 = vld [vmem:[%s7691_s14 + $0x90] sm:$0xff]   ;;  %v7450_v11 = vld [vmem:[%s7691_s14 + $0x98] ss:$0 sps:$4 sm:$0x33]  }
  0xe7   : > { %4309 = vmatmul.mubr.bf16.gmra.mrb[40].mxu0 %v2056_v43  ;;  %4139 = vmatprep.mubr.bf16.mxu1 %v1770_v44  ;;  %v2318_v43 = vrot.slane %v7439_v37, 2  ;;  %v7441_v44 = vld [vmem:[%s7691_s14 + $0x80] sm:$0xff]   ;;  %v2322_v48 = vrot.slane %v7450_v11, 2 }
  0xe8   : > { %4316 = vmatprep.mubr.bf16.mxu0 %v2311_v47  ;;  %6876 = vmatpush3.bf16.msra.mxu1 %v7419_v36  ;;  %v2317_v36 = vsel %vm2286_vm2, %v2314_v42, %v2316_v28  ;;  %v2092_v47 = vsel %vm1949_vm3, %v2082_v26, %v2091_v20  ;;  %v1574_v54 = vrot.slane %v7441_v44, 1  ;;  %v2101_v7 = vsel %vm1949_vm3, %v2091_v20, %v2100_v59  ;;  %v7458_v26 = vld [vmem:[%s7691_s14 + $0x18] sm:$0xff]   ;;  %v7461_v44 = vld [vmem:[%s7691_s14 + $0x20] sm:$0xff]  }
  0xe9   : > { %6877 = vmatprep.subr.bf16.mxu1 %v7425_v33  ;;  %v2319_v8 = vsel %vm2286_vm2, %v2316_v28, %v2318_v43  ;;  %v2321_v15 = vsel %vm2286_vm2, %v2318_v43, %v2320_v10  ;;  %v2323_v31 = vsel %vm2286_vm2, %v2320_v10, %v2322_v48 }
  0xea   : > { %v1575_v40 = vsel %vm1542_vm1, %v1572_v52, %v1574_v54  ;;  %v2709_v52 = vor.u32 %v2708_v32, %v2705_v30  ;;  %v7478_v32 = vld [vmem:[%s7691_s14 + $0x38] sm:$0xff]  }
  0xec   : > { %6878 = vmatpush3.bf16.msra.mxu1 %v7425_v33  ;;  %v1778_v33 = vsel %vm1542_vm1, %v1775_v4, %v1777_v39 }
  0xed   : > { %6879 = vmatprep.subr.bf16.mxu1 %v7431_v58 }
  0xee   : > { %4140 = vmatmul.mubr.bf16.gmra.mrb[44].mxu1 %v1567_v60  ;;  %v1779_v60 = vrot.slane %v7444_v53, 1 }
  0xef   : > { %4317 = vmatmul.mubr.bf16.gmra.mrb[44].mxu0 %v2065_v62  ;;  %4147 = vmatprep.mubr.bf16.mxu1 %v1772_v63  ;;  %v7453_v62 = vld [vmem:[%s7691_s14 + $0x98] ss:$0 sps:$4 sm:$0x33]   ;;  %v7446_v63 = vld [vmem:[%s7691_s14 + $0x88] sm:$0xff]  }
  0xf0   : > { %4324 = vmatprep.mubr.bf16.mxu0 %v2313_v3  ;;  %6880 = vmatpush3.bf16.msra.mxu1 %v7431_v58  ;;  %v2106_v58 = vshll.u32 %v7447_v46, 16  ;;  %v1780_v9 = vsel %vm1542_vm1, %v1777_v39, %v1779_v60  ;;  %v2112_v42 = vshrl.u32 %v7453_v62, 16  ;;  %v1576_v19 = vrot.slane %v7446_v63, 1 }
  0xf1   : > { %6881 = vmatprep.subr.bf16.mxu1 %v7437_v5 }
  0xf2   : > { %v2108_v3 = vrot.slane %v2106_v58, 2  ;;  %v1577_v16 = vsel %vm1542_vm1, %v1574_v54, %v1576_v19  ;;  %v2491_v54 = vrot.slane %v7460_v12, 2 }
  0xf4   : > { %6882 = vmatpush3.bf16.msra.mxu1 %v7437_v5  ;;  %v7455_v5 = vld [vmem:[%s7691_s14 + $0x10] sm:$0xfc]  }
  0xf5   : > { %6883 = vmatprep.subr.bf16.mxu1 %v7443_v17  ;;  %v2695_v21 = vshrl.u32 %v7455_v5, 16 }
  0xf6   : > { %4148 = vmatmul.mubr.bf16.gmra.mrb[48].mxu1 %v1569_v14  ;;  %v1781_v14 = vrot.slane %v7449_v61, 1 }
  0xf7   : > { %4325 = vmatmul.mubr.bf16.gmra.mrb[48].mxu0 %v2074_v2  ;;  %4155 = vmatprep.mubr.bf16.mxu1 %v1774_v1  ;;  %v2109_v2 = vor.u32 %v2108_v3, %v2105_v0  ;;  %v2698_v1 = vshll.u32 %v7455_v5, 16  ;;  %v2697_v45 = vrot.slane %v2695_v21, 2  ;;  %v7466_v0 = vld [vmem:[%s7691_s14 + $0x30] sm:$0xff]   ;;  %v2492_v5 = vsel %vm2286_vm2, %v2490_v38, %v2491_v54  ;;  %v7487_v38 = vld [vmem:[%s10207_s2 + $0x28] sm:$0xff]  }
  0xf8   : > { %4332 = vmatprep.mubr.bf16.mxu0 %v2315_v24  ;;  %6884 = vmatpush3.bf16.msra.mxu1 %v7443_v17  ;;  %v2115_v17 = vshll.u32 %v7453_v62, 16  ;;  %v2114_v24 = vrot.slane %v2112_v42, 1  ;;  %v1782_v27 = vsel %vm1542_vm1, %v1779_v60, %v1781_v14  ;;  %v3038_v14 = vrot.slane %v7466_v0, 3 }
  0xf9   : > { %6885 = vmatprep.subr.bf16.mxu1 %v7451_v25  ;;  %v2110_v4 = vsel %vm1949_vm3, %v2100_v59, %v2109_v2  ;;  %v2700_v28 = vrot.slane %v2698_v1, 3 }
  0xfb   : > { %v2701_v37 = vor.u32 %v2700_v28, %v2697_v45 }
  0xfc   : > { %6886 = vmatpush3.bf16.msra.mxu1 %v7451_v25  ;;  %v2117_v25 = vrot.slane %v2115_v17, 2  ;;  %v7473_v17 = vld [vmem:[%s7691_s14 + $0x30] sm:$0xff]  }
  0xfd   : > { %6923 = vmatprep.subr.bf16.mxu1 %v8199_v29  ;;  %v2710_v50 = vsel %vm2693_vm5, %v2701_v37, %v2709_v52  ;;  %v2730_v48 = vshrl.u32 %v7473_v17, 16  ;;  %v2739_v37 = vshrl.u32 %v7478_v32, 16 }
  0xfe   : > { %4156 = vmatmul.mubr.bf16.gmra.mrb[52].mxu1 %v1571_v18  ;;  %v7457_v18 = vld [vmem:[%s7691_s14 + $0x10] sm:$0xf8]   ;;  %v2118_v34 = vor.u32 %v2117_v25, %v2114_v24  ;;  %v8270_v25 = vld [vmem:[%s7691_s14 + $0x28] sm:$0xff]  }
  0xff   : > { %4333 = vmatmul.mubr.bf16.gmra.mrb[52].mxu0 %v2083_v49  ;;  %4163 = vmatprep.mubr.bf16.mxu1 %v1776_v57  ;;  %v7463_v49 = vld [vmem:[%s7691_s14 + $0x20] sm:$0xff]   ;;  %v1578_v57 = vrot.slane %v7452_v23, 1  ;;  %v3031_v35 = vrot.slane %v7457_v18, 3  ;;  %v2733_v23 = vshll.u32 %v7473_v17, 16  ;;  %v2732_v30 = vrot.slane %v2730_v48, 2 }
 0x100   : > { %4340 = vmatprep.mubr.bf16.mxu0 %v2317_v36  ;;  %v3032_v36 = vrot.slane %v7458_v26, 3  ;;  %v2712_v20 = vshrl.u32 %v7463_v49, 16  ;;  %v2715_v39 = vshll.u32 %v7463_v49, 16  ;;  %v2119_v46 = vsel %vm1949_vm3, %v2109_v2, %v2118_v34  ;;  %v7472_v2 = vld [vmem:[%s10207_s2 + $0x10] sm:$0xff]  }
 0x101   : > { %v1579_v43 = vsel %vm1542_vm1, %v1576_v19, %v1578_v57  ;;  %v2735_v18 = vrot.slane %v2733_v23, 3  ;;  %v2495_v57 = vrot.slane %v8270_v25, 2 }
 0x102   : > { %v2714_v51 = vrot.slane %v2712_v20, 2  ;;  %v2717_v53 = vrot.slane %v2715_v39, 3  ;;  %v7482_v20 = vld [vmem:[%s10207_s2 + $0x20] sm:$0xff]  }
 0x104   : > { %v2718_v60 = vor.u32 %v2717_v53, %v2714_v51  ;;  %v2741_v51 = vrot.slane %v2739_v37, 2 }
 0x106   : > { %4164 = vmatmul.mubr.bf16.gmra.mrb[56].mxu1 %v1573_v6  ;;  %v7464_v6 = vld [vmem:[%s7691_s14 + $0x28] sm:$0xff]  }
 0x107   : > { %4341 = vmatmul.mubr.bf16.gmra.mrb[56].mxu0 %v2092_v47  ;;  %4171 = vmatprep.mubr.bf16.mxu1 %v1778_v33  ;;  %v3033_v47 = vsel %vm3030_vm4, %v3031_v35, %v3032_v36  ;;  %v7468_v33 = vld [vmem:[%s7691_s14 + $0x28] sm:$0xff]   ;;  %v3036_v56 = vrot.slane %v7464_v6, 3 }
 0x108   : > { %4348 = vmatprep.mubr.bf16.mxu0 %v2319_v8  ;;  %v3034_v8 = vrot.slane %v7461_v44, 3  ;;  %v2721_v58 = vshrl.u32 %v7468_v33, 16  ;;  %v2724_v10 = vshll.u32 %v7468_v33, 16  ;;  %v7479_v33 = vld [vmem:[%s7691_s14 + $0x58] sm:$0xff]  }
 0x109   : > { %v3039_v24 = vsel %vm3030_vm4, %v3036_v56, %v3038_v14 }
 0x10a   : > { %v3035_v63 = vsel %vm3030_vm4, %v3032_v36, %v3034_v8  ;;  %v3037_v11 = vsel %vm3030_vm4, %v3034_v8, %v3036_v56  ;;  %v2726_v42 = vrot.slane %v2724_v10, 3  ;;  %v2736_v36 = vor.u32 %v2735_v18, %v2732_v30  ;;  %v7483_v8 = vld [vmem:[%s7691_s14 + $0x40] sm:$0xff]  }
 0x10e   : > { %4172 = vmatmul.mubr.bf16.gmra.mrb[60].mxu1 %v1575_v40  ;;  %v7465_v40 = vld [vmem:[%s7691_s14 + $0x20] sm:$0xff]  }
 0x10f   : > { %4349 = vmatmul.mubr.bf16.gmra.mrb[60].mxu0 %v2101_v7  ;;  %4179 = vmatprep.mubr.bf16.mxu1 %v1780_v9  ;;  %v7469_v7 = vld [vmem:[%s7691_s14 + $0x38] sm:$0xff]   ;;  %v2719_v9 = vsel %vm2693_vm5, %v2709_v52, %v2718_v60  ;;  %v2493_v19 = vrot.slane %v7465_v40, 2  ;;  %v2742_v52 = vshll.u32 %v7478_v32, 16  ;;  %v7492_v40 = vld [vmem:[%s10207_s2 + $0x30] sm:$0xff]  }
 0x110   : > { %4356 = vmatprep.mubr.bf16.mxu0 %v2321_v15  ;;  %v2723_v15 = vrot.slane %v2721_v58, 2  ;;  %v3040_v21 = vrot.slane %v7469_v7, 3  ;;  %v3048_v58 = vrot.slane %v7479_v33, 3  ;;  %v7481_v7 = vld [vmem:[%s7691_s14 + $0x60] sm:$0xff]   ;;  %v7489_v32 = vld [vmem:[%s7691_s14 + $0x78] sm:$0xff]  }
 0x111   : > { %v2494_v26 = vsel %vm2286_vm2, %v2491_v54, %v2493_v19  ;;  %v2496_v6 = vsel %vm2286_vm2, %v2493_v19, %v2495_v57  ;;  %v2744_v53 = vrot.slane %v2742_v52, 3  ;;  %v7491_v33 = vld [vmem:[%s7691_s14 + $0x80] sm:$0xff]  }
 0x112   : > { %v2727_v22 = vor.u32 %v2726_v42, %v2723_v15  ;;  %v7480_v15 = vld [vmem:[%s7691_s14 + $0x38] sm:$0xff]   ;;  %v7484_v42 = vld [vmem:[%s7691_s14 + $0x68] sm:$0xff]  }
 0x113   : > { %v2745_v10 = vor.u32 %v2744_v53, %v2741_v51  ;;  %v2499_v48 = vrot.slane %v7480_v15, 2  ;;  %v3052_v23 = vrot.slane %v7484_v42, 3  ;;  %v8348_v42 = vld [vmem:[%s7691_s14 + $0x50] sm:$0xff]  }
 0x114   : > { %v2728_v28 = vsel %vm2693_vm5, %v2718_v60, %v2727_v22 }
 0x115   : > { %v2746_v17 = vsel %vm2693_vm5, %v2736_v36, %v2745_v10 }
 0x116   : > { %4180 = vmatmul.mubr.bf16.gmra.mrb[64].mxu1 %v1577_v16  ;;  %v7471_v16 = vld [vmem:[%s7691_s14 + $0x40] sm:$0xff]  }
 0x117   : > { %4357 = vmatmul.mubr.bf16.gmra.mrb[64].mxu0 %v2110_v4  ;;  %4187 = vmatprep.mubr.bf16.mxu1 %v1782_v27  ;;  %v3041_v4 = vsel %vm3030_vm4, %v3038_v14, %v3040_v21  ;;  %v7474_v27 = vld [vmem:[%s7691_s14 + $0x48] sm:$0xff]   ;;  %v3042_v49 = vrot.slane %v7471_v16, 3 }
 0x118   : > { %4364 = vmatprep.mubr.bf16.mxu0 %v2323_v31  ;;  %v7477_v31 = vld [vmem:[%s10207_s2 + $0x18] sm:$0xff]   ;;  %v3044_v34 = vrot.slane %v7474_v27, 3  ;;  %v7486_v27 = vld [vmem:[%s7691_s14 + $0x70] sm:$0xff]  }
 0x119   : > { %v3043_v12 = vsel %vm3030_vm4, %v3040_v21, %v3042_v49  ;;  %v7488_v21 = vld [vmem:[%s7691_s14 + $0x48] sm:$0xff]   ;;  %v3054_v37 = vrot.slane %v7486_v27, 3 }
 0x11a   : > { %v2757_v25 = vshrl.u32 %v7488_v21, 16  ;;  %v2760_v16 = vshll.u32 %v7488_v21, 16 }
 0x11e   : > { %4188 = vmatmul.mubr.bf16.gmra.mrb[68].mxu1 %v1579_v43  ;;  %v7476_v43 = vld [vmem:[%s7691_s14 + $0x50] sm:$0xff]  }
 0x11f   : > { %4365 = vmatmul.mubr.bf16.gmra.mrb[68].mxu0 %v2119_v46  ;;  %6887 = vmatprep.mubr.bf16.mxu1 %v3033_v47  ;;  %v3045_v46 = vsel %vm3030_vm4, %v3042_v49, %v3044_v34  ;;  %v7475_v47 = vld [vmem:[%s7691_s14 + $0x30] sm:$0xff]   ;;  %v3046_v54 = vrot.slane %v7476_v43, 3 }
 0x120   : > { %4405 = vmatprep.mubr.bf16.mxu0 %v2710_v50  ;;  %v2737_v50 = vsel %vm2693_vm5, %v2727_v22, %v2736_v36  ;;  %v2497_v56 = vrot.slane %v7475_v47, 2  ;;  %v3050_v22 = vrot.slane %v7481_v7, 3  ;;  %v7493_v36 = vld [vmem:[%s7691_s14 + $0x50] sm:$0xff]   ;;  %v3055_v47 = vsel %vm3030_vm4, %v3052_v23, %v3054_v37 }
 0x121   : > { %v8245_v59 = vpop.f32.mrb[0].mxu1  ;;  %v2766_v43 = vshrl.u32 %v7493_v36, 16 }
 0x122   : > { %v3878_v61 = vpop.f32.mrb[1].mxu1  ;;  %v2500_v30 = vsel %vm2286_vm2, %v2497_v56, %v2499_v48  ;;  %v3053_v18 = vsel %vm3030_vm4, %v3050_v22, %v3052_v23 }
 0x123   : > { %v8247_v62 = vpop.f32.mrb[2].mxu1  ;;  %v2748_v61 = vshrl.u32 %v7483_v8, 16 }
 0x124   : > { %v3881_v3 = vpop.f32.mrb[3].mxu1 }
 0x125   : > { %v2750_v19 = vrot.slane %v2748_v61, 2  ;;  %v3058_v61 = vrot.slane %v7491_v33, 3 }
 0x126   : > { %6888 = vmatmul.mubr.bf16.vlgmr.msra.gmra.mrb[72].mxu1 %v3035_v63  ;;  %v2751_v63 = vshll.u32 %v7483_v8, 16  ;;  %v7490_v8 = vld [vmem:[%s7691_s14 + $0x48] sm:$0xff]  }
 0x127   : > { %4406 = vmatmul.mubr.bf16.vlgmr.msra.gmra.mrb[0].mxu0 %v2492_v5  ;;  %6924 = vmatpush3.bf16.msra.mxu1 %v8199_v29  ;;  %v3047_v5 = vsel %vm3030_vm4, %v3044_v34, %v3046_v54  ;;  %v2762_v34 = vrot.slane %v2760_v16, 3  ;;  %v7502_v16 = vld [vmem:[%s7691_s14 + $0x60] sm:$0xff]  }
 0x128   : > { %4413 = vmatprep.mubr.bf16.mxu0 %v2719_v9  ;;  %6891 = vmatprep.mubr.bf16.mxu1 %v3037_v11  ;;  %v2498_v11 = vsel %vm2286_vm2, %v2495_v57, %v2497_v56  ;;  %v2753_v14 = vrot.slane %v2751_v63, 3  ;;  %v2759_v57 = vrot.slane %v2757_v25, 2  ;;  %v2768_v56 = vrot.slane %v2766_v43, 2  ;;  %v8370_v43 = vld [vmem:[%s7691_s14 + $0x58] sm:$0xff]  }
 0x129   : > { %v8264_v1 = vpop.f32.mrb[4].mxu1  ;;  %6925 = vmatprep.subr.bf16.mxu1 %v7467_v13  ;;  %v2503_v63 = vrot.slane %v7490_v8, 2  ;;  %v7508_v8 = vld [vmem:[%s7691_s14 + $0x20] sm:$0xff]  }
 0x12a   : > { %v3886_v29 = vpop.f32.mrb[5].mxu1 }
 0x12b   : > { %v8266_v55 = vpop.f32.mrb[6].mxu1  ;;  %6926 = vmatpush3.bf16.msra.mxu1 %v7467_v13  ;;  %v3049_v13 = vsel %vm3030_vm4, %v3046_v54, %v3048_v58 }
 0x12c   : > { %v3889_v45 = vpop.f32.mrb[7].mxu1  ;;  %6927 = vmatprep.subr.bf16.mxu1 %v7472_v2 }
 0x12e   : > { %6892 = vmatmul.mubr.bf16.gmra.mrb[76].mxu1 %v3039_v24  ;;  %v2754_v24 = vor.u32 %v2753_v14, %v2750_v19  ;;  %v8352_v19 = vld [vmem:[%s7691_s14 + $0x98] sm:$0xff]  }
 0x12f   : > { %4414 = vmatmul.mubr.bf16.gmra.mrb[4].mxu0 %v2494_v26  ;;  %6895 = vmatprep.mubr.bf16.mxu1 %v3041_v4  ;;  %v3051_v4 = vsel %vm3030_vm4, %v3048_v58, %v3050_v22  ;;  %v7503_v22 = vld [vmem:[%s7691_s14 + $0x8] sm:$0xfe]   ;;  %v3064_v27 = vrot.slane %v8352_v19, 3 }
 0x130   : > { %4421 = vmatprep.mubr.bf16.mxu0 %v2728_v28  ;;  %6928 = vmatpush3.bf16.msra.mxu1 %v7472_v2  ;;  %v7499_v2 = vld [vmem:[%s10207_s2 + $0x38] sm:$0xff]   ;;  %v2755_v49 = vsel %vm2693_vm5, %v2745_v10, %v2754_v24 }
 0x131   : > { %v8282_v35 = vpop.f32.mrb[8].mxu1  ;;  %6929 = vmatprep.subr.bf16.mxu1 %v7477_v31  ;;  %v7497_v10 = vld [vmem:[%s7691_s14 + $0x58] sm:$0xff]  }
 0x132   : > { %10302 = vst [vmem:[#allocation3_spill] sm:$0xff] %v8282_v35  ;;  %v3894_v39 = vpop.f32.mrb[9].mxu1  ;;  %v2775_v7 = vshrl.u32 %v7497_v10, 16  ;;  %v10380_v35 = vmov 0 }
 0x133   : > { %v8287_v41 = vpop.f32.mrb[10].mxu1 }
 0x134   : > { %10303 = vst [vmem:[#allocation4_spill] sm:$0xff] %v8287_v41  ;;  %v3897_v44 = vpop.f32.mrb[11].mxu1  ;;  %6930 = vmatpush3.bf16.msra.mxu1 %v7477_v31  ;;  %v7485_v31 = vld [vmem:[%s7691_s14 + $0x40] sm:$0xff]  }
 0x135   : > { %6931 = vmatprep.subr.bf16.mxu1 %v7482_v20  ;;  %v2501_v52 = vrot.slane %v7485_v31, 2  ;;  %v2769_v44 = vshll.u32 %v7493_v36, 16 }
 0x136   : > { %6896 = vmatmul.mubr.bf16.gmra.mrb[80].mxu1 %v3043_v12  ;;  %v2763_v12 = vor.u32 %v2762_v34, %v2759_v57  ;;  %v2784_v57 = vshrl.u32 %v7502_v16, 16  ;;  %v2787_v34 = vshll.u32 %v7502_v16, 16 }
 0x137   : > { %4422 = vmatmul.mubr.bf16.gmra.mrb[8].mxu0 %v2496_v6  ;;  %6899 = vmatprep.mubr.bf16.mxu1 %v3045_v46  ;;  %v2502_v51 = vsel %vm2286_vm2, %v2499_v48, %v2501_v52  ;;  %v2771_v58 = vrot.slane %v2769_v44, 3  ;;  %v2504_v21 = vsel %vm2286_vm2, %v2501_v52, %v2503_v63  ;;  %v7504_v48 = vld [vmem:[%s7691_s14 + $0x10] sm:$0xff]   ;;  %v7501_v44 = vld [vmem:[%s7691_s14 + $0xa0] ss:$0 sps:$4 sm:$0x77]  }
 0x138   : > { %4429 = vmatprep.mubr.bf16.mxu0 %v2737_v50  ;;  %6932 = vmatpush3.bf16.msra.mxu1 %v7482_v20  ;;  %v3056_v20 = vrot.slane %v7489_v32, 3  ;;  %v2764_v54 = vsel %vm2693_vm5, %v2754_v24, %v2763_v12  ;;  %v2777_v24 = vrot.slane %v2775_v7, 2  ;;  %v5257_v31 = vshll.u32 %v7504_v48, 16 }
 0x139   : > { %v8300_v60 = vpop.f32.mrb[12].mxu1  ;;  %6933 = vmatprep.subr.bf16.mxu1 %v7487_v38 }
 0x13a   : > { %10304 = vst [vmem:[#allocation5_spill] sm:$0xff] %v8300_v60  ;;  %v3902_v0 = vpop.f32.mrb[13].mxu1  ;;  %v3057_v53 = vsel %vm3030_vm4, %v3054_v37, %v3056_v20  ;;  %v3059_v15 = vsel %vm3030_vm4, %v3056_v20, %v3058_v61 }
 0x13b   : > { %v8305_v3 = vpop.f32.mrb[14].mxu1 }
 0x13c   : > { %10305 = vst [vmem:[#allocation6_spill] sm:$0xff] %v8305_v3  ;;  %v3905_v9 = vpop.f32.mrb[15].mxu1  ;;  %6934 = vmatpush3.bf16.msra.mxu1 %v7487_v38  ;;  %v7494_v38 = vld [vmem:[%s7691_s14 + $0x88] sm:$0xff]  }
 0x13d   : > { %6935 = vmatprep.subr.bf16.mxu1 %v7492_v40  ;;  %v2778_v9 = vshll.u32 %v7497_v10, 16  ;;  %v2507_v10 = vrot.slane %v8370_v43, 2 }
 0x13e   : > { %6900 = vmatmul.mubr.bf16.gmra.mrb[84].mxu1 %v3047_v5  ;;  %v2772_v5 = vor.u32 %v2771_v58, %v2768_v56  ;;  %v2789_v56 = vrot.slane %v2787_v34, 3  ;;  %v7507_v58 = vld [vmem:[%s7691_s14 + $0x68] sm:$0xff]  }
 0x13f   : > { %4430 = vmatmul.mubr.bf16.gmra.mrb[12].mxu0 %v2498_v11  ;;  %6903 = vmatprep.mubr.bf16.mxu1 %v3049_v13  ;;  %v2780_v25 = vrot.slane %v2778_v9, 3  ;;  %v2796_v19 = vshll.u32 %v7507_v58, 16 }
 0x140   : > { %4437 = vmatprep.mubr.bf16.mxu0 %v2746_v17  ;;  %6936 = vmatpush3.bf16.msra.mxu1 %v7492_v40  ;;  %v3060_v40 = vrot.slane %v7494_v38, 3  ;;  %v7496_v17 = vld [vmem:[%s7691_s14 + $0x90] sm:$0xff]   ;;  %v2773_v23 = vsel %vm2693_vm5, %v2763_v12, %v2772_v5 }
 0x141   : > { %v8318_v29 = vpop.f32.mrb[16].mxu1  ;;  %6937 = vmatprep.subr.bf16.mxu1 %v7499_v2  ;;  %v2798_v34 = vrot.slane %v2796_v19, 3 }
 0x142   : > { %10306 = vst [vmem:[#allocation7_spill] sm:$0xff] %v8318_v29  ;;  %v3910_v45 = vpop.f32.mrb[17].mxu1 }
 0x143   : > { %v8320_v26 = vpop.f32.mrb[18].mxu1  ;;  %v2505_v45 = vrot.slane %v8348_v42, 2 }
 0x144   : > { %10307 = vst [vmem:[#allocation8_spill] sm:$0xff] %v8320_v26  ;;  %v3913_v28 = vpop.f32.mrb[19].mxu1  ;;  %6938 = vmatpush3.bf16.msra.mxu1 %v7499_v2  ;;  %v3061_v2 = vsel %vm3030_vm4, %v3058_v61, %v3060_v40  ;;  %v3066_v61 = vrot.slane %v7501_v44, 3 }
 0x145   : > { %v5246_v28 = vshrl.u32 %v7503_v22, 16  ;;  %v2506_v52 = vsel %vm2286_vm2, %v2503_v63, %v2505_v45 }
 0x146   : > { %6904 = vmatmul.mubr.bf16.gmra.mrb[88].mxu1 %v3051_v4  ;;  %v3062_v4 = vrot.slane %v7496_v17, 3  ;;  %v2793_v17 = vshrl.u32 %v7507_v58, 16 }
 0x147   : > { %4438 = vmatmul.mubr.bf16.gmra.mrb[16].mxu0 %v2500_v30  ;;  %6907 = vmatprep.mubr.bf16.mxu1 %v3053_v18  ;;  %v5249_v30 = vshll.u32 %v7503_v22, 16  ;;  %v5254_v18 = vshrl.u32 %v7504_v48, 16  ;;  %v5248_v33 = vrot.slane %v5246_v28, 1 }
 0x148   : > { %4445 = vmatprep.mubr.bf16.mxu0 %v2755_v49  ;;  %v2781_v49 = vor.u32 %v2780_v25, %v2777_v24  ;;  %v3063_v20 = vsel %vm3030_vm4, %v3060_v40, %v3062_v4  ;;  %v3065_v12 = vsel %vm3030_vm4, %v3062_v4, %v3064_v27  ;;  %v2508_v25 = vsel %vm2286_vm2, %v2505_v45, %v2507_v10  ;;  %v7505_v4 = vld [vmem:[%s7691_s14 + $0x60] sm:$0xff]  }
 0x149   : > { %v8330_v39 = vpop.f32.mrb[20].mxu1  ;;  %v2509_v45 = vrot.slane %v7505_v4, 2 }
 0x14a   : > { %10308 = vst [vmem:[#allocation9_spill] sm:$0xff] %v8330_v39  ;;  %v3918_v6 = vpop.f32.mrb[21].mxu1  ;;  %v2782_v38 = vsel %vm2693_vm5, %v2772_v5, %v2781_v49 }
 0x14b   : > { %v8332_v46 = vpop.f32.mrb[22].mxu1  ;;  %v7506_v6 = vld [vmem:[%s7691_s14 + $0x18] sm:$0xff]  }
 0x14c   : > { %10309 = vst [vmem:[#allocation10_spill] sm:$0xff] %v8332_v46  ;;  %v3921_v50 = vpop.f32.mrb[23].mxu1  ;;  %v5263_v63 = vshrl.u32 %v7506_v6, 16  ;;  %v5266_v40 = vshll.u32 %v7506_v6, 16 }
 0x14d   : > { %v5251_v50 = vrot.slane %v5249_v30, 2 }
 0x14e   : > { %6908 = vmatmul.mubr.bf16.gmra.mrb[92].mxu1 %v3055_v47  ;;  %v5265_v22 = vrot.slane %v5263_v63, 1  ;;  %v5268_v48 = vrot.slane %v5266_v40, 2 }
 0x14f   : > { %4446 = vmatmul.mubr.bf16.gmra.mrb[20].mxu0 %v2502_v51  ;;  %6911 = vmatprep.mubr.bf16.mxu1 %v3057_v53  ;;  %v5256_v51 = vrot.slane %v5254_v18, 1  ;;  %v5259_v53 = vrot.slane %v5257_v31, 2  ;;  %v5252_v7 = vor.u32 %v5251_v50, %v5248_v33  ;;  %v7512_v18 = vld [vmem:[%s7691_s14 + $0x30] sm:$0xff]  }
 0x150   : > { %4453 = vmatprep.mubr.bf16.mxu0 %v2764_v54  ;;  %v2786_v54 = vrot.slane %v2784_v57, 2  ;;  %v2795_v57 = vrot.slane %v2793_v17, 2  ;;  %v5290_v43 = vshrl.u32 %v7512_v18, 16  ;;  %v5293_v44 = vshll.u32 %v7512_v18, 16 }
 0x151   : > { %v8342_v0 = vpop.f32.mrb[24].mxu1  ;;  %v5260_v9 = vor.u32 %v5259_v53, %v5256_v51  ;;  %v7514_v53 = vld [vmem:[%s7691_s14 + $0x38] sm:$0xff]  }
 0x152   : > { %10310 = vst [vmem:[#allocation11_spill] sm:$0xff] %v8342_v0  ;;  %v3926_v11 = vpop.f32.mrb[25].mxu1  ;;  %v2790_v5 = vor.u32 %v2789_v56, %v2786_v54  ;;  %v2799_v6 = vor.u32 %v2798_v34, %v2795_v57  ;;  %v7509_v54 = vld [vmem:[%s7691_s14 + $0x68] sm:$0xff]   ;;  %v5292_v56 = vrot.slane %v5290_v43, 1  ;;  %v5295_v58 = vrot.slane %v5293_v44, 2  ;;  %v7520_v57 = vld [vmem:[%s7691_s14 + $0x50] sm:$0xff]  }
 0x153   : > { %v8344_v13 = vpop.f32.mrb[26].mxu1  ;;  %v5272_v11 = vshrl.u32 %v7508_v8, 16  ;;  %v5261_v16 = vsel %vm1949_vm3, %v5252_v7, %v5260_v9  ;;  %v5302_v17 = vshll.u32 %v7514_v53, 16 }
 0x154   : > { %10311 = vst [vmem:[#allocation12_spill] sm:$0xff] %v8344_v13  ;;  %v3929_v14 = vpop.f32.mrb[27].mxu1  ;;  %v2791_v31 = vsel %vm2693_vm5, %v2781_v49, %v2790_v5  ;;  %v2800_v63 = vsel %vm2693_vm5, %v2790_v5, %v2799_v6  ;;  %v5296_v19 = vor.u32 %v5295_v58, %v5292_v56  ;;  %v7517_v58 = vld [vmem:[%s7691_s14 + $0x78] sm:$0xff]  }
 0x155   : > { %v5274_v28 = vrot.slane %v5272_v11, 1  ;;  %v7515_v11 = vld [vmem:[%s7691_s14 + $0x78] sm:$0xff]  }
 0x156   : > { %6912 = vmatmul.mubr.bf16.gmra.mrb[96].mxu1 %v3059_v15  ;;  %v5275_v15 = vshll.u32 %v7508_v8, 16  ;;  %v2510_v8 = vsel %vm2286_vm2, %v2507_v10, %v2509_v45  ;;  %v2511_v10 = vrot.slane %v7509_v54, 2  ;;  %v2811_v5 = vshrl.u32 %v7515_v11, 16 }
 0x157   : > { %4454 = vmatmul.mubr.bf16.gmra.mrb[24].mxu0 %v2504_v21  ;;  %6915 = vmatprep.mubr.bf16.mxu1 %v3061_v2  ;;  %v3067_v2 = vsel %vm3030_vm4, %v3064_v27, %v3066_v61  ;;  %v5269_v27 = vor.u32 %v5268_v48, %v5265_v22  ;;  %v7516_v61 = vld [vmem:[%s7691_s14 + $0x40] sm:$0xff]   ;;  %v2814_v48 = vshll.u32 %v7515_v11, 16 }
 0x158   : > { %4461 = vmatprep.mubr.bf16.mxu0 %v2773_v23  ;;  %v7510_v23 = vld [vmem:[%s7691_s14 + $0x28] sm:$0xff]   ;;  %v5277_v30 = vrot.slane %v5275_v15, 2  ;;  %v5299_v15 = vshrl.u32 %v7514_v53, 16  ;;  %v2512_v4 = vsel %vm2286_vm2, %v2509_v45, %v2511_v10 }
 0x159   : > { %v8362_v32 = vpop.f32.mrb[28].mxu1  ;;  %v5270_v33 = vsel %vm1949_vm3, %v5260_v9, %v5269_v27 }
 0x15a   : > { %10312 = vst [vmem:[#allocation13_spill] sm:$0xff] %v8362_v32  ;;  %v3934_v36 = vpop.f32.mrb[29].mxu1 }
 0x15b   : > { %v8364_v37 = vpop.f32.mrb[30].mxu1  ;;  %v7511_v36 = vld [vmem:[%s7691_s14 + $0x70] sm:$0xff]  }
 0x15c   : > { %10313 = vst [vmem:[#allocation14_spill] sm:$0xff] %v8364_v37  ;;  %v3937_v47 = vpop.f32.mrb[31].mxu1  ;;  %v2802_v49 = vshrl.u32 %v7511_v36, 16 }
 0x15d   : > { %v2805_v47 = vshll.u32 %v7511_v36, 16  ;;  %v2813_v36 = vrot.slane %v2811_v5, 2 }
 0x15e   : > { %6916 = vmatmul.mubr.bf16.gmra.mrb[100].mxu1 %v3063_v20  ;;  %v5284_v20 = vshll.u32 %v7510_v23, 16  ;;  %v2804_v40 = vrot.slane %v2802_v49, 2  ;;  %v5326_v49 = vshrl.u32 %v7520_v57, 16 }
 0x15f   : > { %4462 = vmatmul.mubr.bf16.gmra.mrb[28].mxu0 %v2506_v52  ;;  %6919 = vmatprep.mubr.bf16.mxu1 %v3065_v12  ;;  %v5281_v52 = vshrl.u32 %v7510_v23, 16  ;;  %v5278_v12 = vor.u32 %v5277_v30, %v5274_v28  ;;  %v2807_v7 = vrot.slane %v2805_v47, 3  ;;  %v7513_v30 = vld [vmem:[%s7691_s14 + $0x70] sm:$0xff]   ;;  %v5329_v47 = vshll.u32 %v7520_v57, 16 }
 0x160   : > { %4469 = vmatprep.mubr.bf16.mxu0 %v2782_v38  ;;  %v5286_v51 = vrot.slane %v5284_v20, 2  ;;  %v2513_v45 = vrot.slane %v7513_v30, 2 }
 0x161   : > { %v8378_v42 = vpop.f32.mrb[32].mxu1  ;;  %v5283_v50 = vrot.slane %v5281_v52, 1  ;;  %v5279_v38 = vsel %vm1949_vm3, %v5269_v27, %v5278_v12  ;;  %v2808_v22 = vor.u32 %v2807_v7, %v2804_v40  ;;  %v2816_v27 = vrot.slane %v2814_v48, 3  ;;  %v7519_v52 = vld [vmem:[%s7691_s14 + $0x80] sm:$0xff]  }
 0x162   : > { %10314 = vst [vmem:[#allocation15_spill] sm:$0xff] %v8378_v42  ;;  %v3942_v14 = vpop.f32.mrb[33].mxu1  ;;  %v2514_v54 = vsel %vm2286_vm2, %v2511_v10, %v2513_v45  ;;  %v7524_v40 = vld [vmem:[%s7691_s14 + $0x60] sm:$0xff]   ;;  %v2515_v10 = vrot.slane %v7517_v58, 2 }
 0x163   : > { %v8380_v21 = vpop.f32.mrb[34].mxu1  ;;  %v5287_v9 = vor.u32 %v5286_v51, %v5283_v50  ;;  %v5308_v14 = vshrl.u32 %v7516_v61, 16  ;;  %v2809_v34 = vsel %vm2693_vm5, %v2799_v6, %v2808_v22  ;;  %v2820_v6 = vshrl.u32 %v7519_v52, 16 }
 0x164   : > { %10315 = vst [vmem:[#allocation16_spill] sm:$0xff] %v8380_v21  ;;  %v3945_v24 = vpop.f32.mrb[35].mxu1  ;;  %v2823_v50 = vshll.u32 %v7519_v52, 16  ;;  %v5344_v5 = vshrl.u32 %v7524_v40, 16  ;;  %v5347_v48 = vshll.u32 %v7524_v40, 16  ;;  %v2516_v30 = vsel %vm2286_vm2, %v2513_v45, %v2515_v10 }
 0x165   : > { %v5288_v23 = vsel %vm1949_vm3, %v5278_v12, %v5287_v9  ;;  %v5301_v24 = vrot.slane %v5299_v15, 1  ;;  %v5297_v28 = vsel %vm1949_vm3, %v5287_v9, %v5296_v19  ;;  %v5310_v18 = vrot.slane %v5308_v14, 1  ;;  %v7523_v15 = vld [vmem:[%s7691_s14 + $0x88] sm:$0xff]  }
 0x166   : > { %6920 = vmatmul.mubr.bf16.gmra.mrb[104].mxu1 %v3067_v2  ;;  %v5311_v2 = vshll.u32 %v7516_v61, 16  ;;  %v5328_v61 = vrot.slane %v5326_v49, 1  ;;  %v2822_v11 = vrot.slane %v2820_v6, 2  ;;  %v2825_v9 = vrot.slane %v2823_v50, 3 }
 0x167   : > { %4470 = vmatmul.mubr.bf16.gmra.mrb[32].mxu0 %v2508_v25  ;;  %6939 = vmatprep.mubr.bf16.mxu1 %v5261_v16  ;;  %v5304_v25 = vrot.slane %v5302_v17, 2  ;;  %v7518_v16 = vld [vmem:[%s7691_s14 + $0x48] sm:$0xff]   ;;  %v5346_v57 = vrot.slane %v5344_v5, 1 }
 0x168   : > { %4477 = vmatprep.mubr.bf16.mxu0 %v2791_v31  ;;  %v5313_v31 = vrot.slane %v5311_v2, 2  ;;  %v5317_v12 = vshrl.u32 %v7518_v16, 16  ;;  %v5320_v43 = vshll.u32 %v7518_v16, 16 }
 0x169   : > { %v5305_v20 = vor.u32 %v5304_v25, %v5301_v24  ;;  %v2832_v24 = vshll.u32 %v7523_v15, 16 }
 0x16a   : > { %v5314_v44 = vor.u32 %v5313_v31, %v5310_v18  ;;  %v5319_v53 = vrot.slane %v5317_v12, 1  ;;  %v7521_v31 = vld [vmem:[%s7691_s14 + $0x80] sm:$0xff]   ;;  %v7527_v12 = vld [vmem:[%s7691_s14 + $0x90] sm:$0xff]  }
 0x16b   : > { %v5306_v51 = vsel %vm1949_vm3, %v5296_v19, %v5305_v20  ;;  %v2517_v45 = vrot.slane %v7521_v31, 2 }
 0x16c   : > { %v5315_v56 = vsel %vm1949_vm3, %v5305_v20, %v5314_v44  ;;  %v2834_v20 = vrot.slane %v2832_v24, 3 }
 0x16d   : > { %v2518_v58 = vsel %vm2286_vm2, %v2515_v10, %v2517_v45 }
 0x16e   : > { %6940 = vmatmul.mubr.bf16.vlgmr.msra.gmra.mrb[108].mxu1 %v5270_v33  ;;  %v2817_v33 = vor.u32 %v2816_v27, %v2813_v36  ;;  %v7528_v36 = vld [vmem:[%s7691_s14 + $0x70] sm:$0xff]  }
 0x16f   : > { %4478 = vmatmul.mubr.bf16.gmra.mrb[36].mxu0 %v2510_v8  ;;  %6943 = vmatprep.mubr.bf16.mxu1 %v5279_v38  ;;  %v5322_v8 = vrot.slane %v5320_v43, 2  ;;  %v7522_v38 = vld [vmem:[%s7691_s14 + $0x58] sm:$0xff]   ;;  %v5362_v6 = vshrl.u32 %v7528_v36, 16  ;;  %v5365_v50 = vshll.u32 %v7528_v36, 16 }
 0x170   : > { %4485 = vmatprep.mubr.bf16.mxu0 %v2800_v63  ;;  %v5331_v63 = vrot.slane %v5329_v47, 2  ;;  %v2818_v7 = vsel %vm2693_vm5, %v2808_v22, %v2817_v33  ;;  %v5335_v19 = vshrl.u32 %v7522_v38, 16  ;;  %v5338_v14 = vshll.u32 %v7522_v38, 16 }
 0x171   : > { %v5323_v17 = vor.u32 %v5322_v8, %v5319_v53  ;;  %v2829_v22 = vshrl.u32 %v7523_v15, 16  ;;  %v2841_v53 = vshll.u32 %v7527_v12, 16  ;;  %v5364_v40 = vrot.slane %v5362_v6, 1 }
 0x172   : > { %v5332_v2 = vor.u32 %v5331_v63, %v5328_v61  ;;  %v5337_v16 = vrot.slane %v5335_v19, 1  ;;  %v7525_v63 = vld [vmem:[%s7691_s14 + $0x88] sm:$0xff]   ;;  %v7531_v19 = vld [vmem:[%s7691_s14 + $0x98] sm:$0xff]  }
 0x173   : > { %v5324_v25 = vsel %vm1949_vm3, %v5314_v44, %v5323_v17  ;;  %v2831_v52 = vrot.slane %v2829_v22, 2  ;;  %v2519_v10 = vrot.slane %v7525_v63, 2 }
 0x174   : > { %v5333_v18 = vsel %vm1949_vm3, %v5323_v17, %v5332_v2  ;;  %v2843_v17 = vrot.slane %v2841_v53, 3 }
 0x175   : > { %v2520_v31 = vsel %vm2286_vm2, %v2517_v45, %v2519_v10 }
 0x176   : > { %6944 = vmatmul.mubr.bf16.gmra.mrb[112].mxu1 %v5288_v23  ;;  %v2826_v23 = vor.u32 %v2825_v9, %v2822_v11  ;;  %v7532_v11 = vld [vmem:[%s7691_s14 + $0x80] sm:$0xff]  }
 0x177   : > { %4486 = vmatmul.mubr.bf16.gmra.mrb[40].mxu0 %v2512_v4  ;;  %6947 = vmatprep.mubr.bf16.mxu1 %v5297_v28  ;;  %v5340_v4 = vrot.slane %v5338_v14, 2  ;;  %v7526_v28 = vld [vmem:[%s7691_s14 + $0x68] sm:$0xff]   ;;  %v5380_v22 = vshrl.u32 %v7532_v11, 16  ;;  %v5383_v24 = vshll.u32 %v7532_v11, 16 }
 0x178   : > { %4493 = vmatprep.mubr.bf16.mxu0 %v2809_v34  ;;  %v5349_v34 = vrot.slane %v5347_v48, 2  ;;  %v2827_v27 = vsel %vm2693_vm5, %v2817_v33, %v2826_v23  ;;  %v5353_v44 = vshrl.u32 %v7526_v28, 16  ;;  %v5356_v49 = vshll.u32 %v7526_v28, 16 }
 0x179   : > { %v5341_v43 = vor.u32 %v5340_v4, %v5337_v16  ;;  %v2838_v33 = vshrl.u32 %v7527_v12, 16  ;;  %v2850_v16 = vshll.u32 %v7531_v19, 16  ;;  %v5382_v36 = vrot.slane %v5380_v22, 1 }
 0x17a   : > { %v5350_v47 = vor.u32 %v5349_v34, %v5346_v57  ;;  %v5355_v38 = vrot.slane %v5353_v44, 1  ;;  %v7529_v34 = vld [vmem:[%s7691_s14 + $0x90] sm:$0xff]   ;;  %v7535_v44 = vld [vmem:[%s7691_s14 + $0xa0] ss:$0 sps:$4 sm:$0x77]  }
 0x17b   : > { %v5342_v8 = vsel %vm1949_vm3, %v5332_v2, %v5341_v43  ;;  %v2840_v15 = vrot.slane %v2838_v33, 2  ;;  %v2521_v45 = vrot.slane %v7529_v34, 2 }
 0x17c   : > { %v5351_v61 = vsel %vm1949_vm3, %v5341_v43, %v5350_v47  ;;  %v2852_v43 = vrot.slane %v2850_v16, 3 }
 0x17d   : > { %v2522_v63 = vsel %vm2286_vm2, %v2519_v10, %v2521_v45 }
 0x17e   : > { %6948 = vmatmul.mubr.bf16.gmra.mrb[116].mxu1 %v5306_v51  ;;  %v2835_v51 = vor.u32 %v2834_v20, %v2831_v52  ;;  %v7536_v52 = vld [vmem:[%s7691_s14 + $0x90] sm:$0xff]  }
 0x17f   : > { %4494 = vmatmul.mubr.bf16.gmra.mrb[44].mxu0 %v2514_v54  ;;  %6951 = vmatprep.mubr.bf16.mxu1 %v5315_v56  ;;  %v5358_v54 = vrot.slane %v5356_v49, 2  ;;  %v7530_v56 = vld [vmem:[%s7691_s14 + $0x78] sm:$0xff]   ;;  %v5398_v33 = vshrl.u32 %v7536_v52, 16  ;;  %v5401_v53 = vshll.u32 %v7536_v52, 16 }
 0x180   : > { %4501 = vmatprep.mubr.bf16.mxu0 %v2818_v7  ;;  %v5367_v7 = vrot.slane %v5365_v50, 2  ;;  %v2836_v9 = vsel %vm2693_vm5, %v2826_v23, %v2835_v51  ;;  %v5371_v2 = vshrl.u32 %v7530_v56, 16  ;;  %v5374_v5 = vshll.u32 %v7530_v56, 16 }
 0x181   : > { %v5359_v14 = vor.u32 %v5358_v54, %v5355_v38  ;;  %v2847_v23 = vshrl.u32 %v7531_v19, 16  ;;  %v2856_v38 = vshrl.u32 %v7535_v44, 16  ;;  %v2859_v54 = vshll.u32 %v7535_v44, 16 }
 0x182   : > { %v5368_v48 = vor.u32 %v5367_v7, %v5364_v40  ;;  %v5373_v28 = vrot.slane %v5371_v2, 1  ;;  %v7533_v7 = vld [vmem:[%s7691_s14 + $0x98] sm:$0xff]   ;;  %v5400_v11 = vrot.slane %v5398_v33, 1 }
 0x183   : > { %v5360_v4 = vsel %vm1949_vm3, %v5350_v47, %v5359_v14  ;;  %v2849_v12 = vrot.slane %v2847_v23, 2  ;;  %v2861_v19 = vrot.slane %v2859_v54, 3 }
 0x184   : > { %v5369_v57 = vsel %vm1949_vm3, %v5359_v14, %v5368_v48 }
 0x186   : > { %6952 = vmatmul.mubr.bf16.gmra.mrb[120].mxu1 %v5324_v25  ;;  %v2844_v25 = vor.u32 %v2843_v17, %v2840_v15  ;;  %v2858_v17 = vrot.slane %v2856_v38, 2 }
 0x187   : > { %4502 = vmatmul.mubr.bf16.gmra.mrb[48].mxu0 %v2516_v30  ;;  %6955 = vmatprep.mubr.bf16.mxu1 %v5333_v18  ;;  %v5376_v30 = vrot.slane %v5374_v5, 2  ;;  %v7534_v18 = vld [vmem:[%s7691_s14 + $0x88] sm:$0xff]  }
 0x188   : > { %4509 = vmatprep.mubr.bf16.mxu0 %v2827_v27  ;;  %v5385_v27 = vrot.slane %v5383_v24, 2  ;;  %v2845_v20 = vsel %vm2693_vm5, %v2835_v51, %v2844_v25  ;;  %v5389_v47 = vshrl.u32 %v7534_v18, 16  ;;  %v5392_v6 = vshll.u32 %v7534_v18, 16 }
 0x189   : > { %v5377_v49 = vor.u32 %v5376_v30, %v5373_v28  ;;  %v2862_v10 = vor.u32 %v2861_v19, %v2858_v17  ;;  %v7537_v28 = vld [vmem:[%s7691_s14 + $0xa0] ss:$0 sps:$4 sm:$0x33]  }
 0x18a   : > { %v5386_v50 = vor.u32 %v5385_v27, %v5382_v36  ;;  %v5391_v56 = vrot.slane %v5389_v47, 1 }
 0x18b   : > { %v5378_v51 = vsel %vm1949_vm3, %v5368_v48, %v5377_v49  ;;  %v2523_v48 = vrot.slane %v7533_v7, 2 }
 0x18c   : > { %v5387_v40 = vsel %vm1949_vm3, %v5377_v49, %v5386_v50 }
 0x18e   : > { %6956 = vmatmul.mubr.bf16.gmra.mrb[124].mxu1 %v5342_v8  ;;  %v2853_v8 = vor.u32 %v2852_v43, %v2849_v12  ;;  %v286_v12 = vlaneseq }
 0x18f   : > { %4510 = vmatmul.mubr.bf16.gmra.mrb[52].mxu0 %v2518_v58  ;;  %6959 = vmatprep.mubr.bf16.mxu1 %v5351_v61  ;;  %v5394_v58 = vrot.slane %v5392_v6, 2  ;;  %v7538_v61 = vld [vmem:[%s7691_s14 + $0x98] ss:$0 sps:$4 sm:$0x33]   ;;  %s7188_s14 = smul.u32 144, %s10763_s22  ;;  %s284_s22 = scalar_lea.vmem %s10211_s6, %s6188_s23 }
 0x190   : > { %4517 = vmatprep.mubr.bf16.mxu0 %v2836_v9  ;;  %v5403_v9 = vrot.slane %v5401_v53, 2  ;;  %v2854_v15 = vsel %vm2693_vm5, %v2844_v25, %v2853_v8  ;;  %v5407_v2 = vshrl.u32 %v7538_v61, 16  ;;  %v5410_v5 = vshll.u32 %v7538_v61, 16 }
 0x191   : > { %v5395_v14 = vor.u32 %v5394_v58, %v5391_v56  ;;  %v2863_v30 = vsel %vm2693_vm5, %v2853_v8, %v2862_v10  ;;  %v8457_v49 = vshrl.u32 %v286_v12, 7  ;;  %s9040_s17 = scalar_lea.vmem %s10208_s3, %s7188_s14  ;;  %s9784_s20 = scalar_lea.vmem %s10209_s4, %s7188_s14 }
 0x192   : > { %v5404_v22 = vor.u32 %v5403_v9, %v5400_v11  ;;  %v5409_v23 = vrot.slane %v5407_v2, 1  ;;  %v5412_v16 = vrot.slane %v5410_v5, 2 }
 0x193   : > { %v5396_v24 = vsel %vm1949_vm3, %v5386_v50, %v5395_v14  ;;  %v289_v50 = vadd.s32 16, %v8457_v49  ;;  %v8466_v53 = vmul.u32.u64.low 3817748708, %v8457_v49  ;;  %v8467_v8 = vmul.u32.u64.high 3817748708, %v8457_v49, %v8466_v53 }
 0x194   : > { %v5405_v25 = vsel %vm1949_vm3, %v5395_v14, %v5404_v22  ;;  %v5413_v18 = vor.u32 %v5412_v16, %v5409_v23  ;;  %v290_v58 = vadd.s32 24, %v8457_v49  ;;  %v291_v61 = vadd.s32 32, %v8457_v49 }
 0x195   : > { %v292_v11 = vadd.s32 40, %v8457_v49  ;;  %v293_v9 = vadd.s32 48, %v8457_v49  ;;  %v329_v5 = vshrl.u32 %v8467_v8, 4  ;;  %v8743_v32 = vadd.s32 152, %v8457_v49 }
 0x196   : > { %6960 = vmatmul.mubr.bf16.gmra.mrb[128].mxu1 %v5360_v4  ;;  %v2524_v4 = vsel %vm2286_vm2, %v2521_v45, %v2523_v48  ;;  %v288_v45 = vadd.s32 8, %v8457_v49  ;;  %v8484_v19 = vmul.u32.u64.low 3817748708, %v291_v61  ;;  %v8485_v14 = vmul.u32.u64.high 3817748708, %v291_v61, %v8484_v19 }
 0x197   : > { %4518 = vmatmul.mubr.bf16.gmra.mrb[56].mxu0 %v2520_v31  ;;  %6963 = vmatprep.mubr.bf16.mxu1 %v5369_v57  ;;  %v2525_v31 = vrot.slane %v7537_v28, 2  ;;  %v5414_v57 = vsel %vm1949_vm3, %v5404_v22, %v5413_v18  ;;  %v8494_v23 = vmul.u32.u64.low 3817748708, %v293_v9  ;;  %v8495_v16 = vmul.u32.u64.high 3817748708, %v293_v9, %v8494_v23 }
 0x198   : > { %4525 = vmatprep.mubr.bf16.mxu0 %v2845_v20  ;;  %v8501_v18 = vadd.s32 56, %v8457_v49  ;;  %v8549_v23 = vadd.s32 80, %v8457_v49 }
 0x199   : > { %v2526_v34 = vsel %vm2286_vm2, %v2523_v48, %v2525_v31  ;;  %v8490_v48 = vmul.u32.u64.low 3817748708, %v292_v11  ;;  %v8491_v22 = vmul.u32.u64.high 3817748708, %v292_v11, %v8490_v48 }
 0x19b   : > { %v384_v53 = vshrl.u32 %v8491_v22, 4 }
 0x19e   : > { %6964 = vmatmul.mubr.bf16.gmra.mrb[132].mxu1 %v5378_v51  ;;  %v8469_v54 = vmul.u32.u64.low 3817748708, %v288_v45  ;;  %v8470_v51 = vmul.u32.u64.high 3817748708, %v288_v45, %v8469_v54 }
 0x19f   : > { %4526 = vmatmul.mubr.bf16.gmra.mrb[60].mxu0 %v2522_v63  ;;  %6967 = vmatprep.mubr.bf16.mxu1 %v5387_v40  ;;  %v8476_v40 = vmul.u32.u64.low 3817748708, %v289_v50  ;;  %v8477_v7 = vmul.u32.u64.high 3817748708, %v289_v50, %v8476_v40  ;;  %v395_v54 = vshrl.u32 %v8495_v16, 4 }
 0x1a0   : > { %4533 = vmatprep.mubr.bf16.mxu0 %v2854_v15  ;;  %v8481_v15 = vmul.u32.u64.low 3817748708, %v290_v58  ;;  %v8482_v17 = vmul.u32.u64.high 3817748708, %v290_v58, %v8481_v15 }
 0x1a1   : > { %v351_v28 = vshrl.u32 %v8477_v7, 4  ;;  %v8521_v7 = vadd.s32 64, %v8457_v49 }
 0x1a6   : > { %6968 = vmatmul.mubr.bf16.gmra.mrb[136].mxu1 %v5396_v24  ;;  %v340_v24 = vshrl.u32 %v8470_v51, 4 }
 0x1a7   : > { %4534 = vmatmul.mubr.bf16.gmra.mrb[64].mxu0 %v2524_v4  ;;  %6971 = vmatprep.mubr.bf16.mxu1 %v5405_v25 }
 0x1a8   : > { %4541 = vmatprep.mubr.bf16.mxu0 %v2863_v30  ;;  %v330_v30 = vmul.u32 18, %v329_v5  ;;  %v341_v31 = vmul.u32 18, %v340_v24  ;;  %v8533_v5 = vadd.s32 72, %v8457_v49 }
 0x1aa   : > { %v8508_v12 = vsub.s32 %v8457_v49, %v330_v30 }
 0x1ac   : > { %vm719_vm6 = vcmp.ne.s32.totalorder %v8508_v12, 0  ;;  %vm755_vm7 = vcmp.lt.s32.totalorder %v8508_v12, 0  ;;  %v8528_v19 = vadd.s32 18, %v8508_v12 }
 0x1ad   : > { %vm8583_vm15 = vmand %vm755_vm7, %vm719_vm6 }
 0x1ae   : > { %6972 = vmatmul.mubr.bf16.gmra.mrb[140].mxu1 %v5414_v57  ;;  %v362_v57 = vshrl.u32 %v8482_v17, 4 }
 0x1af   : > { %4542 = vmatmul.mubr.bf16.gmra.mrb[68].mxu0 %v2526_v34  ;;  %v373_v34 = vshrl.u32 %v8485_v14, 4  ;;  %v396_v14 = vmul.u32 18, %v395_v54  ;;  %v8593_v54 = vadd.s32 112, %v8457_v49 }
 0x1b1   : > { %v8451_v36 = vpop.f32.mrb[36].mxu1  ;;  %v374_v40 = vmul.u32 18, %v373_v34 }
 0x1b2   : > { %10316 = vst [vmem:[#allocation17_spill] sm:$0xff] %v8451_v36  ;;  %v4127_v27 = vpop.f32.mrb[37].mxu1 }
 0x1b3   : > { %v8453_v52 = vpop.f32.mrb[38].mxu1  ;;  %v352_v27 = vmul.u32 18, %v351_v28  ;;  %v8560_v28 = vadd.s32 88, %v8457_v49 }
 0x1b4   : > { %10317 = vst [vmem:[#allocation18_spill] sm:$0xff] %v8453_v52  ;;  %v4130_v20 = vpop.f32.mrb[39].mxu1  ;;  %v8691_v52 = vadd.s32 120, %v8457_v49 }
 0x1b5   : > { %v8523_v17 = vsub.s32 %v289_v50, %v352_v27  ;;  %v8537_v50 = vsub.s32 %v291_v61, %v374_v40  ;;  %v8569_v27 = vadd.s32 96, %v8457_v49 }
 0x1b6   : > { %v8727_v36 = vmul.u32.u64.low 3817748708, %v8691_v52  ;;  %v8728_v21 = vmul.u32.u64.high 3817748708, %v8691_v52, %v8727_v36 }
 0x1b7   : > { %vm721_vm10 = vcmp.ne.s32.totalorder %v8523_v17, 0  ;;  %vm757_vm11 = vcmp.lt.s32.totalorder %v8523_v17, 0  ;;  %vm723_vm14 = vcmp.ne.s32.totalorder %v8537_v50, 0  ;;  %vm759_vm0 = vcmp.lt.s32.totalorder %v8537_v50, 0 }
 0x1b8   : > { %vm8613_vm4 = vmand %vm757_vm11, %vm721_vm10 }
 0x1b9   : > { %v8455_v43 = vpop.f32.mrb[40].mxu1 }
 0x1ba   : > { %10318 = vst [vmem:[#allocation19_spill] sm:$0xff] %v8455_v43  ;;  %v4135_v44 = vpop.f32.mrb[41].mxu1 }
 0x1bb   : > { %v8459_v47 = vpop.f32.mrb[42].mxu1 }
 0x1bc   : > { %10319 = vst [vmem:[#allocation20_spill] sm:$0xff] %v8459_v47  ;;  %v4138_v6 = vpop.f32.mrb[43].mxu1 }
 0x1bd   : > { %v8511_v44 = vmul.u32.u64.low 3817748708, %v8501_v18  ;;  %v8512_v6 = vmul.u32.u64.high 3817748708, %v8501_v18, %v8511_v44 }
 0x1bf   : > { %v406_v61 = vshrl.u32 %v8512_v6, 4  ;;  %v10385_v6 = vmov 0 }
 0x1c1   : > { %v8463_v33 = vpop.f32.mrb[44].mxu1 }
 0x1c2   : > { %10320 = vst [vmem:[#allocation21_spill] sm:$0xff] %v8463_v33  ;;  %v4143_v38 = vpop.f32.mrb[45].mxu1 }
 0x1c3   : > { %v8472_v56 = vpop.f32.mrb[46].mxu1  ;;  %v8515_v38 = vsub.s32 %v288_v45, %v341_v31  ;;  %v385_v45 = vmul.u32 18, %v384_v53  ;;  %v8562_v31 = vsub.s32 %v293_v9, %v396_v14  ;;  %v407_v14 = vmul.u32 18, %v406_v61 }
 0x1c4   : > { %10321 = vst [vmem:[#allocation22_spill] sm:$0xff] %v8472_v56  ;;  %v4146_v63 = vpop.f32.mrb[47].mxu1 }
 0x1c5   : > { %v363_v63 = vmul.u32 18, %v362_v57  ;;  %vm720_vm8 = vcmp.ne.s32.totalorder %v8515_v38, 0  ;;  %vm756_vm9 = vcmp.lt.s32.totalorder %v8515_v38, 0  ;;  %v8546_v24 = vadd.s32 18, %v8515_v38  ;;  %10327 = vst [vmem:[#allocation28_spill] sm:$0xff] %v8562_v31 }
 0x1c6   : > { %v8565_v57 = vmul.u32.u64.low 3817748708, %v8533_v5  ;;  %v8566_v34 = vmul.u32.u64.high 3817748708, %v8533_v5, %v8565_v57  ;;  %vm8599_vm1 = vmand %vm756_vm9, %vm720_vm8  ;;  %vm725_vm5 = vcmp.ne.s32.totalorder %v8562_v31, 0  ;;  %vm761_vm7 = vcmp.lt.s32.totalorder %v8562_v31, 0 }
 0x1c7   : > { %v8535_v48 = vsub.s32 %v290_v58, %v363_v63  ;;  %v8554_v58 = vadd.s32 18, %v8523_v17  ;;  %vm8643_vm8 = vmand %vm759_vm0, %vm723_vm14  ;;  %v10379_v41 = vsel %vm8599_vm1, %v8546_v24, %v8515_v38  ;;  %v10389_v24 = vmov 0 }
 0x1c8   : > { %vm8672_vm10 = vmand %vm761_vm7, %vm725_vm5  ;;  %v428_v56 = vshrl.u32 %v8566_v34, 4 }
 0x1c9   : > { %v8487_v2 = vpop.f32.mrb[48].mxu1  ;;  %vm722_vm12 = vcmp.ne.s32.totalorder %v8535_v48, 0  ;;  %vm758_vm13 = vcmp.lt.s32.totalorder %v8535_v48, 0  ;;  %v8637_v61 = vadd.s32 18, %v8535_v48 }
 0x1ca   : > { %10322 = vst [vmem:[#allocation23_spill] sm:$0xff] %v8487_v2  ;;  %v4151_v10 = vpop.f32.mrb[49].mxu1  ;;  %vm8626_vm6 = vmand %vm758_vm13, %vm722_vm12 }
 0x1cb   : > { %v8497_v4 = vpop.f32.mrb[50].mxu1  ;;  %v8540_v22 = vmul.u32.u64.low 3817748708, %v8521_v7  ;;  %v8541_v10 = vmul.u32.u64.high 3817748708, %v8521_v7, %v8540_v22 }
 0x1cc   : > { %10323 = vst [vmem:[#allocation24_spill] sm:$0xff] %v8497_v4  ;;  %v4154_v25 = vpop.f32.mrb[51].mxu1 }
 0x1cd   : > { %v8557_v25 = vsub.s32 %v292_v11, %v385_v45  ;;  %v8577_v11 = vadd.s32 104, %v8457_v49 }
 0x1cf   : > { %vm724_vm2 = vcmp.ne.s32.totalorder %v8557_v25, 0  ;;  %vm760_vm3 = vcmp.lt.s32.totalorder %v8557_v25, 0  ;;  %v8668_v4 = vadd.s32 18, %v8557_v25 }
 0x1d0   : > { %vm8663_vm9 = vmand %vm760_vm3, %vm724_vm2 }
 0x1d1   : > { %v8505_v20 = vpop.f32.mrb[52].mxu1 }
 0x1d2   : > { %10324 = vst [vmem:[#allocation25_spill] sm:$0xff] %v8505_v20  ;;  %v4159_v8 = vpop.f32.mrb[53].mxu1  ;;  %v10341_v20 = vmov 0 }
 0x1d3   : > { %v8518_v51 = vpop.f32.mrb[54].mxu1  ;;  %v8589_v53 = vmul.u32.u64.low 3817748708, %v8549_v23  ;;  %v8590_v8 = vmul.u32.u64.high 3817748708, %v8549_v23, %v8589_v53  ;;  %v10342_v20 = vsel %vm8663_vm9, 4294967295, %v10341_v20 }
 0x1d4   : > { %10325 = vst [vmem:[#allocation26_spill] sm:$0xff] %v8518_v51  ;;  %v4162_v15 = vpop.f32.mrb[55].mxu1 }
 0x1d5   : > { %v8606_v40 = vmul.u32.u64.low 3817748708, %v8560_v28  ;;  %v8607_v15 = vmul.u32.u64.high 3817748708, %v8560_v28, %v8606_v40 }
 0x1d6   : > { %v8633_v53 = vmul.u32.u64.low 3817748708, %v8577_v11  ;;  %v8634_v40 = vmul.u32.u64.high 3817748708, %v8577_v11, %v8633_v53 }
 0x1d7   : > { %v8657_v53 = vadd.s32 18, %v8562_v31  ;;  %v450_v47 = vshrl.u32 %v8607_v15, 4 }
 0x1d8   : > { %v472_v15 = vshrl.u32 %v8634_v40, 4 }
 0x1d9   : > { %v8551_v16 = vpop.f32.mrb[56].mxu1  ;;  %10340 = vst [vmem:[#allocation31_spill] sm:$0xff] %v8657_v53  ;;  %v451_v37 = vmul.u32 18, %v450_v47 }
 0x1da   : > { %10326 = vst [vmem:[#allocation27_spill] sm:$0xff] %v8551_v16  ;;  %v4167_v30 = vpop.f32.mrb[57].mxu1 }
 0x1db   : > { %v8571_v44 = vpop.f32.mrb[58].mxu1  ;;  %v8619_v22 = vmul.u32.u64.low 3817748708, %v8569_v27  ;;  %v8620_v30 = vmul.u32.u64.high 3817748708, %v8569_v27, %v8619_v22 }
 0x1dc   : > { %10328 = vst [vmem:[#allocation29_spill] sm:$0xff] %v8571_v44  ;;  %v4170_v9 = vpop.f32.mrb[59].mxu1  ;;  %v8648_v44 = vadd.s32 18, %v8537_v50 }
 0x1dd   : > { %v417_v9 = vshrl.u32 %v8541_v10, 4  ;;  %v8651_v10 = vmul.u32.u64.low 3817748708, %v8593_v54  ;;  %v8652_v16 = vmul.u32.u64.high 3817748708, %v8593_v54, %v8651_v10 }
 0x1de   : > { %v10343_v10 = vmov 0 }
 0x1df   : > { %v10344_v10 = vsel %vm8672_vm10, 4294967295, %v10343_v10  ;;  %v418_v43 = vmul.u32 18, %v417_v9  ;;  %v439_v9 = vshrl.u32 %v8590_v8, 4  ;;  %v461_v8 = vshrl.u32 %v8620_v30, 4 }
 0x1e0   : > { %10345 = vst [vmem:[#allocation32_spill] sm:$0xff] %v10344_v10  ;;  %v483_v42 = vshrl.u32 %v8652_v16, 4  ;;  %v10376_v10 = vmov 0 }
 0x1e1   : > { %v8654_v51 = vpop.f32.mrb[60].mxu1  ;;  %v440_v34 = vmul.u32 18, %v439_v9  ;;  %v462_v9 = vmul.u32 18, %v461_v8 }
 0x1e2   : > { %10339 = vst [vmem:[#allocation30_spill] sm:$0xff] %v8654_v51  ;;  %v4175_v2 = vpop.f32.mrb[61].mxu1  ;;  %v8677_v51 = vsub.s32 %v8501_v18, %v407_v14  ;;  %v8716_v14 = vadd.s32 128, %v8457_v49 }
 0x1e3   : > { %v8680_v33 = vpop.f32.mrb[62].mxu1  ;;  %v429_v2 = vmul.u32 18, %v428_v56  ;;  %v8734_v56 = vadd.s32 144, %v8457_v49 }
 0x1e4   : > { %10346 = vst [vmem:[#allocation33_spill] sm:$0xff] %v8680_v33  ;;  %v4178_v18 = vpop.f32.mrb[63].mxu1  ;;  %vm726_vm11 = vcmp.ne.s32.totalorder %v8677_v51, 0  ;;  %v8721_v33 = vadd.s32 136, %v8457_v49  ;;  %vm762_vm12 = vcmp.lt.s32.totalorder %v8677_v51, 0  ;;  %v8755_v47 = vadd.s32 18, %v8677_v51 }
 0x1e5   : > { %v8724_v18 = vsub.s32 %v8521_v7, %v418_v43  ;;  %v8739_v43 = vmul.u32.u64.low 3817748708, %v8716_v14  ;;  %v8740_v7 = vmul.u32.u64.high 3817748708, %v8716_v14, %v8739_v43  ;;  %v8746_v40 = vsub.s32 %v8533_v5, %v429_v2  ;;  %vm8796_vm3 = vmand %vm762_vm12, %vm726_vm11 }
 0x1e6   : > { %v8749_v16 = vmul.u32.u64.low 3817748708, %v8721_v33  ;;  %v8750_v13 = vmul.u32.u64.high 3817748708, %v8721_v33, %v8749_v16  ;;  %v473_v43 = vmul.u32 18, %v472_v15  ;;  %v8762_v5 = vsub.s32 %v8549_v23, %v440_v34 }
 0x1e7   : > { %vm727_vm13 = vcmp.ne.s32.totalorder %v8724_v18, 0  ;;  %v484_v2 = vmul.u32 18, %v483_v42  ;;  %v8765_v8 = vmul.u32.u64.low 3817748708, %v8734_v56  ;;  %v8766_v46 = vmul.u32.u64.high 3817748708, %v8734_v56, %v8765_v8 }
 0x1e8   : > { %vm763_vm14 = vcmp.lt.s32.totalorder %v8724_v18, 0  ;;  %v8770_v16 = vsub.s32 %v8560_v28, %v451_v37  ;;  %v8777_v39 = vadd.s32 18, %v8724_v18  ;;  %vm728_vm0 = vcmp.ne.s32.totalorder %v8746_v40, 0 }
 0x1e9   : > { %v8736_v30 = vpop.f32.mrb[64].mxu1  ;;  %vm764_vm2 = vcmp.lt.s32.totalorder %v8746_v40, 0  ;;  %v8782_v42 = vsub.s32 %v8569_v27, %v462_v9  ;;  %v494_v23 = vshrl.u32 %v8728_v21, 4  ;;  %v8786_v34 = vsub.s32 %v8577_v11, %v473_v43  ;;  %vm8817_vm11 = vmand %vm763_vm14, %vm727_vm13 }
 0x1ea   : > { %10347 = vst [vmem:[#allocation34_spill] sm:$0xff] %v8736_v30  ;;  %v4183_v36 = vpop.f32.mrb[65].mxu1  ;;  %v8759_v30 = vadd.s32 160, %v8457_v49  ;;  %10349 = vst [vmem:[#allocation36_spill] sm:$0xff] %v8770_v16  ;;  %v8803_v21 = vadd.s32 18, %v8746_v40  ;;  %v8806_v27 = vsub.s32 %v8593_v54, %v484_v2  ;;  %v8811_v9 = vadd.s32 18, %v8762_v5 }
 0x1eb   : > { %v8752_v0 = vpop.f32.mrb[66].mxu1  ;;  %10350 = vst [vmem:[#allocation37_spill] sm:$0xff] %v8782_v42  ;;  %10351 = vst [vmem:[#allocation38_spill] sm:$0xff] %v8786_v34  ;;  %v505_v54 = vshrl.u32 %v8740_v7, 4  ;;  %v516_v8 = vshrl.u32 %v8750_v13, 4  ;;  %vm10361_vm7 = vcmp.ne.s32.totalorder %v8762_v5, 0 }
 0x1ec   : > { %10348 = vst [vmem:[#allocation35_spill] sm:$0xff] %v8752_v0  ;;  %v4186_v36 = vpop.f32.mrb[67].mxu1  ;;  %v8773_v0 = vmul.u32.u64.low 3817748708, %v8743_v32  ;;  %v8774_v15 = vmul.u32.u64.high 3817748708, %v8743_v32, %v8773_v0  ;;  %v8789_v37 = vmul.u32.u64.low 3817748708, %v8759_v30  ;;  %v8790_v28 = vmul.u32.u64.high 3817748708, %v8759_v30, %v8789_v37  ;;  %vm8828_vm5 = vmand %vm764_vm2, %vm728_vm0 }
 0x1ed   : > { %10354 = vst [vmem:[#allocation39_spill] sm:$0xff] %v8806_v27  ;;  %v8836_v37 = vadd.s32 168, %v8457_v49  ;;  %vm10362_vm12 = vcmp.lt.s32.totalorder %v8762_v5, 0  ;;  %v495_v26 = vmul.u32 18, %v494_v23  ;;  %vm10366_vm14 = vcmp.ne.s32.totalorder %v8770_v16, 0 }
 0x1ee   : > { %vm8844_vm10 = vmand %vm10362_vm12, %vm10361_vm7  ;;  %vm10367_vm13 = vcmp.lt.s32.totalorder %v8770_v16, 0  ;;  %v8864_v29 = vadd.s32 18, %v8782_v42  ;;  %v527_v23 = vshrl.u32 %v8766_v46, 4  ;;  %v8868_v3 = vadd.s32 18, %v8806_v27 }
 0x1ef   : > { %vm8857_vm9 = vmand %vm10367_vm13, %vm10366_vm14  ;;  %vm10371_vm2 = vcmp.ne.s32.totalorder %v8782_v42, 0  ;;  %vm10372_vm0 = vcmp.lt.s32.totalorder %v8782_v42, 0  ;;  %v8879_v60 = vadd.s32 18, %v8786_v34  ;;  %v506_v31 = vmul.u32 18, %v505_v54 }
 0x1f0   : > { %10370 = vst [vmem:[#allocation43_spill] sm:$0xff] %v8868_v3  ;;  %vm8874_vm13 = vmand %vm10372_vm0, %vm10371_vm2  ;;  %v538_v53 = vshrl.u32 %v8774_v15, 4  ;;  %v10375_v46 = vsel %vm8583_vm15, %v8528_v19, %v8508_v12  ;;  %vm8896_vm0 = vcmp.lt.s32.totalorder %v10379_v41, 16  ;;  %vm10383_vm2 = vcmp.ne.s32.totalorder %v8786_v34, 0 }
 0x1f1   : > { %v8808_v11 = vpop.f32.mrb[68].mxu1  ;;  %vm8887_vm14 = vcmp.lt.s32.totalorder %v10375_v46, 16  ;;  %v10381_v35 = vsel %vm8896_vm0, 4294967295, %v10380_v35  ;;  %vm10384_vm12 = vcmp.lt.s32.totalorder %v8786_v34, 0  ;;  %v517_v12 = vmul.u32 18, %v516_v8 }
 0x1f2   : > { %10355 = vst [vmem:[#allocation40_spill] sm:$0xff] %v8808_v11  ;;  %v4191_v36 = vpop.f32.mrb[69].mxu1  ;;  %v10377_v10 = vsel %vm8887_vm14, 4294967295, %v10376_v10  ;;  %10382 = vst [vmem:[#allocation45_spill] sm:$0xff] %v10381_v35  ;;  %v8909_v19 = vadd.s32 176, %v8457_v49  ;;  %vm10387_vm15 = vcmp.ne.s32.totalorder %v8806_v27, 0  ;;  %v8932_v54 = vsub.s32 %v8691_v52, %v495_v26 }
 0x1f3   : > { %v8838_v11 = vpop.f32.mrb[70].mxu1  ;;  %v8849_v36 = vadd.s32 18, %v8770_v16  ;;  %10378 = vst [vmem:[#allocation44_spill] sm:$0xff] %v10377_v10  ;;  %vm8904_vm7 = vmand %vm10384_vm12, %vm10383_vm2  ;;  %v8912_v63 = vmul.u32.u64.low 3817748708, %v8836_v37  ;;  %v8913_v15 = vmul.u32.u64.high 3817748708, %v8836_v37, %v8912_v63  ;;  %vm10388_vm1 = vcmp.lt.s32.totalorder %v8806_v27, 0 }
 0x1f4   : > { %10360 = vst [vmem:[#allocation41_spill] sm:$0xff] %v8838_v11  ;;  %v4194_v13 = vpop.f32.mrb[71].mxu1  ;;  %v10368_v11 = vmov 0  ;;  %v10386_v6 = vsel %vm8904_vm7, 4294967295, %v10385_v6  ;;  %vm8927_vm12 = vmand %vm10388_vm1, %vm10387_vm15  ;;  %v549_v8 = vshrl.u32 %v8790_v28, 4  ;;  %v528_v41 = vmul.u32 18, %v527_v23 }
 0x1f5   : > { %10365 = vst [vmem:[#allocation42_spill] sm:$0xff] %v8849_v36  ;;  %v10369_v11 = vsel %vm8857_vm9, 4294967295, %v10368_v11  ;;  %v10373_v13 = vmov 0  ;;  %v10390_v24 = vsel %vm8927_vm12, 4294967295, %v10389_v24  ;;  %10391 = vst [vmem:[#allocation46_spill] sm:$0xff] %v8932_v54  ;;  %v8958_v63 = vsub.s32 %v8716_v14, %v506_v31 }
 0x1f6   : > { %v10374_v13 = vsel %vm8874_vm13, 4294967295, %v10373_v13  ;;  %v539_v46 = vmul.u32 18, %v538_v53  ;;  %v8965_v38 = vsub.s32 %v8721_v33, %v517_v12  ;;  %v550_v53 = vmul.u32 18, %v549_v8 }
 0x1f7   : > { %10392 = vst [vmem:[#allocation47_spill] sm:$0xff] %v8958_v63  ;;  %v8968_v52 = vmul.u32.u64.low 3817748708, %v8909_v19  ;;  %v8969_v42 = vmul.u32.u64.high 3817748708, %v8909_v19, %v8968_v52  ;;  %v8976_v34 = vadd.s32 184, %v8457_v49  ;;  %v8980_v33 = vadd.s32 18, %v8932_v54 }
 0x1f8   : > { %10393 = vst [vmem:[#allocation48_spill] sm:$0xff] %v8965_v38  ;;  %v8983_v12 = vsub.s32 %v8734_v56, %v528_v41  ;;  %v10397_v56 = vsel %vm8613_vm4, %v8554_v58, %v8523_v17  ;;  %v10398_v41 = vmov 0  ;;  %v560_v17 = vshrl.u32 %v8913_v15, 4 }
 0x1f9   : > { %v8947_v26 = vpop.f32.mrb[72].mxu1  ;;  %10394 = vst [vmem:[#allocation49_spill] sm:$0xff] %v8980_v33  ;;  %vm8999_vm15 = vcmp.lt.s32.totalorder %v10397_v56, 16  ;;  %v9019_v45 = vsub.s32 %v8759_v30, %v550_v53  ;;  %vm10407_vm12 = vcmp.lt.s32.totalorder %v8932_v54, 0  ;;  %v10408_v15 = vmov 0 }
 0x1fa   : > { %v4407_v16 = vpop.f32.mrb[0].mxu0  ;;  %v4584_v36 = vpop.f32.mrb[73].mxu1  ;;  %10395 = vst [vmem:[#allocation50_spill] sm:$0xff] %v8983_v12  ;;  %v10399_v41 = vsel %vm8999_vm15, 4294967295, %v10398_v41  ;;  %vm10411_vm7 = vcmp.ne.s32.totalorder %v8958_v63, 0  ;;  %v561_v56 = vmul.u32 18, %v560_v17 }
 0x1fb   : > { %v7007_v28 = vadd.f32 %v4407_v16, %v8245_v59  ;;  %v4409_v31 = vpop.f32.mrb[1].mxu0  ;;  %v8972_v14 = vpop.f32.mrb[74].mxu1  ;;  %v8986_v59 = vadd.s32 192, %v8457_v49  ;;  %10400 = vst [vmem:[#allocation52_spill] sm:$0xff] %v10399_v41  ;;  %10405 = vst [vmem:[#allocation54_spill] sm:$0xff] %v9019_v45  ;;  %v9104_v35 = vadd.s32 18, %v8965_v38 }
 0x1fc   : > { %v4410_v23 = vpop.f32.mrb[2].mxu0  ;;  %v4587_v27 = vpop.f32.mrb[75].mxu1  ;;  %v8992_v31 = vsub.s32 %v8743_v32, %v539_v46  ;;  %v9014_v32 = vadd.s32 18, %v8958_v63  ;;  %v9121_v3 = vadd.s32 18, %v9019_v45  ;;  %v10439_v33 = vmov 0 }
 0x1fd   : > { %v4585_v16 = vadd.f32 %v7007_v28, %v4584_v36  ;;  %v7008_v52 = vadd.f32 %v4410_v23, %v8247_v62  ;;  %v4412_v8 = vpop.f32.mrb[3].mxu0  ;;  %v10401_v62 = vsel %vm8626_vm6, %v8637_v61, %v8535_v48  ;;  %v10402_v36 = vmov 0  ;;  %10427 = vst [vmem:[#allocation60_spill] sm:$0xff] %v9104_v35  ;;  %v10452_v35 = vld [vmem:[#allocation28_spill] sm:$0xff] }
 0x1fe   : > { %10396 = vst [vmem:[#allocation51_spill] sm:$0xff] %v8992_v31  ;;  %vm9008_vm2 = vcmp.lt.s32.totalorder %v10401_v62, 16  ;;  %v9022_v57 = vmul.u32.u64.low 3817748708, %v8976_v34  ;;  %v9023_v48 = vmul.u32.u64.high 3817748708, %v8976_v34, %v9022_v57  ;;  %vm10406_vm6 = vcmp.ne.s32.totalorder %v8932_v54, 0  ;;  %10433 = vst [vmem:[#allocation62_spill] sm:$0xff] %v9121_v3 }
 0x1ff   : > { %v10403_v36 = vsel %vm9008_vm2, 4294967295, %v10402_v36  ;;  %v4588_v58 = vadd.f32 %v7008_v52, %v4587_v27  ;;  %v9028_v61 = vmul.u32.u64.low 3817748708, %v8986_v59  ;;  %v9029_v46 = vmul.u32.u64.high 3817748708, %v8986_v59, %v9028_v61  ;;  %vm9048_vm4 = vmand %vm10407_vm12, %vm10406_vm6 }
 0x200   : > { %10404 = vst [vmem:[#allocation53_spill] sm:$0xff] %v10403_v36  ;;  %v4727_v27 = vsel %vm8887_vm14, %v4585_v16, 0.0  ;;  %v10409_v15 = vsel %vm9048_vm4, 4294967295, %v10408_v15  ;;  %v10413_v52 = vmov 0  ;;  %v571_v8 = vshrl.u32 %v8969_v42, 4 }
 0x201   : > { %v9031_v28 = vpop.f32.mrb[76].mxu1  ;;  %v4728_v30 = vsel %vm8896_vm0, %v4588_v58, 0.0  ;;  %10410 = vst [vmem:[#allocation55_spill] sm:$0xff] %v10409_v15  ;;  %vm10412_vm0 = vcmp.lt.s32.totalorder %v8958_v63, 0  ;;  %vm10415_vm6 = vcmp.ne.s32.totalorder %v8965_v38, 0  ;;  %vm10416_vm14 = vcmp.lt.s32.totalorder %v8965_v38, 0 }
 0x202   : > { %v4415_v23 = vpop.f32.mrb[4].mxu0  ;;  %v9054_v53 = vpop.f32.mrb[77].mxu1  ;;  %v4763_v16 = vpack.c.bf16 %v4728_v30, %v4727_v27  ;;  %vm9060_vm13 = vmand %vm10412_vm0, %vm10411_vm7  ;;  %v10417_v61 = vmov 0  ;;  %v9080_v42 = vadd.s32 200, %v8457_v49  ;;  %v10422_v30 = vmov 0  ;;  %v10451_v38 = vld [vmem:[#allocation31_spill] sm:$0xff] }
 0x203   : > { %v10414_v52 = vsel %vm9060_vm13, 4294967295, %v10413_v52  ;;  %v7009_v62 = vadd.f32 %v4415_v23, %v8264_v1  ;;  %v4417_v58 = vpop.f32.mrb[5].mxu0  ;;  %v9067_v57 = vpop.f32.mrb[78].mxu1  ;;  %vm9073_vm1 = vmand %vm10416_vm14, %vm10415_vm6  ;;  %vm10420_vm14 = vcmp.ne.s32.totalorder %v8983_v12, 0  ;;  %vm10421_vm6 = vcmp.lt.s32.totalorder %v8983_v12, 0 }
 0x204   : > { %v10418_v61 = vsel %vm9073_vm1, 4294967295, %v10417_v61  ;;  %v4418_v17 = vpop.f32.mrb[6].mxu0  ;;  %v9082_v1 = vpop.f32.mrb[79].mxu1  ;;  %6609 = vst [vmem:[%s9040_s17] sm:$0xff] %v4763_v16   ;;  %vm9093_vm12 = vmand %vm10421_vm6, %vm10420_vm14  ;;  %v9098_v23 = vadd.s32 18, %v8983_v12  ;;  %v9101_v58 = vadd.s32 18, %v8992_v31  ;;  %vm10428_vm14 = vcmp.ne.s32.totalorder %v8992_v31, 0 }
 0x205   : > { %10419 = vst [vmem:[#allocation56_spill] sm:$0xff] %v10418_v61  ;;  %v10423_v30 = vsel %vm9093_vm12, 4294967295, %v10422_v30  ;;  %v4593_v10 = vadd.f32 %v7009_v62, %v8947_v26  ;;  %v7010_v27 = vadd.f32 %v4418_v17, %v8266_v55  ;;  %v4420_v54 = vpop.f32.mrb[7].mxu0  ;;  %vm10429_vm6 = vcmp.lt.s32.totalorder %v8992_v31, 0 }
 0x206   : > { %10424 = vst [vmem:[#allocation57_spill] sm:$0xff] %v10423_v30  ;;  %10425 = vst [vmem:[#allocation58_spill] sm:$0xff] %v9098_v23  ;;  %v10430_v15 = vmov 0  ;;  %v4943_v26 = vunpack.c.l.bf16 %v4763_v16  ;;  %v4944_v62 = vunpack.c.h.bf16 %v4763_v16  ;;  %v10434_v55 = vsel %vm8643_vm8, %v8648_v44, %v8537_v50  ;;  %v10449_v30 = vld [vmem:[#allocation32_spill] sm:$0xff] }
 0x207   : > { %10426 = vst [vmem:[#allocation59_spill] sm:$0xff] %v9101_v58  ;;  %vm9116_vm0 = vmand %vm10429_vm6, %vm10428_vm14  ;;  %vm9128_vm7 = vcmp.lt.s32.totalorder %v10434_v55, 16  ;;  %v10435_v54 = vmov 0  ;;  %vm10437_vm13 = vnez %v10342_v20  ;;  %v572_v63 = vmul.u32 18, %v571_v8 }
 0x208   : > { %v10431_v15 = vsel %vm9116_vm0, 4294967295, %v10430_v15  ;;  %v10436_v54 = vsel %vm9128_vm7, 4294967295, %v10435_v54  ;;  %v10438_v17 = vsel %vm10437_vm13, %v8668_v4, %v8557_v25  ;;  %vm10441_vm6 = vcmp.ne.s32.totalorder %v9019_v45, 0 }
 0x209   : > { %10432 = vst [vmem:[#allocation61_spill] sm:$0xff] %v10431_v15  ;;  %vm9137_vm14 = vcmp.lt.s32.totalorder %v10438_v17, 16  ;;  %vm10442_vm4 = vcmp.lt.s32.totalorder %v9019_v45, 0  ;;  %v10443_v50 = vmov 0  ;;  %v9150_v44 = vsub.s32 %v8836_v37, %v561_v56 }
 0x20a   : > { %v10440_v33 = vsel %vm9137_vm14, 4294967295, %v10439_v33  ;;  %vm9145_vm9 = vmand %vm10442_vm4, %vm10441_vm6  ;;  %v4596_v20 = vadd.f32 %v7010_v27, %v8972_v14  ;;  %v582_v4 = vshrl.u32 %v9023_v48, 4  ;;  %v593_v14 = vshrl.u32 %v9029_v46, 4  ;;  %v9171_v48 = vpop.f32.mrb[80].mxu1 }
 0x20b   : > { %v10444_v50 = vsel %vm9145_vm9, 4294967295, %v10443_v50  ;;  %v9155_v25 = vmul.u32.u64.low 3817748708, %v9080_v42  ;;  %v9156_v22 = vmul.u32.u64.high 3817748708, %v9080_v42, %v9155_v25  ;;  %v4729_v56 = vsel %vm8999_vm15, %v4593_v10, 0.0  ;;  %v9184_v8 = vpop.f32.mrb[81].mxu1  ;;  %v10446_v10 = vld [vmem:[#allocation3_spill] sm:$0xff] }
 0x20c   : > { %10445 = vst [vmem:[#allocation63_spill] sm:$0xff] %v10444_v50  ;;  %v4730_v27 = vsel %vm9008_vm2, %v4596_v20, 0.0  ;;  %v9182_v17 = vadd.s32 208, %v8457_v49  ;;  %v4423_v25 = vpop.f32.mrb[8].mxu0  ;;  %v5021_v16 = vmul.f32 %v4943_v26, %v4943_v26  ;;  %v5022_v37 = vmul.f32 %v4944_v62, %v4944_v62  ;;  %v9188_v41 = vpop.f32.mrb[82].mxu1 }
 0x20d   : > { %v4764_v46 = vpack.c.bf16 %v4730_v27, %v4729_v56  ;;  %vm740_vm8 = vcmp.ne.s32.totalorder %v9150_v44, 0  ;;  %v7011_v36 = vadd.f32 %v4423_v25, %v10446_v10  ;;  %v4425_v20 = vpop.f32.mrb[9].mxu0  ;;  %v9191_v50 = vsub.s32 %v8909_v19, %v572_v63  ;;  %v9194_v3 = vpop.f32.mrb[83].mxu1  ;;  %v10448_v25 = vld [vmem:[#allocation4_spill] sm:$0xff] }
 0x20e   : > { %v583_v55 = vmul.u32 18, %v582_v4  ;;  %v4426_v45 = vpop.f32.mrb[10].mxu0  ;;  %v4979_v31 = vadd.f32 %v4944_v62, %v4943_v26  ;;  %v594_v58 = vmul.u32 18, %v593_v14  ;;  %v5057_v23 = vadd.f32 %v5022_v37, %v5021_v16 }
 0x20f   : > { %10447 = vst [vmem:[#allocation3_spill] sm:$0xff] %v9191_v50  ;;  %6785 = vst [vmem:[%s9040_s17 + $0x8] sm:$0xff] %v4764_v46   ;;  %v4945_v56 = vunpack.c.l.bf16 %v4764_v46  ;;  %v4946_v27 = vunpack.c.h.bf16 %v4764_v46  ;;  %v4601_v15 = vadd.f32 %v7011_v36, %v9054_v53  ;;  %v7012_v10 = vadd.f32 %v4426_v45, %v10448_v25  ;;  %v4428_v20 = vpop.f32.mrb[11].mxu0 }
 0x210   : > { %v9200_v12 = vmul.u32.u64.low 3817748708, %v9182_v17  ;;  %v9201_v19 = vmul.u32.u64.high 3817748708, %v9182_v17, %v9200_v12  ;;  %vm10450_vm4 = vnez %v10449_v30  ;;  %v10456_v36 = vsel %vm8796_vm3, %v8755_v47, %v8677_v51 }
 0x211   : > { %v5023_v63 = vmul.f32 %v4945_v56, %v4945_v56  ;;  %v4980_v4 = vadd.f32 %v4979_v31, %v4945_v56  ;;  %v10453_v61 = vsel %vm10450_vm4, %v10451_v38, %v10452_v35  ;;  %vm9217_vm13 = vcmp.lt.s32.totalorder %v10456_v36, 16 }
 0x212   : > { %vm9208_vm6 = vcmp.lt.s32.totalorder %v10453_v61, 16  ;;  %v10457_v45 = vmov 0  ;;  %v9222_v12 = vadd.s32 18, %v9150_v44  ;;  %v4604_v31 = vadd.f32 %v7012_v10, %v9082_v1  ;;  %v9241_v1 = vpop.f32.mrb[84].mxu1 }
 0x213   : > { %v10458_v45 = vsel %vm9217_vm13, 4294967295, %v10457_v45  ;;  %vm741_vm4 = vcmp.ne.s32.totalorder %v9191_v50, 0  ;;  %v9227_v35 = vsub.s32 %v8976_v34, %v583_v55  ;;  %vm10460_vm9 = vcmp.lt.s32.totalorder %v9150_v44, 0  ;;  %v10465_v55 = vld [vmem:[#allocation5_spill] sm:$0xff] }
 0x214   : > { %vm9233_vm2 = vmand %vm10460_vm9, %vm740_vm8  ;;  %v604_v47 = vshrl.u32 %v9156_v22, 4  ;;  %v5024_v0 = vmul.f32 %v4946_v27, %v4946_v27  ;;  %v5058_v38 = vadd.f32 %v5057_v23, %v5023_v63  ;;  %v4981_v53 = vadd.f32 %v4980_v4, %v4946_v27  ;;  %v4431_v22 = vpop.f32.mrb[12].mxu0  ;;  %v9251_v23 = vpop.f32.mrb[85].mxu1 }
 0x215   : > { %10459 = vst [vmem:[#allocation4_spill] sm:$0xff] %v9227_v35  ;;  %v9239_v61 = vadd.s32 216, %v8457_v49  ;;  %v4731_v34 = vsel %vm9128_vm7, %v4601_v15, 0.0  ;;  %v4732_v30 = vsel %vm9137_vm14, %v4604_v31, 0.0  ;;  %vm777_vm9 = vcmp.lt.s32.totalorder %v9191_v50, 0  ;;  %v4433_v56 = vpop.f32.mrb[13].mxu0 }
 0x216   : > { %v9249_v62 = vsub.s32 %v8986_v59, %v594_v58  ;;  %v4765_v16 = vpack.c.bf16 %v4732_v30, %v4731_v34  ;;  %v5059_v37 = vadd.f32 %v5058_v38, %v5024_v0  ;;  %v9254_v14 = vadd.s32 18, %v9191_v50  ;;  %v9261_v27 = vpop.f32.mrb[86].mxu1  ;;  %v4434_v58 = vpop.f32.mrb[14].mxu0  ;;  %vm9272_vm14 = vmand %vm777_vm9, %vm741_vm4 }
 0x217   : > { %v7013_v46 = vadd.f32 %v4431_v22, %v10465_v55  ;;  %vm742_vm3 = vcmp.ne.s32.totalorder %v9227_v35, 0  ;;  %v605_v59 = vmul.u32 18, %v604_v47  ;;  %v9265_v25 = vpop.f32.mrb[87].mxu1  ;;  %v10466_v63 = vmov 0  ;;  %v10469_v47 = vld [vmem:[#allocation6_spill] sm:$0xff]  ;;  %v4436_v38 = vpop.f32.mrb[15].mxu0 }
 0x218   : > { %10463 = vst [vmem:[#allocation32_spill] sm:$0xff] %v9249_v62  ;;  %10464 = vst [vmem:[#allocation31_spill] sm:$0xff] %v9254_v14  ;;  %v4947_v10 = vunpack.c.l.bf16 %v4765_v16  ;;  %v4948_v20 = vunpack.c.h.bf16 %v4765_v16  ;;  %v10467_v63 = vsel %vm9272_vm14, 4294967295, %v10466_v63  ;;  %v7014_v0 = vadd.f32 %v4434_v58, %v10469_v47 }
 0x219   : > { %6786 = vst [vmem:[%s9040_s17 + $0x10] sm:$0xff] %v4765_v16   ;;  %10468 = vst [vmem:[#allocation28_spill] sm:$0xff] %v10467_v63  ;;  %v9277_v4 = vmul.u32.u64.low 3817748708, %v9239_v61  ;;  %v9278_v36 = vmul.u32.u64.high 3817748708, %v9239_v61, %v9277_v4  ;;  %v4609_v31 = vadd.f32 %v7013_v46, %v9031_v28  ;;  %v615_v34 = vshrl.u32 %v9201_v19, 4  ;;  %v9328_v58 = vpop.f32.mrb[88].mxu1 }
 0x21a   : > { %v4982_v30 = vadd.f32 %v4981_v53, %v4947_v10  ;;  %v5025_v22 = vmul.f32 %v4947_v10, %v4947_v10  ;;  %v10470_v16 = vsel %vm8817_vm11, %v8777_v39, %v8724_v18  ;;  %v10471_v55 = vmov 0  ;;  %v9345_v38 = vpop.f32.mrb[89].mxu1 }
 0x21b   : > { %vm9289_vm4 = vcmp.lt.s32.totalorder %v10470_v16, 16  ;;  %v10474_v28 = vsel %vm8828_vm5, %v8803_v21, %v8746_v40  ;;  %v10475_v19 = vmov 0  ;;  %v9304_v43 = vadd.s32 224, %v8457_v49  ;;  %v9352_v18 = vpop.f32.mrb[90].mxu1 }
 0x21c   : > { %v10472_v55 = vsel %vm9289_vm4, 4294967295, %v10471_v55  ;;  %vm9298_vm9 = vcmp.lt.s32.totalorder %v10474_v28, 16  ;;  %v4612_v39 = vadd.f32 %v7014_v0, %v9067_v57  ;;  %v9312_v2 = vadd.s32 18, %v9227_v35  ;;  %v4439_v0 = vpop.f32.mrb[16].mxu0  ;;  %v9361_v14 = vpop.f32.mrb[91].mxu1 }
 0x21d   : > { %10473 = vst [vmem:[#allocation5_spill] sm:$0xff] %v10472_v55  ;;  %v10476_v19 = vsel %vm9298_vm9, 4294967295, %v10475_v19  ;;  %v9315_v40 = vadd.s32 232, %v8457_v49  ;;  %v4983_v21 = vadd.f32 %v4982_v30, %v4948_v20  ;;  %v5026_v53 = vmul.f32 %v4948_v20, %v4948_v20 }
 0x21e   : > { %10477 = vst [vmem:[#allocation6_spill] sm:$0xff] %v10476_v19  ;;  %v5060_v46 = vadd.f32 %v5059_v37, %v5025_v22  ;;  %vm10478_vm5 = vcmp.lt.s32.totalorder %v9227_v35, 0  ;;  %v10479_v57 = vmov 0  ;;  %v9326_v56 = vadd.s32 18, %v9249_v62 }
 0x21f   : > { %vm9321_vm11 = vmand %vm10478_vm5, %vm742_vm3  ;;  %v4733_v10 = vsel %vm9208_vm6, %v4609_v31, 0.0  ;;  %v4734_v20 = vsel %vm9217_vm13, %v4612_v39, 0.0  ;;  %v616_v37 = vmul.u32 18, %v615_v34  ;;  %vm10482_vm8 = vcmp.ne.s32.totalorder %v9249_v62, 0  ;;  %v10488_v34 = vld [vmem:[#allocation7_spill] sm:$0xff]  ;;  %v4441_v39 = vpop.f32.mrb[17].mxu0 }
 0x220   : > { %v10480_v57 = vsel %vm9321_vm11, 4294967295, %v10479_v57  ;;  %10481 = vst [vmem:[#allocation64_spill] sm:$0xff] %v9326_v56  ;;  %vm10483_vm3 = vcmp.lt.s32.totalorder %v9249_v62, 0  ;;  %v10484_v4 = vmov 0  ;;  %v9343_v47 = vsub.s32 %v9080_v42, %v605_v59  ;;  %v4442_v50 = vpop.f32.mrb[18].mxu0 }
 0x221   : > { %vm9338_vm5 = vmand %vm10483_vm3, %vm10482_vm8  ;;  %v4766_v31 = vpack.c.bf16 %v4734_v20, %v4733_v10  ;;  %v5061_v30 = vadd.f32 %v5060_v46, %v5026_v53  ;;  %v9348_v22 = vmul.u32.u64.low 3817748708, %v9304_v43  ;;  %v9349_v16 = vmul.u32.u64.high 3817748708, %v9304_v43, %v9348_v22  ;;  %v4444_v39 = vpop.f32.mrb[19].mxu0 }
 0x222   : > { %v10485_v4 = vsel %vm9338_vm5, 4294967295, %v10484_v4  ;;  %10487 = vst [vmem:[#allocation66_spill] sm:$0xff] %v9343_v47  ;;  %v7015_v28 = vadd.f32 %v4439_v0, %v10488_v34  ;;  %v9355_v15 = vadd.s32 240, %v8457_v49  ;;  %v10489_v22 = vld [vmem:[#allocation8_spill] sm:$0xff]  ;;  %v10490_v10 = vsel %vm8844_vm10, %v8811_v9, %v8762_v5 }
 0x223   : > { %10486 = vst [vmem:[#allocation65_spill] sm:$0xff] %v10485_v4  ;;  %v9358_v42 = vmul.u32.u64.low 3817748708, %v9315_v40  ;;  %v9359_v59 = vmul.u32.u64.high 3817748708, %v9315_v40, %v9358_v42  ;;  %6787 = vst [vmem:[%s9040_s17 + $0x18] sm:$0xff] %v4766_v31   ;;  %v4949_v53 = vunpack.c.l.bf16 %v4766_v31  ;;  %v4950_v46 = vunpack.c.h.bf16 %v4766_v31 }
 0x224   : > { %v4617_v0 = vadd.f32 %v7015_v28, %v9184_v8  ;;  %v7016_v34 = vadd.f32 %v4442_v50, %v10489_v22  ;;  %v626_v42 = vshrl.u32 %v9278_v36, 4  ;;  %vm9381_vm3 = vcmp.lt.s32.totalorder %v10490_v10, 16  ;;  %v10494_v8 = vld [vmem:[#allocation42_spill] sm:$0xff]  ;;  %v10495_v50 = vld [vmem:[#allocation36_spill] sm:$0xff] }
 0x225   : > { %v5027_v31 = vmul.f32 %v4949_v53, %v4949_v53  ;;  %v4984_v63 = vadd.f32 %v4983_v21, %v4949_v53  ;;  %v10491_v35 = vmov 0  ;;  %vm10493_vm5 = vnez %v10369_v11 }
 0x226   : > { %v10492_v35 = vsel %vm9381_vm3, 4294967295, %v10491_v35  ;;  %v10496_v28 = vsel %vm10493_vm5, %v10494_v8, %v10495_v50  ;;  %v10497_v36 = vmov 0  ;;  %v9395_v21 = vsub.s32 %v9182_v17, %v616_v37  ;;  %v9409_v8 = vpop.f32.mrb[92].mxu1  ;;  %v4447_v50 = vpop.f32.mrb[20].mxu0 }
 0x227   : > { %vm9390_vm11 = vcmp.lt.s32.totalorder %v10496_v28, 16  ;;  %v4620_v5 = vadd.f32 %v7016_v34, %v9194_v3  ;;  %v9400_v9 = vadd.s32 18, %v9343_v47  ;;  %v5028_v53 = vmul.f32 %v4950_v46, %v4950_v46  ;;  %10501 = vst [vmem:[#allocation42_spill] sm:$0xff] %v9409_v8  ;;  %v9418_v28 = vpop.f32.mrb[93].mxu1  ;;  %v10506_v8 = vld [vmem:[#allocation37_spill] sm:$0xff] }
 0x228   : > { %v10498_v36 = vsel %vm9390_vm11, 4294967295, %v10497_v36  ;;  %10499 = vst [vmem:[#allocation7_spill] sm:$0xff] %v9395_v21  ;;  %v9403_v7 = vmul.u32.u64.low 3817748708, %v9355_v15  ;;  %v9404_v11 = vmul.u32.u64.high 3817748708, %v9355_v15, %v9403_v7  ;;  %v5062_v10 = vadd.f32 %v5061_v30, %v5027_v31  ;;  %v10502_v31 = vld [vmem:[#allocation9_spill] sm:$0xff]  ;;  %v9423_v20 = vpop.f32.mrb[94].mxu1 }
 0x229   : > { %10500 = vst [vmem:[#allocation8_spill] sm:$0xff] %v9400_v9  ;;  %v4985_v22 = vadd.f32 %v4984_v63, %v4950_v46  ;;  %v9407_v39 = vadd.s32 248, %v8457_v49  ;;  %v4735_v17 = vsel %vm9289_vm4, %v4617_v0, 0.0  ;;  %v4736_v3 = vsel %vm9298_vm9, %v4620_v5, 0.0  ;;  %v4449_v0 = vpop.f32.mrb[21].mxu0  ;;  %10503 = vst [vmem:[#allocation36_spill] sm:$0xff] %v9423_v20 }
 0x22a   : > { %v627_v37 = vmul.u32 18, %v626_v42  ;;  %v9416_v34 = vadd.s32 256, %v8457_v49  ;;  %v4767_v63 = vpack.c.bf16 %v4736_v3, %v4735_v17  ;;  %v5063_v30 = vadd.f32 %v5062_v10, %v5028_v53  ;;  %v4450_v62 = vpop.f32.mrb[22].mxu0  ;;  %v9430_v56 = vpop.f32.mrb[95].mxu1 }
 0x22b   : > { %v637_v46 = vshrl.u32 %v9349_v16, 4  ;;  %v7017_v7 = vadd.f32 %v4447_v50, %v10502_v31  ;;  %v648_v42 = vshrl.u32 %v9359_v59, 4  ;;  %v9428_v5 = vadd.s32 272, %v8457_v49  ;;  %v10504_v50 = vld [vmem:[#allocation10_spill] sm:$0xff]  ;;  %v4452_v0 = vpop.f32.mrb[23].mxu0 }
 0x22c   : > { %6788 = vst [vmem:[%s9040_s17 + $0x20] sm:$0xff] %v4767_v63   ;;  %v4951_v53 = vunpack.c.l.bf16 %v4767_v63  ;;  %v4952_v10 = vunpack.c.h.bf16 %v4767_v63  ;;  %v9434_v16 = vmul.u32.u64.low 3817748708, %v9407_v39  ;;  %v9435_v17 = vmul.u32.u64.high 3817748708, %v9407_v39, %v9434_v16 }
 0x22d   : > { %v4625_v3 = vadd.f32 %v7017_v7, %v9171_v48  ;;  %v7018_v31 = vadd.f32 %v4450_v62, %v10504_v50  ;;  %v9440_v59 = vmul.u32.u64.low 3817748708, %v9416_v34  ;;  %v9441_v4 = vmul.u32.u64.high 3817748708, %v9416_v34, %v9440_v59  ;;  %v10511_v48 = vld [vmem:[#allocation38_spill] sm:$0xff] }
 0x22e   : > { %v4986_v20 = vadd.f32 %v4985_v22, %v4951_v53  ;;  %v5029_v19 = vmul.f32 %v4951_v53, %v4951_v53  ;;  %vm10505_vm5 = vnez %v10374_v13  ;;  %v10508_v55 = vmov 0 }
 0x22f   : > { %v10507_v63 = vsel %vm10505_vm5, %v8864_v29, %v10506_v8  ;;  %vm10510_vm8 = vnez %v10386_v6  ;;  %v10513_v7 = vmov 0  ;;  %v9462_v22 = vadd.s32 18, %v9395_v21 }
 0x230   : > { %vm9448_vm10 = vcmp.lt.s32.totalorder %v10507_v63, 16  ;;  %v10512_v62 = vsel %vm10510_vm8, %v8879_v60, %v10511_v48  ;;  %vm10516_vm4 = vcmp.ne.s32.totalorder %v9343_v47, 0  ;;  %vm10517_vm5 = vcmp.lt.s32.totalorder %v9343_v47, 0  ;;  %v10527_v48 = vld [vmem:[#allocation11_spill] sm:$0xff] }
 0x231   : > { %v10509_v55 = vsel %vm9448_vm10, 4294967295, %v10508_v55  ;;  %vm9457_vm9 = vcmp.lt.s32.totalorder %v10512_v62, 16  ;;  %10515 = vst [vmem:[#allocation9_spill] sm:$0xff] %v9462_v22  ;;  %vm9468_vm14 = vmand %vm10517_vm5, %vm10516_vm4  ;;  %v10518_v29 = vmov 0  ;;  %v638_v13 = vmul.u32 18, %v637_v46 }
 0x232   : > { %v10514_v7 = vsel %vm9457_vm9, 4294967295, %v10513_v7  ;;  %v10519_v29 = vsel %vm9468_vm14, 4294967295, %v10518_v29  ;;  %v4628_v6 = vadd.f32 %v7018_v31, %v9188_v41  ;;  %v9474_v60 = vsub.s32 %v9239_v61, %v627_v37  ;;  %v9488_v41 = vpop.f32.mrb[96].mxu1 }
 0x233   : > { %10520 = vst [vmem:[#allocation10_spill] sm:$0xff] %v10519_v29  ;;  %v9477_v8 = vmul.u32.u64.low 3817748708, %v9428_v5  ;;  %v9478_v53 = vmul.u32.u64.high 3817748708, %v9428_v5, %v9477_v8  ;;  %v4987_v16 = vadd.f32 %v4986_v20, %v4952_v10  ;;  %v5030_v50 = vmul.f32 %v4952_v10, %v4952_v10  ;;  %v9499_v10 = vpop.f32.mrb[97].mxu1 }
 0x234   : > { %10521 = vst [vmem:[#allocation37_spill] sm:$0xff] %v9474_v60  ;;  %v5064_v0 = vadd.f32 %v5063_v30, %v5029_v19  ;;  %vm10522_vm8 = vcmp.ne.s32.totalorder %v9395_v21, 0  ;;  %vm10523_vm4 = vcmp.lt.s32.totalorder %v9395_v21, 0  ;;  %v10524_v59 = vmov 0  ;;  %v4455_v30 = vpop.f32.mrb[24].mxu0  ;;  %v9508_v8 = vpop.f32.mrb[98].mxu1 }
 0x235   : > { %vm9484_vm5 = vmand %vm10523_vm4, %vm10522_vm8  ;;  %v649_v46 = vmul.u32 18, %v648_v42  ;;  %v4737_v61 = vsel %vm9381_vm3, %v4625_v3, 0.0  ;;  %v4738_v37 = vsel %vm9390_vm11, %v4628_v6, 0.0  ;;  %v659_v20 = vshrl.u32 %v9404_v11, 4  ;;  %v4457_v6 = vpop.f32.mrb[25].mxu0  ;;  %10528 = vst [vmem:[#allocation11_spill] sm:$0xff] %v9508_v8 }
 0x236   : > { %v10525_v59 = vsel %vm9484_vm5, 4294967295, %v10524_v59  ;;  %v4768_v42 = vpack.c.bf16 %v4738_v37, %v4737_v61  ;;  %v5065_v31 = vadd.f32 %v5064_v0, %v5030_v50  ;;  %v9502_v63 = vsub.s32 %v9304_v43, %v638_v13  ;;  %v4458_v43 = vpop.f32.mrb[26].mxu0  ;;  %v9520_v13 = vpop.f32.mrb[99].mxu1  ;;  %v10531_v6 = vld [vmem:[#allocation12_spill] sm:$0xff] }
 0x237   : > { %10526 = vst [vmem:[#allocation38_spill] sm:$0xff] %v10525_v59  ;;  %v9505_v3 = vadd.s32 280, %v8457_v49  ;;  %v7019_v62 = vadd.f32 %v4455_v30, %v10527_v48  ;;  %v9515_v19 = vadd.s32 18, %v9474_v60  ;;  %v9518_v50 = vadd.s32 264, %v8457_v49  ;;  %v4460_v47 = vpop.f32.mrb[27].mxu0 }
 0x238   : > { %6789 = vst [vmem:[%s9040_s17 + $0x28] sm:$0xff] %v4768_v42   ;;  %v4953_v0 = vunpack.c.l.bf16 %v4768_v42  ;;  %v4954_v61 = vunpack.c.h.bf16 %v4768_v42  ;;  %v670_v37 = vshrl.u32 %v9435_v17, 4  ;;  %v9525_v30 = vsub.s32 %v9315_v40, %v649_v46  ;;  %v10533_v17 = vld [vmem:[#allocation43_spill] sm:$0xff]  ;;  %v10540_v47 = vld [vmem:[#allocation49_spill] sm:$0xff] }
 0x239   : > { %10529 = vst [vmem:[#allocation67_spill] sm:$0xff] %v9515_v19  ;;  %v4633_v48 = vadd.f32 %v7019_v62, %v9251_v23  ;;  %v7020_v11 = vadd.f32 %v4458_v43, %v10531_v6  ;;  %v660_v49 = vmul.u32 18, %v659_v20  ;;  %v681_v9 = vshrl.u32 %v9441_v4, 4  ;;  %v10534_v42 = vld [vmem:[#allocation39_spill] sm:$0xff]  ;;  %v10541_v62 = vld [vmem:[#allocation46_spill] sm:$0xff]  ;;  %v10681_v59 = vld [vmem:[#allocation9_spill] sm:$0xff] }
 0x23a   : > { %10530 = vst [vmem:[#allocation68_spill] sm:$0xff] %v9525_v30  ;;  %v5031_v29 = vmul.f32 %v4953_v0, %v4953_v0  ;;  %v4988_v8 = vadd.f32 %v4987_v16, %v4953_v0  ;;  %vm10532_vm14 = vnez %v10390_v24  ;;  %v10536_v46 = vmov 0  ;;  %v10538_v23 = vld [vmem:[#allocation55_spill] sm:$0xff] }
 0x23b   : > { %v10535_v40 = vsel %vm10532_vm14, %v10533_v17, %v10534_v42  ;;  %vm10539_vm11 = vnez %v10538_v23  ;;  %v10543_v20 = vmov 0  ;;  %v4636_v16 = vadd.f32 %v7020_v11, %v9265_v25  ;;  %v4463_v11 = vpop.f32.mrb[28].mxu0  ;;  %v10606_v19 = vld [vmem:[#allocation59_spill] sm:$0xff] }
 0x23c   : > { %vm9537_vm5 = vcmp.lt.s32.totalorder %v10535_v40, 16  ;;  %v10542_v43 = vsel %vm10539_vm11, %v10540_v47, %v10541_v62  ;;  %v9552_v24 = vmul.u32.u64.low 3817748708, %v9505_v3  ;;  %v9553_v4 = vmul.u32.u64.high 3817748708, %v9505_v3, %v9552_v24  ;;  %v9561_v62 = vpop.f32.mrb[100].mxu1 }
 0x23d   : > { %v10537_v46 = vsel %vm9537_vm5, 4294967295, %v10536_v46  ;;  %vm9546_vm4 = vcmp.lt.s32.totalorder %v10542_v43, 16  ;;  %v703_v0 = vshrl.u32 %v9478_v53, 4  ;;  %v5032_v42 = vmul.f32 %v4954_v61, %v4954_v61  ;;  %10545 = vst [vmem:[#allocation12_spill] sm:$0xff] %v9561_v62  ;;  %v9570_v21 = vpop.f32.mrb[101].mxu1 }
 0x23e   : > { %v10544_v20 = vsel %vm9546_vm4, 4294967295, %v10543_v20  ;;  %v9558_v6 = vmul.u32.u64.low 3817748708, %v9518_v50  ;;  %v9559_v17 = vmul.u32.u64.high 3817748708, %v9518_v50, %v9558_v6  ;;  %v5066_v40 = vadd.f32 %v5065_v31, %v5031_v29  ;;  %10546 = vst [vmem:[#allocation43_spill] sm:$0xff] %v9570_v21 }
 0x23f   : > { %v4989_v23 = vadd.f32 %v4988_v8, %v4954_v61  ;;  %v671_v47 = vmul.u32 18, %v670_v37  ;;  %v4739_v43 = vsel %vm9448_vm10, %v4633_v48, 0.0  ;;  %v4740_v24 = vsel %vm9457_vm9, %v4636_v16, 0.0  ;;  %v10547_v8 = vld [vmem:[#allocation13_spill] sm:$0xff]  ;;  %v4465_v37 = vpop.f32.mrb[29].mxu0  ;;  %v9577_v48 = vpop.f32.mrb[102].mxu1 }
 0x240   : > { %v9568_v25 = vsub.s32 %v9355_v15, %v660_v49  ;;  %v682_v53 = vmul.u32 18, %v681_v9  ;;  %v4769_v6 = vpack.c.bf16 %v4740_v24, %v4739_v43  ;;  %v5067_v29 = vadd.f32 %v5066_v40, %v5032_v42  ;;  %10548 = vst [vmem:[#allocation39_spill] sm:$0xff] %v9577_v48  ;;  %v4466_v9 = vpop.f32.mrb[30].mxu0  ;;  %v9581_v49 = vpop.f32.mrb[103].mxu1 }
 0x241   : > { %v9574_v31 = vadd.s32 18, %v9502_v63  ;;  %v7021_v61 = vadd.f32 %v4463_v11, %v10547_v8  ;;  %v704_v15 = vmul.u32 18, %v703_v0  ;;  %10549 = vst [vmem:[#allocation55_spill] sm:$0xff] %v9581_v49  ;;  %v9585_v40 = vsub.s32 %v9407_v39, %v671_v47  ;;  %v10551_v11 = vld [vmem:[#allocation14_spill] sm:$0xff]  ;;  %v4468_v37 = vpop.f32.mrb[31].mxu0  ;;  %v10554_v39 = vld [vmem:[#allocation47_spill] sm:$0xff] }
 0x242   : > { %6790 = vst [vmem:[%s9040_s17 + $0x30] sm:$0xff] %v4769_v6   ;;  %v4955_v16 = vunpack.c.l.bf16 %v4769_v6  ;;  %v4956_v42 = vunpack.c.h.bf16 %v4769_v6  ;;  %v9588_v43 = vadd.s32 18, %v9525_v30  ;;  %v7022_v8 = vadd.f32 %v4466_v9, %v10551_v11  ;;  %v10560_v9 = vld [vmem:[#allocation48_spill] sm:$0xff] }
 0x243   : > { %v4641_v24 = vadd.f32 %v7021_v61, %v9241_v1  ;;  %v9594_v0 = vsub.s32 %v9416_v34, %v682_v53  ;;  %vm10553_vm11 = vnez %v10414_v52  ;;  %v10559_v61 = vld [vmem:[#allocation60_spill] sm:$0xff]  ;;  %v714_v52 = vshrl.u32 %v9553_v4, 4 }
 0x244   : > { %10550 = vst [vmem:[#allocation49_spill] sm:$0xff] %v9588_v43  ;;  %v4990_v48 = vadd.f32 %v4989_v23, %v4955_v16  ;;  %v5033_v62 = vmul.f32 %v4955_v16, %v4955_v16  ;;  %v10555_v47 = vsel %vm10553_vm11, %v9014_v32, %v10554_v39  ;;  %v10561_v11 = vsel %vm9073_vm1, %v10559_v61, %v10560_v9 }
 0x245   : > { %10552 = vst [vmem:[#allocation46_spill] sm:$0xff] %v9594_v0  ;;  %vm9601_vm14 = vcmp.lt.s32.totalorder %v10555_v47, 16  ;;  %vm9610_vm8 = vcmp.lt.s32.totalorder %v10561_v11, 16  ;;  %v4644_v34 = vadd.f32 %v7022_v8, %v9261_v27  ;;  %v9618_v32 = vadd.s32 18, %v9568_v25  ;;  %v9633_v27 = vpop.f32.mrb[104].mxu1  ;;  %v10580_v8 = vld [vmem:[#allocation15_spill] sm:$0xff] }
 0x246   : > { %v9621_v23 = vsub.s32 %v9428_v5, %v704_v15  ;;  %v692_v53 = vshrl.u32 %v9559_v17, 4  ;;  %v4991_v16 = vadd.f32 %v4990_v48, %v4956_v42  ;;  %v5034_v39 = vmul.f32 %v4956_v42, %v4956_v42  ;;  %10570 = vst [vmem:[#allocation47_spill] sm:$0xff] %v9633_v27 }
 0x247   : > { %v5068_v47 = vadd.f32 %v5067_v29, %v5033_v62  ;;  %vm10565_vm1 = vcmp.ne.s32.totalorder %v9474_v60, 0  ;;  %vm10566_vm11 = vcmp.lt.s32.totalorder %v9474_v60, 0  ;;  %v10567_v1 = vmov 0  ;;  %v4471_v62 = vpop.f32.mrb[32].mxu0  ;;  %v9649_v29 = vpop.f32.mrb[105].mxu1 }
 0x248   : > { %10564 = vst [vmem:[#allocation13_spill] sm:$0xff] %v9621_v23  ;;  %vm9628_vm9 = vmand %vm10566_vm11, %vm10565_vm1  ;;  %v4741_v5 = vsel %vm9537_vm5, %v4641_v24, 0.0  ;;  %v4742_v4 = vsel %vm9546_vm4, %v4644_v34, 0.0  ;;  %vm10571_vm3 = vcmp.ne.s32.totalorder %v9502_v63, 0  ;;  %vm10572_vm13 = vcmp.lt.s32.totalorder %v9502_v63, 0  ;;  %v4473_v9 = vpop.f32.mrb[33].mxu0 }
 0x249   : > { %v10568_v1 = vsel %vm9628_vm9, 4294967295, %v10567_v1  ;;  %vm9643_vm7 = vmand %vm10572_vm13, %vm10571_vm3  ;;  %10575 = vst [vmem:[#allocation56_spill] sm:$0xff] %v9649_v29  ;;  %v4770_v48 = vpack.c.bf16 %v4742_v4, %v4741_v5  ;;  %v5069_v15 = vadd.f32 %v5068_v47, %v5034_v39  ;;  %vm10576_vm10 = vcmp.ne.s32.totalorder %v9525_v30, 0  ;;  %v9661_v11 = vpop.f32.mrb[106].mxu1  ;;  %v4474_v47 = vpop.f32.mrb[34].mxu0 }
 0x24a   : > { %10569 = vst [vmem:[#allocation14_spill] sm:$0xff] %v10568_v1  ;;  %vm10577_vm4 = vcmp.lt.s32.totalorder %v9525_v30, 0  ;;  %v10578_v42 = vmov 0  ;;  %v715_v24 = vmul.u32 18, %v714_v52  ;;  %v7023_v61 = vadd.f32 %v4471_v62, %v10580_v8  ;;  %10581 = vst [vmem:[#allocation60_spill] sm:$0xff] %v9661_v11  ;;  %v9673_v52 = vpop.f32.mrb[107].mxu1 }
 0x24b   : > { %vm9655_vm5 = vmand %vm10577_vm4, %vm10576_vm10  ;;  %vm10582_vm3 = vcmp.ne.s32.totalorder %v9568_v25, 0  ;;  %vm10583_vm11 = vcmp.lt.s32.totalorder %v9568_v25, 0  ;;  %v693_v39 = vmul.u32 18, %v692_v53  ;;  %10586 = vst [vmem:[#allocation48_spill] sm:$0xff] %v9673_v52  ;;  %v4957_v5 = vunpack.c.l.bf16 %v4770_v48  ;;  %v10591_v11 = vld [vmem:[#allocation16_spill] sm:$0xff]  ;;  %v4476_v27 = vpop.f32.mrb[35].mxu0 }
 0x24c   : > { %v10579_v42 = vsel %vm9655_vm5, 4294967295, %v10578_v42  ;;  %vm9667_vm1 = vmand %vm10583_vm11, %vm10582_vm3  ;;  %6791 = vst [vmem:[%s9040_s17 + $0x38] sm:$0xff] %v4770_v48   ;;  %v4958_v4 = vunpack.c.h.bf16 %v4770_v48  ;;  %vm10587_vm11 = vcmp.ne.s32.totalorder %v9585_v40, 0  ;;  %vm10588_vm3 = vcmp.lt.s32.totalorder %v9585_v40, 0  ;;  %v10601_v27 = vld [vmem:[#allocation50_spill] sm:$0xff]  ;;  %v10607_v1 = vld [vmem:[#allocation51_spill] sm:$0xff] }
 0x24d   : > { %vm9684_vm13 = vmand %vm10588_vm3, %vm10587_vm11  ;;  %v10589_v8 = vmov 0  ;;  %v9689_v53 = vadd.s32 18, %v9585_v40  ;;  %v4649_v9 = vadd.f32 %v7023_v61, %v9345_v38  ;;  %v7024_v48 = vadd.f32 %v4474_v47, %v10591_v11  ;;  %v10600_v61 = vld [vmem:[#allocation58_spill] sm:$0xff] }
 0x24e   : > { %v10590_v8 = vsel %vm9684_vm13, 4294967295, %v10589_v8  ;;  %v9694_v52 = vadd.s32 18, %v9621_v23  ;;  %vm10593_vm4 = vcmp.ne.s32.totalorder %v9594_v0, 0  ;;  %vm10594_vm10 = vcmp.lt.s32.totalorder %v9594_v0, 0  ;;  %v10678_v47 = vld [vmem:[#allocation26_spill] sm:$0xff] }
 0x24f   : > { %vm9700_vm9 = vmand %vm10594_vm10, %vm10593_vm4  ;;  %v10595_v62 = vmov 0  ;;  %v9705_v29 = vadd.s32 18, %v9594_v0  ;;  %v5035_v49 = vmul.f32 %v4957_v5, %v4957_v5  ;;  %v4992_v21 = vadd.f32 %v4991_v16, %v4957_v5 }
 0x250   : > { %10592 = vst [vmem:[#allocation15_spill] sm:$0xff] %v9694_v52  ;;  %v10596_v62 = vsel %vm9700_vm9, 4294967295, %v10595_v62  ;;  %v10602_v11 = vsel %vm9093_vm12, %v10600_v61, %v10601_v27  ;;  %v10608_v22 = vsel %vm9116_vm0, %v10606_v19, %v10607_v1  ;;  %vm10611_vm12 = vcmp.ne.s32.totalorder %v9621_v23, 0 }
 0x251   : > { %10597 = vst [vmem:[#allocation16_spill] sm:$0xff] %v10596_v62  ;;  %10598 = vst [vmem:[#allocation69_spill] sm:$0xff] %v9705_v29  ;;  %vm9712_vm11 = vcmp.lt.s32.totalorder %v10602_v11, 16  ;;  %vm9721_vm10 = vcmp.lt.s32.totalorder %v10608_v22, 16  ;;  %vm10612_vm4 = vcmp.lt.s32.totalorder %v9621_v23, 0  ;;  %v10613_v5 = vmov 0 }
 0x252   : > { %vm9733_vm3 = vmand %vm10612_vm4, %vm10611_vm12  ;;  %v9738_v60 = vsub.s32 %v9505_v3, %v715_v24  ;;  %v4652_v22 = vadd.f32 %v7024_v48, %v9361_v14  ;;  %v9750_v38 = vsub.s32 %v9518_v50, %v693_v39  ;;  %v5036_v61 = vmul.f32 %v4958_v4, %v4958_v4  ;;  %v6941_v3 = vpop.f32.mrb[108].mxu1  ;;  %v10624_v29 = vld [vmem:[#allocation45_spill] sm:$0xff] }
 0x253   : > { %v10614_v5 = vsel %vm9733_vm3, 4294967295, %v10613_v5  ;;  %v5070_v27 = vadd.f32 %v5069_v15, %v5035_v49  ;;  %v4993_v11 = vadd.f32 %v4992_v21, %v4958_v4  ;;  %v4743_v24 = vsel %vm9601_vm14, %v4649_v9, 0.0  ;;  %v4479_v49 = vpop.f32.mrb[36].mxu0  ;;  %v5515_v15 = vpop.f32.mrb[109].mxu1  ;;  %v10617_v9 = vld [vmem:[#allocation17_spill] sm:$0xff]  ;;  %v10619_v21 = vld [vmem:[#allocation44_spill] sm:$0xff] }
 0x254   : > { %10615 = vst [vmem:[#allocation57_spill] sm:$0xff] %v10614_v5  ;;  %10616 = vst [vmem:[#allocation58_spill] sm:$0xff] %v9750_v38  ;;  %v4744_v48 = vsel %vm9610_vm8, %v4652_v22, 0.0  ;;  %vm754_vm0 = vcmp.ne.s32.totalorder %v9738_v60, 0  ;;  %v7025_v22 = vadd.f32 %v4479_v49, %v10617_v9  ;;  %v5660_v50 = vsel %vm8999_vm15, %v6941_v3, 0.0  ;;  %v4481_v14 = vpop.f32.mrb[37].mxu0 }
 0x255   : > { %v4771_v39 = vpack.c.bf16 %v4744_v48, %v4743_v24  ;;  %v5071_v4 = vadd.f32 %v5070_v27, %v5036_v61  ;;  %v6942_v16 = vpop.f32.mrb[110].mxu1  ;;  %v9774_v19 = vadd.s32 18, %v9738_v60  ;;  %vm10620_vm9 = vnez %v10619_v21  ;;  %v4482_v61 = vpop.f32.mrb[38].mxu0  ;;  %v10621_v27 = vld [vmem:[#allocation53_spill] sm:$0xff]  ;;  %v10623_v21 = vld [vmem:[#allocation18_spill] sm:$0xff] }
 0x256   : > { %v5658_v24 = vsel %vm10620_vm9, %v5515_v15, 0.0  ;;  %vm10622_vm12 = vnez %v10621_v27  ;;  %v5518_v14 = vpop.f32.mrb[111].mxu1  ;;  %v4657_v49 = vadd.f32 %v7025_v22, %v9328_v58  ;;  %v7026_v15 = vadd.f32 %v4482_v61, %v10623_v21  ;;  %v4484_v0 = vpop.f32.mrb[39].mxu0 }
 0x257   : > { %v5661_v1 = vsel %vm10622_vm12, %v6942_v16, 0.0  ;;  %6792 = vst [vmem:[%s9040_s17 + $0x40] sm:$0xff] %v4771_v39   ;;  %v4959_v3 = vunpack.c.l.bf16 %v4771_v39  ;;  %v4960_v48 = vunpack.c.h.bf16 %v4771_v39  ;;  %vm10625_vm15 = vnez %v10624_v29  ;;  %v10627_v29 = vld [vmem:[#allocation63_spill] sm:$0xff] }
 0x258   : > { %v5695_v9 = vpack.c.bf16 %v5661_v1, %v5660_v50  ;;  %v5659_v62 = vsel %vm10625_vm15, %v5518_v14, 0.0  ;;  %v4660_v16 = vadd.f32 %v7026_v15, %v9352_v18  ;;  %v9797_v39 = vadd.s32 18, %v9750_v38  ;;  %v6945_v1 = vpop.f32.mrb[112].mxu1 }
 0x259   : > { %v5694_v23 = vpack.c.bf16 %v5659_v62, %v5658_v24  ;;  %v4994_v52 = vadd.f32 %v4993_v11, %v4959_v3  ;;  %v5037_v5 = vmul.f32 %v4959_v3, %v4959_v3  ;;  %vm10628_vm12 = vnez %v10627_v29  ;;  %v10629_v62 = vld [vmem:[#allocation62_spill] sm:$0xff]  ;;  %v4487_v29 = vpop.f32.mrb[40].mxu0 }
 0x25a   : > { %6802 = vst [vmem:[%s9784_s20 + $0x8] sm:$0xff] %v5695_v9   ;;  %v5876_v27 = vunpack.c.l.bf16 %v5695_v9  ;;  %v5877_v30 = vunpack.c.h.bf16 %v5695_v9  ;;  %10626 = vst [vmem:[#allocation50_spill] sm:$0xff] %v9797_v39  ;;  %v10630_v11 = vld [vmem:[#allocation54_spill] sm:$0xff]  ;;  %v4745_v14 = vsel %vm9712_vm11, %v4657_v49, 0.0  ;;  %v4746_v3 = vsel %vm9721_vm10, %v4660_v16, 0.0  ;;  %v10637_v49 = vld [vmem:[#allocation19_spill] sm:$0xff] }
 0x25b   : > { %6699 = vst [vmem:[%s9784_s20] sm:$0xff] %v5694_v23   ;;  %v5874_v58 = vunpack.c.l.bf16 %v5694_v23  ;;  %v5875_v50 = vunpack.c.h.bf16 %v5694_v23  ;;  %v4995_v0 = vadd.f32 %v4994_v52, %v4960_v48  ;;  %v5072_v22 = vadd.f32 %v5071_v4, %v5037_v5  ;;  %v4489_v16 = vpop.f32.mrb[41].mxu0 }
 0x25c   : > { %v10631_v24 = vsel %vm10628_vm12, %v10629_v62, %v10630_v11  ;;  %v5954_v18 = vmul.f32 %v5876_v27, %v5876_v27  ;;  %v5038_v23 = vmul.f32 %v4960_v48, %v4960_v48  ;;  %v10634_v52 = vsel %vm9233_vm2, %v9222_v12, %v9150_v44  ;;  %v5531_v62 = vpop.f32.mrb[113].mxu1  ;;  %v4490_v26 = vpop.f32.mrb[42].mxu0  ;;  %v10651_v16 = vld [vmem:[#allocation31_spill] sm:$0xff] }
 0x25d   : > { %vm9805_vm15 = vcmp.lt.s32.totalorder %v10631_v24, 16  ;;  %vm9818_vm9 = vcmp.lt.s32.totalorder %v10634_v52, 16  ;;  %v5955_v4 = vmul.f32 %v5877_v30, %v5877_v30  ;;  %v5910_v21 = vadd.f32 %v5875_v50, %v5874_v58  ;;  %v6946_v51 = vpop.f32.mrb[114].mxu1 }
 0x25e   : > { %v5952_v15 = vmul.f32 %v5874_v58, %v5874_v58  ;;  %v5953_v9 = vmul.f32 %v5875_v50, %v5875_v50  ;;  %v7027_v11 = vadd.f32 %v4487_v29, %v10637_v49  ;;  %v5664_v48 = vsel %vm9208_vm6, %v6945_v1, 0.0  ;;  %v10649_v49 = vld [vmem:[#allocation28_spill] sm:$0xff] }
 0x25f   : > { %v4772_v24 = vpack.c.bf16 %v4746_v3, %v4745_v14  ;;  %v5073_v44 = vadd.f32 %v5072_v22, %v5038_v23  ;;  %vm10638_vm2 = vcmp.lt.s32.totalorder %v9738_v60, 0  ;;  %v5911_v58 = vadd.f32 %v5910_v21, %v5876_v27  ;;  %v5534_v14 = vpop.f32.mrb[115].mxu1  ;;  %v10647_v3 = vld [vmem:[#allocation20_spill] sm:$0xff]  ;;  %v4492_v21 = vpop.f32.mrb[43].mxu0 }
 0x260   : > { %vm9829_vm12 = vmand %vm10638_vm2, %vm754_vm0  ;;  %v5988_v50 = vadd.f32 %v5953_v9, %v5952_v15  ;;  %vm10641_vm4 = vnez %v10436_v54  ;;  %vm10642_vm6 = vnez %v10458_v45  ;;  %vm10643_vm3 = vcmp.ne.s32.totalorder %v9750_v38, 0 }
 0x261   : > { %v5662_v52 = vsel %vm10641_vm4, %v5531_v62, 0.0  ;;  %v5665_v1 = vsel %vm10642_vm6, %v6946_v51, 0.0  ;;  %vm10644_vm5 = vcmp.lt.s32.totalorder %v9750_v38, 0  ;;  %v4665_v27 = vadd.f32 %v7027_v11, %v9418_v28  ;;  %6793 = vst [vmem:[%s9040_s17 + $0x48] sm:$0xff] %v4772_v24   ;;  %v10652_v51 = vld [vmem:[#allocation3_spill] sm:$0xff]  ;;  %v10657_v11 = vld [vmem:[#allocation4_spill] sm:$0xff] }
 0x262   : > { %vm9841_vm13 = vmand %vm10644_vm5, %vm10643_vm3  ;;  %v7028_v23 = vadd.f32 %v4490_v26, %v10647_v3  ;;  %v5697_v54 = vpack.c.bf16 %v5665_v1, %v5664_v48  ;;  %vm10648_vm0 = vnez %v10440_v33  ;;  %v5989_v15 = vadd.f32 %v5988_v50, %v5954_v18 }
 0x263   : > { %v5663_v45 = vsel %vm10648_vm0, %v5534_v14, 0.0  ;;  %v5912_v29 = vadd.f32 %v5911_v58, %v5877_v30  ;;  %v4961_v62 = vunpack.c.l.bf16 %v4772_v24  ;;  %vm10650_vm5 = vnez %v10649_v49  ;;  %v4495_v49 = vpop.f32.mrb[44].mxu0 }
 0x264   : > { %v5696_v9 = vpack.c.bf16 %v5663_v45, %v5662_v52  ;;  %v10653_v43 = vsel %vm10650_vm5, %v10651_v16, %v10652_v51  ;;  %vm10656_vm4 = vnez %v10480_v57  ;;  %v4668_v30 = vadd.f32 %v7028_v23, %v9430_v56  ;;  %6804 = vst [vmem:[%s9784_s20 + $0x18] sm:$0xff] %v5697_v54   ;;  %v6949_v56 = vpop.f32.mrb[116].mxu1 }
 0x265   : > { %vm9855_vm3 = vcmp.lt.s32.totalorder %v10653_v43, 16  ;;  %v10658_v33 = vsel %vm10656_vm4, %v9312_v2, %v10657_v11  ;;  %v5880_v18 = vunpack.c.l.bf16 %v5697_v54  ;;  %v5990_v50 = vadd.f32 %v5989_v15, %v5955_v4  ;;  %v5547_v51 = vpop.f32.mrb[117].mxu1  ;;  %v10662_v11 = vld [vmem:[#allocation21_spill] sm:$0xff] }
 0x266   : > { %vm9864_vm2 = vcmp.lt.s32.totalorder %v10658_v33, 16  ;;  %6803 = vst [vmem:[%s9784_s20 + $0x10] sm:$0xff] %v5696_v9   ;;  %v5878_v2 = vunpack.c.l.bf16 %v5696_v9  ;;  %v5879_v58 = vunpack.c.h.bf16 %v5696_v9  ;;  %v5039_v52 = vmul.f32 %v4961_v62, %v4961_v62  ;;  %v4497_v9 = vpop.f32.mrb[45].mxu0  ;;  %v10663_v4 = vld [vmem:[#allocation5_spill] sm:$0xff]  ;;  %v6950_v15 = vpop.f32.mrb[118].mxu1 }
 0x267   : > { %v5881_v26 = vunpack.c.h.bf16 %v5697_v54  ;;  %v5958_v1 = vmul.f32 %v5880_v18, %v5880_v18  ;;  %v9879_v14 = vunpack.c.h.bf16 %v4772_v24  ;;  %v9881_v3 = vadd.f32 %v4995_v0, %v4961_v62  ;;  %v4498_v62 = vpop.f32.mrb[46].mxu0 }
 0x268   : > { %v5913_v23 = vadd.f32 %v5912_v29, %v5878_v2  ;;  %v5956_v21 = vmul.f32 %v5878_v2, %v5878_v2  ;;  %v5957_v45 = vmul.f32 %v5879_v58, %v5879_v58  ;;  %vm10661_vm6 = vnez %v10492_v35  ;;  %v5550_v2 = vpop.f32.mrb[119].mxu1  ;;  %v4500_v9 = vpop.f32.mrb[47].mxu0 }
 0x269   : > { %v5668_v16 = vsel %vm10661_vm6, %v6949_v56, 0.0  ;;  %v7029_v33 = vadd.f32 %v4495_v49, %v10662_v11  ;;  %vm10664_vm0 = vnez %v10663_v4  ;;  %v9888_v57 = vadd.f32 %v5073_v44, %v5039_v52  ;;  %v10666_v49 = vld [vmem:[#allocation42_spill] sm:$0xff] }
 0x26a   : > { %v5666_v54 = vsel %vm10664_vm0, %v5547_v51, 0.0  ;;  %v4747_v0 = vsel %vm9805_vm15, %v4665_v27, 0.0  ;;  %v5914_v24 = vadd.f32 %v5913_v23, %v5879_v58  ;;  %v5991_v29 = vadd.f32 %v5990_v50, %v5956_v21  ;;  %v10667_v11 = vld [vmem:[#allocation22_spill] sm:$0xff] }
 0x26b   : > { %vm10665_vm5 = vnez %v10498_v36  ;;  %v4748_v56 = vsel %vm9818_vm9, %v4668_v30, 0.0  ;;  %v4673_v51 = vadd.f32 %v7029_v33, %v10666_v49  ;;  %v7030_v44 = vadd.f32 %v4498_v62, %v10667_v11  ;;  %v10668_v4 = vld [vmem:[#allocation6_spill] sm:$0xff]  ;;  %v6953_v49 = vpop.f32.mrb[120].mxu1  ;;  %v10671_v11 = vld [vmem:[#allocation23_spill] sm:$0xff] }
 0x26c   : > { %v5669_v35 = vsel %vm10665_vm5, %v6950_v15, 0.0  ;;  %vm10669_vm4 = vnez %v10668_v4  ;;  %v5915_v58 = vadd.f32 %v5914_v24, %v5880_v18  ;;  %v5992_v50 = vadd.f32 %v5991_v29, %v5957_v45  ;;  %v10670_v15 = vld [vmem:[#allocation36_spill] sm:$0xff] }
 0x26d   : > { %v5699_v52 = vpack.c.bf16 %v5669_v35, %v5668_v16  ;;  %v5667_v27 = vsel %vm10669_vm4, %v5550_v2, 0.0  ;;  %v4773_v36 = vpack.c.bf16 %v4748_v56, %v4747_v0  ;;  %v5959_v21 = vmul.f32 %v5881_v26, %v5881_v26  ;;  %v4503_v2 = vpop.f32.mrb[48].mxu0  ;;  %v5563_v56 = vpop.f32.mrb[121].mxu1 }
 0x26e   : > { %v5698_v23 = vpack.c.bf16 %v5667_v27, %v5666_v54  ;;  %v4676_v43 = vadd.f32 %v7030_v44, %v10670_v15  ;;  %v5993_v39 = vadd.f32 %v5992_v50, %v5958_v1  ;;  %v5916_v16 = vadd.f32 %v5915_v58, %v5881_v26  ;;  %v4505_v9 = vpop.f32.mrb[49].mxu0  ;;  %v6954_v4 = vpop.f32.mrb[122].mxu1 }
 0x26f   : > { %6806 = vst [vmem:[%s9784_s20 + $0x28] sm:$0xff] %v5699_v52   ;;  %v5884_v30 = vunpack.c.l.bf16 %v5699_v52  ;;  %v5885_v38 = vunpack.c.h.bf16 %v5699_v52  ;;  %6794 = vst [vmem:[%s9040_s17 + $0x50] sm:$0xff] %v4773_v36   ;;  %v9906_v18 = vmul.f32 %v9879_v14, %v9879_v14  ;;  %v4749_v45 = vsel %vm9855_vm3, %v4673_v51, 0.0  ;;  %v4506_v50 = vpop.f32.mrb[50].mxu0 }
 0x270   : > { %6805 = vst [vmem:[%s9784_s20 + $0x20] sm:$0xff] %v5698_v23   ;;  %v5882_v33 = vunpack.c.l.bf16 %v5698_v23  ;;  %v5883_v62 = vunpack.c.h.bf16 %v5698_v23  ;;  %v4750_v54 = vsel %vm9864_vm2, %v4676_v43, 0.0  ;;  %v5994_v29 = vadd.f32 %v5993_v39, %v5959_v21  ;;  %v5566_v23 = vpop.f32.mrb[123].mxu1 }
 0x271   : > { %v5962_v35 = vmul.f32 %v5884_v30, %v5884_v30  ;;  %v5963_v0 = vmul.f32 %v5885_v38, %v5885_v38  ;;  %v7031_v44 = vadd.f32 %v4503_v2, %v10671_v11  ;;  %vm10672_vm6 = vnez %v10537_v46  ;;  %v10675_v46 = vld [vmem:[#allocation24_spill] sm:$0xff] }
 0x272   : > { %v5917_v24 = vadd.f32 %v5916_v16, %v5882_v33  ;;  %v5960_v1 = vmul.f32 %v5882_v33, %v5882_v33  ;;  %v5961_v26 = vmul.f32 %v5883_v62, %v5883_v62  ;;  %v5672_v52 = vsel %vm10672_vm6, %v6953_v49, 0.0  ;;  %v4508_v16 = vpop.f32.mrb[51].mxu0 }
 0x273   : > { %v4774_v27 = vpack.c.bf16 %v4750_v54, %v4749_v45  ;;  %vm10673_vm0 = vnez %v10509_v55  ;;  %vm10674_vm5 = vnez %v10544_v20  ;;  %v9920_v21 = vadd.f32 %v7031_v44, %v9499_v10 }
 0x274   : > { %v5918_v51 = vadd.f32 %v5917_v24, %v5883_v62  ;;  %v5995_v58 = vadd.f32 %v5994_v29, %v5960_v1  ;;  %v5670_v43 = vsel %vm10673_vm0, %v5563_v56, 0.0  ;;  %v5673_v39 = vsel %vm10674_vm5, %v6954_v4, 0.0 }
 0x275   : > { %v7032_v15 = vadd.f32 %v4506_v50, %v10675_v46  ;;  %v5701_v33 = vpack.c.bf16 %v5673_v39, %v5672_v52  ;;  %vm10676_vm4 = vnez %v10514_v7  ;;  %6795 = vst [vmem:[%s9040_s17 + $0x58] sm:$0xff] %v4774_v27   ;;  %v9926_v54 = vunpack.c.l.bf16 %v4774_v27  ;;  %v6957_v52 = vpop.f32.mrb[124].mxu1  ;;  %v10677_v50 = vld [vmem:[#allocation25_spill] sm:$0xff] }
 0x276   : > { %v5671_v62 = vsel %vm10676_vm4, %v5566_v23, 0.0  ;;  %v5919_v55 = vadd.f32 %v5918_v51, %v5884_v30  ;;  %v5996_v49 = vadd.f32 %v5995_v58, %v5961_v26  ;;  %v4963_v1 = vunpack.c.l.bf16 %v4773_v36  ;;  %v5579_v58 = vpop.f32.mrb[125].mxu1 }
 0x277   : > { %v5700_v45 = vpack.c.bf16 %v5671_v62, %v5670_v43  ;;  %v9929_v20 = vadd.f32 %v7032_v15, %v9520_v13  ;;  %6808 = vst [vmem:[%s9784_s20 + $0x38] sm:$0xff] %v5701_v33   ;;  %v5888_v10 = vunpack.c.l.bf16 %v5701_v33  ;;  %v5889_v24 = vunpack.c.h.bf16 %v5701_v33  ;;  %v4511_v13 = vpop.f32.mrb[52].mxu0  ;;  %v6958_v46 = vpop.f32.mrb[126].mxu1 }
 0x278   : > { %v5997_v29 = vadd.f32 %v5996_v49, %v5962_v35  ;;  %v5920_v11 = vadd.f32 %v5919_v55, %v5885_v38  ;;  %v9933_v30 = vunpack.c.h.bf16 %v4774_v27  ;;  %v4964_v26 = vunpack.c.h.bf16 %v4773_v36  ;;  %v4513_v23 = vpop.f32.mrb[53].mxu0  ;;  %v5582_v62 = vpop.f32.mrb[127].mxu1 }
 0x279   : > { %6807 = vst [vmem:[%s9784_s20 + $0x30] sm:$0xff] %v5700_v45   ;;  %v5886_v2 = vunpack.c.l.bf16 %v5700_v45  ;;  %v5887_v56 = vunpack.c.h.bf16 %v5700_v45  ;;  %v5966_v7 = vmul.f32 %v5888_v10, %v5888_v10  ;;  %v5967_v44 = vmul.f32 %v5889_v24, %v5889_v24  ;;  %v4514_v33 = vpop.f32.mrb[54].mxu0 }
 0x27a   : > { %v5998_v51 = vadd.f32 %v5997_v29, %v5963_v0  ;;  %v9937_v43 = vmul.f32 %v9926_v54, %v9926_v54  ;;  %v7033_v39 = vadd.f32 %v4511_v13, %v10677_v50  ;;  %v5676_v38 = vsel %vm9712_vm11, %v6957_v52, 0.0  ;;  %v4516_v29 = vpop.f32.mrb[55].mxu0  ;;  %v10682_v52 = vld [vmem:[#allocation7_spill] sm:$0xff]  ;;  %v10690_v50 = vld [vmem:[#allocation32_spill] sm:$0xff] }
 0x27b   : > { %v5921_v9 = vadd.f32 %v5920_v11, %v5886_v2  ;;  %v5964_v4 = vmul.f32 %v5886_v2, %v5886_v2  ;;  %v5965_v35 = vmul.f32 %v5887_v56, %v5887_v56  ;;  %v4997_v36 = vadd.f32 %v9881_v3, %v9879_v14  ;;  %v10679_v11 = vld [vmem:[#allocation38_spill] sm:$0xff] }
 0x27c   : > { %v5674_v0 = vsel %vm9601_vm14, %v5579_v58, 0.0  ;;  %v5677_v16 = vsel %vm9721_vm10, %v6958_v46, 0.0  ;;  %v9949_v55 = vadd.f32 %v7033_v39, %v9488_v41  ;;  %v7034_v49 = vadd.f32 %v4514_v33, %v10678_v47  ;;  %v10697_v33 = vld [vmem:[#allocation37_spill] sm:$0xff]  ;;  %v6961_v47 = vpop.f32.mrb[128].mxu1  ;;  %v10701_v29 = vld [vmem:[#allocation10_spill] sm:$0xff] }
 0x27d   : > { %v5922_v27 = vadd.f32 %v5921_v9, %v5887_v56  ;;  %v5999_v15 = vadd.f32 %v5998_v51, %v5964_v4  ;;  %v5703_v45 = vpack.c.bf16 %v5677_v16, %v5676_v38  ;;  %v5675_v14 = vsel %vm9610_vm8, %v5582_v62, 0.0  ;;  %v10686_v4 = vld [vmem:[#allocation11_spill] sm:$0xff] }
 0x27e   : > { %v5702_v2 = vpack.c.bf16 %v5675_v14, %v5674_v0  ;;  %v4998_v56 = vadd.f32 %v4997_v36, %v4963_v1  ;;  %vm10680_vm14 = vnez %v10679_v11  ;;  %v9964_v51 = vadd.f32 %v7034_v49, %v10686_v4  ;;  %v10696_v0 = vld [vmem:[#allocation67_spill] sm:$0xff]  ;;  %v10703_v14 = vld [vmem:[#allocation8_spill] sm:$0xff]  ;;  %v5595_v4 = vpop.f32.mrb[129].mxu1 }
 0x27f   : > { %v5923_v3 = vadd.f32 %v5922_v27, %v5888_v10  ;;  %v6000_v6 = vadd.f32 %v5999_v15, %v5965_v35  ;;  %v10683_v9 = vsel %vm10680_vm14, %v10681_v59, %v10682_v52  ;;  %6810 = vst [vmem:[%s9784_s20 + $0x48] sm:$0xff] %v5703_v45   ;;  %v5892_v13 = vunpack.c.l.bf16 %v5703_v45  ;;  %v10687_v10 = vld [vmem:[#allocation65_spill] sm:$0xff]  ;;  %v10689_v35 = vld [vmem:[#allocation64_spill] sm:$0xff]  ;;  %v10694_v15 = vld [vmem:[#allocation14_spill] sm:$0xff] }
 0x280   : > { %vm9959_vm11 = vcmp.lt.s32.totalorder %v10683_v9, 16  ;;  %v5893_v37 = vunpack.c.h.bf16 %v5703_v45  ;;  %v5041_v58 = vmul.f32 %v4963_v1, %v4963_v1  ;;  %vm10688_vm8 = vnez %v10687_v10  ;;  %6809 = vst [vmem:[%s9784_s20 + $0x40] sm:$0xff] %v5702_v2   ;;  %v4519_v9 = vpop.f32.mrb[56].mxu0 }
 0x281   : > { %v10691_v39 = vsel %vm10688_vm8, %v10689_v35, %v10690_v50  ;;  %v6001_v23 = vadd.f32 %v6000_v6, %v5966_v7  ;;  %v5890_v46 = vunpack.c.l.bf16 %v5702_v2  ;;  %v5891_v36 = vunpack.c.h.bf16 %v5702_v2  ;;  %v6962_v35 = vpop.f32.mrb[130].mxu1 }
 0x282   : > { %vm9972_vm10 = vcmp.lt.s32.totalorder %v10691_v39, 16  ;;  %v5924_v27 = vadd.f32 %v5923_v3, %v5889_v24  ;;  %vm10695_vm6 = vnez %v10694_v15  ;;  %v5970_v62 = vmul.f32 %v5892_v13, %v5892_v13  ;;  %v10704_v24 = vld [vmem:[#allocation66_spill] sm:$0xff]  ;;  %v5598_v15 = vpop.f32.mrb[131].mxu1 }
 0x283   : > { %v10698_v16 = vsel %vm10695_vm6, %v10696_v0, %v10697_v33  ;;  %v4999_v49 = vadd.f32 %v4998_v56, %v4964_v26  ;;  %v5042_v45 = vmul.f32 %v4964_v26, %v4964_v26  ;;  %v5075_v7 = vadd.f32 %v9888_v57, %v9906_v18  ;;  %v10708_v56 = vld [vmem:[#allocation27_spill] sm:$0xff]  ;;  %v4521_v18 = vpop.f32.mrb[57].mxu0  ;;  %v10710_v33 = vld [vmem:[#allocation29_spill] sm:$0xff] }
 0x284   : > { %vm9982_vm0 = vcmp.lt.s32.totalorder %v10698_v16, 16  ;;  %vm10702_vm5 = vnez %v10701_v29  ;;  %v5925_v2 = vadd.f32 %v5924_v27, %v5890_v46  ;;  %v5968_v11 = vmul.f32 %v5890_v46, %v5890_v46  ;;  %v4522_v46 = vpop.f32.mrb[58].mxu0  ;;  %v10709_v0 = vld [vmem:[#allocation43_spill] sm:$0xff] }
 0x285   : > { %v10705_v3 = vsel %vm10702_vm5, %v10703_v14, %v10704_v24  ;;  %v5969_v59 = vmul.f32 %v5891_v36, %v5891_v36  ;;  %v6002_v52 = vadd.f32 %v6001_v23, %v5967_v44  ;;  %v7035_v26 = vadd.f32 %v4519_v9, %v10708_v56  ;;  %v10711_v24 = vld [vmem:[#allocation55_spill] sm:$0xff] }
 0x286   : > { %vm9993_vm4 = vcmp.lt.s32.totalorder %v10705_v3, 16  ;;  %v5680_v57 = vsel %vm9855_vm3, %v6961_v47, 0.0  ;;  %v5678_v10 = vsel %vm9805_vm15, %v5595_v4, 0.0  ;;  %v10003_v50 = vadd.f32 %v4999_v49, %v9926_v54  ;;  %v4524_v47 = vpop.f32.mrb[59].mxu0  ;;  %v6965_v4 = vpop.f32.mrb[132].mxu1 }
 0x287   : > { %v5926_v39 = vadd.f32 %v5925_v2, %v5891_v36  ;;  %v6003_v27 = vadd.f32 %v6002_v52, %v5968_v11  ;;  %v5681_v44 = vsel %vm9864_vm2, %v6962_v35, 0.0  ;;  %v5076_v23 = vadd.f32 %v5075_v7, %v5041_v58  ;;  %v4527_v18 = vpop.f32.mrb[60].mxu0  ;;  %v10715_v35 = vld [vmem:[#allocation30_spill] sm:$0xff] }
 0x288   : > { %v10008_v28 = vadd.f32 %v7035_v26, %v10709_v0  ;;  %v7036_v61 = vadd.f32 %v4522_v46, %v10710_v33  ;;  %v5705_v16 = vpack.c.bf16 %v5681_v44, %v5680_v57  ;;  %v5679_v54 = vsel %vm9818_vm9, %v5598_v15, 0.0  ;;  %v10719_v33 = vld [vmem:[#allocation12_spill] sm:$0xff] }
 0x289   : > { %v5927_v36 = vadd.f32 %v5926_v39, %v5892_v13  ;;  %v6004_v49 = vadd.f32 %v6003_v27, %v5969_v59  ;;  %v5077_v29 = vadd.f32 %v5076_v23, %v5042_v45  ;;  %v5704_v14 = vpack.c.bf16 %v5679_v54, %v5678_v10  ;;  %v5611_v10 = vpop.f32.mrb[133].mxu1 }
 0x28a   : > { %v5971_v48 = vmul.f32 %v5893_v37, %v5893_v37  ;;  %v10014_v3 = vadd.f32 %v7036_v61, %v10711_v24  ;;  %v5044_v58 = vmul.f32 %v9933_v30, %v9933_v30  ;;  %6812 = vst [vmem:[%s9784_s20 + $0x58] sm:$0xff] %v5705_v16   ;;  %v5896_v7 = vunpack.c.l.bf16 %v5705_v16  ;;  %v6966_v27 = vpop.f32.mrb[134].mxu1  ;;  %v10725_v24 = vld [vmem:[#allocation39_spill] sm:$0xff] }
 0x28b   : > { %v6005_v2 = vadd.f32 %v6004_v49, %v5970_v62  ;;  %v5078_v11 = vadd.f32 %v5077_v29, %v9937_v43  ;;  %6811 = vst [vmem:[%s9784_s20 + $0x50] sm:$0xff] %v5704_v14   ;;  %v5894_v52 = vunpack.c.l.bf16 %v5704_v14  ;;  %v5895_v5 = vunpack.c.h.bf16 %v5704_v14  ;;  %v5614_v0 = vpop.f32.mrb[135].mxu1  ;;  %v10738_v62 = vld [vmem:[#allocation13_spill] sm:$0xff] }
 0x28c   : > { %v5897_v9 = vunpack.c.h.bf16 %v5705_v16  ;;  %v5974_v13 = vmul.f32 %v5896_v7, %v5896_v7  ;;  %v5928_v59 = vadd.f32 %v5927_v36, %v5893_v37  ;;  %v4753_v45 = vsel %vm9959_vm11, %v9949_v55, 0.0 }
 0x28d   : > { %v10712_v56 = vsel %vm9667_vm1, %v9618_v32, %v9568_v25  ;;  %v5972_v43 = vmul.f32 %v5894_v52, %v5894_v52  ;;  %v5973_v26 = vmul.f32 %v5895_v5, %v5895_v5  ;;  %v6006_v57 = vadd.f32 %v6005_v2, %v5971_v48  ;;  %v4529_v25 = vpop.f32.mrb[61].mxu0 }
 0x28e   : > { %vm10029_vm9 = vcmp.lt.s32.totalorder %v10712_v56, 16  ;;  %v4751_v37 = vsel %vm9972_vm10, %v9920_v21, 0.0  ;;  %v5929_v55 = vadd.f32 %v5928_v59, %v5894_v52  ;;  %v7037_v39 = vadd.f32 %v4527_v18, %v10715_v35  ;;  %v4530_v23 = vpop.f32.mrb[62].mxu0 }
 0x28f   : > { %v5684_v34 = vsel %vm9959_vm11, %v6965_v4, 0.0  ;;  %v4754_v32 = vsel %vm9982_vm0, %v9964_v51, 0.0  ;;  %v10716_v46 = vsel %vm9643_vm7, %v9574_v31, %v9502_v63  ;;  %v6007_v44 = vadd.f32 %v6006_v57, %v5972_v43  ;;  %v10720_v63 = vld [vmem:[#allocation33_spill] sm:$0xff]  ;;  %v4532_v47 = vpop.f32.mrb[63].mxu0  ;;  %v6969_v57 = vpop.f32.mrb[136].mxu1 }
 0x290   : > { %vm10047_vm1 = vcmp.lt.s32.totalorder %v10716_v46, 16  ;;  %v4776_v41 = vpack.c.bf16 %v4754_v32, %v4753_v45  ;;  %v5685_v15 = vsel %vm9982_vm0, %v6966_v27, 0.0  ;;  %v4752_v51 = vsel %vm9993_vm4, %v9929_v20, 0.0 }
 0x291   : > { %v5930_v17 = vadd.f32 %v5929_v55, %v5895_v5  ;;  %v10057_v61 = vadd.f32 %v7037_v39, %v10719_v33  ;;  %v7038_v31 = vadd.f32 %v4530_v23, %v10720_v63  ;;  %v5707_v16 = vpack.c.bf16 %v5685_v15, %v5684_v34  ;;  %v5627_v55 = vpop.f32.mrb[137].mxu1  ;;  %v10732_v23 = vld [vmem:[#allocation34_spill] sm:$0xff] }
 0x292   : > { %vm10721_vm7 = vnez %v10590_v8  ;;  %v6008_v20 = vadd.f32 %v6007_v44, %v5973_v26  ;;  %6797 = vst [vmem:[%s9040_s17 + $0x68] sm:$0xff] %v4776_v41   ;;  %v4969_v36 = vunpack.c.l.bf16 %v4776_v41  ;;  %v10070_v49 = vunpack.c.h.bf16 %v4776_v41  ;;  %v6970_v27 = vpop.f32.mrb[138].mxu1 }
 0x293   : > { %v10722_v1 = vsel %vm10721_vm7, %v9689_v53, %v9585_v40  ;;  %v4775_v29 = vpack.c.bf16 %v4752_v51, %v4751_v37  ;;  %v5975_v14 = vmul.f32 %v5897_v9, %v5897_v9  ;;  %v5931_v48 = vadd.f32 %v5930_v17, %v5896_v7  ;;  %6814 = vst [vmem:[%s9784_s20 + $0x68] sm:$0xff] %v5707_v16   ;;  %v10727_v40 = vld [vmem:[#allocation49_spill] sm:$0xff]  ;;  %v10728_v53 = vld [vmem:[#allocation68_spill] sm:$0xff] }
 0x294   : > { %vm10065_vm15 = vcmp.lt.s32.totalorder %v10722_v1, 16  ;;  %v4708_v2 = vadd.f32 %v7038_v31, %v10725_v24  ;;  %v5900_v8 = vunpack.c.l.bf16 %v5707_v16  ;;  %vm10726_vm3 = vnez %v10579_v42  ;;  %v10733_v17 = vld [vmem:[#allocation56_spill] sm:$0xff]  ;;  %v10734_v31 = vld [vmem:[#allocation35_spill] sm:$0xff] }
 0x295   : > { %v10729_v52 = vsel %vm10726_vm3, %v10727_v40, %v10728_v53  ;;  %v6009_v59 = vadd.f32 %v6008_v20, %v5974_v13  ;;  %v5682_v45 = vsel %vm9972_vm10, %v5611_v10, 0.0  ;;  %v10085_v4 = vunpack.c.h.bf16 %v5707_v16  ;;  %6796 = vst [vmem:[%s9040_s17 + $0x60] sm:$0xff] %v4775_v29   ;;  %v4535_v10 = vpop.f32.mrb[64].mxu0  ;;  %v10742_v53 = vld [vmem:[#allocation48_spill] sm:$0xff] }
 0x296   : > { %vm10079_vm2 = vcmp.lt.s32.totalorder %v10729_v52, 16  ;;  %v4967_v7 = vunpack.c.l.bf16 %v4775_v29  ;;  %v5047_v56 = vmul.f32 %v4969_v36, %v4969_v36  ;;  %v5048_v43 = vmul.f32 %v10070_v49, %v10070_v49  ;;  %v4537_v32 = vpop.f32.mrb[65].mxu0 }
 0x297   : > { %v4968_v42 = vunpack.c.h.bf16 %v4775_v29  ;;  %v5001_v26 = vadd.f32 %v10003_v50, %v9933_v30  ;;  %v5079_v37 = vadd.f32 %v5078_v11, %v5044_v58  ;;  %v5683_v13 = vsel %vm9993_vm4, %v5614_v0, 0.0  ;;  %v4538_v6 = vpop.f32.mrb[66].mxu0  ;;  %v5630_v58 = vpop.f32.mrb[139].mxu1  ;;  %v10735_v29 = vld [vmem:[#allocation57_spill] sm:$0xff] }
 0x298   : > { %v5045_v18 = vmul.f32 %v4967_v7, %v4967_v7  ;;  %v5932_v38 = vadd.f32 %v5931_v48, %v5897_v9  ;;  %v5978_v35 = vmul.f32 %v5900_v8, %v5900_v8  ;;  %v5706_v34 = vpack.c.bf16 %v5683_v13, %v5682_v45  ;;  %v4540_v51 = vpop.f32.mrb[67].mxu0  ;;  %v10745_v45 = vld [vmem:[#allocation69_spill] sm:$0xff]  ;;  %v6973_v13 = vpop.f32.mrb[140].mxu1 }
 0x299   : > { %v5002_v39 = vadd.f32 %v5001_v26, %v4967_v7  ;;  %v6010_v25 = vadd.f32 %v6009_v59, %v5975_v14  ;;  %v5046_v46 = vmul.f32 %v4968_v42, %v4968_v42  ;;  %v7039_v30 = vadd.f32 %v4535_v10, %v10732_v23  ;;  %v10737_v14 = vld [vmem:[#allocation15_spill] sm:$0xff]  ;;  %v10743_v59 = vld [vmem:[#allocation16_spill] sm:$0xff]  ;;  %v10746_v7 = vld [vmem:[#allocation46_spill] sm:$0xff]  ;;  %v10148_v32 = vpop.f32.mrb[141].mxu1 }
 0x29a   : > { %v5080_v44 = vadd.f32 %v5079_v37, %v5045_v18  ;;  %v4757_v50 = vsel %vm10029_vm9, %v10057_v61, 0.0  ;;  %6813 = vst [vmem:[%s9784_s20 + $0x60] sm:$0xff] %v5706_v34   ;;  %v5898_v9 = vunpack.c.l.bf16 %v5706_v34  ;;  %v5899_v41 = vunpack.c.h.bf16 %v5706_v34 }
 0x29b   : > { %v5003_v11 = vadd.f32 %v5002_v39, %v4968_v42  ;;  %v5688_v15 = vsel %vm10029_vm9, %v6969_v57, 0.0  ;;  %v10102_v33 = vadd.f32 %v7039_v30, %v10733_v17  ;;  %v4755_v63 = vsel %vm10047_vm1, %v10008_v28, 0.0 }
 0x29c   : > { %v5081_v0 = vadd.f32 %v5080_v44, %v5046_v46  ;;  %v7040_v61 = vadd.f32 %v4538_v6, %v10734_v31  ;;  %v5933_v47 = vadd.f32 %v5932_v38, %v5898_v9  ;;  %v5976_v1 = vmul.f32 %v5898_v9, %v5898_v9  ;;  %v10753_v6 = vld [vmem:[#allocation50_spill] sm:$0xff] }
 0x29d   : > { %v5004_v16 = vadd.f32 %v5003_v11, %v4969_v36  ;;  %v5977_v20 = vmul.f32 %v5899_v41, %v5899_v41  ;;  %vm10736_vm14 = vnez %v10735_v29  ;;  %v4758_v28 = vsel %vm10065_vm15, %v4708_v2, 0.0 }
 0x29e   : > { %v10739_v48 = vsel %vm10736_vm14, %v10737_v14, %v10738_v62  ;;  %v5082_v40 = vadd.f32 %v5081_v0, %v5047_v56  ;;  %v10118_v52 = vadd.f32 %v7040_v61, %v10742_v53  ;;  %v5689_v36 = vsel %vm10065_vm15, %v6970_v27, 0.0  ;;  %v10759_v14 = vld [vmem:[#allocation47_spill] sm:$0xff] }
 0x29f   : > { %vm10113_vm11 = vcmp.lt.s32.totalorder %v10739_v48, 16  ;;  %vm10744_vm8 = vnez %v10743_v59  ;;  %v5934_v56 = vadd.f32 %v5933_v47, %v5899_v41  ;;  %v6011_v57 = vadd.f32 %v6010_v25, %v5976_v1  ;;  %v4543_v25 = vpop.f32.mrb[68].mxu0 }
 0x2a0   : > { %v10747_v42 = vsel %vm10744_vm8, %v10745_v45, %v10746_v7  ;;  %v4778_v18 = vpack.c.bf16 %v4758_v28, %v4757_v50  ;;  %v5709_v37 = vpack.c.bf16 %v5689_v36, %v5688_v15  ;;  %v10750_v54 = vsel %vm9829_vm12, %v9774_v19, %v9738_v60  ;;  %v4545_v46 = vpop.f32.mrb[69].mxu0  ;;  %v10760_v7 = vld [vmem:[#allocation41_spill] sm:$0xff] }
 0x2a1   : > { %vm10129_vm10 = vcmp.lt.s32.totalorder %v10747_v42, 16  ;;  %vm10138_vm6 = vcmp.lt.s32.totalorder %v10750_v54, 16  ;;  %v4756_v38 = vsel %vm10079_vm2, %v10014_v3, 0.0  ;;  %v5005_v10 = vadd.f32 %v5004_v16, %v10070_v49  ;;  %v6974_v3 = vpop.f32.mrb[142].mxu1  ;;  %v4546_v23 = vpop.f32.mrb[70].mxu0 }
 0x2a2   : > { %v5083_v39 = vadd.f32 %v5082_v40, %v5048_v43  ;;  %v5687_v34 = vsel %vm10079_vm2, %v5630_v58, 0.0  ;;  %v5935_v12 = vadd.f32 %v5934_v56, %v5900_v8  ;;  %v6012_v27 = vadd.f32 %v6011_v57, %v5977_v20  ;;  %6799 = vst [vmem:[%s9040_s17 + $0x78] sm:$0xff] %v4778_v18   ;;  %6816 = vst [vmem:[%s9784_s20 + $0x78] sm:$0xff] %v5709_v37   ;;  %v5646_v30 = vpop.f32.mrb[143].mxu1  ;;  %v10754_v58 = vld [vmem:[#allocation58_spill] sm:$0xff] }
 0x2a3   : > { %v5686_v60 = vsel %vm10047_vm1, %v5627_v55, 0.0  ;;  %v4973_v19 = vunpack.c.l.bf16 %v4778_v18  ;;  %v4974_v44 = vunpack.c.h.bf16 %v4778_v18  ;;  %v5904_v49 = vunpack.c.l.bf16 %v5709_v37  ;;  %v4548_v55 = vpop.f32.mrb[71].mxu0 }
 0x2a4   : > { %v4777_v43 = vpack.c.bf16 %v4756_v38, %v4755_v63  ;;  %v5708_v5 = vpack.c.bf16 %v5687_v34, %v5686_v60  ;;  %v5979_v8 = vmul.f32 %v10085_v4, %v10085_v4  ;;  %v6013_v50 = vadd.f32 %v6012_v27, %v5978_v35  ;;  %v10761_v38 = vld [vmem:[#allocation60_spill] sm:$0xff] }
 0x2a5   : > { %v5936_v21 = vadd.f32 %v5935_v12, %v10085_v4  ;;  %v10755_v11 = vsel %vm9841_vm13, %v10753_v6, %v10754_v58  ;;  %v5051_v41 = vmul.f32 %v4973_v19, %v4973_v19  ;;  %v5905_v15 = vunpack.c.h.bf16 %v5709_v37  ;;  %v10758_v4 = vld [vmem:[#allocation40_spill] sm:$0xff] }
 0x2a6   : > { %vm10162_vm12 = vcmp.lt.s32.totalorder %v10755_v11, 16  ;;  %6798 = vst [vmem:[%s9040_s17 + $0x70] sm:$0xff] %v4777_v43   ;;  %v4971_v51 = vunpack.c.l.bf16 %v4777_v43  ;;  %v4972_v0 = vunpack.c.h.bf16 %v4777_v43  ;;  %6815 = vst [vmem:[%s9784_s20 + $0x70] sm:$0xff] %v5708_v5   ;;  %v5902_v17 = vunpack.c.l.bf16 %v5708_v5 }
 0x2a7   : > { %v5903_v35 = vunpack.c.h.bf16 %v5708_v5  ;;  %v6014_v63 = vadd.f32 %v6013_v50, %v5979_v8  ;;  %v7041_v31 = vadd.f32 %v4543_v25, %v10758_v4  ;;  %v5052_v61 = vmul.f32 %v4974_v44, %v4974_v44 }
 0x2a8   : > { %v5982_v22 = vmul.f32 %v5904_v49, %v5904_v49  ;;  %v5006_v16 = vadd.f32 %v5005_v10, %v4971_v51  ;;  %v5049_v47 = vmul.f32 %v4971_v51, %v4971_v51  ;;  %v5050_v1 = vmul.f32 %v4972_v0, %v4972_v0 }
 0x2a9   : > { %v5937_v20 = vadd.f32 %v5936_v21, %v5902_v17  ;;  %v5980_v29 = vmul.f32 %v5902_v17, %v5902_v17  ;;  %v4721_v62 = vadd.f32 %v7041_v31, %v10759_v14  ;;  %v5981_v53 = vmul.f32 %v5903_v35, %v5903_v35 }
 0x2aa   : > { %v5007_v48 = vadd.f32 %v5006_v16, %v4972_v0  ;;  %v5084_v40 = vadd.f32 %v5083_v39, %v5049_v47  ;;  %v5692_v28 = vsel %vm10113_vm11, %v6973_v13, 0.0  ;;  %v4759_v45 = vsel %vm10129_vm10, %v10102_v33, 0.0 }
 0x2ab   : > { %v5938_v36 = vadd.f32 %v5937_v20, %v5903_v35  ;;  %v6015_v59 = vadd.f32 %v6014_v63, %v5980_v29  ;;  %v7042_v42 = vadd.f32 %v4546_v23, %v10760_v7  ;;  %v5693_v18 = vsel %vm10138_vm6, %v6974_v3, 0.0 }
 0x2ac   : > { %v5008_v56 = vadd.f32 %v5007_v48, %v4973_v19  ;;  %v5085_v57 = vadd.f32 %v5084_v40, %v5050_v1  ;;  %v4760_v37 = vsel %vm10162_vm12, %v10118_v52, 0.0  ;;  %v5711_v39 = vpack.c.bf16 %v5693_v18, %v5692_v28 }
 0x2ad   : > { %v5939_v13 = vadd.f32 %v5938_v36, %v5904_v49  ;;  %v6016_v54 = vadd.f32 %v6015_v59, %v5981_v53  ;;  %v4724_v10 = vadd.f32 %v7042_v42, %v10761_v38  ;;  %v4779_v33 = vpack.c.bf16 %v4760_v37, %v4759_v45 }
 0x2ae   : > { %v5086_v34 = vadd.f32 %v5085_v57, %v5051_v41  ;;  %v5009_v25 = vadd.f32 %v5008_v56, %v4974_v44  ;;  %v5691_v12 = vsel %vm10162_vm12, %v5646_v30, 0.0  ;;  %v4761_v60 = vsel %vm10113_vm11, %v4721_v62, 0.0  ;;  %6818 = vst [vmem:[%s9784_s20 + $0x88] sm:$0xff] %v5711_v39  }
 0x2af   : > { %v6017_v27 = vadd.f32 %v6016_v54, %v5982_v22  ;;  %v5690_v52 = vsel %vm10129_vm10, %v10148_v32, 0.0  ;;  %v4762_v19 = vsel %vm10138_vm6, %v4724_v10, 0.0  ;;  %6800 = vst [vmem:[%s9040_s17 + $0x80] sm:$0xff] %v4779_v33   ;;  %v4975_v3 = vunpack.c.l.bf16 %v4779_v33 }
 0x2b0   : > { %v4780_v46 = vpack.c.bf16 %v4762_v19, %v4761_v60  ;;  %v4976_v44 = vunpack.c.h.bf16 %v4779_v33  ;;  %v5087_v49 = vadd.f32 %v5086_v34, %v5052_v61  ;;  %v5983_v43 = vmul.f32 %v5905_v15, %v5905_v15 }
 0x2b1   : > { %v5710_v5 = vpack.c.bf16 %v5691_v12, %v5690_v52  ;;  %v5940_v23 = vadd.f32 %v5939_v13, %v5905_v15  ;;  %v5010_v30 = vadd.f32 %v5009_v25, %v4975_v3  ;;  %v5053_v8 = vmul.f32 %v4975_v3, %v4975_v3 }
 0x2b2   : > { %6801 = vst [vmem:[%s9040_s17 + $0x88] sm:$0xff] %v4780_v46   ;;  %v4977_v24 = vunpack.c.l.bf16 %v4780_v46  ;;  %v4978_v50 = vunpack.c.h.bf16 %v4780_v46  ;;  %v6018_v2 = vadd.f32 %v6017_v27, %v5983_v43  ;;  %v5054_v6 = vmul.f32 %v4976_v44, %v4976_v44 }
 0x2b3   : > { %6817 = vst [vmem:[%s9784_s20 + $0x80] sm:$0xff] %v5710_v5   ;;  %v5906_v26 = vunpack.c.l.bf16 %v5710_v5  ;;  %v5907_v32 = vunpack.c.h.bf16 %v5710_v5  ;;  %v5011_v55 = vadd.f32 %v5010_v30, %v4976_v44  ;;  %v5088_v58 = vadd.f32 %v5087_v49, %v5053_v8 }
 0x2b4   : > { %v5055_v21 = vmul.f32 %v4977_v24, %v4977_v24  ;;  %v5908_v11 = vunpack.c.l.bf16 %v5711_v39  ;;  %v5909_v17 = vunpack.c.h.bf16 %v5711_v39  ;;  %v5056_v4 = vmul.f32 %v4978_v50, %v4978_v50 }
 0x2b5   : > { %v5941_v9 = vadd.f32 %v5940_v23, %v5906_v26  ;;  %v5984_v41 = vmul.f32 %v5906_v26, %v5906_v26  ;;  %v5012_v51 = vadd.f32 %v5011_v55, %v4977_v24  ;;  %v5089_v0 = vadd.f32 %v5088_v58, %v5054_v6 }
 0x2b6   : > { %v5985_v35 = vmul.f32 %v5907_v32, %v5907_v32  ;;  %v5986_v22 = vmul.f32 %v5908_v11, %v5908_v11  ;;  %v5987_v29 = vmul.f32 %v5909_v17, %v5909_v17 }
 0x2b7   : > { %v5942_v15 = vadd.f32 %v5941_v9, %v5907_v32  ;;  %v6019_v63 = vadd.f32 %v6018_v2, %v5984_v41  ;;  %v5013_v31 = vadd.f32 %v5012_v51, %v4978_v50  ;;  %v5090_v61 = vadd.f32 %v5089_v0, %v5055_v21 }
 0x2b9   : > { %v5943_v16 = vadd.f32 %v5942_v15, %v5908_v11  ;;  %v6020_v47 = vadd.f32 %v6019_v63, %v5985_v35  ;;  %v5014_v1 = vrot.slane %v5013_v31, 4  ;;  %v5091_v20 = vadd.f32 %v5090_v61, %v5056_v4 }
 0x2bb   : > { %v5944_v14 = vadd.f32 %v5943_v16, %v5909_v17  ;;  %v6021_v62 = vadd.f32 %v6020_v47, %v5986_v22  ;;  %v5015_v48 = vadd.f32 %v5014_v1, %v5013_v31  ;;  %v5092_v40 = vrot.slane %v5091_v20, 4 }
 0x2bd   : > { %v5945_v53 = vrot.slane %v5944_v14, 4  ;;  %v6022_v28 = vadd.f32 %v6021_v62, %v5987_v29  ;;  %v5016_v36 = vrot.slane %v5015_v48, 2  ;;  %v5093_v59 = vadd.f32 %v5092_v40, %v5091_v20 }
 0x2bf   : > { %v5946_v45 = vadd.f32 %v5945_v53, %v5944_v14  ;;  %v6023_v7 = vrot.slane %v6022_v28, 4  ;;  %v5017_v42 = vadd.f32 %v5016_v36, %v5015_v48  ;;  %v5094_v56 = vrot.slane %v5093_v59, 2 }
 0x2c1   : > { %v5947_v57 = vrot.slane %v5946_v45, 2  ;;  %v6024_v18 = vadd.f32 %v6023_v7, %v6022_v28  ;;  %v5018_v37 = vrot.slane %v5017_v42, 1  ;;  %v5095_v13 = vadd.f32 %v5094_v56, %v5093_v59 }
 0x2c3   : > { %v5948_v54 = vadd.f32 %v5947_v57, %v5946_v45  ;;  %v6025_v38 = vrot.slane %v6024_v18, 2  ;;  %v5019_v10 = vadd.f32 %v5018_v37, %v5017_v42  ;;  %v5096_v39 = vrot.slane %v5095_v13, 1 }
 0x2c5   : > { %v5949_v34 = vrot.slane %v5948_v54, 1  ;;  %v6026_v33 = vadd.f32 %v6025_v38, %v6024_v18  ;;  %5020 = vst [vmem:[%s280_s26] sm:$0x1] %v5019_v10  ;;  %v5097_v25 = vadd.f32 %v5096_v39, %v5095_v13 }
 0x2c7   : > { %v5950_v12 = vadd.f32 %v5949_v34, %v5948_v54  ;;  %v6027_v27 = vrot.slane %v6026_v33, 1  ;;  %5098 = vst [vmem:[%s280_s26 + $0x1] sm:$0x1] %v5097_v25 }
 0x2c9   : > { %5951 = vst [vmem:[%s284_s22] sm:$0x1] %v5950_v12  ;;  %v6028_v60 = vadd.f32 %v6027_v27, %v6026_v33 }
 0x2cb   : > { %6029 = vst [vmem:[%s284_s22 + $0x1] sm:$0x1] %v6028_v60 }
 0x2cc PF: > { %s17_s21 = sadd.s32 1, %s7545_s21  }
 0x2cd   : > { %p14_p4 = scmp.ge.s32.totalorder %s17_s21, 4  }
 0x2cf   :  { %16 = sbr.rel (!%p14_p4) target bundleno = 1 (0x1), region = 98 }

// kernel: basic_block_forward.4
= control target key start
LH: loop header
LB: loop body
LE: loop exit
PB: predicated region body
PF: predicated region fallthrough
CT: control target
= control target key end

     0   :  { %s7170_s18 = smov 0   ;;  %s9612_s0 = inlined_call_operand.vmem [shape: bf16[2,288,128], index: 0, kind: input, shape index: {}]   ;;  %s9613_s1 = inlined_call_operand.vmem [shape: f32[1,128], index: 1, kind: input, shape index: {}]   ;;  %s9614_s2 = inlined_call_operand.vmem [shape: f32[1,128], index: 2, kind: input, shape index: {}]   ;;  %s9615_s3 = inlined_call_operand.vmem [shape: bf16[1152,128], index: 3, kind: input, shape index: {}]   ;;  %s9616_s4 = inlined_call_operand.vmem [shape: bf16[2,288,128], index: 4, kind: output, shape index: {0}]   ;;  %s9617_s5 = inlined_call_operand.vmem [shape: f32[2,2,128], index: 5, kind: output, shape index: {1}]  }
   0x1 LB: > { %s5929_s19 = sadd.s32 4294967295, %s7137_s18   ;;  %p5933_p0 = scmp.ge.s32.totalorder %s7137_s18, 1  ;;  %s7137_s18 = sphi %s7170_s18, %s16_s18  }
   0x2   : > { %p190_p1 = scmp.lt.s32.totalorder %s7137_s18, 3 }
   0x4   : > { %p191_p2 = pnand %p5933_p0, %p190_p1 }
   0x6   : > { %194 = sbr.rel (%p191_p2) target bundleno = 817 (0x331), region = 36 }
   0xd   : > { %v6869_v0 = vld [vmem:[%s9615_s3] sm:$0xff]   ;;  %v9637_v1 = vmov 0   ;;  %v6871_v3 = vld [vmem:[%s9615_s3 + $0x8] sm:$0xff]   ;;  %v6873_v5 = vld [vmem:[%s9615_s3 + $0x10] sm:$0xff]   ;;  %v237_v9 = vlaneseq  ;;  %p222_p3 = scmp.lt.s32.totalorder %s5929_s19, 1  ;;  %vm1118_vm0 = vcmask 1041408  }
   0xe   : > { %4586 = vmatprep.subr.bf16.mxu1 %v9637_v1  ;;  %1116 = vst [vmem:[#allocation2] sm:$0xf] %v9637_v1  ;;  %1117 = vst [vmem:[#allocation2 + $0x4] sm:$0xf] %v9637_v1  ;;  %4763 = vmatprep.subr.bf16.mxu0 %v9637_v1  ;;  %v6870_v2 = vld [vmem:[%s9615_s3 + $0x80] sm:$0xff]   ;;  %v6872_v4 = vld [vmem:[%s9615_s3 + $0x88] sm:$0xff]  }
   0xf   : > { %1130 = vst [vmem:[#allocation2 + $0x9c] sm:$0xf] %v9637_v1  ;;  %1131 = vst [vmem:[#allocation2 + $0xa0] sm:$0xf] %v9637_v1  ;;  %4587 = vmatpush1.bf16.msra.mxu1 %v6869_v0  ;;  %4764 = vmatpush1.bf16.msra.mxu0 %v6870_v2  ;;  %v6874_v6 = vld [vmem:[%s9615_s3 + $0x90] sm:$0xff]   ;;  %v6875_v7 = vld [vmem:[%s9615_s3 + $0x18] sm:$0xff]  }
  0x10   : > { %4588 = vmatprep.subr.bf16.mxu1 %v9637_v1  ;;  %4765 = vmatprep.subr.bf16.mxu0 %v9637_v1  ;;  %v6876_v8 = vld [vmem:[%s9615_s3 + $0x98] sm:$0xff]   ;;  %v6877_v10 = vld [vmem:[%s9615_s3 + $0x20] sm:$0xff]   ;;  %v7224_v12 = vshrl.u32 %v237_v9, 7  ;;  %v6879_v13 = vld [vmem:[%s9615_s3 + $0x28] sm:$0xff]   ;;  %s9981_s19 = smov (!%p222_p3, %s5929_s19), 1  ;;  %vm1124_vm7 = vcmask 1043457  }
  0x11   : > { %v6878_v11 = vld [vmem:[%s9615_s3 + $0xa0] sm:$0xff]   ;;  %v6880_v14 = vld [vmem:[%s9615_s3 + $0xa8] sm:$0xff]   ;;  %v6881_v16 = vld [vmem:[%s9615_s3 + $0x30] sm:$0xff]   ;;  %s6787_s23 = smul.u32 144, %s9981_s19  ;;  %vm1119_vm1 = vsmask.f32 1280 }
  0x12   : > { %v7239_v15 = vadd.s32 8, %v7224_v12  ;;  %v6882_v17 = vld [vmem:[%s9615_s3 + $0xb0] sm:$0xff]   ;;  %v7250_v18 = vadd.s32 16, %v7224_v12  ;;  %v7254_v19 = vadd.s32 24, %v7224_v12  ;;  %v7257_v20 = vadd.s32 32, %v7224_v12  ;;  %v6883_v23 = vld [vmem:[%s9615_s3 + $0x38] sm:$0xff]   ;;  %vm7350_vm2 = vmand %vm1118_vm0, %vm1119_vm1 }
  0x13   : > { %4589 = vmatpush1.bf16.msra.mxu1 %v6871_v3  ;;  %4766 = vmatpush1.bf16.msra.mxu0 %v6872_v4  ;;  %v7260_v21 = vadd.s32 40, %v7224_v12  ;;  %v7263_v22 = vadd.s32 48, %v7224_v12  ;;  %v7269_v24 = vadd.s32 56, %v7224_v12  ;;  %v6884_v25 = vld [vmem:[%s9615_s3 + $0xb8] sm:$0xff]   ;;  %v7276_v26 = vadd.s32 64, %v7224_v12  ;;  %v6885_v27 = vld [vmem:[%s9615_s3 + $0x40] sm:$0xff]   ;;  %s7296_s11 = scalar_lea.vmem %s9612_s0, %s6787_s23  ;;  %s9382_s16 = scalar_lea.vmem %s9616_s4, %s6787_s23 }
  0x14   : > { %4590 = vmatprep.subr.bf16.mxu1 %v9637_v1  ;;  %4767 = vmatprep.subr.bf16.mxu0 %v9637_v1  ;;  %v7283_v28 = vadd.s32 72, %v7224_v12  ;;  %v7286_v29 = vadd.s32 80, %v7224_v12  ;;  %v6886_v30 = vld [vmem:[%s9615_s3 + $0xc0] sm:$0xff]   ;;  %v7299_v31 = vadd.s32 88, %v7224_v12  ;;  %v7302_v32 = vadd.s32 96, %v7224_v12  ;;  %v6887_v37 = vld [vmem:[%s9615_s3 + $0x48] sm:$0xff]  }
  0x15   : > { %v7305_v33 = vadd.s32 104, %v7224_v12  ;;  %v7308_v34 = vadd.s32 112, %v7224_v12  ;;  %v7312_v35 = vadd.s32 120, %v7224_v12  ;;  %v7315_v36 = vadd.s32 128, %v7224_v12  ;;  %v6328_v42 = vld [vmem:[%s7296_s11] sm:$0xff]   ;;  %v6888_v44 = vld [vmem:[%s9615_s3 + $0xc8] sm:$0xff]  }
  0x16   : > { %v7322_v38 = vmul.u32.u64.low 3817748708, %v7224_v12  ;;  %v7323_v39 = vmul.u32.u64.high 3817748708, %v7224_v12, %v7322_v38  ;;  %v7326_v40 = vmul.u32.u64.low 3817748708, %v7239_v15  ;;  %v7327_v41 = vmul.u32.u64.high 3817748708, %v7239_v15, %v7326_v40  ;;  %v7330_v43 = vld [vmem:[#allocation2] sm:$0xff]   ;;  %v6889_v58 = vld [vmem:[%s9615_s3 + $0x50] sm:$0xff]  }
  0x17   : > { %4591 = vmatpush1.bf16.msra.mxu1 %v6873_v5  ;;  %4768 = vmatpush1.bf16.msra.mxu0 %v6874_v6  ;;  %v6329_v45 = vunpack.c.l.bf16 %v6328_v42  ;;  %v6330_v46 = vunpack.c.h.bf16 %v6328_v42  ;;  %v7338_v47 = vld [vmem:[%s9613_s1] ss:$0 sm:$0xff]  ;;  %v7341_v48 = vadd.s32 136, %v7224_v12  ;;  %v1121_v51 = vld [vmem:[#allocation2 + $0x8] sm:$0x3]  ;;  %v7355_v52 = vadd.s32 144, %v7224_v12 }
  0x18   : > { %4592 = vmatprep.subr.bf16.mxu1 %v9637_v1  ;;  %4769 = vmatprep.subr.bf16.mxu0 %v9637_v1  ;;  %v7346_v49 = vld [vmem:[%s9614_s2] ss:$0 sm:$0xff]  ;;  %v7358_v53 = vadd.s32 152, %v7224_v12  ;;  %v1122_v56 = vsel %vm7350_vm2, 0, %v1121_v51  ;;  %v7366_v57 = vadd.s32 160, %v7224_v12  ;;  %v280_v59 = vshrl.u32 %v7323_v39, 4 }
  0x19   : > { %v965_v54 = vmul.f32 %v6329_v45, %v7338_v47  ;;  %v966_v55 = vmul.f32 %v6330_v46, %v7338_v47  ;;  %v291_v60 = vshrl.u32 %v7327_v41, 4  ;;  %1123 = vst [vmem:[#allocation2 + $0x8] sm:$0x3] %v1122_v56  ;;  %v1973_v61 = vshrl.u32 %v7330_v43, 16  ;;  %v6489_v63 = vld [vmem:[%s7296_s11 + $0x8] sm:$0xff]   ;;  %v6890_v5 = vld [vmem:[%s9615_s3 + $0xd0] sm:$0xff]  }
  0x1a   : > { %v1975_v62 = vshll.u32 %v7330_v43, 16  ;;  %v7380_v3 = vmul.u32.u64.low 3817748708, %v7250_v18  ;;  %v7381_v4 = vmul.u32.u64.high 3817748708, %v7250_v18, %v7380_v3  ;;  %v281_v6 = vmul.u32 18, %v280_v59  ;;  %v7408_v40 = vld [vmem:[%s7296_s11 + $0x10] sm:$0xff]   ;;  %s5936_s23 = sshll.u32 %s9981_s19, 1 }
  0x1b   : > { %4593 = vmatpush1.bf16.msra.mxu1 %v6875_v7  ;;  %4770 = vmatpush1.bf16.msra.mxu0 %v6876_v8  ;;  %v1008_v0 = vadd.f32 %v7346_v49, %v965_v54  ;;  %v1009_v2 = vadd.f32 %v7346_v49, %v966_v55  ;;  %v292_v7 = vmul.u32 18, %v291_v60  ;;  %v6333_v9 = vunpack.c.l.bf16 %v6489_v63  ;;  %s235_s21 = scalar_lea.vmem %s9617_s5, %s5936_s23 }
  0x1c   : > { %4594 = vmatprep.subr.bf16.mxu1 %v9637_v1  ;;  %4771 = vmatprep.subr.bf16.mxu0 %v9637_v1  ;;  %v7386_v8 = vrot.slane %v1975_v62, 1  ;;  %v7404_v38 = vmul.u32.u64.low 3817748708, %v7257_v20  ;;  %v7405_v39 = vmul.u32.u64.high 3817748708, %v7257_v20, %v7404_v38  ;;  %vm1125_vm8 = vsmask.f32 7942 }
  0x1d   : > { %vm1240_vm11 = vsmask.f32 5392  ;;  %v6337_v56 = vunpack.c.l.bf16 %v7408_v40  ;;  %v6896_v38 = vld [vmem:[%s9615_s3 + $0xe8] sm:$0xff]  }
  0x1f   : > { %4595 = vmatpush1.bf16.msra.mxu1 %v6877_v10  ;;  %4772 = vmatpush1.bf16.msra.mxu0 %v6878_v11  ;;  %v1044_v10 = vmax.f32 %v1008_v0, 0.0  ;;  %v1045_v11 = vmax.f32 %v1009_v2, 0.0  ;;  %v9689_v0 = vmov 0  ;;  %v9692_v2 = vmov 0 }
  0x20   : > { %4596 = vmatprep.subr.bf16.mxu1 %v9637_v1  ;;  %4773 = vmatprep.subr.bf16.mxu0 %v9637_v1 }
  0x23   : > { %4597 = vmatpush1.bf16.msra.mxu1 %v6879_v13  ;;  %4774 = vmatpush1.bf16.msra.mxu0 %v6880_v14  ;;  %v7390_v13 = vmul.u32.u64.low 3817748708, %v7254_v19  ;;  %v7391_v14 = vmul.u32.u64.high 3817748708, %v7254_v19, %v7390_v13 }
  0x24   : > { %4598 = vmatprep.subr.bf16.mxu1 %v9637_v1  ;;  %4775 = vmatprep.subr.bf16.mxu0 %v9637_v1 }
  0x25   : > { %v313_v46 = vshrl.u32 %v7391_v14, 4 }
  0x27   : > { %4599 = vmatpush1.bf16.msra.mxu1 %v6881_v16  ;;  %4776 = vmatpush1.bf16.msra.mxu0 %v6882_v17  ;;  %v282_v16 = vsub.s32 %v7224_v12, %v281_v6  ;;  %v293_v17 = vsub.s32 %v7239_v15, %v292_v7  ;;  %v6892_v15 = vld [vmem:[%s9615_s3 + $0xd8] sm:$0xff]   ;;  %v314_v62 = vmul.u32 18, %v313_v46  ;;  %v6897_v46 = vld [vmem:[%s9615_s3 + $0x70] sm:$0xff]  }
  0x28   : > { %4600 = vmatprep.subr.bf16.mxu1 %v9637_v1  ;;  %4777 = vmatprep.subr.bf16.mxu0 %v9637_v1 }
  0x29   : > { %vm670_vm3 = vcmp.ne.s32.totalorder %v282_v16, 0  ;;  %vm671_vm4 = vcmp.ne.s32.totalorder %v293_v17, 0  ;;  %vm706_vm5 = vcmp.lt.s32.totalorder %v282_v16, 0  ;;  %vm707_vm6 = vcmp.lt.s32.totalorder %v293_v17, 0 }
  0x2a   : > { %vm7414_vm9 = vmand %vm706_vm5, %vm670_vm3  ;;  %v778_v42 = vadd.s32 18, %v282_v16  ;;  %v315_v7 = vsub.s32 %v7254_v19, %v314_v62  ;;  %v6895_v19 = vld [vmem:[%s9615_s3 + $0x68] sm:$0xff]   ;;  %v7478_v62 = vld [vmem:[%s7296_s11 + $0x18] sm:$0xff]  }
  0x2b   : > { %4601 = vmatpush1.bf16.msra.mxu1 %v6883_v23  ;;  %4778 = vmatpush1.bf16.msra.mxu0 %v6884_v25  ;;  %v6334_v23 = vunpack.c.h.bf16 %v6489_v63  ;;  %v7396_v25 = vld [vmem:[#allocation2] sm:$0xfe]   ;;  %vm743_vm10 = vmand %vm707_vm6, %vm671_vm4 }
  0x2c   : > { %4602 = vmatprep.subr.bf16.mxu1 %v9637_v1  ;;  %4779 = vmatprep.subr.bf16.mxu0 %v9637_v1  ;;  %v2287_v55 = vrot.slane %v7396_v25, 1  ;;  %v6893_v63 = vld [vmem:[%s9615_s3 + $0x60] sm:$0xff]   ;;  %vm673_vm0 = vcmp.ne.s32.totalorder %v315_v7, 0  ;;  %vm709_vm3 = vcmp.lt.s32.totalorder %v315_v7, 0  ;;  %vm7485_vm6 = vmand %vm1124_vm7, %vm1125_vm8  ;;  %vm9621_vm8 = vcmask 1046528  }
  0x2d   : > { %v968_v51 = vmul.f32 %v6334_v23, %v7338_v47  ;;  %vm7459_vm5 = vmand %vm709_vm3, %vm673_vm0 }
  0x2e   : > { %vm7505_vm7 = vmor %vm1119_vm1, %vm1240_vm11 }
  0x2f   : > { %4603 = vmatpush1.bf16.msra.mxu1 %v6885_v27  ;;  %4780 = vmatpush1.bf16.msra.mxu0 %v6886_v30  ;;  %v6891_v27 = vld [vmem:[%s9615_s3 + $0x58] sm:$0xff]   ;;  %v302_v30 = vshrl.u32 %v7381_v4, 4  ;;  %v1011_v3 = vadd.f32 %v7346_v49, %v968_v51 }
  0x30   : > { %4604 = vmatprep.subr.bf16.mxu1 %v9637_v1  ;;  %4781 = vmatprep.subr.bf16.mxu0 %v9637_v1 }
  0x31   : > { %v303_v45 = vmul.u32 18, %v302_v30 }
  0x33   : > { %4605 = vmatpush1.bf16.msra.mxu1 %v6887_v37  ;;  %4782 = vmatpush1.bf16.msra.mxu0 %v6888_v44  ;;  %v967_v37 = vmul.f32 %v6333_v9, %v7338_v47  ;;  %v779_v44 = vadd.s32 18, %v293_v17  ;;  %v304_v60 = vsub.s32 %v7250_v18, %v303_v45  ;;  %v6894_v18 = vld [vmem:[%s9615_s3 + $0xe0] sm:$0xff]   ;;  %v6338_v45 = vunpack.c.h.bf16 %v7408_v40 }
  0x34   : > { %4606 = vmatprep.subr.bf16.mxu1 %v9637_v1  ;;  %4783 = vmatprep.subr.bf16.mxu0 %v9637_v1  ;;  %v9701_v40 = vmov 0 }
  0x35   : > { %v7422_v54 = vadd.f32 %v7346_v49, %v967_v37  ;;  %v815_v59 = vsel %vm743_vm10, %v779_v44, %v293_v17  ;;  %vm672_vm14 = vcmp.ne.s32.totalorder %v304_v60, 0  ;;  %vm708_vm15 = vcmp.lt.s32.totalorder %v304_v60, 0 }
  0x36   : > { %vm7436_vm13 = vcmp.lt.s32.totalorder %v815_v59, 16  ;;  %v780_v14 = vadd.s32 18, %v304_v60  ;;  %vm7452_vm4 = vmand %vm708_vm15, %vm672_vm14  ;;  %v781_v17 = vadd.s32 18, %v315_v7  ;;  %v324_v44 = vshrl.u32 %v7405_v39, 4 }
  0x37   : > { %4607 = vmatpush1.bf16.msra.mxu1 %v6889_v58  ;;  %4784 = vmatpush1.bf16.msra.mxu0 %v6890_v5  ;;  %v814_v58 = vsel %vm7414_vm9, %v778_v42, %v282_v16  ;;  %v9693_v2 = vsel %vm7436_vm13, 4294967295, %v9692_v2  ;;  %v1046_v4 = vmax.f32 %v7422_v54, 0.0  ;;  %v1081_v6 = vsel %vm7436_vm13, %v1045_v11, 0.0 }
  0x38   : > { %4608 = vmatprep.subr.bf16.mxu1 %v9637_v1  ;;  %4785 = vmatprep.subr.bf16.mxu0 %v9637_v1  ;;  %vm7432_vm12 = vcmp.lt.s32.totalorder %v814_v58, 16  ;;  %9694 = vst [vmem:[#allocation5_spill] sm:$0xff] %v9693_v2  ;;  %v6256_v13 = vpack.c.bf16 %v1081_v6, %v1081_v6  ;;  %v816_v41 = vsel %vm7452_vm4, %v780_v14, %v304_v60  ;;  %v6898_v60 = vld [vmem:[%s9615_s3 + $0xf0] sm:$0xff]   ;;  %vm9619_vm14 = vsmask.f32 7424 }
  0x39   : > { %v9690_v0 = vsel %vm7432_vm12, 4294967295, %v9689_v0  ;;  %v1080_v5 = vsel %vm7432_vm12, %v1044_v10, 0.0  ;;  %v1047_v10 = vmax.f32 %v1011_v3, 0.0  ;;  %v817_v42 = vsel %vm7459_vm5, %v781_v17, %v315_v7 }
  0x3a   : > { %9691 = vst [vmem:[#allocation4_spill] sm:$0xff] %v9690_v0  ;;  %v6255_v9 = vpack.c.bf16 %v1080_v5, %v1080_v5  ;;  %v1255_v30 = vshll.u32 %v6256_v13, 16  ;;  %vm7489_vm9 = vcmp.lt.s32.totalorder %v816_v41, 16  ;;  %vm7493_vm10 = vcmp.lt.s32.totalorder %v817_v42, 16 }
  0x3b   : > { %4609 = vmatpush1.bf16.msra.mxu1 %v6891_v27  ;;  %4786 = vmatpush1.bf16.msra.mxu0 %v6892_v15  ;;  %v1252_v27 = vshrl.u32 %v6256_v13, 16  ;;  %v1638_v15 = vld [vmem:[#allocation2 + $0x8] sm:$0xe]  ;;  %v9702_v40 = vsel %vm7489_vm9, 4294967295, %v9701_v40  ;;  %v325_v3 = vmul.u32 18, %v324_v44  ;;  %v1082_v7 = vsel %vm7489_vm9, %v1046_v4, 0.0 }
  0x3c   : > { %4610 = vmatprep.subr.bf16.mxu1 %v9637_v1  ;;  %4787 = vmatprep.subr.bf16.mxu0 %v9637_v1  ;;  %v1243_v11 = vshrl.u32 %v6255_v9, 16  ;;  %v1246_v23 = vshll.u32 %v6255_v9, 16  ;;  %v1257_v59 = vrot.slane %v1255_v30, 7  ;;  %9703 = vst [vmem:[#allocation6_spill] sm:$0xff] %v9702_v40  ;;  %v1083_v9 = vsel %vm7493_vm10, %v1047_v10, 0.0  ;;  %v6899_v4 = vld [vmem:[%s9615_s3 + $0x78] sm:$0xff]  }
  0x3d   : > { %v1254_v58 = vrot.slane %v1252_v27, 6  ;;  %v6257_v14 = vpack.c.bf16 %v1082_v7, %v1082_v7  ;;  %v326_v16 = vsub.s32 %v7257_v20, %v325_v3  ;;  %v6341_v17 = vunpack.c.l.bf16 %v7478_v62  ;;  %v6492_v7 = vld [vmem:[%s7296_s11 + $0x20] sm:$0xff]  }
  0x3e   : > { %v1245_v51 = vrot.slane %v1243_v11, 6  ;;  %v1248_v54 = vrot.slane %v1246_v23, 7  ;;  %v970_v23 = vmul.f32 %v6338_v45, %v7338_v47  ;;  %vm9782_vm13 = vcmask 1046528  }
  0x3f   : > { %4611 = vmatpush1.bf16.msra.mxu1 %v6893_v63  ;;  %4788 = vmatpush1.bf16.msra.mxu0 %v6894_v18  ;;  %v9704_v63 = vmov 0  ;;  %v969_v18 = vmul.f32 %v6337_v56, %v7338_v47  ;;  %v1258_v6 = vor.u32 %v1257_v59, %v1254_v58  ;;  %v6258_v56 = vpack.c.bf16 %v1083_v9, %v1083_v9 }
  0x40   : > { %4612 = vmatprep.subr.bf16.mxu1 %v9637_v1  ;;  %4789 = vmatprep.subr.bf16.mxu0 %v9637_v1  ;;  %v9705_v63 = vsel %vm7493_vm10, 4294967295, %v9704_v63  ;;  %v1249_v5 = vor.u32 %v1248_v54, %v1245_v51  ;;  %v1262_v27 = vshrl.u32 %v6257_v14, 16  ;;  %v1265_v30 = vshll.u32 %v6257_v14, 16 }
  0x41   : > { %9706 = vst [vmem:[#allocation7_spill] sm:$0xff] %v9705_v63  ;;  %v1260_v11 = vrot.slane %v1258_v6, 4  ;;  %v1272_v37 = vshrl.u32 %v6258_v56, 16  ;;  %v1275_v20 = vshll.u32 %v6258_v56, 16  ;;  %vm674_vm1 = vcmp.ne.s32.totalorder %v326_v16, 0 }
  0x42   : > { %v1250_v10 = vrot.slane %v1249_v5, 4  ;;  %v7524_v42 = vmul.u32.u64.low 3817748708, %v7260_v21  ;;  %v7525_v44 = vmul.u32.u64.high 3817748708, %v7260_v21, %v7524_v42  ;;  %v1267_v45 = vrot.slane %v1265_v30, 7  ;;  %v7551_v30 = vld [vmem:[%s7296_s11 + $0x28] sm:$0xff]  }
  0x43   : > { %4613 = vmatpush1.bf16.msra.mxu1 %v6895_v19  ;;  %4790 = vmatpush1.bf16.msra.mxu0 %v6896_v38  ;;  %v1639_v19 = vsel %vm7485_vm6, %v1249_v5, %v1638_v15  ;;  %v6900_v38 = vld [vmem:[%s9615_s3 + $0xf8] sm:$0xff]   ;;  %v1264_v15 = vrot.slane %v1262_v27, 6  ;;  %v1277_v51 = vrot.slane %v1275_v20, 7  ;;  %vm710_vm11 = vcmp.lt.s32.totalorder %v326_v16, 0 }
  0x44   : > { %4614 = vmatprep.subr.bf16.mxu1 %v9637_v1  ;;  %4791 = vmatprep.subr.bf16.mxu0 %v9637_v1  ;;  %1640 = vst [vmem:[#allocation2 + $0x8] sm:$0xe] %v1639_v19  ;;  %v1259_v41 = vsel %vm7505_vm7, %v1250_v10, %v1258_v6  ;;  %v782_v54 = vadd.s32 18, %v326_v16  ;;  %v1012_v58 = vadd.f32 %v7346_v49, %v969_v18  ;;  %vm746_vm15 = vmand %vm710_vm11, %vm674_vm1  ;;  %v335_v9 = vshrl.u32 %v7525_v44, 4 }
  0x45   : > { %1641 = vst [vmem:[#allocation2 + $0xc] sm:$0xf] %v1259_v41  ;;  %v7531_v59 = vadd.f32 %v7346_v49, %v970_v23  ;;  %v7537_v5 = vmul.u32.u64.low 3817748708, %v7263_v22  ;;  %v7538_v6 = vmul.u32.u64.high 3817748708, %v7263_v22, %v7537_v5  ;;  %v9709_v23 = vmov 0 }
  0x46   : > { %v818_v14 = vsel %vm746_vm15, %v782_v54, %v326_v16  ;;  %v1048_v18 = vmax.f32 %v1012_v58, 0.0  ;;  %v1978_v16 = vor.u32 %v7386_v8, %v1973_v61  ;;  %v971_v8 = vmul.f32 %v6341_v17, %v7338_v47 }
  0x47   : > { %4615 = vmatpush1.bf16.msra.mxu1 %v6897_v46  ;;  %4792 = vmatpush1.bf16.msra.mxu0 %v6898_v60  ;;  %v1274_v46 = vrot.slane %v1272_v37, 6  ;;  %v1268_v60 = vor.u32 %v1267_v45, %v1264_v15  ;;  %v1049_v56 = vmax.f32 %v7531_v59, 0.0  ;;  %vm7545_vm0 = vcmp.lt.s32.totalorder %v818_v14, 16 }
  0x48   : > { %4616 = vmatprep.subr.bf16.mxu1 %v9637_v1  ;;  %4793 = vmatprep.subr.bf16.mxu0 %v9637_v1  ;;  %v9710_v23 = vsel %vm7545_vm0, 4294967295, %v9709_v23  ;;  %v6346_v37 = vunpack.c.h.bf16 %v6492_v7  ;;  %v1084_v41 = vsel %vm7545_vm0, %v1048_v18, 0.0  ;;  %v346_v42 = vshrl.u32 %v7538_v6, 4  ;;  %v6905_v6 = vld [vmem:[#allocation2] sm:$0xff]  }
  0x49   : > { %v7533_v3 = vor.u32 %v1277_v51, %v1274_v46  ;;  %v1269_v10 = vsel %vm7505_vm7, %v1260_v11, %v1268_v60  ;;  %v1270_v19 = vrot.slane %v1268_v60, 4  ;;  %9711 = vst [vmem:[#allocation8_spill] sm:$0xff] %v9710_v23  ;;  %v6345_v11 = vunpack.c.l.bf16 %v6492_v7 }
  0x4a   : > { %1642 = vst [vmem:[#allocation2 + $0x10] sm:$0xf] %v1269_v10  ;;  %v6259_v61 = vpack.c.bf16 %v1084_v41, %v1084_v41  ;;  %v347_v54 = vmul.u32 18, %v346_v42  ;;  %v974_v58 = vmul.f32 %v6346_v37, %v7338_v47  ;;  %v6349_v59 = vunpack.c.l.bf16 %v7551_v30  ;;  %v7589_v37 = vld [vmem:[%s7296_s11 + $0x30] sm:$0xff]  }
  0x4b   : > { %4617 = vmatpush1.bf16.msra.mxu1 %v6899_v4  ;;  %4794 = vmatpush1.bf16.msra.mxu0 %v6900_v38  ;;  %v1280_v27 = vrot.slane %v7533_v3, 4  ;;  %v6342_v4 = vunpack.c.h.bf16 %v7478_v62  ;;  %v1279_v20 = vsel %vm7505_vm7, %v1270_v19, %v7533_v3  ;;  %v336_v38 = vmul.u32 18, %v335_v9 }
  0x4c   : > { %6601 = vmatprep.subr.bf16.mxu1 %v9637_v1  ;;  %4940 = vmatprep.subr.bf16.mxu0 %v9637_v1  ;;  %v6902_v43 = vld [vmem:[#allocation2 + $0x8] sm:$0xff]   ;;  %1643 = vst [vmem:[#allocation2 + $0x14] sm:$0xf] %v1279_v20  ;;  %v973_v15 = vmul.f32 %v6345_v11, %v7338_v47  ;;  %v1282_v5 = vshrl.u32 %v6259_v61, 16  ;;  %v1285_v62 = vshll.u32 %v6259_v61, 16  ;;  %v7586_v11 = vadd.f32 %v7346_v49, %v971_v8 }
  0x4d   : > { %v972_v44 = vmul.f32 %v6342_v4, %v7338_v47  ;;  %v6903_v45 = vld [vmem:[#allocation2 + $0x8] sm:$0xfe]   ;;  %v337_v51 = vsub.s32 %v7260_v21, %v336_v38  ;;  %v1980_v60 = vshll.u32 %v6902_v43, 16  ;;  %v1984_v3 = vshrl.u32 %v6902_v43, 16  ;;  %v6943_v21 = vld [vmem:[%s9615_s3 + $0x180] sm:$0xff]  }
  0x4e   : > { %v7570_v46 = vld [vmem:[#allocation2 + $0x8] sm:$0xff]   ;;  %v2490_v17 = vrot.slane %v6903_v45, 1  ;;  %v1284_v18 = vrot.slane %v1282_v5, 6  ;;  %v1287_v10 = vrot.slane %v1285_v62, 7  ;;  %v348_v4 = vsub.s32 %v7263_v22, %v347_v54 }
  0x4f   : > { %v2288_v7 = vrot.slane %v7570_v46, 1  ;;  %vm675_vm3 = vcmp.ne.s32.totalorder %v337_v51, 0  ;;  %vm711_vm4 = vcmp.lt.s32.totalorder %v337_v51, 0  ;;  %v1982_v9 = vrot.slane %v1980_v60, 1  ;;  %v6928_v46 = vld [vmem:[%s9615_s3 + $0x120] sm:$0xff]  }
  0x50   : > { %vm747_vm5 = vmand %vm711_vm4, %vm675_vm3  ;;  %v783_v14 = vadd.s32 18, %v337_v51  ;;  %v7592_v41 = vor.u32 %v1287_v10, %v1284_v18  ;;  %v7595_v42 = vadd.f32 %v7346_v49, %v972_v44  ;;  %v7604_v22 = vadd.f32 %v7346_v49, %v973_v15  ;;  %v6913_v10 = vld [vmem:[%s9615_s3 + $0x108] sm:$0xff]  }
  0x51   : > { %v2289_v19 = vsel %vm9621_vm8, %v2287_v55, %v2288_v7  ;;  %v1983_v20 = vsel %vm9619_vm14, %v1978_v16, %v1982_v9  ;;  %v1986_v25 = vor.u32 %v1984_v3, %v1982_v9  ;;  %v9712_v55 = vmov 0  ;;  %v6911_v9 = vld [vmem:[#allocation2 + $0x8] sm:$0xff]  }
  0x52   : > { %v819_v38 = vsel %vm747_vm5, %v783_v14, %v337_v51  ;;  %4618 = vmatprep.mubr.bf16.mxu1 %v1983_v20  ;;  %v7607_v61 = vadd.f32 %v7346_v49, %v974_v58  ;;  %v1289_v44 = vsel %vm7505_vm7, %v1280_v27, %v7592_v41  ;;  %v6350_v51 = vunpack.c.h.bf16 %v7551_v30  ;;  %v6908_v27 = vld [vmem:[%s9615_s3 + $0x100] sm:$0xff]  }
  0x53   : > { %v7597_v43 = vld [vmem:[#allocation2 + $0x10] sm:$0xff]   ;;  %vm7599_vm1 = vcmp.lt.s32.totalorder %v819_v38, 16  ;;  %4619 = vmatmul.mubr.bf16.vlgmr.msra.gmra.mrb[0].mxu1 %v6905_v6  ;;  %v975_v15 = vmul.f32 %v6349_v59, %v7338_v47  ;;  %1644 = vst [vmem:[#allocation2 + $0x18] sm:$0xf] %v1289_v44  ;;  %v7622_v60 = vmul.u32.u64.low 3817748708, %v7269_v24  ;;  %v7623_v3 = vmul.u32.u64.high 3817748708, %v7269_v24, %v7622_v60 }
  0x54   : > { %v9713_v55 = vsel %vm7599_vm1, 4294967295, %v9712_v55  ;;  %v7609_v16 = vld [vmem:[#allocation2 + $0x10] sm:$0xff]   ;;  %v1085_v8 = vsel %vm7599_vm1, %v1049_v56, 0.0  ;;  %v9618_v54 = vrot.slane %v7597_v43, 1  ;;  %6617 = vmatpush1.bf16.msra.mxu1 %v6943_v21  ;;  %v6949_v56 = vld [vmem:[%s9615_s3 + $0x188] sm:$0xff]   ;;  %v1290_v59 = vrot.slane %v7592_v41, 4 }
  0x55   : > { %9714 = vst [vmem:[#allocation9_spill] sm:$0xff] %v9713_v55  ;;  %v7616_v45 = vld [vmem:[#allocation2 + $0x10] sm:$0xff]   ;;  %v6260_v58 = vpack.c.bf16 %v1085_v8, %v1085_v8  ;;  %v1988_v30 = vshll.u32 %v7609_v16, 16  ;;  %vm676_vm11 = vcmp.ne.s32.totalorder %v348_v4, 0  ;;  %v6353_v5 = vunpack.c.l.bf16 %v7589_v37  ;;  %6602 = vmatprep.subr.bf16.mxu1 %v9637_v1 }
  0x56   : > { %v2492_v62 = vsel %vm9621_vm8, %v2490_v17, %v9618_v54  ;;  %vm712_vm15 = vcmp.lt.s32.totalorder %v348_v4, 0  ;;  %v2290_v18 = vrot.slane %v7616_v45, 1  ;;  %v784_v38 = vadd.s32 18, %v348_v4 }
  0x57   : > { %v1292_v6 = vshrl.u32 %v6260_v58, 16  ;;  %v1295_v21 = vshll.u32 %v6260_v58, 16  ;;  %4795 = vmatprep.mubr.bf16.mxu0 %v2492_v62  ;;  %v7638_v14 = vrot.slane %v1988_v30, 1  ;;  %vm7644_vm3 = vmand %vm712_vm15, %vm676_vm11  ;;  %v1050_v17 = vmax.f32 %v7586_v11, 0.0 }
  0x58   : > { %4796 = vmatmul.mubr.bf16.vlgmr.msra.gmra.mrb[0].mxu0 %v2289_v19  ;;  %v1992_v44 = vshrl.u32 %v7609_v16, 16  ;;  %v357_v58 = vshrl.u32 %v7623_v3, 4  ;;  %6618 = vmatpush1.bf16.msra.mxu1 %v6949_v56  ;;  %v820_v30 = vsel %vm7644_vm3, %v784_v38, %v348_v4  ;;  %v1051_v62 = vmax.f32 %v7595_v42, 0.0  ;;  %v6918_v42 = vld [vmem:[%s9615_s3 + $0x110] sm:$0xff]  }
  0x59   : > { %v1294_v41 = vrot.slane %v1292_v6, 6  ;;  %v1297_v8 = vrot.slane %v1295_v21, 7  ;;  %4941 = vmatpush1.bf16.msra.mxu0 %v6908_v27  ;;  %v1991_v60 = vsel %vm9619_vm14, %v1986_v25, %v7638_v14  ;;  %v1052_v54 = vmax.f32 %v7604_v22, 0.0  ;;  %6603 = vmatprep.subr.bf16.mxu1 %v9637_v1 }
  0x5a   : > { %4626 = vmatprep.mubr.bf16.mxu1 %v1991_v60  ;;  %4942 = vmatprep.subr.bf16.mxu0 %v9637_v1  ;;  %v358_v11 = vmul.u32 18, %v357_v58  ;;  %vm7659_vm4 = vcmp.lt.s32.totalorder %v820_v30, 16  ;;  %v9717_v3 = vmov 0  ;;  %v1053_v25 = vmax.f32 %v7607_v61, 0.0 }
  0x5b   : > { %v1298_v19 = vor.u32 %v1297_v8, %v1294_v41  ;;  %v9718_v3 = vsel %vm7659_vm4, 4294967295, %v9717_v3  ;;  %4627 = vmatmul.mubr.bf16.gmra.mrb[4].mxu1 %v6911_v9  ;;  %v1086_v4 = vsel %vm7659_vm4, %v1050_v17, 0.0  ;;  %v976_v56 = vmul.f32 %v6350_v51, %v7338_v47  ;;  %v6955_v17 = vld [vmem:[%s9615_s3 + $0x190] sm:$0xff]  }
  0x5c   : > { %9719 = vst [vmem:[#allocation10_spill] sm:$0xff] %v9718_v3  ;;  %v7671_v27 = vadd.f32 %v7346_v49, %v975_v15  ;;  %v6354_v6 = vunpack.c.h.bf16 %v7589_v37  ;;  %v359_v20 = vsub.s32 %v7269_v24, %v358_v11  ;;  %v6261_v9 = vpack.c.bf16 %v1086_v4, %v1086_v4  ;;  %6619 = vmatpush1.bf16.msra.mxu1 %v6955_v17  ;;  %v6923_v4 = vld [vmem:[%s9615_s3 + $0x118] sm:$0xff]  }
  0x5d   : > { %v1299_v21 = vsel %vm7505_vm7, %v1290_v59, %v1298_v19  ;;  %v1300_v38 = vrot.slane %v1298_v19, 4  ;;  %4943 = vmatpush1.bf16.msra.mxu0 %v6913_v10  ;;  %v7681_v51 = vmul.u32.u64.low 3817748708, %v7276_v26  ;;  %v7682_v41 = vmul.u32.u64.high 3817748708, %v7276_v26, %v7681_v51  ;;  %6604 = vmatprep.subr.bf16.mxu1 %v9637_v1 }
  0x5e   : > { %1645 = vst [vmem:[#allocation2 + $0x1c] sm:$0xf] %v1299_v21  ;;  %v7685_v15 = vmul.u32.u64.low 3817748708, %v7283_v28  ;;  %v7686_v8 = vmul.u32.u64.high 3817748708, %v7283_v28, %v7685_v15  ;;  %vm677_vm5 = vcmp.ne.s32.totalorder %v359_v20, 0  ;;  %vm713_vm11 = vcmp.lt.s32.totalorder %v359_v20, 0  ;;  %4944 = vmatprep.subr.bf16.mxu0 %v9637_v1 }
  0x5f   : > { %v785_v59 = vadd.s32 18, %v359_v20  ;;  %v1302_v24 = vshrl.u32 %v6261_v9, 16  ;;  %vm749_vm15 = vmand %vm713_vm11, %vm677_vm5  ;;  %v1305_v58 = vshll.u32 %v6261_v9, 16  ;;  %v7694_v30 = vadd.f32 %v7346_v49, %v976_v56 }
  0x60   : > { %v7690_v60 = vmul.u32.u64.low 3817748708, %v7286_v29  ;;  %v7691_v10 = vmul.u32.u64.high 3817748708, %v7286_v29, %v7690_v60  ;;  %v7701_v21 = vmul.u32.u64.low 3817748708, %v7299_v31  ;;  %v7702_v17 = vmul.u32.u64.high 3817748708, %v7299_v31, %v7701_v21 }
  0x61   : > { %v821_v19 = vsel %vm749_vm15, %v785_v59, %v359_v20  ;;  %v1304_v11 = vrot.slane %v1302_v24, 6  ;;  %v9720_v9 = vmov 0  ;;  %v1307_v51 = vrot.slane %v1305_v58, 7  ;;  %4945 = vmatpush1.bf16.msra.mxu0 %v6918_v42 }
  0x62   : > { %vm7704_vm3 = vcmp.lt.s32.totalorder %v821_v19, 16  ;;  %v368_v56 = vshrl.u32 %v7682_v41, 4  ;;  %v379_v15 = vshrl.u32 %v7686_v8, 4  ;;  %4946 = vmatprep.subr.bf16.mxu0 %v9637_v1  ;;  %v1054_v59 = vmax.f32 %v7671_v27, 0.0 }
  0x63   : > { %v9721_v9 = vsel %vm7704_vm3, 4294967295, %v9720_v9  ;;  %v1087_v20 = vsel %vm7704_vm3, %v1051_v62, 0.0  ;;  %v977_v60 = vmul.f32 %v6353_v5, %v7338_v47  ;;  %v1308_v58 = vor.u32 %v1307_v51, %v1304_v11 }
  0x64   : > { %9722 = vst [vmem:[#allocation11_spill] sm:$0xff] %v9721_v9  ;;  %v6262_v19 = vpack.c.bf16 %v1087_v20, %v1087_v20  ;;  %v369_v42 = vmul.u32 18, %v368_v56  ;;  %v380_v21 = vmul.u32 18, %v379_v15  ;;  %v2291_v62 = vsel %vm9621_vm8, %v2288_v7, %v2290_v18 }
  0x65   : > { %v7718_v41 = vld [vmem:[#allocation2 + $0x18] sm:$0xff]   ;;  %v1994_v8 = vor.u32 %v1992_v44, %v7638_v14  ;;  %v390_v37 = vshrl.u32 %v7691_v10, 4  ;;  %v978_v5 = vmul.f32 %v6354_v6, %v7338_v47  ;;  %v1309_v51 = vsel %vm7505_vm7, %v1300_v38, %v1308_v58  ;;  %4947 = vmatpush1.bf16.msra.mxu0 %v6923_v4 }
  0x66   : > { %v7730_v11 = vld [vmem:[#allocation2 + $0x18] sm:$0xff]   ;;  %v1312_v56 = vshrl.u32 %v6262_v19, 16  ;;  %v1315_v15 = vshll.u32 %v6262_v19, 16  ;;  %v7738_v7 = vadd.f32 %v7346_v49, %v977_v60  ;;  %v2493_v16 = vrot.slane %v7718_v41, 1  ;;  %1646 = vst [vmem:[#allocation2 + $0x20] sm:$0xf] %v1309_v51  ;;  %4948 = vmatprep.subr.bf16.mxu0 %v9637_v1 }
  0x67   : > { %v370_v47 = vsub.s32 %v7276_v26, %v369_v42  ;;  %v381_v14 = vsub.s32 %v7283_v28, %v380_v21  ;;  %v391_v44 = vmul.u32 18, %v390_v37  ;;  %v7745_v6 = vld [vmem:[%s7296_s11 + $0x38] sm:$0xff]   ;;  %v1996_v38 = vshll.u32 %v7730_v11, 16  ;;  %v6916_v51 = vld [vmem:[#allocation2 + $0x10] sm:$0xff]  }
  0x68   : > { %v1310_v10 = vrot.slane %v1308_v58, 4  ;;  %v1314_v4 = vrot.slane %v1312_v56, 6  ;;  %v1317_v20 = vrot.slane %v1315_v15, 7  ;;  %v7748_v19 = vld [vmem:[#allocation2 + $0x18] sm:$0xff]   ;;  %v9723_v26 = vrot.slane %v7597_v43, 1  ;;  %v6933_v58 = vld [vmem:[%s9615_s3 + $0x128] sm:$0xff]  }
  0x69   : > { %v6961_v60 = vld [vmem:[%s9615_s3 + $0x198] sm:$0xff]   ;;  %v2000_v42 = vshrl.u32 %v7730_v11, 16  ;;  %vm678_vm5 = vcmp.ne.s32.totalorder %v370_v47, 0  ;;  %vm679_vm11 = vcmp.ne.s32.totalorder %v381_v14, 0  ;;  %v1998_v21 = vrot.slane %v1996_v38, 1  ;;  %4949 = vmatpush1.bf16.msra.mxu0 %v6928_v46 }
  0x6a   : > { %v2494_v28 = vsel %vm9621_vm8, %v9723_v26, %v2493_v16  ;;  %v7762_v37 = vor.u32 %v1317_v20, %v1314_v4  ;;  %vm714_vm15 = vcmp.lt.s32.totalorder %v370_v47, 0  ;;  %vm715_vm14 = vcmp.lt.s32.totalorder %v381_v14, 0  ;;  %4950 = vmatprep.subr.bf16.mxu0 %v9637_v1  ;;  %6620 = vmatpush1.bf16.msra.mxu1 %v6961_v60  ;;  %v7852_v11 = vld [vmem:[%s9613_s1] ss:$0 sm:$0xff] }
  0x6b   : > { %4803 = vmatprep.mubr.bf16.mxu0 %v2494_v28  ;;  %vm7764_vm3 = vmand %vm714_vm15, %vm678_vm5  ;;  %v786_v56 = vadd.s32 18, %v370_v47  ;;  %v787_v15 = vadd.s32 18, %v381_v14  ;;  %v392_v26 = vsub.s32 %v7286_v29, %v391_v44  ;;  %v6357_v28 = vunpack.c.l.bf16 %v7745_v6  ;;  %v6940_v29 = vld [vmem:[%s9615_s3 + $0x130] sm:$0xff]   ;;  %6605 = vmatprep.subr.bf16.mxu1 %v9637_v1 }
  0x6c   : > { %4804 = vmatmul.mubr.bf16.gmra.mrb[4].mxu0 %v2291_v62  ;;  %vm9726_vm8 = vsmask.f32 7424  ;;  %v1319_v4 = vsel %vm7505_vm7, %v1310_v10, %v7762_v37  ;;  %v2292_v62 = vrot.slane %v7748_v19, 1  ;;  %vm751_vm5 = vmand %vm715_vm14, %vm679_vm11  ;;  %v1320_v46 = vrot.slane %v7762_v37, 4  ;;  %v7894_v37 = vld [vmem:[%s9614_s2] ss:$0 sm:$0xff] }
  0x6d   : > { %v1999_v38 = vsel %vm9726_vm8, %v1994_v8, %v1998_v21  ;;  %1647 = vst [vmem:[#allocation2 + $0x24] sm:$0xf] %v1319_v4  ;;  %v822_v8 = vsel %vm7764_vm3, %v786_v56, %v370_v47  ;;  %v823_v44 = vsel %vm751_vm5, %v787_v15, %v381_v14  ;;  %v401_v20 = vshrl.u32 %v7702_v17, 4  ;;  %4951 = vmatpush1.bf16.msra.mxu0 %v6933_v58  ;;  %v6948_v56 = vld [vmem:[%s9615_s3 + $0x138] sm:$0xff]  }
  0x6e   : > { %4634 = vmatprep.mubr.bf16.mxu1 %v1999_v38  ;;  %vm680_vm8 = vcmp.ne.s32.totalorder %v392_v26, 0  ;;  %vm7785_vm14 = vcmp.lt.s32.totalorder %v822_v8, 16  ;;  %v9727_v10 = vmov 0  ;;  %vm7789_vm11 = vcmp.lt.s32.totalorder %v823_v44, 16  ;;  %4952 = vmatprep.subr.bf16.mxu0 %v9637_v1 }
  0x6f   : > { %4635 = vmatmul.mubr.bf16.gmra.mrb[8].mxu1 %v6916_v51  ;;  %v9728_v10 = vsel %vm7785_vm14, 4294967295, %v9727_v10  ;;  %v9730_v24 = vmov 0  ;;  %v7794_v60 = vadd.f32 %v7346_v49, %v978_v5  ;;  %v6358_v47 = vunpack.c.h.bf16 %v7745_v6 }
  0x70   : > { %9729 = vst [vmem:[#allocation12_spill] sm:$0xff] %v9728_v10  ;;  %v9731_v24 = vsel %vm7789_vm11, 4294967295, %v9730_v24  ;;  %v1088_v17 = vsel %vm7785_vm14, %v1052_v54, 0.0  ;;  %v1089_v14 = vsel %vm7789_vm11, %v1053_v25, 0.0  ;;  %v402_v51 = vmul.u32 18, %v401_v20  ;;  %v7824_v20 = vld [vmem:[%s7296_s11 + $0x40] sm:$0xff]  }
  0x71   : > { %9732 = vst [vmem:[#allocation13_spill] sm:$0xff] %v9731_v24  ;;  %vm716_vm3 = vcmp.lt.s32.totalorder %v392_v26, 0  ;;  %v6263_v43 = vpack.c.bf16 %v1088_v17, %v1088_v17  ;;  %v6264_v49 = vpack.c.bf16 %v1089_v14, %v1089_v14  ;;  %v788_v22 = vadd.s32 18, %v392_v26  ;;  %4953 = vmatpush1.bf16.msra.mxu0 %v6940_v29 }
  0x72   : > { %vm7807_vm15 = vmand %vm716_vm3, %vm680_vm8  ;;  %v1056_v54 = vmax.f32 %v7738_v7, 0.0  ;;  %v403_v61 = vsub.s32 %v7299_v31, %v402_v51  ;;  %v7814_v6 = vmul.u32.u64.low 3817748708, %v7302_v32  ;;  %v7815_v25 = vmul.u32.u64.high 3817748708, %v7302_v32, %v7814_v6  ;;  %4954 = vmatprep.subr.bf16.mxu0 %v9637_v1 }
  0x73   : > { %v1057_v58 = vmax.f32 %v7794_v60, 0.0  ;;  %v1322_v15 = vshrl.u32 %v6263_v43, 16  ;;  %v1325_v38 = vshll.u32 %v6263_v43, 16  ;;  %v1332_v4 = vshrl.u32 %v6264_v49, 16 }
  0x74   : > { %v1335_v8 = vshll.u32 %v6264_v49, 16  ;;  %vm681_vm5 = vcmp.ne.s32.totalorder %v403_v61, 0  ;;  %vm717_vm8 = vcmp.lt.s32.totalorder %v403_v61, 0  ;;  %v789_v44 = vadd.s32 18, %v403_v61  ;;  %v7827_v17 = vld [vmem:[#allocation2 + $0x20] sm:$0xff]  }
  0x75   : > { %v824_v31 = vsel %vm7807_vm15, %v788_v22, %v392_v26  ;;  %vm9735_vm3 = vcmask 1046528   ;;  %v1324_v51 = vrot.slane %v1322_v15, 6  ;;  %v7834_v29 = vld [vmem:[#allocation2 + $0x20] sm:$0xff]   ;;  %v2002_v43 = vor.u32 %v2000_v42, %v1998_v21  ;;  %vm7838_vm15 = vmand %vm717_vm8, %vm681_vm5  ;;  %4955 = vmatpush1.bf16.msra.mxu0 %v6948_v56 }
  0x76   : > { %v2293_v14 = vsel %vm9735_vm3, %v2290_v18, %v2292_v62  ;;  %v1327_v49 = vrot.slane %v1325_v38, 7  ;;  %v1334_v26 = vrot.slane %v1332_v4, 6  ;;  %v1337_v5 = vrot.slane %v1335_v8, 7  ;;  %v6954_v21 = vld [vmem:[%s9615_s3 + $0x140] sm:$0xff]   ;;  %4956 = vmatprep.subr.bf16.mxu0 %v9637_v1  ;;  %vm9740_vm5 = vmmov %vm9735_vm3 }
  0x77   : > { %v2495_v6 = vrot.slane %v7827_v17, 1  ;;  %v825_v45 = vsel %vm7838_vm15, %v789_v44, %v403_v61  ;;  %vm7845_vm11 = vcmp.lt.s32.totalorder %v824_v31, 16  ;;  %v979_v42 = vmul.f32 %v7852_v11, %v6357_v28  ;;  %v7859_v4 = vld [vmem:[#allocation2 + $0x20] sm:$0xff]  }
  0x78   : > { %v2004_v15 = vshll.u32 %v7834_v29, 16  ;;  %v1328_v38 = vor.u32 %v1327_v49, %v1324_v51  ;;  %v1338_v61 = vor.u32 %v1337_v5, %v1334_v26  ;;  %v7862_v8 = vmul.f32 %v7852_v11, %v6358_v47  ;;  %v6967_v31 = vld [vmem:[%s9615_s3 + $0x1a0] sm:$0xff]   ;;  %v6921_v49 = vld [vmem:[#allocation2 + $0x18] sm:$0xff]  }
  0x79   : > { %v2496_v28 = vsel %vm9740_vm5, %v2493_v16, %v2495_v6  ;;  %vm7870_vm8 = vcmp.lt.s32.totalorder %v825_v45, 16  ;;  %v1090_v44 = vsel %vm7845_vm11, %v1054_v59, 0.0  ;;  %v6361_v47 = vunpack.c.l.bf16 %v7824_v20  ;;  %6621 = vmatpush1.bf16.msra.mxu1 %v6967_v31  ;;  %4957 = vmatpush1.bf16.msra.mxu0 %v6954_v21 }
  0x7a   : > { %4811 = vmatprep.mubr.bf16.mxu0 %v2496_v28  ;;  %v2006_v51 = vrot.slane %v2004_v15, 1  ;;  %v1329_v41 = vsel %vm7505_vm7, %v1320_v46, %v1328_v38  ;;  %v1330_v16 = vrot.slane %v1328_v38, 4  ;;  %v9743_v27 = vmax.f32 %v7694_v30, 0.0  ;;  %v6960_v30 = vld [vmem:[%s9615_s3 + $0x148] sm:$0xff]   ;;  %6606 = vmatprep.subr.bf16.mxu1 %v9637_v1 }
  0x7b   : > { %4812 = vmatmul.mubr.bf16.gmra.mrb[8].mxu0 %v2293_v14  ;;  %1648 = vst [vmem:[#allocation2 + $0x28] sm:$0xf] %v1329_v41  ;;  %v2008_v26 = vshrl.u32 %v7834_v29, 16  ;;  %v6265_v5 = vpack.c.bf16 %v1090_v44, %v1090_v44  ;;  %v7897_v46 = vadd.f32 %v7894_v37, %v979_v42  ;;  %vm9744_vm3 = vsmask.f32 7424  ;;  %4958 = vmatprep.subr.bf16.mxu0 %v9637_v1 }
  0x7c   : > { %v1091_v59 = vsel %vm7870_vm8, %v9743_v27, 0.0  ;;  %v2007_v14 = vsel %vm9744_vm3, %v2002_v43, %v2006_v51  ;;  %v1339_v29 = vsel %vm7505_vm7, %v1330_v16, %v1338_v61  ;;  %v2294_v45 = vrot.slane %v7859_v4, 1 }
  0x7d   : > { %v6266_v22 = vpack.c.bf16 %v1091_v59, %v1091_v59  ;;  %v412_v15 = vshrl.u32 %v7815_v25, 4  ;;  %4642 = vmatprep.mubr.bf16.mxu1 %v2007_v14  ;;  %1649 = vst [vmem:[#allocation2 + $0x2c] sm:$0xf] %v1339_v29  ;;  %v1342_v42 = vshrl.u32 %v6265_v5, 16  ;;  %v1345_v38 = vshll.u32 %v6265_v5, 16  ;;  %4959 = vmatpush1.bf16.msra.mxu0 %v6960_v30 }
  0x7e   : > { %4643 = vmatmul.mubr.bf16.gmra.mrb[12].mxu1 %v6921_v49  ;;  %v1340_v43 = vrot.slane %v1338_v61, 4  ;;  %v7910_v41 = vmul.u32.u64.low 3817748708, %v7305_v33  ;;  %v7911_v16 = vmul.u32.u64.high 3817748708, %v7305_v33, %v7910_v41  ;;  %v6966_v61 = vld [vmem:[%s9615_s3 + $0x150] sm:$0xff]   ;;  %4960 = vmatprep.subr.bf16.mxu0 %v9637_v1  ;;  %vm9756_vm1 = vcmask 1046528  }
  0x7f   : > { %v1352_v28 = vshrl.u32 %v6266_v22, 16  ;;  %v1355_v44 = vshll.u32 %v6266_v22, 16  ;;  %v413_v31 = vmul.u32 18, %v412_v15  ;;  %v1344_v27 = vrot.slane %v1342_v42, 6  ;;  %v6497_v41 = vld [vmem:[%s7296_s11 + $0x48] sm:$0xff]  }
  0x80   : > { %v1347_v25 = vrot.slane %v1345_v38, 7  ;;  %v7915_v5 = vmul.u32.u64.low 3817748708, %v7308_v34  ;;  %v7916_v29 = vmul.u32.u64.high 3817748708, %v7308_v34, %v7915_v5  ;;  %vm9785_vm12 = vcmask 1046528  }
  0x81   : > { %v1354_v21 = vrot.slane %v1352_v28, 6  ;;  %v1357_v59 = vrot.slane %v1355_v44, 7  ;;  %v414_v14 = vsub.s32 %v7302_v32, %v413_v31  ;;  %v6362_v32 = vunpack.c.h.bf16 %v7824_v20  ;;  %4961 = vmatpush1.bf16.msra.mxu0 %v6966_v61 }
  0x82   : > { %v1348_v49 = vor.u32 %v1347_v25, %v1344_v27  ;;  %v7925_v42 = vmul.u32.u64.low 3817748708, %v7312_v35  ;;  %v7926_v38 = vmul.u32.u64.high 3817748708, %v7312_v35, %v7925_v42  ;;  %v981_v28 = vmul.f32 %v7852_v11, %v6361_v47  ;;  %4962 = vmatprep.subr.bf16.mxu0 %v9637_v1 }
  0x83   : > { %v7922_v15 = vor.u32 %v1357_v59, %v1354_v21  ;;  %v423_v31 = vshrl.u32 %v7911_v16, 4  ;;  %vm682_vm15 = vcmp.ne.s32.totalorder %v414_v14, 0  ;;  %v2295_v25 = vsel %vm9740_vm5, %v2292_v62, %v2294_v45  ;;  %v6926_v42 = vld [vmem:[#allocation2 + $0x20] sm:$0xff]  }
  0x84   : > { %v1349_v30 = vsel %vm7505_vm7, %v1340_v43, %v1348_v49  ;;  %v1350_v44 = vrot.slane %v1348_v49, 4  ;;  %v7935_v27 = vld [vmem:[#allocation2 + $0x28] sm:$0xff]   ;;  %v2010_v21 = vor.u32 %v2008_v26, %v2006_v51  ;;  %vm718_vm3 = vcmp.lt.s32.totalorder %v414_v14, 0 }
  0x85   : > { %1650 = vst [vmem:[#allocation2 + $0x30] sm:$0xf] %v1349_v30  ;;  %v6924_v20 = vld [vmem:[#allocation2 + $0x28] sm:$0xff]   ;;  %v424_v16 = vmul.u32 18, %v423_v31  ;;  %v790_v59 = vadd.s32 18, %v414_v14  ;;  %v7949_v5 = vadd.f32 %v7894_v37, %v7862_v8  ;;  %v2497_v19 = vrot.slane %v7935_v27, 1  ;;  %vm7954_vm5 = vmand %vm718_vm3, %vm682_vm15 }
  0x86   : > { %v1359_v47 = vsel %vm7505_vm7, %v1350_v44, %v7922_v15  ;;  %v7945_v43 = vld [vmem:[#allocation2 + $0x28] sm:$0xff]   ;;  %v434_v51 = vshrl.u32 %v7916_v29, 4  ;;  %v982_v26 = vmul.f32 %v7852_v11, %v6362_v32  ;;  %v6365_v61 = vunpack.c.l.bf16 %v6497_v41  ;;  %v6972_v31 = vld [vmem:[%s9615_s3 + $0x158] sm:$0xff]  }
  0x87   : > { %1651 = vst [vmem:[#allocation2 + $0x34] sm:$0xf] %v1359_v47  ;;  %v2012_v49 = vshll.u32 %v6924_v20, 16  ;;  %v425_v8 = vsub.s32 %v7305_v33, %v424_v16  ;;  %v7962_v30 = vadd.f32 %v7894_v37, %v981_v28  ;;  %v6366_v44 = vunpack.c.h.bf16 %v6497_v41  ;;  %v6973_v27 = vld [vmem:[%s9615_s3 + $0x1a8] sm:$0xff]   ;;  %4963 = vmatpush1.bf16.msra.mxu0 %v6972_v31 }
  0x88   : > { %vm9747_vm15 = vcmask 1046528   ;;  %v826_v32 = vsel %vm7954_vm5, %v790_v59, %v414_v14  ;;  %v435_v33 = vmul.u32 18, %v434_v51  ;;  %v445_v28 = vshrl.u32 %v7926_v38, 4  ;;  %6622 = vmatpush1.bf16.msra.mxu1 %v6973_v27  ;;  %4964 = vmatprep.subr.bf16.mxu0 %v9637_v1 }
  0x89   : > { %v2498_v29 = vsel %vm9747_vm15, %v2495_v6, %v2497_v19  ;;  %v2014_v41 = vrot.slane %v2012_v49, 1  ;;  %v2296_v47 = vrot.slane %v7945_v43, 1  ;;  %vm683_vm3 = vcmp.ne.s32.totalorder %v425_v8, 0  ;;  %6607 = vmatprep.subr.bf16.mxu1 %v9637_v1 }
  0x8a   : > { %4819 = vmatprep.mubr.bf16.mxu0 %v2498_v29  ;;  %vm719_vm14 = vcmp.lt.s32.totalorder %v425_v8, 0  ;;  %v2016_v16 = vshrl.u32 %v6924_v20, 16  ;;  %v791_v17 = vadd.s32 18, %v425_v8  ;;  %vm7981_vm15 = vcmp.lt.s32.totalorder %v826_v32, 16 }
  0x8b   : > { %4820 = vmatmul.mubr.bf16.gmra.mrb[12].mxu0 %v2295_v25  ;;  %vm7977_vm4 = vmand %vm719_vm14, %vm683_vm3  ;;  %v9750_v6 = vmov 0  ;;  %v446_v14 = vmul.u32 18, %v445_v28  ;;  %vm9752_vm5 = vsmask.f32 7424  ;;  %v1092_v59 = vsel %vm7981_vm15, %v1056_v54, 0.0 }
  0x8c   : > { %v9751_v6 = vsel %vm7981_vm15, 4294967295, %v9750_v6  ;;  %v2015_v38 = vsel %vm9752_vm5, %v2010_v21, %v2014_v41  ;;  %v436_v25 = vsub.s32 %v7308_v34, %v435_v33  ;;  %v7992_v20 = vadd.f32 %v7894_v37, %v982_v26 }
  0x8d   : > { %4650 = vmatprep.mubr.bf16.mxu1 %v2015_v38  ;;  %v827_v62 = vsel %vm7977_vm4, %v791_v17, %v425_v8  ;;  %v6267_v51 = vpack.c.bf16 %v1092_v59, %v1092_v59  ;;  %v1360_v21 = vrot.slane %v7922_v15, 4  ;;  %v447_v7 = vsub.s32 %v7312_v35, %v446_v14 }
  0x8e   : > { %v8000_v49 = vld [vmem:[#allocation2 + $0x30] sm:$0xff]   ;;  %4651 = vmatmul.mubr.bf16.gmra.mrb[16].mxu1 %v6926_v42  ;;  %vm9753_vm14 = vcmask 1046528   ;;  %vm8007_vm3 = vcmp.lt.s32.totalorder %v827_v62, 16  ;;  %v9754_v54 = vmov 0  ;;  %v983_v22 = vmul.f32 %v7852_v11, %v6365_v61 }
  0x8f   : > { %v2297_v34 = vsel %vm9753_vm14, %v2294_v45, %v2296_v47  ;;  %v9755_v54 = vsel %vm8007_vm3, 4294967295, %v9754_v54  ;;  %v984_v26 = vmul.f32 %v7852_v11, %v6366_v44  ;;  %v8013_v15 = vld [vmem:[#allocation2 + $0x30] sm:$0xff]   ;;  %v2018_v35 = vor.u32 %v2016_v16, %v2014_v41  ;;  %v6931_v41 = vld [vmem:[#allocation2 + $0x28] sm:$0xff]  }
  0x90   : > { %v1093_v42 = vsel %vm8007_vm3, %v1057_v58, 0.0  ;;  %v1362_v8 = vshrl.u32 %v6267_v51, 16  ;;  %v1365_v4 = vshll.u32 %v6267_v51, 16  ;;  %v2499_v45 = vrot.slane %v8000_v49, 1 }
  0x91   : > { %v6268_v31 = vpack.c.bf16 %v1093_v42, %v1093_v42  ;;  %vm720_vm5 = vcmp.lt.s32.totalorder %v436_v25, 0  ;;  %v2020_v27 = vshll.u32 %v8013_v15, 16  ;;  %vm685_vm14 = vcmp.ne.s32.totalorder %v447_v7, 0 }
  0x92   : > { %v1364_v61 = vrot.slane %v1362_v8, 6  ;;  %v1367_v29 = vrot.slane %v1365_v4, 7  ;;  %v2500_v44 = vsel %vm9756_vm1, %v2497_v19, %v2499_v45  ;;  %v1059_v58 = vmax.f32 %v7949_v5, 0.0  ;;  %v8032_v19 = vld [vmem:[#allocation2 + $0x30] sm:$0xff]  }
  0x93   : > { %v1372_v60 = vshrl.u32 %v6268_v31, 16  ;;  %v1375_v32 = vshll.u32 %v6268_v31, 16  ;;  %4827 = vmatprep.mubr.bf16.mxu0 %v2500_v44  ;;  %v8025_v33 = vrot.slane %v2020_v27, 1  ;;  %vm721_vm4 = vcmp.lt.s32.totalorder %v447_v7, 0  ;;  %v6978_v4 = vld [vmem:[%s9615_s3 + $0x1b0] sm:$0xff]  }
  0x94   : > { %v1368_v28 = vor.u32 %v1367_v29, %v1364_v61  ;;  %vm9757_vm0 = vcmp.ne.s32.totalorder %v436_v25, 0  ;;  %v792_v17 = vadd.s32 18, %v436_v25  ;;  %4828 = vmatmul.mubr.bf16.gmra.mrb[16].mxu0 %v2297_v34  ;;  %vm8035_vm1 = vmand %vm721_vm4, %vm685_vm14  ;;  %v793_v59 = vadd.s32 18, %v447_v7  ;;  %6623 = vmatpush1.bf16.msra.mxu1 %v6978_v4 }
  0x95   : > { %vm8028_vm10 = vmand %vm720_vm5, %vm9757_vm0  ;;  %v1374_v14 = vrot.slane %v1372_v60, 6  ;;  %v1377_v38 = vrot.slane %v1375_v32, 7  ;;  %v8040_v62 = vadd.f32 %v7894_v37, %v983_v22  ;;  %vm9762_vm0 = vsmask.f32 7424  ;;  %6608 = vmatprep.subr.bf16.mxu1 %v9637_v1 }
  0x96   : > { %v2023_v51 = vsel %vm9762_vm0, %v2018_v35, %v8025_v33  ;;  %v1369_v42 = vsel %vm7505_vm7, %v1360_v21, %v1368_v28  ;;  %v1370_v34 = vrot.slane %v1368_v28, 4  ;;  %v8047_v8 = vadd.f32 %v7894_v37, %v984_v26  ;;  %v6979_v21 = vld [vmem:[%s9615_s3 + $0x160] sm:$0xff]   ;;  %v6980_v28 = vld [vmem:[%s9615_s3 + $0x1b8] sm:$0xff]  }
  0x97   : > { %4658 = vmatprep.mubr.bf16.mxu1 %v2023_v51  ;;  %v1378_v31 = vor.u32 %v1377_v38, %v1374_v14  ;;  %1652 = vst [vmem:[#allocation2 + $0x38] sm:$0xf] %v1369_v42  ;;  %v2024_v22 = vshrl.u32 %v8013_v15, 16  ;;  %v828_v27 = vsel %vm8028_vm10, %v792_v17, %v436_v25  ;;  %v829_v35 = vsel %vm8035_vm1, %v793_v59, %v447_v7  ;;  %v8096_v59 = vld [vmem:[%s7296_s11 + $0x50] sm:$0xff]   ;;  %v8099_v51 = vld [vmem:[%s7296_s11 + $0x58] sm:$0xff]  }
  0x98   : > { %4659 = vmatmul.mubr.bf16.gmra.mrb[20].mxu1 %v6931_v41  ;;  %vm8060_vm4 = vcmp.lt.s32.totalorder %v828_v27, 16  ;;  %vm8064_vm5 = vcmp.lt.s32.totalorder %v829_v35, 16  ;;  %v8069_v15 = vmul.u32.u64.low 3817748708, %v7315_v36  ;;  %v8070_v29 = vmul.u32.u64.high 3817748708, %v7315_v36, %v8069_v15  ;;  %4965 = vmatpush1.bf16.msra.mxu0 %v6979_v21 }
  0x99   : > { %v1379_v25 = vsel %vm7505_vm7, %v1370_v34, %v1378_v31  ;;  %v2298_v7 = vrot.slane %v8032_v19, 1  ;;  %v9767_v44 = vmax.f32 %v7897_v46, 0.0  ;;  %v1095_v32 = vsel %vm8064_vm5, %v1059_v58, 0.0  ;;  %4966 = vmatprep.subr.bf16.mxu0 %v9637_v1  ;;  %6624 = vmatpush1.bf16.msra.mxu1 %v6980_v28 }
  0x9a   : > { %1653 = vst [vmem:[#allocation2 + $0x3c] sm:$0xf] %v1379_v25  ;;  %v6270_v16 = vpack.c.bf16 %v1095_v32, %v1095_v32  ;;  %v8085_v17 = vmul.u32.u64.low 3817748708, %v7341_v48  ;;  %v8086_v14 = vmul.u32.u64.high 3817748708, %v7341_v48, %v8085_v17  ;;  %v1380_v46 = vrot.slane %v1378_v31, 4  ;;  %6609 = vmatprep.subr.bf16.mxu1 %v9637_v1 }
  0x9b   : > { %v1094_v60 = vsel %vm8060_vm4, %v9767_v44, 0.0  ;;  %v8092_v38 = vmul.u32.u64.low 3817748708, %v7355_v52  ;;  %v8093_v5 = vmul.u32.u64.high 3817748708, %v7355_v52, %v8092_v38  ;;  %v456_v35 = vshrl.u32 %v8070_v29, 4 }
  0x9c   : > { %v6269_v41 = vpack.c.bf16 %v1094_v60, %v1094_v60  ;;  %v1392_v4 = vshrl.u32 %v6270_v16, 16  ;;  %v1395_v27 = vshll.u32 %v6270_v16, 16  ;;  %v6369_v60 = vunpack.c.l.bf16 %v8096_v59 }
  0x9d   : > { %v8104_v31 = vmul.u32.u64.low 3817748708, %v7358_v53  ;;  %v8105_v15 = vmul.u32.u64.high 3817748708, %v7358_v53, %v8104_v31  ;;  %v6370_v32 = vunpack.c.h.bf16 %v8096_v59  ;;  %v457_v16 = vmul.u32 18, %v456_v35 }
  0x9e   : > { %v1382_v42 = vshrl.u32 %v6269_v41, 16  ;;  %v1385_v34 = vshll.u32 %v6269_v41, 16  ;;  %v1394_v41 = vrot.slane %v1392_v4, 6  ;;  %v1397_v17 = vrot.slane %v1395_v27, 7 }
  0x9f   : > { %v467_v29 = vshrl.u32 %v8086_v14, 4  ;;  %v478_v21 = vshrl.u32 %v8093_v5, 4  ;;  %v1062_v58 = vmax.f32 %v8040_v62, 0.0  ;;  %v6373_v28 = vunpack.c.l.bf16 %v8099_v51 }
  0xa0   : > { %v1384_v25 = vrot.slane %v1382_v42, 6  ;;  %v1387_v44 = vrot.slane %v1385_v34, 7  ;;  %vm9768_vm10 = vcmask 1046528   ;;  %v8121_v34 = vor.u32 %v1397_v17, %v1394_v41 }
  0xa1   : > { %v8114_v42 = vld [vmem:[#allocation2 + $0x38] sm:$0xff]   ;;  %v2299_v59 = vsel %vm9768_vm10, %v2296_v47, %v2298_v7  ;;  %v458_v4 = vsub.s32 %v7315_v36, %v457_v16  ;;  %v468_v14 = vmul.u32 18, %v467_v29  ;;  %v2026_v5 = vor.u32 %v2024_v22, %v8025_v33  ;;  %v6936_v22 = vld [vmem:[#allocation2 + $0x30] sm:$0xff]   ;;  %v6987_v29 = vld [vmem:[%s9615_s3 + $0x168] sm:$0xff]  }
  0xa2   : > { %v1388_v38 = vor.u32 %v1387_v44, %v1384_v25  ;;  %v8124_v27 = vld [vmem:[#allocation2 + $0x38] sm:$0xff]   ;;  %v479_v44 = vmul.u32 18, %v478_v21  ;;  %v2501_v43 = vrot.slane %v8114_v42, 1  ;;  %v985_v41 = vmul.f32 %v7852_v11, %v6369_v60  ;;  %4967 = vmatpush1.bf16.msra.mxu0 %v6987_v29 }
  0xa3   : > { %v8129_v25 = vld [vmem:[#allocation2 + $0x38] sm:$0xff]   ;;  %v469_v47 = vsub.s32 %v7341_v48, %v468_v14  ;;  %vm686_vm14 = vcmp.ne.s32.totalorder %v458_v4, 0  ;;  %vm722_vm1 = vcmp.lt.s32.totalorder %v458_v4, 0  ;;  %v2028_v36 = vshll.u32 %v8124_v27, 16  ;;  %v6985_v48 = vld [vmem:[%s9615_s3 + $0x1c0] sm:$0xff]   ;;  %4968 = vmatprep.subr.bf16.mxu0 %v9637_v1 }
  0xa4   : > { %v1389_v35 = vsel %vm7505_vm7, %v1380_v46, %v1388_v38  ;;  %v1390_v31 = vrot.slane %v1388_v38, 4  ;;  %vm8137_vm0 = vmand %vm722_vm1, %vm686_vm14  ;;  %v2502_v17 = vsel %vm9768_vm10, %v2499_v45, %v2501_v43  ;;  %v794_v16 = vadd.s32 18, %v458_v4  ;;  %6625 = vmatpush1.bf16.msra.mxu1 %v6985_v48 }
  0xa5   : > { %1654 = vst [vmem:[#allocation2 + $0x40] sm:$0xf] %v1389_v35  ;;  %vm687_vm9 = vcmp.ne.s32.totalorder %v469_v47, 0  ;;  %vm723_vm14 = vcmp.lt.s32.totalorder %v469_v47, 0  ;;  %4835 = vmatprep.mubr.bf16.mxu0 %v2502_v17  ;;  %v2030_v60 = vrot.slane %v2028_v36, 1  ;;  %v2300_v38 = vrot.slane %v8129_v25, 1  ;;  %6610 = vmatprep.subr.bf16.mxu1 %v9637_v1 }
  0xa6   : > { %v1399_v33 = vsel %vm7505_vm7, %v1390_v31, %v8121_v34  ;;  %vm8155_vm1 = vmand %vm723_vm14, %vm687_vm9  ;;  %v795_v35 = vadd.s32 18, %v469_v47  ;;  %v8160_v49 = vadd.s32 168, %v7224_v12  ;;  %4836 = vmatmul.mubr.bf16.gmra.mrb[20].mxu0 %v2299_v59  ;;  %v830_v45 = vsel %vm8137_vm0, %v794_v16, %v458_v4  ;;  %v6986_v17 = vld [vmem:[%s9615_s3 + $0x1c8] sm:$0xff]  }
  0xa7   : > { %1655 = vst [vmem:[#allocation2 + $0x44] sm:$0xf] %v1399_v33  ;;  %v480_v31 = vsub.s32 %v7355_v52, %v479_v44  ;;  %v489_v33 = vshrl.u32 %v8105_v15, 4  ;;  %v986_v36 = vmul.f32 %v7852_v11, %v6370_v32  ;;  %vm9773_vm9 = vsmask.f32 7424 }
  0xa8   : > { %v2031_v21 = vsel %vm9773_vm9, %v2026_v5, %v2030_v60  ;;  %v2032_v48 = vshrl.u32 %v8124_v27, 16  ;;  %v831_v59 = vsel %vm8155_vm1, %v795_v35, %v469_v47  ;;  %vm8175_vm0 = vcmp.lt.s32.totalorder %v830_v45, 16  ;;  %6626 = vmatpush1.bf16.msra.mxu1 %v6986_v17 }
  0xa9   : > { %v9774_v4 = vmov 0  ;;  %4666 = vmatprep.mubr.bf16.mxu1 %v2031_v21  ;;  %vm8179_vm10 = vcmp.lt.s32.totalorder %v831_v59, 16  ;;  %v9776_v52 = vmov 0  ;;  %v9778_v15 = vmax.f32 %v7962_v30, 0.0  ;;  %6611 = vmatprep.subr.bf16.mxu1 %v9637_v1 }
  0xaa   : > { %v9775_v4 = vsel %vm8175_vm0, 4294967295, %v9774_v4  ;;  %v9777_v52 = vsel %vm8179_vm10, 4294967295, %v9776_v52  ;;  %v490_v5 = vmul.u32 18, %v489_v33  ;;  %vm688_vm14 = vcmp.ne.s32.totalorder %v480_v31, 0  ;;  %4667 = vmatmul.mubr.bf16.gmra.mrb[24].mxu1 %v6936_v22 }
  0xab   : > { %v1096_v32 = vsel %vm8175_vm0, %v9778_v15, 0.0  ;;  %v9779_v27 = vmax.f32 %v7992_v20, 0.0  ;;  %vm724_vm1 = vcmp.lt.s32.totalorder %v480_v31, 0  ;;  %v8193_v46 = vadd.f32 %v7894_v37, %v985_v41 }
  0xac   : > { %v6271_v47 = vpack.c.bf16 %v1096_v32, %v1096_v32  ;;  %v1400_v30 = vrot.slane %v8121_v34, 4  ;;  %v491_v16 = vsub.s32 %v7358_v53, %v490_v5  ;;  %vm8197_vm9 = vmand %vm724_vm1, %vm688_vm14  ;;  %v796_v22 = vadd.s32 18, %v480_v31  ;;  %v6941_v5 = vld [vmem:[#allocation2 + $0x38] sm:$0xff]  }
  0xad   : > { %v1097_v44 = vsel %vm8179_vm10, %v9779_v27, 0.0  ;;  %v2301_v41 = vsel %vm9782_vm13, %v2298_v7, %v2300_v38  ;;  %v2034_v14 = vor.u32 %v2032_v48, %v2030_v60  ;;  %v8209_v34 = vadd.f32 %v7894_v37, %v986_v36 }
  0xae   : > { %v6272_v21 = vpack.c.bf16 %v1097_v44, %v1097_v44  ;;  %v8201_v20 = vld [vmem:[#allocation2 + $0x40] sm:$0xff]   ;;  %v1402_v35 = vshrl.u32 %v6271_v47, 16  ;;  %v1405_v45 = vshll.u32 %v6271_v47, 16  ;;  %v832_v59 = vsel %vm8197_vm9, %v796_v22, %v480_v31 }
  0xaf   : > { %v8212_v53 = vld [vmem:[#allocation2 + $0x40] sm:$0xff]   ;;  %v2503_v15 = vrot.slane %v8201_v20, 1  ;;  %vm689_vm14 = vcmp.ne.s32.totalorder %v491_v16, 0  ;;  %vm725_vm13 = vcmp.lt.s32.totalorder %v491_v16, 0  ;;  %v797_v27 = vadd.s32 18, %v491_v16 }
  0xb0   : > { %v1412_v33 = vshrl.u32 %v6272_v21, 16  ;;  %v1415_v17 = vshll.u32 %v6272_v21, 16  ;;  %v1404_v19 = vrot.slane %v1402_v35, 6  ;;  %v2036_v7 = vshll.u32 %v8212_v53, 16  ;;  %vm8218_vm1 = vmand %vm725_vm13, %vm689_vm14 }
  0xb1   : > { %v1407_v60 = vrot.slane %v1405_v45, 7  ;;  %v2504_v31 = vsel %vm9785_vm12, %v2501_v43, %v2503_v15  ;;  %v1064_v44 = vmax.f32 %v8193_v46, 0.0  ;;  %v6374_v47 = vunpack.c.h.bf16 %v8099_v51 }
  0xb2   : > { %v1414_v36 = vrot.slane %v1412_v33, 6  ;;  %v1417_v48 = vrot.slane %v1415_v17, 7  ;;  %4843 = vmatprep.mubr.bf16.mxu0 %v2504_v31  ;;  %v8229_v21 = vrot.slane %v2036_v7, 1  ;;  %vm8231_vm9 = vcmp.lt.s32.totalorder %v832_v59, 16  ;;  %v6992_v17 = vld [vmem:[%s9615_s3 + $0x1d0] sm:$0xff]   ;;  %v8267_v7 = vld [vmem:[#allocation2 + $0x40] sm:$0xff]  }
  0xb3   : > { %v1408_v29 = vor.u32 %v1407_v60, %v1404_v19  ;;  %v9786_v35 = vmov 0  ;;  %4844 = vmatmul.mubr.bf16.gmra.mrb[24].mxu0 %v2301_v41  ;;  %v833_v42 = vsel %vm8218_vm1, %v797_v27, %v491_v16  ;;  %v1098_v43 = vsel %vm8231_vm9, %v1062_v58, 0.0  ;;  %6627 = vmatpush1.bf16.msra.mxu1 %v6992_v17 }
  0xb4   : > { %v1418_v22 = vor.u32 %v1417_v48, %v1414_v36  ;;  %v9787_v35 = vsel %vm8231_vm9, 4294967295, %v9786_v35  ;;  %v1065_v45 = vmax.f32 %v8209_v34, 0.0  ;;  %v987_v33 = vmul.f32 %v7852_v11, %v6373_v28  ;;  %6612 = vmatprep.subr.bf16.mxu1 %v9637_v1  ;;  %v7005_v34 = vld [vmem:[%s9615_s3 + $0x178] sm:$0xff]  }
  0xb5   : > { %vm9788_vm12 = vsmask.f32 7424  ;;  %v1409_v16 = vsel %vm7505_vm7, %v1400_v30, %v1408_v29  ;;  %v1410_v62 = vrot.slane %v1408_v29, 4  ;;  %v8253_v59 = vadd.s32 176, %v7224_v12  ;;  %v6993_v30 = vld [vmem:[%s9615_s3 + $0x1d8] sm:$0xff]  }
  0xb6   : > { %v2039_v41 = vsel %vm9788_vm12, %v2034_v14, %v8229_v21  ;;  %1656 = vst [vmem:[#allocation2 + $0x48] sm:$0xf] %v1409_v16  ;;  %vm8255_vm14 = vcmp.lt.s32.totalorder %v833_v42, 16  ;;  %v9789_v58 = vmov 0  ;;  %v6273_v51 = vpack.c.bf16 %v1098_v43, %v1098_v43 }
  0xb7   : > { %4674 = vmatprep.mubr.bf16.mxu1 %v2039_v41  ;;  %v9790_v58 = vsel %vm8255_vm14, 4294967295, %v9789_v58  ;;  %v1420_v28 = vrot.slane %v1418_v22, 4  ;;  %v8260_v19 = vadd.s32 184, %v7224_v12  ;;  %v1419_v14 = vsel %vm7505_vm7, %v1410_v62, %v1418_v22  ;;  %6628 = vmatpush1.bf16.msra.mxu1 %v6993_v30 }
  0xb8   : > { %4675 = vmatmul.mubr.bf16.gmra.mrb[28].mxu1 %v6941_v5  ;;  %v9791_v60 = vmax.f32 %v8047_v8, 0.0  ;;  %v8274_v48 = vmul.u32.u64.low 3817748708, %v7366_v57  ;;  %v8275_v32 = vmul.u32.u64.high 3817748708, %v7366_v57, %v8274_v48  ;;  %1657 = vst [vmem:[#allocation2 + $0x4c] sm:$0xf] %v1419_v14  ;;  %v1422_v27 = vshrl.u32 %v6273_v51, 16  ;;  %6613 = vmatprep.subr.bf16.mxu1 %v9637_v1 }
  0xb9   : > { %v1425_v29 = vshll.u32 %v6273_v51, 16  ;;  %v988_v22 = vmul.f32 %v7852_v11, %v6374_v47  ;;  %v8280_v5 = vmul.u32.u64.low 3817748708, %v8160_v49  ;;  %v8281_v42 = vmul.u32.u64.high 3817748708, %v8160_v49, %v8280_v5 }
  0xba   : > { %v1099_v36 = vsel %vm8255_vm14, %v9791_v60, 0.0  ;;  %v8284_v8 = vmul.u32.u64.low 3817748708, %v8253_v59  ;;  %v8285_v43 = vmul.u32.u64.high 3817748708, %v8253_v59, %v8284_v8  ;;  %v1424_v17 = vrot.slane %v1422_v27, 6  ;;  %v8296_v27 = vld [vmem:[%s7296_s11 + $0x60] sm:$0xff]  }
  0xbb   : > { %v6274_v31 = vpack.c.bf16 %v1099_v36, %v1099_v36  ;;  %v1427_v41 = vrot.slane %v1425_v29, 7  ;;  %v2302_v14 = vrot.slane %v8267_v7, 1  ;;  %v500_v51 = vshrl.u32 %v8275_v32, 4 }
  0xbc   : > { %v8290_v11 = vmul.u32.u64.low 3817748708, %v8260_v19  ;;  %v8291_v47 = vmul.u32.u64.high 3817748708, %v8260_v19, %v8290_v11  ;;  %v2040_v60 = vshrl.u32 %v8212_v53, 16  ;;  %v8302_v30 = vadd.f32 %v7894_v37, %v988_v22  ;;  %v6996_v53 = vld [vmem:[%s9615_s3 + $0x170] sm:$0xff]  }
  0xbd   : > { %v1432_v16 = vshrl.u32 %v6274_v31, 16  ;;  %v1435_v62 = vshll.u32 %v6274_v31, 16  ;;  %v1428_v36 = vor.u32 %v1427_v41, %v1424_v17  ;;  %v8299_v31 = vadd.f32 %v7894_v37, %v987_v33  ;;  %v6999_v17 = vld [vmem:[%s9615_s3 + $0x1e0] sm:$0xff]   ;;  %4969 = vmatpush1.bf16.msra.mxu0 %v6996_v53 }
  0xbe   : > { %v501_v11 = vmul.u32 18, %v500_v51  ;;  %v511_v37 = vshrl.u32 %v8281_v42, 4  ;;  %v6377_v22 = vunpack.c.l.bf16 %v8296_v27  ;;  %vm9792_vm13 = vcmask 1046528   ;;  %6629 = vmatpush1.bf16.msra.mxu1 %v6999_v17  ;;  %4970 = vmatprep.subr.bf16.mxu0 %v9637_v1 }
  0xbf   : > { %v1434_v48 = vrot.slane %v1432_v16, 6  ;;  %v1437_v5 = vrot.slane %v1435_v62, 7  ;;  %v1429_v32 = vsel %vm7505_vm7, %v1420_v28, %v1428_v36  ;;  %v1430_v29 = vrot.slane %v1428_v36, 4  ;;  %v8314_v33 = vld [vmem:[#allocation2 + $0x48] sm:$0xff]   ;;  %6614 = vmatprep.subr.bf16.mxu1 %v9637_v1  ;;  %vm9793_vm12 = vmmov %vm9792_vm13 }
  0xc0   : > { %1658 = vst [vmem:[#allocation2 + $0x50] sm:$0xf] %v1429_v32  ;;  %v2303_v28 = vsel %vm9792_vm13, %v2300_v38, %v2302_v14  ;;  %v8323_v41 = vld [vmem:[#allocation2 + $0x48] sm:$0xff]   ;;  %v502_v51 = vsub.s32 %v7366_v57, %v501_v11  ;;  %v522_v42 = vshrl.u32 %v8285_v43, 4  ;;  %v2505_v36 = vrot.slane %v8314_v33, 1  ;;  %v6946_v32 = vld [vmem:[#allocation2 + $0x40] sm:$0xff]  }
  0xc1   : > { %v8306_v8 = vor.u32 %v1437_v5, %v1434_v48  ;;  %v8328_v62 = vld [vmem:[#allocation2 + $0x48] sm:$0xff]   ;;  %v2042_v25 = vor.u32 %v2040_v60, %v8229_v21  ;;  %v512_v38 = vmul.u32 18, %v511_v37  ;;  %v533_v48 = vshrl.u32 %v8291_v47, 4  ;;  %4971 = vmatpush1.bf16.msra.mxu0 %v7005_v34 }
  0xc2   : > { %v2044_v5 = vshll.u32 %v8323_v41, 16  ;;  %vm690_vm1 = vcmp.ne.s32.totalorder %v502_v51, 0  ;;  %v1066_v57 = vmax.f32 %v8299_v31, 0.0  ;;  %v7000_v21 = vld [vmem:[%s9615_s3 + $0x1e8] sm:$0xff]   ;;  %v2506_v47 = vsel %vm9793_vm12, %v2503_v15, %v2505_v36  ;;  %5117 = vmatprep.subr.bf16.mxu0 %v9637_v1 }
  0xc3   : > { %v1439_v16 = vsel %vm7505_vm7, %v1430_v29, %v8306_v8  ;;  %v513_v60 = vsub.s32 %v8160_v49, %v512_v38  ;;  %vm726_vm13 = vcmp.lt.s32.totalorder %v502_v51, 0  ;;  %v798_v29 = vadd.s32 18, %v502_v51  ;;  %4851 = vmatprep.mubr.bf16.mxu0 %v2506_v47  ;;  %6630 = vmatpush1.bf16.msra.mxu1 %v7000_v21  ;;  %v8351_v43 = vld [vmem:[%s7296_s11 + $0x68] sm:$0xff]  }
  0xc4   : > { %1659 = vst [vmem:[#allocation2 + $0x54] sm:$0xf] %v1439_v16  ;;  %v2046_v11 = vrot.slane %v2044_v5, 1  ;;  %v9640_v53 = vrot.slane %v8328_v62, 1  ;;  %vm762_vm10 = vmand %vm726_vm13, %vm690_vm1  ;;  %v523_v17 = vmul.u32 18, %v522_v42  ;;  %v534_v37 = vmul.u32 18, %v533_v48  ;;  %4852 = vmatmul.mubr.bf16.gmra.mrb[28].mxu0 %v2303_v28  ;;  %6615 = vmatprep.subr.bf16.mxu1 %v9637_v1 }
  0xc5   : > { %vm691_vm0 = vcmp.ne.s32.totalorder %v513_v60, 0  ;;  %vm727_vm14 = vcmp.lt.s32.totalorder %v513_v60, 0  ;;  %v799_v16 = vadd.s32 18, %v513_v60  ;;  %v834_v20 = vsel %vm762_vm10, %v798_v29, %v502_v51 }
  0xc6   : > { %vm9794_vm12 = vsmask.f32 7424  ;;  %v2048_v15 = vshrl.u32 %v8323_v41, 16  ;;  %vm763_vm9 = vmand %vm727_vm14, %vm691_vm0  ;;  %vm8356_vm3 = vcmp.lt.s32.totalorder %v834_v20, 16  ;;  %v9795_v38 = vmov 0 }
  0xc7   : > { %v2047_v49 = vsel %vm9794_vm12, %v2042_v25, %v2046_v11  ;;  %v9796_v38 = vsel %vm8356_vm3, 4294967295, %v9795_v38  ;;  %v6378_v42 = vunpack.c.h.bf16 %v8296_v27  ;;  %v835_v28 = vsel %vm763_vm9, %v799_v16, %v513_v60  ;;  %v8376_v27 = vld [vmem:[%s9613_s1] ss:$0 sm:$0xff] }
  0xc8   : > { %9797 = vst [vmem:[#allocation14_spill] sm:$0xff] %v9796_v38  ;;  %4682 = vmatprep.mubr.bf16.mxu1 %v2047_v49  ;;  %v1100_v51 = vsel %vm8356_vm3, %v1064_v44, 0.0  ;;  %v524_v48 = vsub.s32 %v8253_v59, %v523_v17  ;;  %v535_v25 = vsub.s32 %v8260_v19, %v534_v37  ;;  %vm8369_vm0 = vcmp.lt.s32.totalorder %v835_v28, 16  ;;  %v6952_v28 = vld [vmem:[#allocation2 + $0x48] sm:$0xff]  }
  0xc9   : > { %4683 = vmatmul.mubr.bf16.gmra.mrb[32].mxu1 %v6946_v32  ;;  %v9798_v41 = vmov 0  ;;  %v6275_v21 = vpack.c.bf16 %v1100_v51, %v1100_v51  ;;  %v8379_v46 = vmul.f32 %v8376_v27, %v6377_v22  ;;  %v6381_v44 = vunpack.c.l.bf16 %v8351_v43 }
  0xca   : > { %v9799_v41 = vsel %vm8369_vm0, 4294967295, %v9798_v41  ;;  %vm9801_vm10 = vcmask 1046528   ;;  %v1101_v32 = vsel %vm8369_vm0, %v1065_v45, 0.0  ;;  %v1440_v47 = vrot.slane %v8306_v8, 4  ;;  %v7006_v45 = vld [vmem:[%s9615_s3 + $0x1f0] sm:$0xff]  }
  0xcb   : > { %v8367_v5 = vld [vmem:[#allocation2 + $0x50] sm:$0xff]   ;;  %9800 = vst [vmem:[#allocation15_spill] sm:$0xff] %v9799_v41  ;;  %v2305_v59 = vsel %vm9801_vm10, %v2302_v14, %v9640_v53  ;;  %v6382_v22 = vunpack.c.h.bf16 %v8351_v43  ;;  %v6276_v29 = vpack.c.bf16 %v1101_v32, %v1101_v32  ;;  %v1442_v17 = vshrl.u32 %v6275_v21, 16  ;;  %vm9802_vm1 = vmmov %vm9801_vm10  ;;  %6631 = vmatpush1.bf16.msra.mxu1 %v7006_v45 }
  0xcc   : > { %v8387_v19 = vld [vmem:[#allocation2 + $0x50] sm:$0xff]   ;;  %v9639_v60 = vrot.slane %v8367_v5, 1  ;;  %v1445_v37 = vshll.u32 %v6275_v21, 16  ;;  %v2050_v16 = vor.u32 %v2048_v15, %v2046_v11  ;;  %vm692_vm9 = vcmp.ne.s32.totalorder %v524_v48, 0  ;;  %6616 = vmatprep.subr.bf16.mxu1 %v9637_v1 }
  0xcd   : > { %v2052_v7 = vshll.u32 %v8387_v19, 16  ;;  %vm693_vm14 = vcmp.ne.s32.totalorder %v535_v25, 0  ;;  %v1444_v8 = vrot.slane %v1442_v17, 6  ;;  %v1452_v20 = vshrl.u32 %v6276_v29, 16 }
  0xce   : > { %v2508_v14 = vsel %vm9802_vm1, %v2505_v36, %v9639_v60  ;;  %v1447_v11 = vrot.slane %v1445_v37, 7  ;;  %v1455_v15 = vshll.u32 %v6276_v29, 16  ;;  %vm728_vm13 = vcmp.lt.s32.totalorder %v524_v48, 0  ;;  %v7007_v29 = vld [vmem:[%s9615_s3 + $0x1f8] sm:$0xff]  }
  0xcf   : > { %4859 = vmatprep.mubr.bf16.mxu0 %v2508_v14  ;;  %v8408_v49 = vrot.slane %v2052_v7, 1  ;;  %v8411_v51 = vadd.s32 192, %v7224_v12  ;;  %v1454_v32 = vrot.slane %v1452_v20, 6  ;;  %vm729_vm12 = vcmp.lt.s32.totalorder %v535_v25, 0  ;;  %vm8414_vm10 = vmand %vm728_vm13, %vm692_vm9  ;;  %v8423_v7 = vld [vmem:[#allocation2 + $0x50] sm:$0xff]   ;;  %6632 = vmatpush1.bf16.msra.mxu1 %v7007_v29 }
  0xd0   : > { %4860 = vmatmul.mubr.bf16.gmra.mrb[32].mxu0 %v2305_v59  ;;  %v1448_v21 = vor.u32 %v1447_v11, %v1444_v8  ;;  %v800_v36 = vadd.s32 18, %v524_v48  ;;  %vm9805_vm1 = vsmask.f32 7424  ;;  %v1457_v37 = vrot.slane %v1455_v15, 7  ;;  %vm8426_vm0 = vmand %vm729_vm12, %vm693_vm14 }
  0xd1   : > { %v2055_v17 = vsel %vm9805_vm1, %v2050_v16, %v8408_v49  ;;  %v801_v34 = vadd.s32 18, %v535_v25  ;;  %v990_v14 = vmul.f32 %v8376_v27, %v6378_v42  ;;  %v8438_v11 = vadd.s32 200, %v7224_v12 }
  0xd2   : > { %4690 = vmatprep.mubr.bf16.mxu1 %v2055_v17  ;;  %v1449_v45 = vsel %vm7505_vm7, %v1440_v47, %v1448_v21  ;;  %v1450_v16 = vrot.slane %v1448_v21, 4  ;;  %v836_v8 = vsel %vm8414_vm10, %v800_v36, %v524_v48  ;;  %v1458_v20 = vor.u32 %v1457_v37, %v1454_v32 }
  0xd3   : > { %1660 = vst [vmem:[#allocation2 + $0x58] sm:$0xf] %v1449_v45  ;;  %4691 = vmatmul.mubr.bf16.gmra.mrb[36].mxu1 %v6952_v28  ;;  %v837_v42 = vsel %vm8426_vm0, %v801_v34, %v535_v25  ;;  %vm8442_vm9 = vcmp.lt.s32.totalorder %v836_v8, 16  ;;  %v9808_v15 = vmov 0  ;;  %v991_v17 = vmul.f32 %v8376_v27, %v6381_v44 }
  0xd4   : > { %v9809_v15 = vsel %vm8442_vm9, 4294967295, %v9808_v15  ;;  %vm8447_vm14 = vcmp.lt.s32.totalorder %v837_v42, 16  ;;  %v9811_v47 = vmov 0  ;;  %v1102_v48 = vsel %vm8442_vm9, %v1066_v57, 0.0 }
  0xd5   : > { %9810 = vst [vmem:[#allocation16_spill] sm:$0xff] %v9809_v15  ;;  %v9812_v47 = vsel %vm8447_vm14, 4294967295, %v9811_v47  ;;  %v8456_v28 = vmul.u32.u64.low 3817748708, %v8411_v51  ;;  %v8457_v21 = vmul.u32.u64.high 3817748708, %v8411_v51, %v8456_v28  ;;  %v1459_v25 = vsel %vm7505_vm7, %v1450_v16, %v1458_v20 }
  0xd6   : > { %9813 = vst [vmem:[#allocation17_spill] sm:$0xff] %v9812_v47  ;;  %v9642_v32 = vrot.slane %v8423_v7, 1  ;;  %v9814_v44 = vmax.f32 %v8302_v30, 0.0  ;;  %v6277_v36 = vpack.c.bf16 %v1102_v48, %v1102_v48  ;;  %1661 = vst [vmem:[#allocation2 + $0x5c] sm:$0xf] %v1459_v25  ;;  %v2056_v31 = vshrl.u32 %v8387_v19, 16 }
  0xd7   : > { %v8468_v37 = vmul.u32.u64.low 3817748708, %v8438_v11  ;;  %v8469_v59 = vmul.u32.u64.high 3817748708, %v8438_v11, %v8468_v37  ;;  %v1460_v29 = vrot.slane %v1458_v20, 4  ;;  %v8472_v16 = vadd.s32 208, %v7224_v12 }
  0xd8   : > { %v1103_v33 = vsel %vm8447_vm14, %v9814_v44, 0.0  ;;  %v1462_v34 = vshrl.u32 %v6277_v36, 16  ;;  %v1465_v45 = vshll.u32 %v6277_v36, 16  ;;  %v544_v42 = vshrl.u32 %v8457_v21, 4  ;;  %v8488_v37 = vld [vmem:[%s9614_s2] ss:$0 sm:$0xff] }
  0xd9   : > { %v6278_v57 = vpack.c.bf16 %v1103_v33, %v1103_v33  ;;  %v8476_v48 = vadd.s32 216, %v7224_v12  ;;  %v8479_v25 = vmul.u32.u64.low 3817748708, %v8472_v16  ;;  %v8480_v44 = vmul.u32.u64.high 3817748708, %v8472_v16, %v8479_v25  ;;  %v8483_v33 = vld [vmem:[%s7296_s11 + $0x70] sm:$0xff]  }
  0xda   : > { %v1464_v28 = vrot.slane %v1462_v34, 6  ;;  %v1467_v19 = vrot.slane %v1465_v45, 7  ;;  %v1032_v21 = vadd.f32 %v8488_v37, %v8379_v46  ;;  %v545_v45 = vmul.u32 18, %v544_v42 }
  0xdb   : > { %v1472_v30 = vshrl.u32 %v6278_v57, 16  ;;  %v1475_v8 = vshll.u32 %v6278_v57, 16  ;;  %v8493_v57 = vadd.f32 %v8488_v37, %v990_v14  ;;  %v555_v1 = vshrl.u32 %v8469_v59, 4 }
  0xdc   : > { %v1468_v34 = vor.u32 %v1467_v19, %v1464_v28  ;;  %v8502_v25 = vmul.u32.u64.low 3817748708, %v8476_v48  ;;  %v8503_v60 = vmul.u32.u64.high 3817748708, %v8476_v48, %v8502_v25  ;;  %v8506_v53 = vadd.f32 %v8488_v37, %v991_v17 }
  0xdd   : > { %v1474_v20 = vrot.slane %v1472_v30, 6  ;;  %v1477_v36 = vrot.slane %v1475_v8, 7  ;;  %v992_v30 = vmul.f32 %v8376_v27, %v6382_v22  ;;  %v8508_v46 = vld [vmem:[#allocation2 + $0x58] sm:$0xff]   ;;  %v546_v59 = vsub.s32 %v8411_v51, %v545_v45 }
  0xde   : > { %v1469_v14 = vsel %vm7505_vm7, %v1460_v29, %v1468_v34  ;;  %v1470_v42 = vrot.slane %v1468_v34, 4  ;;  %v6385_v43 = vunpack.c.l.bf16 %v8483_v33  ;;  %v9815_v22 = vrot.slane %v8328_v62, 1  ;;  %v6956_v19 = vld [vmem:[#allocation2 + $0x58] sm:$0xff]  }
  0xdf   : > { %v8499_v8 = vor.u32 %v1477_v36, %v1474_v20  ;;  %vm9816_vm0 = vcmask 1046528   ;;  %v2058_v17 = vor.u32 %v2056_v31, %v8408_v49  ;;  %1662 = vst [vmem:[#allocation2 + $0x60] sm:$0xf] %v1469_v14  ;;  %v8520_v20 = vld [vmem:[#allocation2 + $0x58] sm:$0xff]   ;;  %v556_v36 = vmul.u32 18, %v555_v1 }
  0xe0   : > { %v2307_v28 = vsel %vm9816_vm0, %v9815_v22, %v9642_v32  ;;  %v6386_v29 = vunpack.c.h.bf16 %v8483_v33  ;;  %v2509_v34 = vrot.slane %v8508_v46, 1  ;;  %vm694_vm13 = vcmp.ne.s32.totalorder %v546_v59, 0  ;;  %vm9820_vm1 = vmmov %vm9816_vm0  ;;  %v6958_v46 = vld [vmem:[#allocation2 + $0x50] sm:$0xff]  }
  0xe1   : > { %v1479_v51 = vsel %vm7505_vm7, %v1470_v42, %v8499_v8  ;;  %vm730_vm12 = vcmp.lt.s32.totalorder %v546_v59, 0  ;;  %v2060_v62 = vshll.u32 %v6956_v19, 16  ;;  %v557_v45 = vsub.s32 %v8438_v11, %v556_v36 }
  0xe2   : > { %1663 = vst [vmem:[#allocation2 + $0x64] sm:$0xf] %v1479_v51  ;;  %vm8528_vm10 = vmand %vm730_vm12, %vm694_vm13  ;;  %v1068_v31 = vmax.f32 %v1032_v21, 0.0  ;;  %v1069_v1 = vmax.f32 %v8493_v57, 0.0  ;;  %v9819_v33 = vrot.slane %v8367_v5, 1  ;;  %v802_v14 = vadd.s32 18, %v546_v59 }
  0xe3   : > { %v566_v42 = vshrl.u32 %v8480_v44, 4  ;;  %v577_v22 = vshrl.u32 %v8503_v60, 4  ;;  %v2062_v11 = vrot.slane %v2060_v62, 1  ;;  %v9647_v36 = vrot.slane %v8520_v20, 1 }
  0xe4   : > { %v2510_v25 = vsel %vm9820_vm1, %v9819_v33, %v2509_v34  ;;  %vm695_vm0 = vcmp.ne.s32.totalorder %v557_v45, 0  ;;  %vm731_vm13 = vcmp.lt.s32.totalorder %v557_v45, 0  ;;  %v803_v5 = vadd.s32 18, %v557_v45 }
  0xe5   : > { %4867 = vmatprep.mubr.bf16.mxu0 %v2510_v25  ;;  %vm8539_vm12 = vmand %vm731_vm13, %vm695_vm0  ;;  %v838_v57 = vsel %vm8528_vm10, %v802_v14, %v546_v59  ;;  %v567_v51 = vmul.u32 18, %v566_v42  ;;  %v578_v44 = vmul.u32 18, %v577_v22  ;;  %vm9823_vm1 = vsmask.f32 7424 }
  0xe6   : > { %4868 = vmatmul.mubr.bf16.gmra.mrb[36].mxu0 %v2307_v28  ;;  %v2063_v60 = vsel %vm9823_vm1, %v2058_v17, %v2062_v11  ;;  %v2064_v33 = vshrl.u32 %v6956_v19, 16  ;;  %vm8546_vm3 = vcmp.lt.s32.totalorder %v838_v57, 16  ;;  %v9824_v62 = vmov 0  ;;  %v8554_v28 = vld [vmem:[%s7296_s11 + $0x78] sm:$0xff]  }
  0xe7   : > { %v9825_v62 = vsel %vm8546_vm3, 4294967295, %v9824_v62  ;;  %v8551_v25 = vadd.f32 %v8488_v37, %v992_v30  ;;  %4698 = vmatprep.mubr.bf16.mxu1 %v2063_v60  ;;  %v839_v32 = vsel %vm8539_vm12, %v803_v5, %v557_v45  ;;  %v1104_v59 = vsel %vm8546_vm3, %v1068_v31, 0.0 }
  0xe8   : > { %9826 = vst [vmem:[#allocation18_spill] sm:$0xff] %v9825_v62  ;;  %v568_v49 = vsub.s32 %v8472_v16, %v567_v51  ;;  %v579_v19 = vsub.s32 %v8476_v48, %v578_v44  ;;  %4699 = vmatmul.mubr.bf16.gmra.mrb[40].mxu1 %v6958_v46  ;;  %vm8562_vm10 = vcmp.lt.s32.totalorder %v839_v32, 16  ;;  %v9827_v17 = vmov 0 }
  0xe9   : > { %v9828_v17 = vsel %vm8562_vm10, 4294967295, %v9827_v17  ;;  %v6279_v30 = vpack.c.bf16 %v1104_v59, %v1104_v59  ;;  %v1480_v14 = vrot.slane %v8499_v8, 4  ;;  %v993_v42 = vmul.f32 %v8376_v27, %v6385_v43  ;;  %v8568_v22 = vld [vmem:[#allocation2 + $0x60] sm:$0xff]  }
  0xea   : > { %9829 = vst [vmem:[#allocation19_spill] sm:$0xff] %v9828_v17  ;;  %v9830_v45 = vrot.slane %v8423_v7, 1  ;;  %vm9831_vm0 = vcmask 1046528   ;;  %v1105_v48 = vsel %vm8562_vm10, %v1069_v1, 0.0  ;;  %v994_v32 = vmul.f32 %v8376_v27, %v6386_v29  ;;  %v8579_v46 = vld [vmem:[#allocation2 + $0x60] sm:$0xff]  }
  0xeb   : > { %v6389_v31 = vunpack.c.l.bf16 %v8554_v28  ;;  %v2066_v8 = vor.u32 %v2064_v33, %v2062_v11  ;;  %v6280_v21 = vpack.c.bf16 %v1105_v48, %v1105_v48  ;;  %v1482_v43 = vshrl.u32 %v6279_v30, 16  ;;  %v6964_v48 = vld [vmem:[#allocation2 + $0x58] sm:$0xff]  }
  0xec   : > { %v2309_v16 = vsel %vm9831_vm0, %v9830_v45, %v9647_v36  ;;  %v1485_v5 = vshll.u32 %v6279_v30, 16  ;;  %v9646_v57 = vrot.slane %v8568_v22, 1  ;;  %vm696_vm13 = vcmp.ne.s32.totalorder %v568_v49, 0 }
  0xed   : > { %vm732_vm1 = vcmp.lt.s32.totalorder %v568_v49, 0  ;;  %v2068_v7 = vshll.u32 %v8579_v46, 16  ;;  %v1484_v51 = vrot.slane %v1482_v43, 6  ;;  %v1492_v1 = vshrl.u32 %v6280_v21, 16 }
  0xee   : > { %v1487_v44 = vrot.slane %v1485_v5, 7  ;;  %v2512_v29 = vsel %vm9831_vm0, %v2509_v34, %v9646_v57  ;;  %v1495_v60 = vshll.u32 %v6280_v21, 16  ;;  %v1070_v11 = vmax.f32 %v8506_v53, 0.0  ;;  %vm8594_vm10 = vmand %vm732_vm1, %vm696_vm13 }
  0xef   : > { %v8588_v33 = vadd.s32 224, %v7224_v12  ;;  %4875 = vmatprep.mubr.bf16.mxu0 %v2512_v29  ;;  %v8590_v59 = vrot.slane %v2068_v7, 1  ;;  %v1494_v45 = vrot.slane %v1492_v1, 6  ;;  %vm733_vm12 = vcmp.lt.s32.totalorder %v579_v19, 0 }
  0xf0   : > { %v1488_v30 = vor.u32 %v1487_v44, %v1484_v51  ;;  %4876 = vmatmul.mubr.bf16.gmra.mrb[40].mxu0 %v2309_v16  ;;  %v1497_v34 = vrot.slane %v1495_v60, 7  ;;  %vm9834_vm0 = vcmp.ne.s32.totalorder %v579_v19, 0  ;;  %v804_v21 = vadd.s32 18, %v568_v49  ;;  %v8611_v60 = vld [vmem:[#allocation2 + $0x60] sm:$0xff]  }
  0xf1   : > { %vm8599_vm3 = vmand %vm733_vm12, %vm9834_vm0  ;;  %v805_v5 = vadd.s32 18, %v579_v19  ;;  %v1071_v7 = vmax.f32 %v8551_v25, 0.0  ;;  %vm9837_vm14 = vsmask.f32 7424  ;;  %v8609_v29 = vadd.f32 %v8488_v37, %v993_v42 }
  0xf2   : > { %v2071_v51 = vsel %vm9837_vm14, %v2066_v8, %v8590_v59  ;;  %v1489_v44 = vsel %vm7505_vm7, %v1480_v14, %v1488_v30  ;;  %v1490_v1 = vrot.slane %v1488_v30, 4  ;;  %v1498_v16 = vor.u32 %v1497_v34, %v1494_v45 }
  0xf3   : > { %4706 = vmatprep.mubr.bf16.mxu1 %v2071_v51  ;;  %1664 = vst [vmem:[#allocation2 + $0x68] sm:$0xf] %v1489_v44  ;;  %v840_v57 = vsel %vm8594_vm10, %v804_v21, %v568_v49  ;;  %v841_v25 = vsel %vm8599_vm3, %v805_v5, %v579_v19  ;;  %v267_v8 = vadd.s32 232, %v7224_v12  ;;  %v9838_v14 = vmov 0 }
  0xf4   : > { %4707 = vmatmul.mubr.bf16.gmra.mrb[44].mxu1 %v6964_v48  ;;  %vm8618_vm14 = vcmp.lt.s32.totalorder %v840_v57, 16  ;;  %vm8622_vm13 = vcmp.lt.s32.totalorder %v841_v25, 16  ;;  %v9841_v42 = vmov 0  ;;  %v1499_v49 = vsel %vm7505_vm7, %v1490_v1, %v1498_v16 }
  0xf5   : > { %v9839_v14 = vsel %vm8618_vm14, 4294967295, %v9838_v14  ;;  %v9842_v42 = vsel %vm8622_vm13, 4294967295, %v9841_v42  ;;  %v8627_v30 = vmul.u32.u64.low 3817748708, %v8588_v33  ;;  %v8628_v45 = vmul.u32.u64.high 3817748708, %v8588_v33, %v8627_v30  ;;  %1665 = vst [vmem:[#allocation2 + $0x6c] sm:$0xf] %v1499_v49 }
  0xf6   : > { %9840 = vst [vmem:[#allocation20_spill] sm:$0xff] %v9839_v14  ;;  %9843 = vst [vmem:[#allocation21_spill] sm:$0xff] %v9842_v42  ;;  %v1106_v19 = vsel %vm8618_vm14, %v1070_v11, 0.0  ;;  %v1107_v57 = vsel %vm8622_vm13, %v1071_v7, 0.0  ;;  %v6390_v48 = vunpack.c.h.bf16 %v8554_v28  ;;  %v8642_v51 = vadd.f32 %v8488_v37, %v994_v32  ;;  %v8651_v49 = vld [vmem:[%s7296_s11 + $0x80] sm:$0xff]  }
  0xf7   : > { %v6281_v43 = vpack.c.bf16 %v1106_v19, %v1106_v19  ;;  %v6282_v34 = vpack.c.bf16 %v1107_v57, %v1107_v57  ;;  %v8637_v53 = vmul.u32.u64.low 3817748708, %v267_v8  ;;  %v8638_v21 = vmul.u32.u64.high 3817748708, %v267_v8, %v8637_v53 }
  0xf8   : > { %v8645_v44 = vadd.s32 240, %v7224_v12  ;;  %v8648_v11 = vadd.s32 248, %v7224_v12  ;;  %v1500_v19 = vrot.slane %v1498_v16, 4  ;;  %v588_v57 = vshrl.u32 %v8628_v45, 4 }
  0xf9   : > { %v1502_v7 = vshrl.u32 %v6281_v43, 16  ;;  %v1505_v1 = vshll.u32 %v6281_v43, 16  ;;  %v1512_v25 = vshrl.u32 %v6282_v34, 16  ;;  %v1515_v30 = vshll.u32 %v6282_v34, 16 }
  0xfa   : > { %v8655_v53 = vmul.u32.u64.low 3817748708, %v8645_v44  ;;  %v8656_v36 = vmul.u32.u64.high 3817748708, %v8645_v44, %v8655_v53  ;;  %v995_v24 = vmul.f32 %v8376_v27, %v6389_v31  ;;  %v8662_v10 = vmul.f32 %v8376_v27, %v6390_v48 }
  0xfb   : > { %v1504_v32 = vrot.slane %v1502_v7, 6  ;;  %v1507_v5 = vrot.slane %v1505_v1, 7  ;;  %v1514_v43 = vrot.slane %v1512_v25, 6  ;;  %v1517_v34 = vrot.slane %v1515_v30, 7 }
  0xfc   : > { %v589_v9 = vmul.u32 18, %v588_v57  ;;  %v599_v16 = vshrl.u32 %v8638_v21, 4  ;;  %v2072_v45 = vshrl.u32 %v8579_v46, 16  ;;  %v8670_v7 = vld [vmem:[#allocation2 + $0x68] sm:$0xff]   ;;  %v6393_v1 = vunpack.c.l.bf16 %v8651_v49 }
  0xfd   : > { %v1508_v3 = vor.u32 %v1507_v5, %v1504_v32  ;;  %v8667_v55 = vmul.u32.u64.low 3817748708, %v8648_v11  ;;  %v8668_v53 = vmul.u32.u64.high 3817748708, %v8648_v11, %v8667_v55  ;;  %v8672_v28 = vor.u32 %v1517_v34, %v1514_v43  ;;  %v6968_v5 = vld [vmem:[#allocation2 + $0x68] sm:$0xff]  }
  0xfe   : > { %v590_v31 = vsub.s32 %v8588_v33, %v589_v9  ;;  %v600_v48 = vmul.u32 18, %v599_v16  ;;  %v9844_v25 = vrot.slane %v8611_v60, 1  ;;  %v9845_v21 = vrot.slane %v8520_v20, 1  ;;  %v8685_v9 = vld [vmem:[#allocation2 + $0x68] sm:$0xff]  }
  0xff   : > { %vm9846_vm3 = vcmask 1046528   ;;  %v1509_v30 = vsel %vm7505_vm7, %v1500_v19, %v1508_v3  ;;  %v1510_v55 = vrot.slane %v1508_v3, 4  ;;  %v610_v57 = vshrl.u32 %v8656_v36, 4 }
 0x100   : > { %v2311_v46 = vsel %vm9846_vm3, %v9845_v21, %v9844_v25  ;;  %v2513_v32 = vrot.slane %v8670_v7, 1  ;;  %1666 = vst [vmem:[#allocation2 + $0x70] sm:$0xf] %v1509_v30  ;;  %v601_v33 = vsub.s32 %v267_v8, %v600_v48  ;;  %vm698_vm10 = vcmp.ne.s32.totalorder %v590_v31, 0  ;;  %vm9850_vm0 = vmmov %vm9846_vm3 }
 0x101   : > { %vm734_vm12 = vcmp.lt.s32.totalorder %v590_v31, 0  ;;  %v2074_v43 = vor.u32 %v2072_v45, %v8590_v59  ;;  %v2076_v20 = vshll.u32 %v6968_v5, 16  ;;  %v1519_v34 = vsel %vm7505_vm7, %v1510_v55, %v8672_v28  ;;  %v6970_v45 = vld [vmem:[#allocation2 + $0x60] sm:$0xff]  }
 0x102   : > { %vm8691_vm1 = vmand %vm734_vm12, %vm698_vm10  ;;  %v1072_v3 = vmax.f32 %v8609_v29, 0.0  ;;  %v9849_v36 = vrot.slane %v8568_v22, 1  ;;  %1667 = vst [vmem:[#allocation2 + $0x74] sm:$0xf] %v1519_v34  ;;  %vm699_vm3 = vcmp.ne.s32.totalorder %v601_v33, 0  ;;  %vm735_vm13 = vcmp.lt.s32.totalorder %v601_v33, 0 }
 0x103   : > { %v806_v59 = vadd.s32 18, %v590_v31  ;;  %v2078_v16 = vrot.slane %v2076_v20, 1  ;;  %vm771_vm14 = vmand %vm735_vm13, %vm699_vm3  ;;  %v807_v48 = vadd.s32 18, %v601_v33  ;;  %v1073_v25 = vmax.f32 %v8642_v51, 0.0 }
 0x104   : > { %v2514_v8 = vsel %vm9850_vm0, %v9849_v36, %v2513_v32  ;;  %v6394_v21 = vunpack.c.h.bf16 %v8651_v49  ;;  %v9657_v29 = vrot.slane %v8685_v9, 1  ;;  %v611_v30 = vmul.u32 18, %v610_v57 }
 0x105   : > { %4883 = vmatprep.mubr.bf16.mxu0 %v2514_v8  ;;  %v842_v22 = vsel %vm8691_vm1, %v806_v59, %v590_v31  ;;  %v621_v55 = vshrl.u32 %v8668_v53, 4  ;;  %vm9851_vm10 = vsmask.f32 7424  ;;  %v2080_v36 = vshrl.u32 %v6968_v5, 16 }
 0x106   : > { %4884 = vmatmul.mubr.bf16.gmra.mrb[44].mxu0 %v2311_v46  ;;  %v2079_v34 = vsel %vm9851_vm10, %v2074_v43, %v2078_v16  ;;  %v843_v20 = vsel %vm771_vm14, %v807_v48, %v601_v33  ;;  %vm8708_vm12 = vcmp.lt.s32.totalorder %v842_v22, 16  ;;  %v9852_v8 = vmov 0 }
 0x107   : > { %v9853_v8 = vsel %vm8708_vm12, 4294967295, %v9852_v8  ;;  %4714 = vmatprep.mubr.bf16.mxu1 %v2079_v34  ;;  %vm8712_vm13 = vcmp.lt.s32.totalorder %v843_v20, 16  ;;  %v9855_v51 = vmov 0  ;;  %v1108_v49 = vsel %vm8708_vm12, %v1072_v3, 0.0 }
 0x108   : > { %9854 = vst [vmem:[#allocation22_spill] sm:$0xff] %v9853_v8  ;;  %v9856_v51 = vsel %vm8712_vm13, 4294967295, %v9855_v51  ;;  %v612_v31 = vsub.s32 %v8645_v44, %v611_v30  ;;  %v622_v46 = vmul.u32 18, %v621_v55  ;;  %4715 = vmatmul.mubr.bf16.gmra.mrb[48].mxu1 %v6970_v45  ;;  %v1109_v53 = vsel %vm8712_vm13, %v1073_v25, 0.0 }
 0x109   : > { %9857 = vst [vmem:[#allocation23_spill] sm:$0xff] %v9856_v51  ;;  %v6283_v5 = vpack.c.bf16 %v1108_v49, %v1108_v49  ;;  %v1520_v57 = vrot.slane %v8672_v28, 4  ;;  %v1038_v33 = vadd.f32 %v8488_v37, %v995_v24  ;;  %v6284_v43 = vpack.c.bf16 %v1109_v53, %v1109_v53  ;;  %v8724_v59 = vld [vmem:[#allocation2 + $0x70] sm:$0xff]  }
 0x10a   : > { %v623_v19 = vsub.s32 %v8648_v11, %v622_v46  ;;  %vm700_vm14 = vcmp.ne.s32.totalorder %v612_v31, 0  ;;  %vm736_vm1 = vcmp.lt.s32.totalorder %v612_v31, 0  ;;  %v9858_v44 = vrot.slane %v8611_v60, 1  ;;  %v8736_v48 = vld [vmem:[#allocation2 + $0x70] sm:$0xff]   ;;  %v8740_v60 = vld [vmem:[%s7296_s11 + $0x88] sm:$0xff]  }
 0x10b   : > { %v1522_v45 = vshrl.u32 %v6283_v5, 16  ;;  %v1039_v28 = vadd.f32 %v8488_v37, %v8662_v10  ;;  %v8734_v24 = vmul.f32 %v8376_v27, %v6393_v1  ;;  %v2082_v11 = vor.u32 %v2080_v36, %v2078_v16  ;;  %v6976_v36 = vld [vmem:[#allocation2 + $0x68] sm:$0xff]   ;;  %v8754_v53 = vld [vmem:[#allocation2 + $0x70] sm:$0xff]  }
 0x10c   : > { %v2313_v3 = vsel %vm9850_vm0, %v9858_v44, %v9657_v29  ;;  %v1525_v25 = vshll.u32 %v6283_v5, 16  ;;  %v1532_v22 = vshrl.u32 %v6284_v43, 16  ;;  %v1535_v30 = vshll.u32 %v6284_v43, 16  ;;  %vm8745_vm0 = vmand %vm736_vm1, %vm700_vm14 }
 0x10d   : > { %v9656_v55 = vrot.slane %v8724_v59, 1  ;;  %v1524_v34 = vrot.slane %v1522_v45, 6  ;;  %vm701_vm3 = vcmp.ne.s32.totalorder %v623_v19, 0  ;;  %vm737_vm10 = vcmp.lt.s32.totalorder %v623_v19, 0 }
 0x10e   : > { %v2084_v20 = vshll.u32 %v8736_v48, 16  ;;  %v1527_v49 = vrot.slane %v1525_v25, 7  ;;  %v1534_v10 = vrot.slane %v1532_v22, 6  ;;  %v1537_v46 = vrot.slane %v1535_v30, 7  ;;  %vm8761_vm14 = vmand %vm737_vm10, %vm701_vm3 }
 0x10f   : > { %vm9861_vm13 = vcmask 1046528   ;;  %v808_v5 = vadd.s32 18, %v612_v31  ;;  %v1074_v43 = vmax.f32 %v1038_v33, 0.0  ;;  %v998_v44 = vmul.f32 %v8376_v27, %v6394_v21 }
 0x110   : > { %v2516_v16 = vsel %vm9861_vm13, %v2513_v32, %v9656_v55  ;;  %v8757_v45 = vrot.slane %v2084_v20, 1  ;;  %v1528_v25 = vor.u32 %v1527_v49, %v1524_v34  ;;  %v1538_v22 = vor.u32 %v1537_v46, %v1534_v10  ;;  %v8772_v34 = vld [vmem:[%s9615_s3 + $0x200] sm:$0xff]  }
 0x111   : > { %4891 = vmatprep.mubr.bf16.mxu0 %v2516_v16  ;;  %v809_v7 = vadd.s32 18, %v623_v19  ;;  %v844_v32 = vsel %vm8745_vm0, %v808_v5, %v612_v31  ;;  %v1075_v55 = vmax.f32 %v1039_v28, 0.0  ;;  %v270_v33 = vadd.s32 256, %v7224_v12  ;;  %6549 = vmatprep.subr.bf16.mxu1 %v8772_v34 }
 0x112   : > { %4892 = vmatmul.mubr.bf16.gmra.mrb[48].mxu0 %v2313_v3  ;;  %v6397_v21 = vunpack.c.l.bf16 %v8740_v60  ;;  %vm9864_vm13 = vsmask.f32 7424  ;;  %v1529_v49 = vsel %vm7505_vm7, %v1520_v57, %v1528_v25  ;;  %v1530_v3 = vrot.slane %v1528_v25, 4 }
 0x113   : > { %v2087_v20 = vsel %vm9864_vm13, %v2082_v11, %v8757_v45  ;;  %v8779_v10 = vadd.s32 264, %v7224_v12  ;;  %1668 = vst [vmem:[#allocation2 + $0x78] sm:$0xf] %v1529_v49  ;;  %v2088_v28 = vshrl.u32 %v8736_v48, 16  ;;  %v845_v46 = vsel %vm8761_vm14, %v809_v7, %v623_v19 }
 0x114   : > { %4722 = vmatprep.mubr.bf16.mxu1 %v2087_v20  ;;  %vm8785_vm1 = vcmp.lt.s32.totalorder %v844_v32, 16  ;;  %v9865_v1 = vmov 0  ;;  %v1539_v57 = vsel %vm7505_vm7, %v1530_v3, %v1538_v22  ;;  %vm8792_vm3 = vcmp.lt.s32.totalorder %v845_v46, 16 }
 0x115   : > { %v9866_v1 = vsel %vm8785_vm1, 4294967295, %v9865_v1  ;;  %4723 = vmatmul.mubr.bf16.gmra.mrb[52].mxu1 %v6976_v36  ;;  %v9868_v11 = vmov 0  ;;  %v1110_v48 = vsel %vm8785_vm1, %v1074_v43, 0.0  ;;  %v272_v16 = vadd.s32 272, %v7224_v12  ;;  %1669 = vst [vmem:[#allocation2 + $0x7c] sm:$0xf] %v1539_v57 }
 0x116   : > { %9867 = vst [vmem:[#allocation24_spill] sm:$0xff] %v9866_v1  ;;  %v9869_v11 = vsel %vm8792_vm3, 4294967295, %v9868_v11  ;;  %v1111_v19 = vsel %vm8792_vm3, %v1075_v55, 0.0  ;;  %v6285_v5 = vpack.c.bf16 %v1110_v48, %v1110_v48  ;;  %v8809_v20 = vadd.s32 280, %v7224_v12 }
 0x117   : > { %9870 = vst [vmem:[#allocation25_spill] sm:$0xff] %v9869_v11  ;;  %v8801_v25 = vmul.u32.u64.low 3817748708, %v270_v33  ;;  %v8802_v30 = vmul.u32.u64.high 3817748708, %v270_v33, %v8801_v25  ;;  %v6286_v7 = vpack.c.bf16 %v1111_v19, %v1111_v19  ;;  %v1040_v12 = vadd.f32 %v8488_v37, %v8734_v24 }
 0x118   : > { %v8805_v36 = vmul.u32.u64.low 3817748708, %v8779_v10  ;;  %v8806_v32 = vmul.u32.u64.high 3817748708, %v8779_v10, %v8805_v36  ;;  %v1542_v49 = vshrl.u32 %v6285_v5, 16  ;;  %v1545_v43 = vshll.u32 %v6285_v5, 16 }
 0x119   : > { %v8811_v3 = vmul.u32.u64.low 3817748708, %v272_v16  ;;  %v8812_v46 = vmul.u32.u64.high 3817748708, %v272_v16, %v8811_v3  ;;  %v1552_v57 = vshrl.u32 %v6286_v7, 16  ;;  %v1555_v29 = vshll.u32 %v6286_v7, 16 }
 0x11a   : > { %v8815_v55 = vmul.u32.u64.low 3817748708, %v8809_v20  ;;  %v8816_v48 = vmul.u32.u64.high 3817748708, %v8809_v20, %v8815_v55  ;;  %v1540_v25 = vrot.slane %v1538_v22, 4  ;;  %v1544_v19 = vrot.slane %v1542_v49, 6 }
 0x11b   : > { %v1547_v31 = vrot.slane %v1545_v43, 7  ;;  %v632_v23 = vshrl.u32 %v8802_v30, 4  ;;  %v1554_v36 = vrot.slane %v1552_v57, 6  ;;  %v1557_v51 = vrot.slane %v1555_v29, 7 }
 0x11c   : > { %v1041_v5 = vadd.f32 %v8488_v37, %v998_v44  ;;  %v643_v7 = vshrl.u32 %v8806_v32, 4  ;;  %v6398_v8 = vunpack.c.h.bf16 %v8740_v60  ;;  %v8824_v1 = vld [vmem:[#allocation2 + $0x78] sm:$0xff]   ;;  %v9871_v22 = vrot.slane %v8754_v53, 1 }
 0x11d   : > { %v1548_v11 = vor.u32 %v1547_v31, %v1544_v19  ;;  %v633_v3 = vmul.u32 18, %v632_v23  ;;  %v9872_v49 = vrot.slane %v8685_v9, 1  ;;  %vm9873_vm10 = vcmask 1046528   ;;  %v6981_v31 = vld [vmem:[#allocation2 + $0x78] sm:$0xff]  }
 0x11e   : > { %v8831_v29 = vor.u32 %v1557_v51, %v1554_v36  ;;  %v654_v24 = vshrl.u32 %v8812_v46, 4  ;;  %v999_v44 = vmul.f32 %v8376_v27, %v6397_v21  ;;  %v8837_v60 = vld [vmem:[#allocation2 + $0x78] sm:$0xff]   ;;  %v644_v57 = vmul.u32 18, %v643_v7  ;;  %vm9875_vm0 = vmmov %vm9873_vm10 }
 0x11f   : > { %v2315_v30 = vsel %vm9873_vm10, %v9872_v49, %v9871_v22  ;;  %v1549_v23 = vsel %vm7505_vm7, %v1540_v25, %v1548_v11  ;;  %v1550_v32 = vrot.slane %v1548_v11, 4  ;;  %v634_v43 = vsub.s32 %v270_v33, %v633_v3 }
 0x120   : > { %v2517_v55 = vrot.slane %v8824_v1, 1  ;;  %v2090_v9 = vor.u32 %v2088_v28, %v8757_v45  ;;  %1670 = vst [vmem:[#allocation2 + $0x80] sm:$0xf] %v1549_v23  ;;  %v1076_v51 = vmax.f32 %v1040_v12, 0.0  ;;  %v655_v19 = vmul.u32 18, %v654_v24  ;;  %v6983_v12 = vld [vmem:[#allocation2 + $0x70] sm:$0xff]  }
 0x121   : > { %v2092_v36 = vshll.u32 %v6981_v31, 16  ;;  %v1559_v21 = vsel %vm7505_vm7, %v1550_v32, %v8831_v29  ;;  %v1077_v46 = vmax.f32 %v1041_v5, 0.0  ;;  %v1000_v25 = vmul.f32 %v8376_v27, %v6398_v8 }
 0x122   : > { %v9874_v33 = vrot.slane %v8724_v59, 1  ;;  %1671 = vst [vmem:[#allocation2 + $0x84] sm:$0xf] %v1559_v21  ;;  %v645_v45 = vsub.s32 %v8779_v10, %v644_v57  ;;  %vm702_vm14 = vcmp.ne.s32.totalorder %v634_v43, 0  ;;  %vm738_vm13 = vcmp.lt.s32.totalorder %v634_v43, 0 }
 0x123   : > { %v2094_v28 = vrot.slane %v2092_v36, 1  ;;  %v2316_v3 = vrot.slane %v8837_v60, 1  ;;  %vm774_vm10 = vmand %vm738_vm13, %vm702_vm14  ;;  %v810_v5 = vadd.s32 18, %v634_v43  ;;  %v656_v7 = vsub.s32 %v272_v16, %v655_v19 }
 0x124   : > { %v2518_v11 = vsel %vm9875_vm0, %v9874_v33, %v2517_v55  ;;  %vm703_vm3 = vcmp.ne.s32.totalorder %v645_v45, 0  ;;  %vm739_vm12 = vcmp.lt.s32.totalorder %v645_v45, 0  ;;  %v811_v27 = vadd.s32 18, %v645_v45 }
 0x125   : > { %4899 = vmatprep.mubr.bf16.mxu0 %v2518_v11  ;;  %v665_v8 = vshrl.u32 %v8816_v48, 4  ;;  %vm9876_vm0 = vsmask.f32 7424  ;;  %v2096_v22 = vshrl.u32 %v6981_v31, 16  ;;  %vm775_vm1 = vmand %vm739_vm12, %vm703_vm3  ;;  %v846_v10 = vsel %vm774_vm10, %v810_v5, %v634_v43 }
 0x126   : > { %4900 = vmatmul.mubr.bf16.gmra.mrb[52].mxu0 %v2315_v30  ;;  %v2095_v59 = vsel %vm9876_vm0, %v2090_v9, %v2094_v28  ;;  %vm704_vm9 = vcmp.ne.s32.totalorder %v656_v7, 0  ;;  %v847_v49 = vsel %vm775_vm1, %v811_v27, %v645_v45  ;;  %vm8854_vm15 = vcmp.lt.s32.totalorder %v846_v10, 16  ;;  %v6990_v10 = vld [vmem:[#allocation2 + $0x78] sm:$0xff]  }
 0x127   : > { %4730 = vmatprep.mubr.bf16.mxu1 %v2095_v59  ;;  %v9877_v24 = vmov 0  ;;  %v666_v23 = vmul.u32 18, %v665_v8  ;;  %vm740_vm14 = vcmp.lt.s32.totalorder %v656_v7, 0  ;;  %vm8858_vm13 = vcmp.lt.s32.totalorder %v847_v49, 16 }
 0x128   : > { %v9878_v24 = vsel %vm8854_vm15, 4294967295, %v9877_v24  ;;  %4731 = vmatmul.mubr.bf16.gmra.mrb[56].mxu1 %v6983_v12  ;;  %v9880_v16 = vmov 0  ;;  %v1112_v48 = vsel %vm8854_vm15, %v1076_v51, 0.0  ;;  %v1113_v30 = vsel %vm8858_vm13, %v1077_v46, 0.0  ;;  %vm8867_vm12 = vmand %vm740_vm14, %vm704_vm9 }
 0x129   : > { %9879 = vst [vmem:[#allocation26_spill] sm:$0xff] %v9878_v24  ;;  %v9881_v16 = vsel %vm8858_vm13, 4294967295, %v9880_v16  ;;  %v6287_v31 = vpack.c.bf16 %v1112_v48, %v1112_v48  ;;  %v667_v32 = vsub.s32 %v8809_v20, %v666_v23  ;;  %v812_v57 = vadd.s32 18, %v656_v7  ;;  %v8871_v9 = vld [vmem:[#allocation2 + $0x80] sm:$0xff]   ;;  %v7052_v24 = vld [vmem:[#allocation2 + $0x58] sm:$0xff]  }
 0x12a   : > { %9882 = vst [vmem:[#allocation27_spill] sm:$0xff] %v9881_v16  ;;  %v6288_v19 = vpack.c.bf16 %v1113_v30, %v1113_v30  ;;  %v1560_v36 = vrot.slane %v8831_v29, 4  ;;  %v1042_v21 = vadd.f32 %v8488_v37, %v999_v44  ;;  %v1043_v51 = vadd.f32 %v8488_v37, %v1000_v25  ;;  %v8881_v33 = vld [vmem:[#allocation2 + $0x80] sm:$0xff]  }
 0x12b   : > { %v9885_v46 = vrot.slane %v8754_v53, 1  ;;  %vm9886_vm1 = vcmask 1046528   ;;  %v2098_v11 = vor.u32 %v2096_v22, %v2094_v28  ;;  %v1562_v45 = vshrl.u32 %v6287_v31, 16  ;;  %v1127_v53 = vld [vmem:[#allocation2 + $0x98] sm:$0xe]  ;;  %v6997_v13 = vld [vmem:[#allocation2 + $0x80] sm:$0xff]  }
 0x12c   : > { %v1565_v12 = vshll.u32 %v6287_v31, 16  ;;  %v2519_v5 = vrot.slane %v8871_v9, 1  ;;  %v1572_v27 = vshrl.u32 %v6288_v19, 16  ;;  %v1575_v8 = vshll.u32 %v6288_v19, 16  ;;  %vm9887_vm3 = vmmov %vm9886_vm1  ;;  %v7017_v9 = vld [vmem:[#allocation2 + $0x48] sm:$0xff]  }
 0x12d   : > { %v2317_v20 = vsel %vm9886_vm1, %v9885_v46, %v2316_v3  ;;  %v848_v29 = vsel %vm8867_vm12, %v812_v57, %v656_v7  ;;  %v2100_v37 = vshll.u32 %v8881_v33, 16  ;;  %v1564_v44 = vrot.slane %v1562_v45, 6 }
 0x12e   : > { %v1567_v25 = vrot.slane %v1565_v12, 7  ;;  %vm705_vm9 = vcmp.ne.s32.totalorder %v667_v32, 0  ;;  %v2520_v28 = vsel %vm9887_vm3, %v2517_v55, %v2519_v5  ;;  %v1574_v59 = vrot.slane %v1572_v27, 6 }
 0x12f   : > { %v1577_v22 = vrot.slane %v1575_v8, 7  ;;  %v1078_v49 = vmax.f32 %v1042_v21, 0.0  ;;  %4907 = vmatprep.mubr.bf16.mxu0 %v2520_v28  ;;  %v2102_v23 = vrot.slane %v2100_v37, 1  ;;  %vm741_vm10 = vcmp.lt.s32.totalorder %v667_v32, 0  ;;  %v7010_v8 = vld [vmem:[#allocation2 + $0x38] sm:$0xff]  }
 0x130   : > { %v1568_v48 = vor.u32 %v1567_v25, %v1564_v44  ;;  %4908 = vmatmul.mubr.bf16.gmra.mrb[56].mxu0 %v2317_v20  ;;  %vm777_vm0 = vmand %vm741_vm10, %vm705_vm9  ;;  %v813_v30 = vadd.s32 18, %v667_v32  ;;  %vm8892_vm14 = vcmp.lt.s32.totalorder %v848_v29, 16  ;;  %v9888_v31 = vmov 0 }
 0x131   : > { %v1578_v7 = vor.u32 %v1577_v22, %v1574_v59  ;;  %v9889_v31 = vsel %vm8892_vm14, 4294967295, %v9888_v31  ;;  %v1079_v43 = vmax.f32 %v1043_v51, 0.0  ;;  %vm9891_vm12 = vsmask.f32 7424  ;;  %v7011_v59 = vld [vmem:[#allocation2 + $0x40] sm:$0xff]   ;;  %vm9896_vm9 = vmmov %vm9887_vm3 }
 0x132   : > { %9890 = vst [vmem:[#allocation28_spill] sm:$0xff] %v9889_v31  ;;  %v2103_v1 = vsel %vm9891_vm12, %v2098_v11, %v2102_v23  ;;  %v1569_v55 = vsel %vm7505_vm7, %v1560_v36, %v1568_v48  ;;  %v1570_v57 = vrot.slane %v1568_v48, 4  ;;  %v849_v19 = vsel %vm777_vm0, %v813_v30, %v667_v32  ;;  %v8909_v36 = vld [vmem:[#allocation2 + $0x80] sm:$0xff]   ;;  %vm9898_vm10 = vmmov %vm9887_vm3 }
 0x133   : > { %4738 = vmatprep.mubr.bf16.mxu1 %v2103_v1  ;;  %1672 = vst [vmem:[#allocation2 + $0x88] sm:$0xf] %v1569_v55  ;;  %v1114_v21 = vsel %vm8892_vm14, %v1078_v49, 0.0  ;;  %v1128_v46 = vsel %vm7485_vm6, 0, %v1127_v53  ;;  %vm8905_vm1 = vcmp.lt.s32.totalorder %v849_v19, 16  ;;  %v9892_v51 = vmov 0  ;;  %vm9895_vm6 = vmmov %vm9887_vm3 }
 0x134   : > { %v1579_v20 = vsel %vm7505_vm7, %v1570_v57, %v1578_v7  ;;  %4739 = vmatmul.mubr.bf16.gmra.mrb[60].mxu1 %v6990_v10  ;;  %v9893_v51 = vsel %vm8905_vm1, 4294967295, %v9892_v51  ;;  %v6289_v11 = vpack.c.bf16 %v1114_v21, %v1114_v21  ;;  %1129 = vst [vmem:[#allocation2 + $0x98] sm:$0xe] %v1128_v46  ;;  %v1115_v32 = vsel %vm8905_vm1, %v1079_v43, 0.0 }
 0x135   : > { %9894 = vst [vmem:[#allocation29_spill] sm:$0xff] %v9893_v51  ;;  %1673 = vst [vmem:[#allocation2 + $0x8c] sm:$0xf] %v1579_v20  ;;  %v6290_v45 = vpack.c.bf16 %v1115_v32, %v1115_v32  ;;  %v1580_v27 = vrot.slane %v1578_v7, 4  ;;  %v2318_v53 = vrot.slane %v8909_v36, 1  ;;  %v2104_v28 = vshrl.u32 %v8881_v33, 16 }
 0x136   : > { %v1582_v12 = vshrl.u32 %v6289_v11, 16  ;;  %v1585_v39 = vshll.u32 %v6289_v11, 16  ;;  %v3483_v48 = vshrl.u32 %v7010_v8, 16  ;;  %v3486_v30 = vshll.u32 %v7010_v8, 16 }
 0x137   : > { %v1592_v44 = vshrl.u32 %v6290_v45, 16  ;;  %v1595_v25 = vshll.u32 %v6290_v45, 16  ;;  %v3492_v21 = vshrl.u32 %v7011_v59, 16  ;;  %v3495_v11 = vshll.u32 %v7011_v59, 16 }
 0x138   : > { %v1584_v29 = vrot.slane %v1582_v12, 6  ;;  %v1587_v37 = vrot.slane %v1585_v39, 7  ;;  %v2319_v36 = vsel %vm9895_vm6, %v2316_v3, %v2318_v53  ;;  %v2106_v32 = vor.u32 %v2104_v28, %v2102_v23 }
 0x139   : > { %v1594_v10 = vrot.slane %v1592_v44, 6  ;;  %v1597_v49 = vrot.slane %v1595_v25, 7  ;;  %v3485_v60 = vrot.slane %v3483_v48, 2  ;;  %v3494_v3 = vrot.slane %v3492_v21, 2 }
 0x13a   : > { %v1588_v22 = vor.u32 %v1587_v37, %v1584_v29  ;;  %v3488_v29 = vrot.slane %v3486_v30, 3  ;;  %v3497_v23 = vrot.slane %v3495_v11, 3  ;;  %vm3030_vm6 = vcmask 1045504  }
 0x13b   : > { %v1598_v55 = vor.u32 %v1597_v49, %v1594_v10  ;;  %v1676_v19 = vld [vmem:[#allocation2 + $0x98] sm:$0x3]  ;;  %v7013_v10 = vld [vmem:[#allocation2 + $0x10] sm:$0xff]   ;;  %v2787_v16 = vshll.u32 %v7052_v24, 16 }
 0x13c   : > { %v6989_v43 = vld [vmem:[#allocation2 + $0x88] sm:$0xff]   ;;  %v1589_v1 = vsel %vm7505_vm7, %v1580_v27, %v1588_v22  ;;  %v1590_v7 = vrot.slane %v1588_v22, 4  ;;  %v8931_v28 = vor.u32 %v3488_v29, %v3485_v60  ;;  %v3498_v59 = vor.u32 %v3497_v23, %v3494_v3  ;;  %v7021_v29 = vld [vmem:[#allocation2 + $0x50] sm:$0xff]  }
 0x13d   : > { %v6994_v57 = vld [vmem:[#allocation2 + $0x88] sm:$0xff]   ;;  %1674 = vst [vmem:[#allocation2 + $0x90] sm:$0xf] %v1589_v1  ;;  %v2521_v46 = vrot.slane %v6989_v43, 1  ;;  %v1600_v20 = vrot.slane %v1598_v55, 4  ;;  %v3501_v43 = vshrl.u32 %v7017_v9, 16 }
 0x13e   : > { %v1599_v33 = vsel %vm7505_vm7, %v1590_v7, %v1598_v55  ;;  %v2108_v45 = vshll.u32 %v6994_v57, 16  ;;  %v8927_v8 = vld [vmem:[#allocation2 + $0x88] sm:$0xff]   ;;  %vm9897_vm7 = vmmov %vm9891_vm12  ;;  %v2112_v44 = vshrl.u32 %v6994_v57, 16  ;;  %v3504_v1 = vshll.u32 %v7017_v9, 16 }
 0x13f   : > { %1675 = vst [vmem:[#allocation2 + $0x94] sm:$0xf] %v1599_v33  ;;  %v2522_v12 = vsel %vm9896_vm9, %v2519_v5, %v2521_v46  ;;  %v1677_v39 = vsel %vm7350_vm2, %v1600_v20, %v1676_v19  ;;  %v2320_v50 = vrot.slane %v8927_v8, 1  ;;  %vm3437_vm2 = vsmask.f32 5376  ;;  %v7003_v30 = vld [vmem:[#allocation2 + $0x88] sm:$0xff]   ;;  %vm9899_vm0 = vmmov %vm9897_vm7 }
 0x140   : > { %4915 = vmatprep.mubr.bf16.mxu0 %v2522_v12  ;;  %v2110_v27 = vrot.slane %v2108_v45, 1  ;;  %1678 = vst [vmem:[#allocation2 + $0x98] sm:$0x3] %v1677_v39  ;;  %v7012_v22 = vld [vmem:[#allocation2 + $0x8] sm:$0xfe]   ;;  %v8933_v19 = vld [vmem:[#allocation2 + $0x10] sm:$0xff]   ;;  %v3499_v39 = vsel %vm3437_vm2, %v8931_v28, %v3498_v59  ;;  %vm9900_vm12 = vmmov %vm9887_vm3 }
 0x141   : > { %4916 = vmatmul.mubr.bf16.gmra.mrb[60].mxu0 %v2319_v36  ;;  %v7008_v57 = vld [vmem:[#allocation2 + $0x8] sm:$0xfc]   ;;  %v2321_v21 = vsel %vm9887_vm3, %v2318_v53, %v2320_v50  ;;  %v8939_v45 = vld [vmem:[#allocation2 + $0x40] sm:$0xff]   ;;  %v2695_v8 = vshrl.u32 %v7012_v22, 16  ;;  %v2698_v60 = vshll.u32 %v7012_v22, 16  ;;  %v2706_v23 = vshll.u32 %v7013_v10, 16  ;;  %vm9901_vm9 = vmmov %vm9887_vm3 }
 0x142   : > { %v2111_v37 = vsel %vm9897_vm7, %v2106_v32, %v2110_v27  ;;  %v2114_v49 = vor.u32 %v2112_v44, %v2110_v27  ;;  %v8937_v32 = vld [vmem:[#allocation2 + $0x38] sm:$0xff]   ;;  %v3503_v27 = vrot.slane %v3501_v43, 2  ;;  %v3032_v44 = vrot.slane %v8933_v19, 2 }
 0x143   : > { %4746 = vmatprep.mubr.bf16.mxu1 %v2111_v37  ;;  %v3031_v37 = vrot.slane %v7008_v57, 2  ;;  %v9668_v9 = vrot.slane %v8937_v32, 2  ;;  %v2700_v43 = vrot.slane %v2698_v60, 2  ;;  %v3510_v22 = vshrl.u32 %v7021_v29, 16  ;;  %v8953_v19 = vld [vmem:[#allocation2 + $0x18] sm:$0xff]  }
 0x144   : > { %4747 = vmatmul.mubr.bf16.gmra.mrb[64].mxu1 %v6997_v13  ;;  %v7001_v5 = vld [vmem:[#allocation2 + $0x90] ss:$0 sps:$4 sm:$0x11]   ;;  %v3506_v13 = vrot.slane %v3504_v1, 3  ;;  %v3513_v1 = vshll.u32 %v7021_v29, 16  ;;  %v2789_v51 = vrot.slane %v2787_v16, 2 }
 0x145   : > { %v2116_v48 = vshll.u32 %v7001_v5, 16  ;;  %v7004_v20 = vld [vmem:[#allocation2 + $0x90] ss:$0 sps:$4 sm:$0x11]   ;;  %v3245_v5 = vrot.slane %v8939_v45, 2  ;;  %vm3774_vm3 = vcmask 1044480  }
 0x146   : > { %v6995_v25 = vld [vmem:[#allocation2 + $0x90] sm:$0xff]   ;;  %v2322_v3 = vrot.slane %v7004_v20, 1  ;;  %v7025_v20 = vld [vmem:[#allocation2 + $0x58] sm:$0xff]   ;;  %vm2693_vm7 = vsmask.f32 6400 }
 0x147   : > { %v2523_v7 = vrot.slane %v6995_v25, 1  ;;  %v7002_v55 = vld [vmem:[#allocation2 + $0x98] ss:$0 sps:$4 sm:$0x11]   ;;  %v2118_v33 = vrot.slane %v2116_v48, 1  ;;  %v3507_v25 = vor.u32 %v3506_v13, %v3503_v27  ;;  %v2697_v48 = vrot.slane %v2695_v8, 1 }
 0x148   : > { %v2525_v36 = vrot.slane %v7002_v55, 1  ;;  %v2708_v55 = vrot.slane %v2706_v23, 2  ;;  %v3246_v57 = vsel %vm3030_vm6, %v9668_v9, %v3245_v5  ;;  %v3034_v13 = vrot.slane %v8953_v19, 2  ;;  %v7047_v9 = vld [vmem:[#allocation2 + $0x50] sm:$0xff]  }
 0x149   : > { %v2524_v11 = vsel %vm9898_vm10, %v2521_v46, %v2523_v7  ;;  %v2119_v12 = vsel %vm9899_vm0, %v2114_v49, %v2118_v33  ;;  %v2703_v46 = vshrl.u32 %v7013_v10, 16  ;;  %v7018_v49 = vld [vmem:[#allocation2 + $0x18] sm:$0xff]   ;;  %v3033_v10 = vsel %vm3030_vm6, %v3031_v37, %v3032_v44  ;;  %v8968_v37 = vld [vmem:[#allocation2 + $0x20] sm:$0xff]  }
 0x14a   : > { %4923 = vmatprep.mubr.bf16.mxu0 %v2524_v11  ;;  %4754 = vmatprep.mubr.bf16.mxu1 %v2119_v12  ;;  %v2526_v53 = vsel %vm9900_vm12, %v2523_v7, %v2525_v36  ;;  %v2323_v7 = vsel %vm9901_vm9, %v2320_v50, %v2322_v3  ;;  %v3508_v33 = vsel %vm3437_vm2, %v3498_v59, %v3507_v25  ;;  %v7049_v11 = vld [vmem:[%s9615_s3 + $0x208] sm:$0xff]   ;;  %v3512_v50 = vrot.slane %v3510_v22, 2  ;;  %v7029_v22 = vld [vmem:[#allocation2 + $0x60] sm:$0xff]   ;;  %v7091_v40 = vld [vmem:[#allocation2 + $0x98] ss:$0 sps:$4 sm:$0x33]  }
 0x14b   : > { %4924 = vmatmul.mubr.bf16.gmra.mrb[64].mxu0 %v2321_v21  ;;  %v8955_v21 = vld [vmem:[#allocation2 + $0x48] sm:$0xff]   ;;  %v3515_v36 = vrot.slane %v3513_v1, 3  ;;  %v2701_v45 = vor.u32 %v2700_v43, %v2697_v48  ;;  %v2715_v27 = vshll.u32 %v7018_v49, 16  ;;  %v3519_v60 = vshrl.u32 %v7025_v20, 16  ;;  %v7059_v1 = vld [vmem:[%s9615_s3 + $0x218] sm:$0xff]  }
 0x14c   : > { %4931 = vmatprep.mubr.bf16.mxu0 %v2526_v53  ;;  %4755 = vmatmul.mubr.bf16.gmra.mrb[68].mxu1 %v7003_v30  ;;  %v2705_v30 = vrot.slane %v2703_v46, 1  ;;  %v3247_v59 = vrot.slane %v8955_v21, 2  ;;  %v7058_v53 = vld [vmem:[%s9615_s3 + $0x210] sm:$0xff]   ;;  %v3522_v46 = vshll.u32 %v7025_v20, 16  ;;  %v3035_v48 = vsel %vm3030_vm6, %v3032_v44, %v3034_v13  ;;  %v7115_v44 = vld [vmem:[%s9615_s3 + $0x180] sm:$0xff]  }
 0x14d   : > { %5189 = vmatprep.mubr.bf16.mxu1 %v3499_v39  ;;  %v2712_v39 = vshrl.u32 %v7018_v49, 16  ;;  %v3516_v8 = vor.u32 %v3515_v36, %v3512_v50  ;;  %v2717_v23 = vrot.slane %v2715_v27, 2  ;;  %v7022_v49 = vld [vmem:[#allocation2 + $0x20] sm:$0xff]   ;;  %v9902_v19 = vmov 0   ;;  %v7116_v27 = vld [vmem:[%s9615_s3 + $0x188] sm:$0xff]  }
 0x14e   : > { %v2709_v12 = vor.u32 %v2708_v55, %v2705_v30  ;;  %v3248_v43 = vsel %vm3030_vm6, %v3245_v5, %v3247_v59  ;;  %v3521_v30 = vrot.slane %v3519_v60, 2  ;;  %v3524_v55 = vrot.slane %v3522_v46, 3 }
 0x14f   : > { %v2714_v3 = vrot.slane %v2712_v39, 1  ;;  %v2724_v5 = vshll.u32 %v7022_v49, 16  ;;  %v3036_v21 = vrot.slane %v8968_v37, 2  ;;  %v3528_v50 = vshrl.u32 %v7029_v22, 16 }
 0x150   : > { %v2710_v29 = vsel %vm2693_vm7, %v2701_v45, %v2709_v12  ;;  %v3525_v20 = vor.u32 %v3524_v55, %v3521_v30  ;;  %v3531_v36 = vshll.u32 %v7029_v22, 16  ;;  %v7064_v45 = vld [vmem:[%s9615_s3 + $0x220] sm:$0xff]   ;;  %vm9920_vm10 = vnez %v9777_v52 }
 0x151   : > { %v3037_v46 = vsel %vm3030_vm6, %v3034_v13, %v3036_v21 }
 0x152   : > { %v3526_v37 = vsel %vm3437_vm2, %v3516_v8, %v3525_v20 }
 0x153   : > { %4932 = vmatmul.mubr.bf16.gmra.mrb[68].mxu0 %v2323_v7  ;;  %v3517_v7 = vsel %vm3437_vm2, %v3507_v25, %v3516_v8  ;;  %v8984_v25 = vld [vmem:[#allocation2 + $0x28] sm:$0xff]  }
 0x154   : > { %4972 = vmatprep.mubr.bf16.mxu0 %v3033_v10  ;;  %5190 = vmatmul.mubr.bf16.vlgmr.msra.gmra.mrb[72].mxu1 %v3246_v57  ;;  %v2718_v10 = vor.u32 %v2717_v23, %v2714_v3  ;;  %v2721_v57 = vshrl.u32 %v7022_v49, 16  ;;  %v7033_v23 = vld [vmem:[#allocation2 + $0x68] sm:$0xff]   ;;  %v3530_v49 = vrot.slane %v3528_v50, 2  ;;  %v3038_v22 = vrot.slane %v8984_v25, 2 }
 0x155   : > { %5197 = vmatprep.mubr.bf16.mxu1 %v3508_v33  ;;  %6550 = vmatpush3.bf16.msra.mxu1 %v8772_v34  ;;  %v8971_v34 = vld [vmem:[#allocation2 + $0x50] sm:$0xff]   ;;  %v3537_v55 = vshrl.u32 %v7033_v23, 16 }
 0x156   : > { %6551 = vmatprep.subr.bf16.mxu1 %v7049_v11  ;;  %v3249_v33 = vrot.slane %v8971_v34, 2  ;;  %v2719_v39 = vsel %vm2693_vm7, %v2709_v12, %v2718_v10  ;;  %v2723_v60 = vrot.slane %v2721_v57, 1  ;;  %v7065_v12 = vld [vmem:[%s9615_s3 + $0x228] sm:$0xff]   ;;  %v7117_v34 = vld [vmem:[%s9615_s3 + $0x190] sm:$0xff]  }
 0x157   : > { %v7070_v57 = vld [vmem:[%s9615_s3 + $0x230] sm:$0xff]  }
 0x158   : > { %v3250_v3 = vsel %vm3030_vm6, %v3247_v59, %v3249_v33 }
 0x159   : > { %6552 = vmatpush3.bf16.msra.mxu1 %v7049_v11  ;;  %v7026_v11 = vld [vmem:[#allocation2 + $0x28] sm:$0xff]  }
 0x15a   : > { %6553 = vmatprep.subr.bf16.mxu1 %v7058_v53  ;;  %v2730_v59 = vshrl.u32 %v7026_v11, 16 }
 0x15b   : > { %4973 = vmatmul.mubr.bf16.vlgmr.msra.gmra.mrb[0].mxu0 %v2710_v29  ;;  %v8995_v29 = vld [vmem:[#allocation2 + $0x58] sm:$0xff]  }
 0x15c   : > { %5118 = vmatpush1.bf16.msra.mxu0 %v7115_v44  ;;  %4980 = vmatprep.mubr.bf16.mxu0 %v3035_v48  ;;  %v3533_v48 = vrot.slane %v3531_v36, 3  ;;  %v3251_v8 = vrot.slane %v8995_v29, 2  ;;  %v3540_v44 = vshll.u32 %v7033_v23, 16  ;;  %v7118_v36 = vld [vmem:[%s9615_s3 + $0x198] sm:$0xff]   ;;  %v3539_v23 = vrot.slane %v3537_v55, 2 }
 0x15d   : > { %5198 = vmatmul.mubr.bf16.gmra.mrb[76].mxu1 %v3248_v43  ;;  %5119 = vmatprep.subr.bf16.mxu0 %v9902_v19  ;;  %v2733_v43 = vshll.u32 %v7026_v11, 16  ;;  %v2732_v11 = vrot.slane %v2730_v59, 1  ;;  %v7071_v29 = vld [vmem:[%s9615_s3 + $0x238] sm:$0xff]  }
 0x15e   : > { %5205 = vmatprep.mubr.bf16.mxu1 %v3517_v7  ;;  %6554 = vmatpush3.bf16.msra.mxu1 %v7058_v53  ;;  %v2726_v53 = vrot.slane %v2724_v5, 2  ;;  %v3534_v30 = vor.u32 %v3533_v48, %v3530_v49  ;;  %v7034_v55 = vld [vmem:[#allocation2 + $0x38] sm:$0xff]  }
 0x15f   : > { %6555 = vmatprep.subr.bf16.mxu1 %v7059_v1  ;;  %v2735_v50 = vrot.slane %v2733_v43, 2 }
 0x160   : > { %5120 = vmatpush1.bf16.msra.mxu0 %v7116_v27  ;;  %v2727_v13 = vor.u32 %v2726_v53, %v2723_v60  ;;  %v3039_v27 = vsel %vm3030_vm6, %v3036_v21, %v3038_v22  ;;  %v9020_v60 = vld [vmem:[#allocation2 + $0x30] sm:$0xff]   ;;  %v9022_v53 = vld [vmem:[#allocation2 + $0x60] sm:$0xff]  }
 0x161   : > { %5121 = vmatprep.subr.bf16.mxu0 %v9902_v19  ;;  %v2736_v21 = vor.u32 %v2735_v50, %v2732_v11  ;;  %v3253_v59 = vrot.slane %v9022_v53, 2  ;;  %v9049_v53 = vld [vmem:[#allocation2 + $0x68] sm:$0xff]  }
 0x162   : > { %6556 = vmatpush3.bf16.msra.mxu1 %v7059_v1  ;;  %v9007_v1 = vpop.f32.mrb[0].mxu1  ;;  %v2728_v25 = vsel %vm2693_vm7, %v2718_v10, %v2727_v13  ;;  %v7037_v10 = vld [vmem:[#allocation2 + $0x70] sm:$0xff]  }
 0x163   : > { %4981 = vmatmul.mubr.bf16.gmra.mrb[4].mxu0 %v2719_v39  ;;  %6557 = vmatprep.subr.bf16.mxu1 %v7064_v45  ;;  %9903 = vst [vmem:[#allocation30_spill] sm:$0xff] %v9007_v1  ;;  %v4622_v7 = vpop.f32.mrb[1].mxu1  ;;  %v2737_v50 = vsel %vm2693_vm7, %v2727_v13, %v2736_v21 }
 0x164   : > { %4988 = vmatprep.mubr.bf16.mxu0 %v3037_v46  ;;  %5122 = vmatpush1.bf16.msra.mxu0 %v7117_v34  ;;  %v9013_v5 = vpop.f32.mrb[2].mxu1  ;;  %v3252_v46 = vsel %vm3030_vm6, %v3249_v33, %v3251_v8  ;;  %v7119_v33 = vld [vmem:[%s9615_s3 + $0x1a0] sm:$0xff]   ;;  %v3040_v34 = vrot.slane %v9020_v60, 2  ;;  %v3254_v60 = vsel %vm3030_vm6, %v3251_v8, %v3253_v59 }
 0x165   : > { %5206 = vmatmul.mubr.bf16.gmra.mrb[80].mxu1 %v3250_v3  ;;  %5123 = vmatprep.subr.bf16.mxu0 %v9902_v19  ;;  %9904 = vst [vmem:[#allocation31_spill] sm:$0xff] %v9013_v5  ;;  %v4625_v39 = vpop.f32.mrb[3].mxu1  ;;  %v3535_v3 = vsel %vm3437_vm2, %v3525_v20, %v3534_v30 }
 0x166   : > { %5213 = vmatprep.mubr.bf16.mxu1 %v3526_v37  ;;  %6558 = vmatpush3.bf16.msra.mxu1 %v7064_v45  ;;  %v7030_v45 = vld [vmem:[#allocation2 + $0x30] sm:$0xff]   ;;  %v3542_v37 = vrot.slane %v3540_v44, 3  ;;  %v3546_v44 = vshrl.u32 %v7037_v10, 16  ;;  %v7120_v39 = vld [vmem:[%s9615_s3 + $0x1a8] sm:$0xff]  }
 0x167   : > { %6559 = vmatprep.subr.bf16.mxu1 %v7065_v12  ;;  %v2739_v49 = vshrl.u32 %v7030_v45, 16  ;;  %v2742_v48 = vshll.u32 %v7030_v45, 16 }
 0x168   : > { %5124 = vmatpush1.bf16.msra.mxu0 %v7118_v36  ;;  %v3543_v7 = vor.u32 %v3542_v37, %v3539_v23  ;;  %v7041_v23 = vld [vmem:[#allocation2 + $0x78] sm:$0xff]  }
 0x169   : > { %5125 = vmatprep.subr.bf16.mxu0 %v9902_v19  ;;  %v2741_v36 = vrot.slane %v2739_v49, 1  ;;  %v2744_v45 = vrot.slane %v2742_v48, 2  ;;  %v2751_v49 = vshll.u32 %v7034_v55, 16  ;;  %v7121_v48 = vld [vmem:[%s9615_s3 + $0x1b0] sm:$0xff]  }
 0x16a   : > { %6560 = vmatpush3.bf16.msra.mxu1 %v7065_v12  ;;  %v9033_v12 = vpop.f32.mrb[4].mxu1  ;;  %v3544_v13 = vsel %vm3437_vm2, %v3534_v30, %v3543_v7 }
 0x16b   : > { %4989 = vmatmul.mubr.bf16.gmra.mrb[8].mxu0 %v2728_v25  ;;  %6561 = vmatprep.subr.bf16.mxu1 %v7070_v57  ;;  %9905 = vst [vmem:[#allocation32_spill] sm:$0xff] %v9033_v12  ;;  %v4630_v20 = vpop.f32.mrb[5].mxu1  ;;  %v3549_v25 = vshll.u32 %v7037_v10, 16  ;;  %v3548_v10 = vrot.slane %v3546_v44, 2 }
 0x16c   : > { %4996 = vmatprep.mubr.bf16.mxu0 %v3039_v27  ;;  %5126 = vmatpush1.bf16.msra.mxu0 %v7119_v33  ;;  %v9038_v43 = vpop.f32.mrb[6].mxu1  ;;  %v3041_v27 = vsel %vm3030_vm6, %v3038_v22, %v3040_v34  ;;  %v2745_v22 = vor.u32 %v2744_v45, %v2741_v36  ;;  %v3255_v33 = vrot.slane %v9049_v53, 2  ;;  %v2753_v45 = vrot.slane %v2751_v49, 2  ;;  %v9071_v53 = vld [vmem:[#allocation2 + $0x70] sm:$0xff]  }
 0x16d   : > { %5214 = vmatmul.mubr.bf16.gmra.mrb[84].mxu1 %v3252_v46  ;;  %5127 = vmatprep.subr.bf16.mxu0 %v9902_v19  ;;  %9906 = vst [vmem:[#allocation33_spill] sm:$0xff] %v9038_v43  ;;  %v4633_v11 = vpop.f32.mrb[7].mxu1  ;;  %v2748_v46 = vshrl.u32 %v7034_v55, 16  ;;  %v3555_v55 = vshrl.u32 %v7041_v23, 16  ;;  %v2856_v43 = vshrl.u32 %v7091_v40, 16 }
 0x16e   : > { %5221 = vmatprep.mubr.bf16.mxu1 %v3535_v3  ;;  %6562 = vmatpush3.bf16.msra.mxu1 %v7070_v57  ;;  %v9045_v57 = vld [vmem:[#allocation2 + $0x38] sm:$0xff]   ;;  %v3551_v3 = vrot.slane %v3549_v25, 3  ;;  %v9052_v37 = vpop.f32.mrb[8].mxu1  ;;  %v7038_v25 = vld [vmem:[#allocation2 + $0x40] sm:$0xff]   ;;  %v3558_v11 = vshll.u32 %v7041_v23, 16 }
 0x16f   : > { %6563 = vmatprep.subr.bf16.mxu1 %v7071_v29  ;;  %9907 = vst [vmem:[#allocation34_spill] sm:$0xff] %v9052_v37  ;;  %v4638_v8 = vpop.f32.mrb[9].mxu1  ;;  %v2750_v36 = vrot.slane %v2748_v46, 1  ;;  %v3557_v46 = vrot.slane %v3555_v55, 2  ;;  %v2757_v23 = vshrl.u32 %v7038_v25, 16  ;;  %v2760_v49 = vshll.u32 %v7038_v25, 16 }
 0x170   : > { %5128 = vmatpush1.bf16.msra.mxu0 %v7120_v39  ;;  %v9059_v30 = vpop.f32.mrb[10].mxu1  ;;  %v3552_v44 = vor.u32 %v3551_v3, %v3548_v10  ;;  %v7122_v39 = vld [vmem:[%s9615_s3 + $0x1b8] sm:$0xff]   ;;  %v3560_v10 = vrot.slane %v3558_v11, 3  ;;  %v7062_v37 = vld [vmem:[#allocation2 + $0x68] sm:$0xff]   ;;  %v2858_v42 = vrot.slane %v2856_v43, 1 }
 0x171   : > { %5129 = vmatprep.subr.bf16.mxu0 %v9902_v19  ;;  %9908 = vst [vmem:[#allocation35_spill] sm:$0xff] %v9059_v30  ;;  %v4641_v20 = vpop.f32.mrb[11].mxu1  ;;  %v2754_v3 = vor.u32 %v2753_v45, %v2750_v36  ;;  %v2759_v36 = vrot.slane %v2757_v23, 1  ;;  %v2762_v45 = vrot.slane %v2760_v49, 2  ;;  %v7051_v23 = vld [vmem:[#allocation2 + $0x88] sm:$0xff]  }
 0x172   : > { %6564 = vmatpush3.bf16.msra.mxu1 %v7071_v29  ;;  %v3042_v29 = vrot.slane %v9045_v57, 2  ;;  %v9067_v57 = vld [vmem:[#allocation2 + $0x40] sm:$0xff]   ;;  %v3561_v55 = vor.u32 %v3560_v10, %v3557_v46 }
 0x173   : > { %4997 = vmatmul.mubr.bf16.gmra.mrb[12].mxu0 %v2737_v50  ;;  %v2746_v50 = vsel %vm2693_vm7, %v2736_v21, %v2745_v22  ;;  %v3553_v21 = vsel %vm3437_vm2, %v3543_v7, %v3552_v44  ;;  %v3257_v7 = vrot.slane %v9071_v53, 2  ;;  %v9089_v53 = vld [vmem:[#allocation2 + $0x48] sm:$0xff]   ;;  %v2763_v49 = vor.u32 %v2762_v45, %v2759_v36 }
 0x174   : > { %5004 = vmatprep.mubr.bf16.mxu0 %v3041_v27  ;;  %5130 = vmatpush1.bf16.msra.mxu0 %v7121_v48  ;;  %v3043_v27 = vsel %vm3030_vm6, %v3040_v34, %v3042_v29  ;;  %v7123_v34 = vld [vmem:[%s9615_s3 + $0x1c0] sm:$0xff]   ;;  %v9079_v48 = vpop.f32.mrb[12].mxu1  ;;  %v3573_v36 = vshrl.u32 %v7051_v23, 16  ;;  %v3576_v45 = vshll.u32 %v7051_v23, 16 }
 0x175   : > { %5222 = vmatmul.mubr.bf16.gmra.mrb[88].mxu1 %v3254_v60  ;;  %5131 = vmatprep.subr.bf16.mxu0 %v9902_v19  ;;  %v3256_v60 = vsel %vm3030_vm6, %v3253_v59, %v3255_v33  ;;  %v3044_v59 = vrot.slane %v9067_v57, 2  ;;  %9909 = vst [vmem:[#allocation36_spill] sm:$0xff] %v9079_v48  ;;  %v4646_v20 = vpop.f32.mrb[13].mxu1 }
 0x176   : > { %5229 = vmatprep.mubr.bf16.mxu1 %v3544_v13  ;;  %v7046_v13 = vld [vmem:[#allocation2 + $0x80] sm:$0xff]   ;;  %v9082_v25 = vpop.f32.mrb[14].mxu1 }
 0x177   : > { %v3564_v8 = vshrl.u32 %v7046_v13, 16  ;;  %v3567_v11 = vshll.u32 %v7046_v13, 16  ;;  %9910 = vst [vmem:[#allocation37_spill] sm:$0xff] %v9082_v25  ;;  %v4649_v57 = vpop.f32.mrb[15].mxu1  ;;  %v3258_v13 = vsel %vm3030_vm6, %v3255_v33, %v3257_v7  ;;  %v3046_v33 = vrot.slane %v9089_v53, 2  ;;  %v7126_v53 = vld [vmem:[%s9615_s3 + $0x1d8] sm:$0xff]  }
 0x178   : > { %5132 = vmatpush1.bf16.msra.mxu0 %v7122_v39  ;;  %v7042_v39 = vld [vmem:[#allocation2 + $0x48] sm:$0xff]   ;;  %v2764_v57 = vsel %vm2693_vm7, %v2754_v3, %v2763_v49  ;;  %v7056_v25 = vld [vmem:[#allocation2 + $0x60] sm:$0xff]  }
 0x179   : > { %5133 = vmatprep.subr.bf16.mxu0 %v9902_v19  ;;  %v3566_v46 = vrot.slane %v3564_v8, 2  ;;  %v3569_v10 = vrot.slane %v3567_v11, 3  ;;  %v2769_v20 = vshll.u32 %v7042_v39, 16 }
 0x17b   : > { %5005 = vmatmul.mubr.bf16.gmra.mrb[16].mxu0 %v2746_v50  ;;  %v2755_v50 = vsel %vm2693_vm7, %v2745_v22, %v2754_v3  ;;  %v3562_v22 = vsel %vm3437_vm2, %v3552_v44, %v3561_v55 }
 0x17c   : > { %5012 = vmatprep.mubr.bf16.mxu0 %v3043_v27  ;;  %5134 = vmatpush1.bf16.msra.mxu0 %v7123_v34  ;;  %v7124_v27 = vld [vmem:[%s9615_s3 + $0x1c8] sm:$0xff]   ;;  %v2766_v34 = vshrl.u32 %v7042_v39, 16 }
 0x17d   : > { %5230 = vmatmul.mubr.bf16.gmra.mrb[92].mxu1 %v3256_v60  ;;  %5135 = vmatprep.subr.bf16.mxu0 %v9902_v19  ;;  %v3045_v60 = vsel %vm3030_vm6, %v3042_v29, %v3044_v59  ;;  %v7125_v29 = vld [vmem:[%s9615_s3 + $0x1d0] sm:$0xff]  }
 0x17e   : > { %5237 = vmatprep.mubr.bf16.mxu1 %v3553_v21  ;;  %v9093_v21 = vld [vmem:[#allocation2 + $0x78] sm:$0xff]  }
 0x17f   : > { %v3259_v8 = vrot.slane %v9093_v21, 2  ;;  %v3047_v21 = vsel %vm3030_vm6, %v3044_v59, %v3046_v33  ;;  %v2775_v59 = vshrl.u32 %v7047_v9, 16 }
 0x180   : > { %5136 = vmatpush1.bf16.msra.mxu0 %v7124_v27  ;;  %v9099_v27 = vpop.f32.mrb[16].mxu1 }
 0x181   : > { %5137 = vmatprep.subr.bf16.mxu0 %v9902_v19  ;;  %9911 = vst [vmem:[#allocation38_spill] sm:$0xff] %v9099_v27  ;;  %v4654_v44 = vpop.f32.mrb[17].mxu1  ;;  %v7127_v27 = vld [vmem:[%s9615_s3 + $0x1e0] sm:$0xff]  }
 0x182   : > { %v9104_v11 = vpop.f32.mrb[18].mxu1  ;;  %v7055_v44 = vld [vmem:[#allocation2 + $0x90] sm:$0xff]  }
 0x183   : > { %5013 = vmatmul.mubr.bf16.gmra.mrb[20].mxu0 %v2755_v50  ;;  %9912 = vst [vmem:[#allocation39_spill] sm:$0xff] %v9104_v11  ;;  %v3570_v50 = vor.u32 %v3569_v10, %v3566_v46  ;;  %v4657_v39 = vpop.f32.mrb[19].mxu1  ;;  %v3260_v46 = vsel %vm3030_vm6, %v3257_v7, %v3259_v8  ;;  %v9117_v10 = vld [vmem:[#allocation2 + $0x80] sm:$0xff]   ;;  %v2778_v11 = vshll.u32 %v7047_v9, 16 }
 0x184   : > { %5020 = vmatprep.mubr.bf16.mxu0 %v3045_v60  ;;  %5138 = vmatpush1.bf16.msra.mxu0 %v7125_v29  ;;  %v2768_v60 = vrot.slane %v2766_v34, 1  ;;  %v2771_v29 = vrot.slane %v2769_v20, 2  ;;  %v3575_v34 = vrot.slane %v3573_v36, 2  ;;  %v3578_v20 = vrot.slane %v3576_v45, 3 }
 0x185   : > { %5238 = vmatmul.mubr.bf16.gmra.mrb[96].mxu1 %v3258_v13  ;;  %5139 = vmatprep.subr.bf16.mxu0 %v9902_v19  ;;  %v9110_v13 = vpop.f32.mrb[20].mxu1  ;;  %v3571_v23 = vsel %vm3437_vm2, %v3561_v55, %v3570_v50  ;;  %v3261_v55 = vrot.slane %v9117_v10, 2  ;;  %v3582_v45 = vshrl.u32 %v7055_v44, 16 }
 0x186   : > { %5245 = vmatprep.mubr.bf16.mxu1 %v3562_v22  ;;  %v9113_v22 = vld [vmem:[#allocation2 + $0x50] sm:$0xff]   ;;  %v4662_v3 = vpop.f32.mrb[21].mxu1  ;;  %v3579_v36 = vor.u32 %v3578_v20, %v3575_v34 }
 0x187   : > { %v9120_v39 = vpop.f32.mrb[22].mxu1  ;;  %v2780_v3 = vrot.slane %v2778_v11, 2  ;;  %v3262_v10 = vsel %vm3030_vm6, %v3259_v8, %v3261_v55  ;;  %v3584_v20 = vrot.slane %v3582_v45, 2 }
 0x188   : > { %5140 = vmatpush1.bf16.msra.mxu0 %v7126_v53  ;;  %v2772_v53 = vor.u32 %v2771_v29, %v2768_v60  ;;  %v4665_v7 = vpop.f32.mrb[23].mxu1  ;;  %v2777_v29 = vrot.slane %v2775_v59, 1 }
 0x189   : > { %5141 = vmatprep.subr.bf16.mxu0 %v9902_v19  ;;  %v9128_v60 = vpop.f32.mrb[24].mxu1 }
 0x18a   : > { %v2773_v9 = vsel %vm2693_vm7, %v2763_v49, %v2772_v53  ;;  %v4670_v34 = vpop.f32.mrb[25].mxu1  ;;  %v3580_v49 = vsel %vm3437_vm2, %v3570_v50, %v3579_v36  ;;  %v2781_v7 = vor.u32 %v2780_v3, %v2777_v29 }
 0x18b   : > { %5021 = vmatmul.mubr.bf16.gmra.mrb[24].mxu0 %v2764_v57  ;;  %v3048_v57 = vrot.slane %v9113_v22, 2  ;;  %v9138_v59 = vpop.f32.mrb[26].mxu1 }
 0x18c   : > { %5028 = vmatprep.mubr.bf16.mxu0 %v3047_v21  ;;  %5142 = vmatpush1.bf16.msra.mxu0 %v7127_v27  ;;  %v3585_v21 = vshll.u32 %v7055_v44, 16  ;;  %v7128_v27 = vld [vmem:[%s9615_s3 + $0x1e8] sm:$0xff]   ;;  %v7061_v44 = vld [vmem:[#allocation2 + $0x98] sm:$0xff]   ;;  %v4673_v8 = vpop.f32.mrb[27].mxu1 }
 0x18d   : > { %5246 = vmatmul.mubr.bf16.gmra.mrb[100].mxu1 %v3260_v46  ;;  %5143 = vmatprep.subr.bf16.mxu0 %v9902_v19  ;;  %v3049_v22 = vsel %vm3030_vm6, %v3046_v33, %v3048_v57  ;;  %v7050_v46 = vld [vmem:[#allocation2 + $0x58] sm:$0xff]   ;;  %v7129_v33 = vld [vmem:[%s9615_s3 + $0x1f0] sm:$0xff]   ;;  %v9144_v45 = vpop.f32.mrb[28].mxu1  ;;  %v2793_v8 = vshrl.u32 %v7056_v25, 16 }
 0x18e   : > { %5253 = vmatprep.mubr.bf16.mxu1 %v3571_v23  ;;  %v7053_v23 = vld [vmem:[#allocation2 + $0x88] sm:$0xff]   ;;  %v3587_v11 = vrot.slane %v3585_v21, 3  ;;  %v3050_v34 = vrot.slane %v7050_v46, 2  ;;  %v4678_v29 = vpop.f32.mrb[29].mxu1 }
 0x18f   : > { %v3263_v50 = vrot.slane %v7053_v23, 2  ;;  %v9150_v46 = vpop.f32.mrb[30].mxu1  ;;  %v7054_v23 = vld [vmem:[#allocation2 + $0x60] sm:$0xff]   ;;  %v2796_v29 = vshll.u32 %v7056_v25, 16  ;;  %v2795_v30 = vrot.slane %v2793_v8, 1  ;;  %v7068_v8 = vld [vmem:[#allocation2 + $0x70] sm:$0xff]  }
 0x190   : > { %5144 = vmatpush1.bf16.msra.mxu0 %v7128_v27  ;;  %v2784_v27 = vshrl.u32 %v7052_v24, 16  ;;  %v3588_v21 = vor.u32 %v3587_v11, %v3584_v20  ;;  %v2782_v24 = vsel %vm2693_vm7, %v2772_v53, %v2781_v7  ;;  %v7057_v11 = vld [vmem:[#allocation2 + $0x90] sm:$0xff]  }
 0x191   : > { %5145 = vmatprep.subr.bf16.mxu0 %v9902_v19  ;;  %v3264_v20 = vsel %vm3030_vm6, %v3261_v55, %v3263_v50  ;;  %v3265_v31 = vrot.slane %v7057_v11, 2  ;;  %v2805_v11 = vshll.u32 %v7062_v37, 16 }
 0x192   : > { %v2786_v3 = vrot.slane %v2784_v27, 1  ;;  %v3589_v53 = vsel %vm3437_vm2, %v3579_v36, %v3588_v21  ;;  %v7067_v27 = vld [vmem:[#allocation2 + $0xa0] ss:$0 sps:$4 sm:$0x77]  }
 0x193   : > { %5029 = vmatmul.mubr.bf16.gmra.mrb[28].mxu0 %v2773_v9  ;;  %v3591_v9 = vshrl.u32 %v7061_v44, 16  ;;  %v3600_v48 = vshrl.u32 %v7067_v27, 16 }
 0x194   : > { %5036 = vmatprep.mubr.bf16.mxu0 %v3049_v22  ;;  %5146 = vmatpush1.bf16.msra.mxu0 %v7129_v33  ;;  %v3594_v22 = vshll.u32 %v7061_v44, 16  ;;  %v2790_v33 = vor.u32 %v2789_v51, %v2786_v3  ;;  %v7063_v51 = vld [vmem:[#allocation2 + $0x98] sm:$0xff]  }
 0x195   : > { %5254 = vmatmul.mubr.bf16.gmra.mrb[104].mxu1 %v3262_v10  ;;  %5147 = vmatprep.subr.bf16.mxu0 %v9902_v19  ;;  %v7130_v10 = vld [vmem:[%s9615_s3 + $0x1f8] sm:$0xff]   ;;  %v3051_v19 = vsel %vm3030_vm6, %v3048_v57, %v3050_v34  ;;  %v3593_v44 = vrot.slane %v3591_v9, 2  ;;  %v7060_v9 = vld [vmem:[#allocation2 + $0x68] sm:$0xff]   ;;  %v3602_v3 = vrot.slane %v3600_v48, 2 }
 0x196   : > { %5261 = vmatprep.mubr.bf16.mxu1 %v3580_v49  ;;  %v4681_v49 = vpop.f32.mrb[31].mxu1  ;;  %v3596_v16 = vrot.slane %v3594_v22, 3  ;;  %v2791_v55 = vsel %vm2693_vm7, %v2781_v7, %v2790_v33  ;;  %v3266_v22 = vsel %vm3030_vm6, %v3263_v50, %v3265_v31  ;;  %v3054_v7 = vrot.slane %v7060_v9, 2  ;;  %v7074_v9 = vld [vmem:[#allocation2 + $0x18] sm:$0xff]  }
 0x197   : > { %v3603_v49 = vshll.u32 %v7067_v27, 16  ;;  %v2807_v27 = vrot.slane %v2805_v11, 2 }
 0x198   : > { %5148 = vmatpush1.bf16.msra.mxu0 %v7130_v10  ;;  %v3052_v10 = vrot.slane %v7054_v23, 2  ;;  %v3597_v57 = vor.u32 %v3596_v16, %v3593_v44 }
 0x19a   : > { %v3053_v36 = vsel %vm3030_vm6, %v3050_v34, %v3052_v10  ;;  %v3598_v25 = vsel %vm3437_vm2, %v3588_v21, %v3597_v57  ;;  %v3055_v48 = vsel %vm3030_vm6, %v3052_v10, %v3054_v7  ;;  %v7066_v21 = vld [vmem:[#allocation2 + $0x70] sm:$0xff]  }
 0x19b   : > { %5037 = vmatmul.mubr.bf16.gmra.mrb[32].mxu0 %v2782_v24  ;;  %v2798_v24 = vrot.slane %v2796_v29, 2 }
 0x19c   : > { %5044 = vmatprep.mubr.bf16.mxu0 %v3051_v19  ;;  %v3605_v19 = vrot.slane %v3603_v49, 3  ;;  %v9159_v16 = vpop.f32.mrb[32].mxu1 }
 0x19d   : > { %5262 = vmatmul.mubr.bf16.gmra.mrb[108].mxu1 %v3264_v20  ;;  %v2799_v23 = vor.u32 %v2798_v24, %v2795_v30  ;;  %v2802_v20 = vshrl.u32 %v7062_v37, 16  ;;  %v4686_v29 = vpop.f32.mrb[33].mxu1  ;;  %v7069_v30 = vld [vmem:[#allocation2 + $0xa0] ss:$0 sps:$4 sm:$0x33]  }
 0x19e   : > { %5269 = vmatprep.mubr.bf16.mxu1 %v3589_v53  ;;  %v3267_v53 = vrot.slane %v7063_v51, 2  ;;  %v3606_v44 = vor.u32 %v3605_v19, %v3602_v3  ;;  %v9163_v49 = vpop.f32.mrb[34].mxu1  ;;  %v2814_v51 = vshll.u32 %v7068_v8, 16  ;;  %v3269_v10 = vrot.slane %v7069_v30, 2 }
 0x19f   : > { %v2800_v34 = vsel %vm2693_vm7, %v2790_v33, %v2799_v23  ;;  %v2804_v50 = vrot.slane %v2802_v20, 1  ;;  %v3776_v19 = vrot.slane %v7074_v9, 3 }
 0x1a0   : > { %v3268_v37 = vsel %vm3030_vm6, %v3265_v31, %v3267_v53  ;;  %v3607_v24 = vsel %vm3437_vm2, %v3597_v57, %v3606_v44  ;;  %v2816_v11 = vrot.slane %v2814_v51, 2  ;;  %v7072_v44 = vld [vmem:[#allocation2 + $0x78] sm:$0xff]  }
 0x1a1   : > { %v2808_v33 = vor.u32 %v2807_v27, %v2804_v50  ;;  %v3270_v27 = vsel %vm3030_vm6, %v3267_v53, %v3269_v10  ;;  %v7079_v10 = vld [vmem:[#allocation2 + $0x80] sm:$0xff]  }
 0x1a3   : > { %5045 = vmatmul.mubr.bf16.gmra.mrb[36].mxu0 %v2791_v55  ;;  %v4689_v55 = vpop.f32.mrb[35].mxu1  ;;  %v2809_v20 = vsel %vm2693_vm7, %v2799_v23, %v2808_v33 }
 0x1a4   : > { %5052 = vmatprep.mubr.bf16.mxu0 %v3053_v36  ;;  %v7073_v36 = vld [vmem:[#allocation2 + $0x10] sm:$0xf8]  }
 0x1a5   : > { %5270 = vmatmul.mubr.bf16.gmra.mrb[112].mxu1 %v3266_v22  ;;  %v2811_v22 = vshrl.u32 %v7068_v8, 16  ;;  %v3775_v3 = vrot.slane %v7073_v36, 3  ;;  %v7076_v8 = vld [vmem:[#allocation2 + $0x20] sm:$0xff]   ;;  %v3058_v36 = vrot.slane %v7072_v44, 2  ;;  %v2832_v44 = vshll.u32 %v7079_v10, 16 }
 0x1a6   : > { %5277 = vmatprep.mubr.bf16.mxu1 %v3598_v25  ;;  %v3056_v25 = vrot.slane %v7066_v21, 2  ;;  %v9168_v29 = vpop.f32.mrb[36].mxu1 }
 0x1a7   : > { %v2813_v31 = vrot.slane %v2811_v22, 1  ;;  %v4694_v50 = vpop.f32.mrb[37].mxu1  ;;  %v3777_v21 = vsel %vm3774_vm3, %v3775_v3, %v3776_v19 }
 0x1a8   : > { %v3057_v57 = vsel %vm3030_vm6, %v3054_v7, %v3056_v25  ;;  %v3778_v7 = vrot.slane %v7076_v8, 3  ;;  %v7077_v50 = vld [vmem:[#allocation2 + $0x80] sm:$0xff]  }
 0x1a9   : > { %v2817_v30 = vor.u32 %v2816_v11, %v2813_v31  ;;  %v7082_v11 = vld [vmem:[#allocation2 + $0x38] sm:$0xff]  }
 0x1aa   : > { %v3779_v3 = vsel %vm3774_vm3, %v3776_v19, %v3778_v7  ;;  %v3784_v8 = vrot.slane %v7082_v11, 3 }
 0x1ab   : > { %5053 = vmatmul.mubr.bf16.gmra.mrb[40].mxu0 %v2800_v34  ;;  %v7075_v34 = vld [vmem:[#allocation2 + $0x78] sm:$0xff]   ;;  %v2818_v22 = vsel %vm2693_vm7, %v2808_v33, %v2817_v30 }
 0x1ac   : > { %5060 = vmatprep.mubr.bf16.mxu0 %v3055_v48  ;;  %v9172_v48 = vpop.f32.mrb[38].mxu1  ;;  %v2820_v55 = vshrl.u32 %v7075_v34, 16 }
 0x1ad   : > { %5278 = vmatmul.mubr.bf16.gmra.mrb[116].mxu1 %v3268_v37  ;;  %v7078_v37 = vld [vmem:[#allocation2 + $0x28] sm:$0xff]   ;;  %v4697_v23 = vpop.f32.mrb[39].mxu1 }
 0x1ae   : > { %5285 = vmatprep.mubr.bf16.mxu1 %v3607_v24  ;;  %v2823_v24 = vshll.u32 %v7075_v34, 16  ;;  %v3780_v9 = vrot.slane %v7078_v37, 3  ;;  %v2822_v53 = vrot.slane %v2820_v55, 1  ;;  %v7080_v23 = vld [vmem:[#allocation2 + $0x30] sm:$0xff]   ;;  %v2834_v37 = vrot.slane %v2832_v44, 2  ;;  %v7083_v55 = vld [vmem:[#allocation2 + $0x88] sm:$0xff]  }
 0x1af   : > { %v3782_v33 = vrot.slane %v7080_v23, 3 }
 0x1b0   : > { %v2825_v51 = vrot.slane %v2823_v24, 2  ;;  %v3781_v31 = vsel %vm3774_vm3, %v3778_v7, %v3780_v9  ;;  %v7081_v24 = vld [vmem:[#allocation2 + $0x88] sm:$0xff]  }
 0x1b1   : > { %v3783_v7 = vsel %vm3774_vm3, %v3780_v9, %v3782_v33  ;;  %v3062_v23 = vrot.slane %v7081_v24, 2  ;;  %v7090_v24 = vld [vmem:[#allocation2 + $0x58] sm:$0xff]  }
 0x1b2   : > { %v2826_v34 = vor.u32 %v2825_v51, %v2822_v53  ;;  %v3785_v53 = vsel %vm3774_vm3, %v3782_v33, %v3784_v8  ;;  %v7086_v51 = vld [vmem:[#allocation2 + $0x48] sm:$0xff]  }
 0x1b3   : > { %5061 = vmatmul.mubr.bf16.gmra.mrb[44].mxu0 %v2809_v20  ;;  %v3059_v20 = vsel %vm3030_vm6, %v3056_v25, %v3058_v36  ;;  %v3788_v9 = vrot.slane %v7086_v51, 3 }
 0x1b4   : > { %5068 = vmatprep.mubr.bf16.mxu0 %v3057_v57  ;;  %v2829_v57 = vshrl.u32 %v7079_v10, 16 }
 0x1b5   : > { %5286 = vmatmul.mubr.bf16.gmra.mrb[120].mxu1 %v3270_v27  ;;  %v3060_v27 = vrot.slane %v7077_v50, 2  ;;  %v2838_v50 = vshrl.u32 %v7083_v55, 16 }
 0x1b6   : > { %6565 = vmatprep.mubr.bf16.mxu1 %v3777_v21  ;;  %v2827_v21 = vsel %vm2693_vm7, %v2817_v30, %v2826_v34  ;;  %v2831_v25 = vrot.slane %v2829_v57, 1 }
 0x1b7   : > { %v3061_v19 = vsel %vm3030_vm6, %v3058_v36, %v3060_v27  ;;  %v2840_v44 = vrot.slane %v2838_v50, 1  ;;  %v3063_v63 = vsel %vm3030_vm6, %v3060_v27, %v3062_v23  ;;  %v7089_v27 = vld [vmem:[#allocation2 + $0x98] ss:$0 sps:$4 sm:$0x33]  }
 0x1bb   : > { %5069 = vmatmul.mubr.bf16.gmra.mrb[48].mxu0 %v2818_v22  ;;  %v7084_v22 = vld [vmem:[#allocation2 + $0x40] sm:$0xff]   ;;  %v9183_v10 = vpop.f32.mrb[40].mxu1 }
 0x1bc   : > { %5076 = vmatprep.mubr.bf16.mxu0 %v3059_v20  ;;  %v2835_v20 = vor.u32 %v2834_v37, %v2831_v25  ;;  %v4702_v30 = vpop.f32.mrb[41].mxu1  ;;  %v3786_v36 = vrot.slane %v7084_v22, 3  ;;  %v7088_v37 = vld [vmem:[#allocation2 + $0x50] sm:$0xff]  }
 0x1bd   : > { %6566 = vmatmul.mubr.bf16.vlgmr.msra.gmra.mrb[124].mxu1 %v3779_v3  ;;  %v2841_v3 = vshll.u32 %v7083_v55, 16  ;;  %v3790_v50 = vrot.slane %v7088_v37, 3  ;;  %v3792_v30 = vrot.slane %v7090_v24, 3 }
 0x1be   : > { %6569 = vmatprep.mubr.bf16.mxu1 %v3781_v31  ;;  %v9185_v31 = vpop.f32.mrb[42].mxu1  ;;  %v2836_v57 = vsel %vm2693_vm7, %v2826_v34, %v2835_v20  ;;  %v3787_v25 = vsel %vm3774_vm3, %v3784_v8, %v3786_v36  ;;  %v3789_v55 = vsel %vm3774_vm3, %v3786_v36, %v3788_v9 }
 0x1bf   : > { %v4705_v11 = vpop.f32.mrb[43].mxu1  ;;  %v2843_v33 = vrot.slane %v2841_v3, 2  ;;  %v3793_v37 = vsel %vm3774_vm3, %v3790_v50, %v3792_v30 }
 0x1c3   : > { %5077 = vmatmul.mubr.bf16.gmra.mrb[52].mxu0 %v2827_v21  ;;  %v7087_v21 = vld [vmem:[#allocation2 + $0x90] sm:$0xff]  }
 0x1c4   : > { %5084 = vmatprep.mubr.bf16.mxu0 %v3061_v19  ;;  %v7085_v19 = vld [vmem:[#allocation2 + $0x90] sm:$0xff]   ;;  %v2847_v22 = vshrl.u32 %v7087_v21, 16 }
 0x1c5   : > { %6570 = vmatmul.mubr.bf16.gmra.mrb[128].mxu1 %v3783_v7  ;;  %v2844_v7 = vor.u32 %v2843_v33, %v2840_v44  ;;  %v3064_v51 = vrot.slane %v7085_v19, 2  ;;  %v7093_v33 = vld [vmem:[#allocation2 + $0x10] sm:$0xfc]   ;;  %v3791_v19 = vsel %vm3774_vm3, %v3788_v9, %v3790_v50 }
 0x1c6   : > { %6573 = vmatprep.mubr.bf16.mxu1 %v3785_v53  ;;  %v2850_v53 = vshll.u32 %v7087_v21, 16  ;;  %v7094_v21 = vld [vmem:[#allocation2 + $0x18] sm:$0xff]  }
 0x1c7   : > { %v9191_v34 = vpop.f32.mrb[44].mxu1  ;;  %v2845_v8 = vsel %vm2693_vm7, %v2835_v20, %v2844_v7  ;;  %v3065_v44 = vsel %vm3030_vm6, %v3062_v23, %v3064_v51  ;;  %v2859_v20 = vshll.u32 %v7091_v40, 16  ;;  %v3450_v12 = vshll.u32 %v7094_v21, 16 }
 0x1c8   : > { %v4710_v3 = vpop.f32.mrb[45].mxu1  ;;  %v2852_v36 = vrot.slane %v2850_v53, 2  ;;  %v3442_v53 = vshll.u32 %v7093_v33, 16 }
 0x1c9   : > { %v9193_v11 = vpop.f32.mrb[46].mxu1  ;;  %v3066_v3 = vrot.slane %v7089_v27, 2  ;;  %v2861_v50 = vrot.slane %v2859_v20, 2  ;;  %v3452_v27 = vrot.slane %v3450_v12, 3 }
 0x1cb   : > { %5085 = vmatmul.mubr.bf16.gmra.mrb[56].mxu0 %v2836_v57  ;;  %v2849_v57 = vrot.slane %v2847_v22, 1  ;;  %v3439_v22 = vshrl.u32 %v7093_v33, 16 }
 0x1cc   : > { %5092 = vmatprep.mubr.bf16.mxu0 %v3063_v63  ;;  %v4713_v63 = vpop.f32.mrb[47].mxu1 }
 0x1cd   : > { %6574 = vmatmul.mubr.bf16.gmra.mrb[132].mxu1 %v3787_v25  ;;  %v7092_v25 = vld [vmem:[#allocation2 + $0x60] sm:$0xff]   ;;  %v2853_v24 = vor.u32 %v2852_v36, %v2849_v57  ;;  %v3447_v63 = vshrl.u32 %v7094_v21, 16  ;;  %v3441_v62 = vrot.slane %v3439_v22, 2  ;;  %v7100_v21 = vld [vmem:[#allocation2 + $0x78] sm:$0xff]  }
 0x1ce   : > { %6577 = vmatprep.mubr.bf16.mxu1 %v3789_v55  ;;  %v7095_v55 = vld [vmem:[#allocation2 + $0x68] sm:$0xff]   ;;  %v3794_v23 = vrot.slane %v7092_v25, 3  ;;  %v7099_v36 = vld [vmem:[#allocation2 + $0x20] sm:$0xff]   ;;  %v2862_v25 = vor.u32 %v2861_v50, %v2858_v42  ;;  %v7097_v22 = vld [vmem:[#allocation2 + $0x18] sm:$0xff]  }
 0x1cf   : > { %v3796_v17 = vrot.slane %v7095_v55, 3  ;;  %v2854_v9 = vsel %vm2693_vm7, %v2844_v7, %v2853_v24  ;;  %v3449_v57 = vrot.slane %v3447_v63, 2  ;;  %v3459_v43 = vshll.u32 %v7099_v36, 16  ;;  %v7103_v42 = vld [vmem:[#allocation2 + $0x28] sm:$0xff]   ;;  %v7102_v50 = vld [vmem:[#allocation2 + $0x80] sm:$0xff]  }
 0x1d0   : > { %v3795_v40 = vsel %vm3774_vm3, %v3792_v30, %v3794_v23  ;;  %v2863_v12 = vsel %vm2693_vm7, %v2853_v24, %v2862_v25  ;;  %v7096_v30 = vld [vmem:[#allocation2 + $0x10] sm:$0xfc]  }
 0x1d1   : > { %v3797_v33 = vsel %vm3774_vm3, %v3794_v23, %v3796_v17  ;;  %v3234_v24 = vrot.slane %v7096_v30, 2 }
 0x1d3   : > { %5093 = vmatmul.mubr.bf16.gmra.mrb[60].mxu0 %v2845_v8  ;;  %v3067_v8 = vsel %vm3030_vm6, %v3064_v51, %v3066_v3  ;;  %v3456_v51 = vshrl.u32 %v7099_v36, 16  ;;  %v3800_v3 = vrot.slane %v7100_v21, 3  ;;  %v3235_v36 = vrot.slane %v7097_v22, 2 }
 0x1d4   : > { %5100 = vmatprep.mubr.bf16.mxu0 %v3065_v44  ;;  %v3444_v44 = vrot.slane %v3442_v53, 3  ;;  %v3802_v21 = vrot.slane %v7102_v50, 3 }
 0x1d5   : > { %6578 = vmatmul.mubr.bf16.gmra.mrb[136].mxu1 %v3791_v19  ;;  %v7098_v19 = vld [vmem:[#allocation2 + $0x70] sm:$0xff]   ;;  %v3458_v23 = vrot.slane %v3456_v51, 2  ;;  %v7101_v51 = vld [vmem:[#allocation2 + $0x20] sm:$0xff]  }
 0x1d6   : > { %6581 = vmatprep.mubr.bf16.mxu1 %v3793_v37  ;;  %v3445_v7 = vor.u32 %v3444_v44, %v3441_v62  ;;  %v3453_v37 = vor.u32 %v3452_v27, %v3449_v57  ;;  %v3798_v55 = vrot.slane %v7098_v19, 3  ;;  %v7104_v27 = vld [vmem:[#allocation2 + $0x88] sm:$0xff]   ;;  %v3465_v19 = vshrl.u32 %v7103_v42, 16 }
 0x1d7   : > { %v3804_v25 = vrot.slane %v7104_v27, 3 }
 0x1d8   : > { %v3454_v63 = vsel %vm3437_vm2, %v3445_v7, %v3453_v37  ;;  %v3799_v62 = vsel %vm3774_vm3, %v3796_v17, %v3798_v55  ;;  %v3801_v57 = vsel %vm3774_vm3, %v3798_v55, %v3800_v3  ;;  %v3236_v7 = vsel %vm3030_vm6, %v3234_v24, %v3235_v36 }
 0x1d9   : > { %v3803_v55 = vsel %vm3774_vm3, %v3800_v3, %v3802_v21  ;;  %v3805_v22 = vsel %vm3774_vm3, %v3802_v21, %v3804_v25 }
 0x1db   : > { %5101 = vmatmul.mubr.bf16.gmra.mrb[64].mxu0 %v2854_v9  ;;  %v9203_v20 = vpop.f32.mrb[48].mxu1  ;;  %v3461_v9 = vrot.slane %v3459_v43, 3  ;;  %v3467_v43 = vrot.slane %v3465_v19, 2  ;;  %v7105_v19 = vld [vmem:[#allocation2 + $0x28] sm:$0xff]  }
 0x1dc   : > { %5108 = vmatprep.mubr.bf16.mxu0 %v3067_v8  ;;  %v4718_v53 = vpop.f32.mrb[49].mxu1 }
 0x1dd   : > { %6582 = vmatmul.mubr.bf16.gmra.mrb[140].mxu1 %v3795_v40  ;;  %v9207_v8 = vpop.f32.mrb[50].mxu1  ;;  %v3462_v40 = vor.u32 %v3461_v9, %v3458_v23  ;;  %v7107_v53 = vld [vmem:[#allocation2 + $0x30] sm:$0xff]   ;;  %v7108_v23 = vld [vmem:[#allocation2 + $0x98] sm:$0xff]  }
 0x1de   : > { %6585 = vmatprep.mubr.bf16.mxu1 %v3797_v33  ;;  %v4721_v44 = vpop.f32.mrb[51].mxu1  ;;  %v3468_v33 = vshll.u32 %v7103_v42, 16  ;;  %v3237_v42 = vrot.slane %v7101_v51, 2  ;;  %v3808_v3 = vrot.slane %v7108_v23, 3 }
 0x1df   : > { %v3463_v17 = vsel %vm3437_vm2, %v3453_v37, %v3462_v40  ;;  %v3474_v37 = vshrl.u32 %v7107_v53, 16  ;;  %v3477_v44 = vshll.u32 %v7107_v53, 16  ;;  %v7110_v51 = vld [vmem:[#allocation2 + $0xa0] ss:$0 sps:$4 sm:$0x77]  }
 0x1e0   : > { %v3238_v24 = vsel %vm3030_vm6, %v3235_v36, %v3237_v42  ;;  %v3810_v53 = vrot.slane %v7110_v51, 3  ;;  %v7109_v36 = vld [vmem:[#allocation2 + $0x30] sm:$0xff]  }
 0x1e1   : > { %v3476_v21 = vrot.slane %v3474_v37, 2 }
 0x1e3   : > { %5109 = vmatmul.mubr.bf16.gmra.mrb[68].mxu0 %v2863_v12  ;;  %v3470_v12 = vrot.slane %v3468_v33, 3 }
 0x1e4   : > { %5149 = vmatprep.mubr.bf16.mxu0 %v3454_v63  ;;  %v7106_v63 = vld [vmem:[#allocation2 + $0x90] sm:$0xff]  }
 0x1e5   : > { %6586 = vmatmul.mubr.bf16.gmra.mrb[144].mxu1 %v3799_v62  ;;  %v3471_v50 = vor.u32 %v3470_v12, %v3467_v43  ;;  %v3806_v27 = vrot.slane %v7106_v63, 3  ;;  %v3239_v43 = vrot.slane %v7105_v19, 2 }
 0x1e6   : > { %6589 = vmatprep.mubr.bf16.mxu1 %v3801_v57 }
 0x1e7   : > { %v3472_v33 = vsel %vm3437_vm2, %v3462_v40, %v3471_v50  ;;  %v3240_v63 = vsel %vm3030_vm6, %v3237_v42, %v3239_v43  ;;  %v3811_v40 = vsel %vm3774_vm3, %v3808_v3, %v3810_v53 }
 0x1e8   : > { %v9214_v30 = vpop.f32.mrb[52].mxu1 }
 0x1e9   : > { %v4726_v9 = vpop.f32.mrb[53].mxu1 }
 0x1ea   : > { %v9217_v62 = vpop.f32.mrb[54].mxu1 }
 0x1eb   : > { %5150 = vmatmul.mubr.bf16.vlgmr.msra.gmra.mrb[0].mxu0 %v3236_v7  ;;  %v4729_v57 = vpop.f32.mrb[55].mxu1  ;;  %v3479_v7 = vrot.slane %v3477_v44, 3 }
 0x1ec   : > { %5157 = vmatprep.mubr.bf16.mxu0 %v3463_v17  ;;  %v3807_v17 = vsel %vm3774_vm3, %v3804_v25, %v3806_v27  ;;  %v3241_v25 = vrot.slane %v7109_v36, 2 }
 0x1ed   : > { %6590 = vmatmul.mubr.bf16.gmra.mrb[148].mxu1 %v3803_v55  ;;  %v3809_v55 = vsel %vm3774_vm3, %v3806_v27, %v3808_v3  ;;  %v3480_v12 = vor.u32 %v3479_v7, %v3476_v21  ;;  %v9913_v3 = vrot.slane %v8937_v32, 2 }
 0x1ee   : > { %6593 = vmatprep.mubr.bf16.mxu1 %v3805_v22  ;;  %v3242_v57 = vsel %vm3030_vm6, %v3239_v43, %v3241_v25 }
 0x1ef   : > { %v3481_v22 = vsel %vm3437_vm2, %v3471_v50, %v3480_v12  ;;  %v3490_v42 = vsel %vm3437_vm2, %v3480_v12, %v8931_v28  ;;  %vm9919_vm2 = vnez %v9775_v4 }
 0x1f3   : > { %5158 = vmatmul.mubr.bf16.gmra.mrb[4].mxu0 %v3238_v24  ;;  %v3244_v24 = vsel %vm3030_vm6, %v3241_v25, %v9913_v3 }
 0x1f4   : > { %5165 = vmatprep.mubr.bf16.mxu0 %v3472_v33 }
 0x1f5   : > { %6594 = vmatmul.mubr.bf16.gmra.mrb[152].mxu1 %v3807_v17 }
 0x1f6   : > { %6597 = vmatprep.mubr.bf16.mxu1 %v3809_v55 }
 0x1fb   : > { %5166 = vmatmul.mubr.bf16.gmra.mrb[8].mxu0 %v3240_v63  ;;  %v9226_v23 = vpop.f32.mrb[56].mxu1 }
 0x1fc   : > { %5173 = vmatprep.mubr.bf16.mxu0 %v3481_v22  ;;  %v4734_v9 = vpop.f32.mrb[57].mxu1 }
 0x1fd   : > { %6598 = vmatmul.mubr.bf16.gmra.mrb[156].mxu1 %v3811_v40  ;;  %v9228_v37 = vpop.f32.mrb[58].mxu1 }
 0x1fe   : > { %v4737_v44 = vpop.f32.mrb[59].mxu1 }
 0x203   : > { %5174 = vmatmul.mubr.bf16.gmra.mrb[12].mxu0 %v3242_v57 }
 0x204   : > { %5181 = vmatprep.mubr.bf16.mxu0 %v3490_v42 }
 0x207   : > { %v9233_v50 = vpop.f32.mrb[60].mxu1 }
 0x208   : > { %v4742_v27 = vpop.f32.mrb[61].mxu1 }
 0x209   : > { %v9238_v19 = vpop.f32.mrb[62].mxu1 }
 0x20a   : > { %v4745_v33 = vpop.f32.mrb[63].mxu1 }
 0x20b   : > { %5182 = vmatmul.mubr.bf16.gmra.mrb[16].mxu0 %v3244_v24 }
 0x217   : > { %v9240_v21 = vpop.f32.mrb[64].mxu1 }
 0x218   : > { %v4750_v7 = vpop.f32.mrb[65].mxu1 }
 0x219   : > { %v9242_v17 = vpop.f32.mrb[66].mxu1 }
 0x21a   : > { %v4753_v51 = vpop.f32.mrb[67].mxu1 }
 0x21f   : > { %v9244_v28 = vpop.f32.mrb[68].mxu1 }
 0x220   : > { %v4758_v55 = vpop.f32.mrb[69].mxu1 }
 0x221   : > { %v9246_v43 = vpop.f32.mrb[70].mxu1 }
 0x222   : > { %v4761_v12 = vpop.f32.mrb[71].mxu1 }
 0x227   : > { %v5191_v53 = vpop.f32.mrb[72].mxu1 }
 0x228   : > { %v5193_v32 = vpop.f32.mrb[73].mxu1 }
 0x229   : > { %v5194_v63 = vpop.f32.mrb[74].mxu1 }
 0x22a   : > { %v5196_v36 = vpop.f32.mrb[75].mxu1 }
 0x230   : > { %v5199_v22 = vpop.f32.mrb[76].mxu1 }
 0x231   : > { %v5201_v40 = vpop.f32.mrb[77].mxu1 }
 0x232   : > { %v5202_v25 = vpop.f32.mrb[78].mxu1 }
 0x233   : > { %v5204_v9 = vpop.f32.mrb[79].mxu1 }
 0x238   : > { %v5207_v44 = vpop.f32.mrb[80].mxu1 }
 0x239   : > { %v5209_v57 = vpop.f32.mrb[81].mxu1 }
 0x23a   : > { %v5210_v42 = vpop.f32.mrb[82].mxu1 }
 0x23b   : > { %v5212_v27 = vpop.f32.mrb[83].mxu1 }
 0x240   : > { %v5215_v3 = vpop.f32.mrb[84].mxu1 }
 0x241   : > { %v5217_v24 = vpop.f32.mrb[85].mxu1 }
 0x242   : > { %v5218_v33 = vpop.f32.mrb[86].mxu1 }
 0x243   : > { %v5220_v7 = vpop.f32.mrb[87].mxu1 }
 0x248   : > { %v5223_v51 = vpop.f32.mrb[88].mxu1 }
 0x249   : > { %v5225_v55 = vpop.f32.mrb[89].mxu1 }
 0x24a   : > { %v9248_v14 = vpop.f32.mrb[90].mxu1 }
 0x24b   : > { %v5228_v12 = vpop.f32.mrb[91].mxu1 }
 0x250   : > { %v9250_v32 = vpop.f32.mrb[92].mxu1 }
 0x251   : > { %v5233_v36 = vpop.f32.mrb[93].mxu1 }
 0x252   : > { %v9252_v2 = vpop.f32.mrb[94].mxu1 }
 0x253   : > { %v5236_v40 = vpop.f32.mrb[95].mxu1 }
 0x256   : > { %v5014_v9 = vpop.f32.mrb[20].mxu0 }
 0x257   : > { %v6643_v57 = vadd.f32 %v5014_v9, %v9110_v13  ;;  %v5016_v0 = vpop.f32.mrb[21].mxu0 }
 0x258   : > { %v5017_v27 = vpop.f32.mrb[22].mxu0  ;;  %v9255_v5 = vpop.f32.mrb[96].mxu1 }
 0x259   : > { %v6645_v24 = vadd.f32 %v5017_v27, %v9120_v39  ;;  %v9258_v7 = vadd.f32 %v6643_v57, %v5191_v53  ;;  %v5019_v55 = vpop.f32.mrb[23].mxu0  ;;  %v5241_v1 = vpop.f32.mrb[97].mxu1 }
 0x25a   : > { %v9260_v12 = vpop.f32.mrb[98].mxu1 }
 0x25b   : > { %v9262_v41 = vadd.f32 %v6645_v24, %v5194_v63  ;;  %v5244_v36 = vpop.f32.mrb[99].mxu1 }
 0x25e   : > { %v5022_v38 = vpop.f32.mrb[24].mxu0 }
 0x25f   : > { %v6647_v40 = vadd.f32 %v5022_v38, %v9128_v60  ;;  %v5024_v47 = vpop.f32.mrb[25].mxu0 }
 0x260   : > { %v5025_v13 = vpop.f32.mrb[26].mxu0  ;;  %v9265_v0 = vpop.f32.mrb[100].mxu1 }
 0x261   : > { %v6649_v9 = vadd.f32 %v5025_v13, %v9138_v59  ;;  %v9268_v15 = vadd.f32 %v6647_v40, %v5199_v22  ;;  %v5027_v39 = vpop.f32.mrb[27].mxu0  ;;  %v5249_v53 = vpop.f32.mrb[101].mxu1 }
 0x262   : > { %v9270_v57 = vpop.f32.mrb[102].mxu1 }
 0x263   : > { %v9272_v1 = vadd.f32 %v6649_v9, %v5202_v25  ;;  %v5252_v63 = vpop.f32.mrb[103].mxu1 }
 0x266   : > { %v5030_v27 = vpop.f32.mrb[28].mxu0 }
 0x267   : > { %v6651_v24 = vadd.f32 %v5030_v27, %v9144_v45  ;;  %v5032_v55 = vpop.f32.mrb[29].mxu0 }
 0x268   : > { %v5033_v38 = vpop.f32.mrb[30].mxu0  ;;  %v9275_v47 = vpop.f32.mrb[104].mxu1 }
 0x269   : > { %v6653_v60 = vadd.f32 %v5033_v38, %v9150_v46  ;;  %v9278_v36 = vadd.f32 %v6651_v24, %v5207_v44  ;;  %v5035_v59 = vpop.f32.mrb[31].mxu0  ;;  %v5257_v22 = vpop.f32.mrb[105].mxu1 }
 0x26a   : > { %v9280_v40 = vpop.f32.mrb[106].mxu1 }
 0x26b   : > { %v9282_v13 = vadd.f32 %v6653_v60, %v5210_v42  ;;  %v5260_v25 = vpop.f32.mrb[107].mxu1 }
 0x26e   : > { %v5038_v9 = vpop.f32.mrb[32].mxu0 }
 0x26f   : > { %v6655_v39 = vadd.f32 %v5038_v9, %v9159_v16  ;;  %v5040_v53 = vpop.f32.mrb[33].mxu0 }
 0x270   : > { %v5041_v45 = vpop.f32.mrb[34].mxu0  ;;  %v9285_v63 = vpop.f32.mrb[108].mxu1 }
 0x271   : > { %v6657_v27 = vadd.f32 %v5041_v45, %v9163_v49  ;;  %v9288_v55 = vadd.f32 %v6655_v39, %v5215_v3  ;;  %v5043_v46 = vpop.f32.mrb[35].mxu0  ;;  %v5265_v44 = vpop.f32.mrb[109].mxu1 }
 0x272   : > { %v9290_v24 = vpop.f32.mrb[110].mxu1 }
 0x273   : > { %v9292_v38 = vadd.f32 %v6657_v27, %v5218_v33  ;;  %v5268_v42 = vpop.f32.mrb[111].mxu1 }
 0x276   : > { %v5046_v60 = vpop.f32.mrb[36].mxu0 }
 0x277   : > { %v6659_v59 = vadd.f32 %v5046_v60, %v9168_v29  ;;  %v5048_v22 = vpop.f32.mrb[37].mxu0 }
 0x278   : > { %v5049_v16 = vpop.f32.mrb[38].mxu0  ;;  %v9295_v25 = vpop.f32.mrb[112].mxu1 }
 0x279   : > { %v6661_v9 = vadd.f32 %v5049_v16, %v9172_v48  ;;  %v9298_v53 = vadd.f32 %v6659_v59, %v5223_v51  ;;  %v5051_v49 = vpop.f32.mrb[39].mxu0  ;;  %v5273_v3 = vpop.f32.mrb[113].mxu1 }
 0x27a   : > { %v9300_v39 = vpop.f32.mrb[114].mxu1 }
 0x27b   : > { %v9303_v45 = vadd.f32 %v6661_v9, %v9248_v14  ;;  %v5276_v33 = vpop.f32.mrb[115].mxu1 }
 0x27e   : > { %v5054_v27 = vpop.f32.mrb[40].mxu0 }
 0x27f   : > { %v6663_v46 = vadd.f32 %v5054_v27, %v9183_v10  ;;  %v5056_v29 = vpop.f32.mrb[41].mxu0 }
 0x280   : > { %v5057_v44 = vpop.f32.mrb[42].mxu0  ;;  %v9306_v42 = vpop.f32.mrb[116].mxu1 }
 0x281   : > { %v9309_v60 = vadd.f32 %v6663_v46, %v9250_v32  ;;  %v6665_v48 = vadd.f32 %v5057_v44, %v9185_v31  ;;  %v5059_v51 = vpop.f32.mrb[43].mxu0  ;;  %v5281_v59 = vpop.f32.mrb[117].mxu1 }
 0x282   : > { %v9312_v22 = vpop.f32.mrb[118].mxu1 }
 0x283   : > { %v9315_v14 = vadd.f32 %v6665_v48, %v9252_v2  ;;  %v5284_v16 = vpop.f32.mrb[119].mxu1 }
 0x286   : > { %v5062_v9 = vpop.f32.mrb[44].mxu0 }
 0x287   : > { %v6667_v10 = vadd.f32 %v5062_v9, %v9191_v34  ;;  %v5064_v49 = vpop.f32.mrb[45].mxu0 }
 0x288   : > { %v5065_v3 = vpop.f32.mrb[46].mxu0  ;;  %v9318_v33 = vpop.f32.mrb[120].mxu1 }
 0x289   : > { %v6669_v32 = vadd.f32 %v5065_v3, %v9193_v11  ;;  %v5067_v27 = vpop.f32.mrb[47].mxu0  ;;  %v5289_v46 = vpop.f32.mrb[121].mxu1  ;;  %v9322_v31 = vadd.f32 %v6667_v10, %v9255_v5 }
 0x28a   : > { %v9324_v29 = vpop.f32.mrb[122].mxu1 }
 0x28b   : > { %v5292_v44 = vpop.f32.mrb[123].mxu1  ;;  %v9327_v2 = vadd.f32 %v6669_v32, %v9260_v12 }
 0x28e   : > { %v5070_v48 = vpop.f32.mrb[48].mxu0 }
 0x28f   : > { %v6671_v34 = vadd.f32 %v5070_v48, %v9203_v20  ;;  %v5072_v51 = vpop.f32.mrb[49].mxu0 }
 0x290   : > { %v5073_v59 = vpop.f32.mrb[50].mxu0  ;;  %v9330_v16 = vpop.f32.mrb[124].mxu1 }
 0x291   : > { %v6673_v11 = vadd.f32 %v5073_v59, %v9207_v8  ;;  %v5075_v9 = vpop.f32.mrb[51].mxu0  ;;  %v9333_v49 = vpop.f32.mrb[125].mxu1  ;;  %v9336_v5 = vadd.f32 %v6671_v34, %v9265_v0 }
 0x292   : > { %v9338_v10 = vpop.f32.mrb[126].mxu1 }
 0x293   : > { %v9340_v3 = vpop.f32.mrb[127].mxu1  ;;  %v9343_v12 = vadd.f32 %v6673_v11, %v9270_v57 }
 0x296   : > { %v5078_v20 = vpop.f32.mrb[52].mxu0 }
 0x297   : > { %v6675_v32 = vadd.f32 %v5078_v20, %v9214_v30  ;;  %v5080_v27 = vpop.f32.mrb[53].mxu0 }
 0x298   : > { %v5081_v46 = vpop.f32.mrb[54].mxu0  ;;  %v9346_v44 = vpop.f32.mrb[128].mxu1 }
 0x299   : > { %v6677_v8 = vadd.f32 %v5081_v46, %v9217_v62  ;;  %v5083_v48 = vpop.f32.mrb[55].mxu0  ;;  %v9349_v51 = vpop.f32.mrb[129].mxu1  ;;  %v9352_v0 = vadd.f32 %v6675_v32, %v9275_v47 }
 0x29a   : > { %v9354_v34 = vpop.f32.mrb[130].mxu1 }
 0x29b   : > { %9914 = vst [vmem:[#allocation40_spill] sm:$0xff] %v9354_v34  ;;  %v9356_v59 = vpop.f32.mrb[131].mxu1  ;;  %v9359_v57 = vadd.f32 %v6677_v8, %v9280_v40 }
 0x29e   : > { %v5086_v30 = vpop.f32.mrb[56].mxu0 }
 0x29f   : > { %v6679_v11 = vadd.f32 %v5086_v30, %v9226_v23  ;;  %v5088_v9 = vpop.f32.mrb[57].mxu0 }
 0x2a0   : > { %v5089_v20 = vpop.f32.mrb[58].mxu0  ;;  %v6575_v62 = vpop.f32.mrb[132].mxu1 }
 0x2a1   : > { %v6681_v27 = vadd.f32 %v5089_v20, %v9228_v37  ;;  %v5091_v46 = vpop.f32.mrb[59].mxu0  ;;  %v5369_v47 = vadd.f32 %v9258_v7, %v6575_v62  ;;  %v9364_v32 = vpop.f32.mrb[133].mxu1  ;;  %v9367_v48 = vadd.f32 %v6679_v11, %v9285_v63 }
 0x2a2   : > { %v6576_v34 = vpop.f32.mrb[134].mxu1 }
 0x2a3   : > { %v5372_v40 = vadd.f32 %v9262_v41, %v6576_v34  ;;  %v9370_v8 = vpop.f32.mrb[135].mxu1  ;;  %v9373_v23 = vadd.f32 %v6681_v27, %v9290_v24  ;;  %v5481_v30 = vsel %vm7845_vm11, %v5369_v47, 0.0  ;;  %vm9915_vm11 = vnez %v9751_v6 }
 0x2a5   : > { %v5482_v37 = vsel %vm7870_vm8, %v5372_v40, 0.0  ;;  %vm9916_vm8 = vnez %v9755_v54 }
 0x2a6   : > { %v5094_v7 = vpop.f32.mrb[60].mxu0  ;;  %v9386_v41 = vpack.c.bf16 %v5482_v37, %v5481_v30 }
 0x2a7   : > { %v6683_v63 = vadd.f32 %v5094_v7, %v9233_v50  ;;  %v5096_v24 = vpop.f32.mrb[61].mxu0 }
 0x2a8   : > { %v5097_v34 = vpop.f32.mrb[62].mxu0  ;;  %6510 = vst [vmem:[%s9382_s16 + $0x28] sm:$0xff] %v9386_v41   ;;  %v6579_v18 = vpop.f32.mrb[136].mxu1 }
 0x2a9   : > { %v6685_v11 = vadd.f32 %v5097_v34, %v9238_v19  ;;  %v5099_v9 = vpop.f32.mrb[63].mxu0  ;;  %v5385_v20 = vadd.f32 %v9278_v36, %v6579_v18  ;;  %v5376_v62 = vpop.f32.mrb[137].mxu1  ;;  %v9394_v56 = vadd.f32 %v6683_v63, %v9295_v25 }
 0x2aa   : > { %v5377_v27 = vadd.f32 %v9268_v15, %v5376_v62  ;;  %v6580_v46 = vpop.f32.mrb[138].mxu1 }
 0x2ab   : > { %v5388_v50 = vadd.f32 %v9282_v13, %v6580_v46  ;;  %v5379_v47 = vpop.f32.mrb[139].mxu1  ;;  %v9399_v40 = vadd.f32 %v6685_v11, %v9300_v39  ;;  %v5485_v36 = vsel %vm8060_vm4, %v5385_v20, 0.0  ;;  %vm9917_vm4 = vnez %v9787_v35 }
 0x2ac   : > { %v5380_v19 = vadd.f32 %v9272_v1, %v5379_v47  ;;  %v5483_v15 = vsel %vm9915_vm11, %v5377_v27, 0.0 }
 0x2ad   : > { %v5486_v25 = vsel %vm8064_vm5, %v5388_v50, 0.0  ;;  %vm9918_vm5 = vnez %v9790_v58 }
 0x2ae   : > { %v5102_v30 = vpop.f32.mrb[64].mxu0  ;;  %v9408_v37 = vpack.c.bf16 %v5486_v25, %v5485_v36  ;;  %v5484_v13 = vsel %vm9916_vm8, %v5380_v19, 0.0 }
 0x2af   : > { %v6687_v39 = vadd.f32 %v5102_v30, %v9240_v21  ;;  %v5104_v7 = vpop.f32.mrb[65].mxu0  ;;  %v9413_v63 = vpack.c.bf16 %v5484_v13, %v5483_v15  ;;  %v9921_v13 = vld [vmem:[#allocation16_spill] sm:$0xff] }
 0x2b0   : > { %v5105_v1 = vpop.f32.mrb[66].mxu0  ;;  %6512 = vst [vmem:[%s9382_s16 + $0x38] sm:$0xff] %v9408_v37   ;;  %v6583_v26 = vpop.f32.mrb[140].mxu1  ;;  %vm9922_vm0 = vnez %v9921_v13 }
 0x2b1   : > { %v6689_v61 = vadd.f32 %v5105_v1, %v9242_v17  ;;  %v5107_v24 = vpop.f32.mrb[67].mxu0  ;;  %6511 = vst [vmem:[%s9382_s16 + $0x30] sm:$0xff] %v9413_v63   ;;  %v5401_v6 = vadd.f32 %v9298_v53, %v6583_v26  ;;  %v5392_v34 = vpop.f32.mrb[141].mxu1  ;;  %v9423_v21 = vadd.f32 %v6687_v39, %v9306_v42  ;;  %v9923_v39 = vld [vmem:[#allocation17_spill] sm:$0xff]  ;;  %v9925_v1 = vld [vmem:[#allocation14_spill] sm:$0xff] }
 0x2b2   : > { %v5393_v54 = vadd.f32 %v9288_v55, %v5392_v34  ;;  %v6584_v18 = vpop.f32.mrb[142].mxu1  ;;  %vm9924_vm12 = vnez %v9923_v39  ;;  %vm9926_vm6 = vnez %v9925_v1 }
 0x2b3   : > { %v5404_v11 = vadd.f32 %v9303_v45, %v6584_v18  ;;  %v5395_v9 = vpop.f32.mrb[143].mxu1  ;;  %v9428_v17 = vadd.f32 %v6689_v61, %v9312_v22  ;;  %v5489_v53 = vsel %vm9917_vm4, %v5401_v6, 0.0 }
 0x2b4   : > { %v5396_v20 = vadd.f32 %v9292_v38, %v5395_v9  ;;  %v5487_v42 = vsel %vm9919_vm2, %v5393_v54, 0.0 }
 0x2b5   : > { %v5490_v55 = vsel %vm9918_vm5, %v5404_v11, 0.0  ;;  %v9930_v11 = vld [vmem:[#allocation31_spill] sm:$0xff] }
 0x2b6   : > { %v5110_v62 = vpop.f32.mrb[68].mxu0  ;;  %v9436_v27 = vpack.c.bf16 %v5490_v55, %v5489_v53  ;;  %v5488_v45 = vsel %vm9920_vm10, %v5396_v20, 0.0 }
 0x2b7   : > { %v6691_v38 = vadd.f32 %v5110_v62, %v9244_v28  ;;  %v5112_v46 = vpop.f32.mrb[69].mxu0  ;;  %v9441_v22 = vpack.c.bf16 %v5488_v45, %v5487_v42 }
 0x2b8   : > { %v5113_v50 = vpop.f32.mrb[70].mxu0  ;;  %6514 = vst [vmem:[%s9382_s16 + $0x48] sm:$0xff] %v9436_v27   ;;  %v6587_v35 = vpop.f32.mrb[144].mxu1 }
 0x2b9   : > { %v6693_v58 = vadd.f32 %v5113_v50, %v9246_v43  ;;  %v5115_v47 = vpop.f32.mrb[71].mxu0  ;;  %6513 = vst [vmem:[%s9382_s16 + $0x40] sm:$0xff] %v9441_v22   ;;  %v5417_v4 = vadd.f32 %v9322_v31, %v6587_v35  ;;  %v5408_v19 = vpop.f32.mrb[145].mxu1  ;;  %v9451_v28 = vadd.f32 %v6691_v38, %v9318_v33 }
 0x2ba   : > { %v5409_v52 = vadd.f32 %v9309_v60, %v5408_v19  ;;  %v6588_v36 = vpop.f32.mrb[146].mxu1 }
 0x2bb   : > { %v5420_v25 = vadd.f32 %v9327_v2, %v6588_v36  ;;  %v5411_v30 = vpop.f32.mrb[147].mxu1  ;;  %v9456_v43 = vadd.f32 %v6693_v58, %v9324_v29  ;;  %v5493_v31 = vsel %vm9922_vm0, %v5417_v4, 0.0  ;;  %v9927_v2 = vld [vmem:[#allocation15_spill] sm:$0xff]  ;;  %v9933_v58 = vld [vmem:[#allocation5_spill] sm:$0xff]  ;;  %v9935_v4 = vld [vmem:[#allocation20_spill] sm:$0xff] }
 0x2bc   : > { %v5412_v15 = vadd.f32 %v9315_v14, %v5411_v30  ;;  %v5491_v33 = vsel %vm9926_vm6, %v5409_v52, 0.0  ;;  %vm9928_vm9 = vnez %v9927_v2  ;;  %v9929_v14 = vld [vmem:[#allocation30_spill] sm:$0xff]  ;;  %vm9934_vm3 = vnez %v9933_v58  ;;  %v9939_v36 = vld [vmem:[#allocation21_spill] sm:$0xff]  ;;  %v9943_v30 = vld [vmem:[#allocation32_spill] sm:$0xff] }
 0x2bd   : > { %v5494_v60 = vsel %vm9924_vm12, %v5420_v25, 0.0  ;;  %vm9936_vm11 = vnez %v9935_v4  ;;  %v9937_v52 = vld [vmem:[#allocation18_spill] sm:$0xff]  ;;  %vm9940_vm4 = vnez %v9939_v36 }
 0x2be   : > { %v5151_v7 = vpop.f32.mrb[0].mxu0  ;;  %v9464_v26 = vpack.c.bf16 %v5494_v60, %v5493_v31  ;;  %v5492_v61 = vsel %vm9928_vm9, %v5412_v15, 0.0  ;;  %vm9938_vm8 = vnez %v9937_v52  ;;  %v9951_v58 = vld [vmem:[#allocation34_spill] sm:$0xff] }
 0x2bf   : > { %v6633_v24 = vadd.f32 %v5151_v7, %v9929_v14  ;;  %v5153_v29 = vpop.f32.mrb[1].mxu0  ;;  %v9469_v6 = vpack.c.bf16 %v5492_v61, %v5491_v33  ;;  %v9944_v61 = vld [vmem:[#allocation33_spill] sm:$0xff] }
 0x2c0   : > { %v5154_v34 = vpop.f32.mrb[2].mxu0  ;;  %6516 = vst [vmem:[%s9382_s16 + $0x58] sm:$0xff] %v9464_v26   ;;  %v6591_v54 = vpop.f32.mrb[148].mxu1 }
 0x2c1   : > { %v5329_v18 = vadd.f32 %v6633_v24, %v9333_v49  ;;  %v6634_v9 = vadd.f32 %v5154_v34, %v9930_v11  ;;  %v5156_v20 = vpop.f32.mrb[3].mxu0  ;;  %6515 = vst [vmem:[%s9382_s16 + $0x50] sm:$0xff] %v9469_v6   ;;  %v5424_v53 = vpop.f32.mrb[149].mxu1  ;;  %v5433_v55 = vadd.f32 %v9352_v0, %v6591_v54  ;;  %v9931_v49 = vld [vmem:[#allocation4_spill] sm:$0xff] }
 0x2c2   : > { %v5425_v62 = vadd.f32 %v9336_v5, %v5424_v53  ;;  %v6592_v42 = vpop.f32.mrb[150].mxu1  ;;  %vm9932_vm7 = vnez %v9931_v49  ;;  %v9949_v49 = vld [vmem:[#allocation24_spill] sm:$0xff] }
 0x2c3   : > { %v5332_v45 = vadd.f32 %v6634_v9, %v9340_v3  ;;  %v5427_v38 = vpop.f32.mrb[151].mxu1  ;;  %v5436_v46 = vadd.f32 %v9359_v57, %v6592_v42  ;;  %v5471_v35 = vsel %vm9932_vm7, %v5329_v18, 0.0  ;;  %v5497_v0 = vsel %vm9936_vm11, %v5433_v55, 0.0  ;;  %v9945_v9 = vld [vmem:[#allocation6_spill] sm:$0xff] }
 0x2c4   : > { %v5428_v50 = vadd.f32 %v9343_v12, %v5427_v38  ;;  %v5495_v3 = vsel %vm9938_vm8, %v5425_v62, 0.0  ;;  %v9941_v12 = vld [vmem:[#allocation19_spill] sm:$0xff]  ;;  %vm9946_vm2 = vnez %v9945_v9  ;;  %vm9950_vm0 = vnez %v9949_v49 }
 0x2c5   : > { %v5472_v47 = vsel %vm9934_vm3, %v5332_v45, 0.0  ;;  %v5498_v57 = vsel %vm9940_vm4, %v5436_v46, 0.0  ;;  %vm9942_vm5 = vnez %v9941_v12 }
 0x2c6   : > { %v5507_v19 = vpack.c.bf16 %v5472_v47, %v5471_v35  ;;  %v5159_v5 = vpop.f32.mrb[4].mxu0  ;;  %v5496_v25 = vsel %vm9942_vm5, %v5428_v50, 0.0  ;;  %v9495_v31 = vpack.c.bf16 %v5498_v57, %v5497_v0 }
 0x2c7   : > { %v6635_v15 = vadd.f32 %v5159_v5, %v9943_v30  ;;  %v5161_v13 = vpop.f32.mrb[5].mxu0  ;;  %v9497_v39 = vpack.c.bf16 %v5496_v25, %v5495_v3  ;;  %v9956_v5 = vld [vmem:[#allocation23_spill] sm:$0xff] }
 0x2c8   : > { %6403 = vst [vmem:[%s9382_s16] sm:$0xff] %v5507_v19   ;;  %v5687_v60 = vunpack.c.l.bf16 %v5507_v19  ;;  %v5688_v7 = vunpack.c.h.bf16 %v5507_v19  ;;  %v5162_v1 = vpop.f32.mrb[6].mxu0  ;;  %v6595_v33 = vpop.f32.mrb[152].mxu1  ;;  %6518 = vst [vmem:[%s9382_s16 + $0x68] sm:$0xff] %v9495_v31   ;;  %v9954_v19 = vld [vmem:[#allocation25_spill] sm:$0xff]  ;;  %vm9957_vm9 = vnez %v9956_v5  ;;  %v9958_v30 = vld [vmem:[#allocation35_spill] sm:$0xff] }
 0x2c9   : > { %v5337_v2 = vadd.f32 %v6635_v15, %v9330_v16  ;;  %v6636_v14 = vadd.f32 %v5162_v1, %v9944_v61  ;;  %v5164_v24 = vpop.f32.mrb[7].mxu0  ;;  %6517 = vst [vmem:[%s9382_s16 + $0x60] sm:$0xff] %v9497_v39   ;;  %v5440_v29 = vpop.f32.mrb[153].mxu1  ;;  %v5449_v53 = vadd.f32 %v9394_v56, %v6595_v33  ;;  %v9947_v16 = vld [vmem:[#allocation7_spill] sm:$0xff]  ;;  %v9952_v56 = vld [vmem:[#allocation22_spill] sm:$0xff]  ;;  %vm9955_vm6 = vnez %v9954_v19 }
 0x2ca   : > { %v6596_v34 = vpop.f32.mrb[154].mxu1  ;;  %v5723_v11 = vadd.f32 %v5688_v7, %v5687_v60  ;;  %vm9948_vm10 = vnez %v9947_v16  ;;  %v5441_v62 = vadd.f32 %v9367_v48, %v5440_v29  ;;  %v5765_v38 = vmul.f32 %v5687_v60, %v5687_v60 }
 0x2cb   : > { %v5340_v54 = vadd.f32 %v6636_v14, %v9338_v10  ;;  %v5443_v18 = vpop.f32.mrb[155].mxu1  ;;  %v5473_v20 = vsel %vm9946_vm2, %v5337_v2, 0.0  ;;  %v5452_v42 = vadd.f32 %v9399_v40, %v6596_v34  ;;  %v5766_v46 = vmul.f32 %v5688_v7, %v5688_v7 }
 0x2cc   : > { %v5444_v45 = vadd.f32 %v9373_v23, %v5443_v18  ;;  %v5501_v35 = vsel %vm9950_vm0, %v5449_v53, 0.0  ;;  %vm9953_vm12 = vnez %v9952_v56 }
 0x2cd   : > { %v5474_v55 = vsel %vm9948_vm10, %v5340_v54, 0.0  ;;  %v5499_v0 = vsel %vm9953_vm12, %v5441_v62, 0.0  ;;  %v5502_v48 = vsel %vm9955_vm6, %v5452_v42, 0.0  ;;  %v5801_v1 = vadd.f32 %v5766_v46, %v5765_v38  ;;  %v9959_v54 = vld [vmem:[#allocation8_spill] sm:$0xff] }
 0x2ce   : > { %v5508_v10 = vpack.c.bf16 %v5474_v55, %v5473_v20  ;;  %v5167_v50 = vpop.f32.mrb[8].mxu0  ;;  %v5500_v40 = vsel %vm9957_vm9, %v5444_v45, 0.0  ;;  %v9525_v36 = vpack.c.bf16 %v5502_v48, %v5501_v35  ;;  %vm9960_vm7 = vnez %v9959_v54  ;;  %v9963_v55 = vld [vmem:[#allocation36_spill] sm:$0xff]  ;;  %v9975_v54 = vld [vmem:[#allocation39_spill] sm:$0xff] }
 0x2cf   : > { %v6637_v47 = vadd.f32 %v5167_v50, %v9951_v58  ;;  %v5169_v4 = vpop.f32.mrb[9].mxu0  ;;  %v9527_v57 = vpack.c.bf16 %v5500_v40, %v5499_v0  ;;  %v9965_v58 = vld [vmem:[#allocation37_spill] sm:$0xff] }
 0x2d0   : > { %6506 = vst [vmem:[%s9382_s16 + $0x8] sm:$0xff] %v5508_v10   ;;  %v5689_v23 = vunpack.c.l.bf16 %v5508_v10  ;;  %v5690_v52 = vunpack.c.h.bf16 %v5508_v10  ;;  %v5170_v3 = vpop.f32.mrb[10].mxu0  ;;  %v6599_v12 = vpop.f32.mrb[156].mxu1  ;;  %6520 = vst [vmem:[%s9382_s16 + $0x78] sm:$0xff] %v9525_v36  }
 0x2d1   : > { %v5345_v25 = vadd.f32 %v6637_v47, %v9349_v51  ;;  %v6638_v15 = vadd.f32 %v5170_v3, %v9958_v30  ;;  %v5172_v13 = vpop.f32.mrb[11].mxu0  ;;  %v5465_v60 = vadd.f32 %v9451_v28, %v6599_v12  ;;  %v5456_v7 = vpop.f32.mrb[157].mxu1  ;;  %6519 = vst [vmem:[%s9382_s16 + $0x70] sm:$0xff] %v9527_v57   ;;  %v9961_v28 = vld [vmem:[#allocation9_spill] sm:$0xff]  ;;  %v9970_v30 = vld [vmem:[#allocation10_spill] sm:$0xff] }
 0x2d2   : > { %v5724_v33 = vadd.f32 %v5723_v11, %v5689_v23  ;;  %v5767_v2 = vmul.f32 %v5689_v23, %v5689_v23  ;;  %v6600_v61 = vpop.f32.mrb[158].mxu1  ;;  %v5768_v51 = vmul.f32 %v5690_v52, %v5690_v52  ;;  %vm9962_vm3 = vnez %v9961_v28  ;;  %v9969_v23 = vld [vmem:[#allocation40_spill] sm:$0xff]  ;;  %v9972_v13 = vld [vmem:[#allocation11_spill] sm:$0xff] }
 0x2d3   : > { %v5348_v14 = vadd.f32 %v6638_v15, %v9356_v59  ;;  %v5459_v24 = vpop.f32.mrb[159].mxu1  ;;  %v5475_v18 = vsel %vm9960_vm7, %v5345_v25, 0.0  ;;  %v5457_v16 = vadd.f32 %v9423_v21, %v5456_v7  ;;  %v5468_v59 = vadd.f32 %v9456_v43, %v6600_v61 }
 0x2d4   : > { %v5725_v29 = vadd.f32 %v5724_v33, %v5690_v52  ;;  %v5802_v34 = vadd.f32 %v5801_v1, %v5767_v2  ;;  %v5460_v45 = vadd.f32 %v9428_v17, %v5459_v24  ;;  %v5505_v50 = vsel %vm8892_vm14, %v5465_v60, 0.0  ;;  %v9974_v2 = vld [vmem:[#allocation38_spill] sm:$0xff] }
 0x2d5   : > { %v5476_v9 = vsel %vm9962_vm3, %v5348_v14, 0.0  ;;  %v5506_v4 = vsel %vm8905_vm1, %v5468_v59, 0.0  ;;  %v5503_v5 = vsel %vm8854_vm15, %v5457_v16, 0.0  ;;  %vm9971_vm14 = vnez %v9970_v30  ;;  %v9978_v59 = vld [vmem:[#allocation13_spill] sm:$0xff] }
 0x2d6   : > { %v5803_v11 = vadd.f32 %v5802_v34, %v5768_v51  ;;  %v5509_v20 = vpack.c.bf16 %v5476_v9, %v5475_v18  ;;  %v5175_v53 = vpop.f32.mrb[12].mxu0  ;;  %v5504_v17 = vsel %vm8858_vm13, %v5460_v45, 0.0  ;;  %v9556_v40 = vpack.c.bf16 %v5506_v4, %v5505_v50 }
 0x2d7   : > { %v6639_v62 = vadd.f32 %v5175_v53, %v9963_v55  ;;  %v5177_v42 = vpop.f32.mrb[13].mxu0  ;;  %v9559_v52 = vpack.c.bf16 %v5504_v17, %v5503_v5  ;;  %vm9973_vm13 = vnez %v9972_v13  ;;  %vm9979_vm1 = vnez %v9978_v59 }
 0x2d8   : > { %6507 = vst [vmem:[%s9382_s16 + $0x10] sm:$0xff] %v5509_v20   ;;  %v5691_v38 = vunpack.c.l.bf16 %v5509_v20  ;;  %v5692_v46 = vunpack.c.h.bf16 %v5509_v20  ;;  %v5178_v49 = vpop.f32.mrb[14].mxu0  ;;  %6522 = vst [vmem:[%s9382_s16 + $0x88] sm:$0xff] %v9556_v40   ;;  %v5697_v50 = vunpack.c.l.bf16 %v9386_v41 }
 0x2d9   : > { %v5353_v35 = vadd.f32 %v6639_v62, %v9346_v44  ;;  %v6640_v47 = vadd.f32 %v5178_v49, %v9965_v58  ;;  %v5180_v56 = vpop.f32.mrb[15].mxu0  ;;  %6521 = vst [vmem:[%s9382_s16 + $0x80] sm:$0xff] %v9559_v52   ;;  %v9976_v62 = vld [vmem:[#allocation12_spill] sm:$0xff] }
 0x2da   : > { %v5726_v0 = vadd.f32 %v5725_v29, %v5691_v38  ;;  %v5769_v19 = vmul.f32 %v5691_v38, %v5691_v38  ;;  %v5770_v12 = vmul.f32 %v5692_v46, %v5692_v46  ;;  %vm9977_vm15 = vnez %v9976_v62 }
 0x2db   : > { %v5356_v44 = vadd.f32 %v6640_v47, %v9969_v23  ;;  %v5477_v15 = vsel %vm9971_vm14, %v5353_v35, 0.0  ;;  %v5775_v4 = vmul.f32 %v5697_v50, %v5697_v50  ;;  %v5699_v56 = vunpack.c.l.bf16 %v9413_v63 }
 0x2dc   : > { %v5727_v3 = vadd.f32 %v5726_v0, %v5692_v46  ;;  %v5804_v25 = vadd.f32 %v5803_v11, %v5769_v19  ;;  %v5700_v19 = vunpack.c.h.bf16 %v9413_v63  ;;  %v5701_v23 = vunpack.c.l.bf16 %v9408_v37 }
 0x2dd   : > { %v5478_v60 = vsel %vm9973_vm13, %v5356_v44, 0.0  ;;  %v5777_v44 = vmul.f32 %v5699_v56, %v5699_v56  ;;  %v5704_v63 = vunpack.c.h.bf16 %v9441_v22  ;;  %v5709_v62 = vunpack.c.l.bf16 %v9464_v26 }
 0x2de   : > { %v5805_v7 = vadd.f32 %v5804_v25, %v5770_v12  ;;  %v5510_v1 = vpack.c.bf16 %v5478_v60, %v5477_v15  ;;  %v5183_v33 = vpop.f32.mrb[16].mxu0  ;;  %v5778_v25 = vmul.f32 %v5700_v19, %v5700_v19  ;;  %v5779_v13 = vmul.f32 %v5701_v23, %v5701_v23 }
 0x2df   : > { %v6641_v61 = vadd.f32 %v5183_v33, %v9974_v2  ;;  %v5185_v14 = vpop.f32.mrb[17].mxu0  ;;  %v5703_v60 = vunpack.c.l.bf16 %v9441_v22  ;;  %v5708_v22 = vunpack.c.h.bf16 %v9469_v6 }
 0x2e0   : > { %6508 = vst [vmem:[%s9382_s16 + $0x18] sm:$0xff] %v5510_v1   ;;  %v5693_v24 = vunpack.c.l.bf16 %v5510_v1  ;;  %v5694_v29 = vunpack.c.h.bf16 %v5510_v1  ;;  %v5186_v51 = vpop.f32.mrb[18].mxu0  ;;  %v5705_v14 = vunpack.c.l.bf16 %v9436_v27 }
 0x2e1   : > { %v5361_v34 = vadd.f32 %v6641_v61, %v9364_v32  ;;  %v6642_v18 = vadd.f32 %v5186_v51, %v9975_v54  ;;  %v5188_v28 = vpop.f32.mrb[19].mxu0 }
 0x2e2   : > { %v5728_v9 = vadd.f32 %v5727_v3, %v5693_v24  ;;  %v5771_v11 = vmul.f32 %v5693_v24, %v5693_v24  ;;  %v5772_v16 = vmul.f32 %v5694_v29, %v5694_v29  ;;  %v5781_v24 = vmul.f32 %v5703_v60, %v5703_v60 }
 0x2e3   : > { %v5364_v20 = vadd.f32 %v6642_v18, %v9370_v8  ;;  %v5479_v42 = vsel %vm9977_vm15, %v5361_v34, 0.0  ;;  %v5698_v8 = vunpack.c.h.bf16 %v9386_v41  ;;  %v5702_v41 = vunpack.c.h.bf16 %v9408_v37 }
 0x2e4   : > { %v5729_v53 = vadd.f32 %v5728_v9, %v5694_v29  ;;  %v5806_v55 = vadd.f32 %v5805_v7, %v5771_v11  ;;  %v5706_v37 = vunpack.c.h.bf16 %v9436_v27  ;;  %v5782_v34 = vmul.f32 %v5704_v63, %v5704_v63 }
 0x2e5   : > { %v5480_v45 = vsel %vm9979_vm1, %v5364_v20, 0.0  ;;  %v5776_v0 = vmul.f32 %v5698_v8, %v5698_v8  ;;  %v5780_v33 = vmul.f32 %v5702_v41, %v5702_v41  ;;  %v5783_v28 = vmul.f32 %v5705_v14, %v5705_v14 }
 0x2e6   : > { %v5807_v38 = vadd.f32 %v5806_v55, %v5772_v16  ;;  %v5511_v46 = vpack.c.bf16 %v5480_v45, %v5479_v42  ;;  %v5707_v9 = vunpack.c.l.bf16 %v9469_v6  ;;  %v5710_v27 = vunpack.c.h.bf16 %v9464_v26 }
 0x2e7   : > { %v5712_v6 = vunpack.c.h.bf16 %v9497_v39  ;;  %v5714_v26 = vunpack.c.h.bf16 %v9495_v31 }
 0x2e8   : > { %6509 = vst [vmem:[%s9382_s16 + $0x20] sm:$0xff] %v5511_v46   ;;  %v5695_v32 = vunpack.c.l.bf16 %v5511_v46  ;;  %v5696_v10 = vunpack.c.h.bf16 %v5511_v46  ;;  %v5785_v42 = vmul.f32 %v5707_v9, %v5707_v9 }
 0x2ea   : > { %v5730_v49 = vadd.f32 %v5729_v53, %v5695_v32  ;;  %v5773_v35 = vmul.f32 %v5695_v32, %v5695_v32  ;;  %v5774_v47 = vmul.f32 %v5696_v10, %v5696_v10  ;;  %v5784_v53 = vmul.f32 %v5706_v37, %v5706_v37 }
 0x2ec   : > { %v5731_v58 = vadd.f32 %v5730_v49, %v5696_v10  ;;  %v5808_v21 = vadd.f32 %v5807_v38, %v5773_v35  ;;  %v5786_v38 = vmul.f32 %v5708_v22, %v5708_v22  ;;  %v5787_v10 = vmul.f32 %v5709_v62, %v5709_v62 }
 0x2ee   : > { %v5732_v43 = vadd.f32 %v5731_v58, %v5697_v50  ;;  %v5809_v17 = vadd.f32 %v5808_v21, %v5774_v47  ;;  %v5711_v50 = vunpack.c.l.bf16 %v9497_v39  ;;  %v5713_v21 = vunpack.c.l.bf16 %v9495_v31 }
 0x2ef   : > { %v5716_v39 = vunpack.c.h.bf16 %v9527_v57  ;;  %v5718_v31 = vunpack.c.h.bf16 %v9525_v36 }
 0x2f0   : > { %v5733_v48 = vadd.f32 %v5732_v43, %v5698_v8  ;;  %v5810_v5 = vadd.f32 %v5809_v17, %v5775_v4  ;;  %v5788_v8 = vmul.f32 %v5710_v27, %v5710_v27  ;;  %v5789_v4 = vmul.f32 %v5711_v50, %v5711_v50 }
 0x2f1   : > { %v5790_v17 = vmul.f32 %v5712_v6, %v5712_v6 }
 0x2f2   : > { %v5734_v3 = vadd.f32 %v5733_v48, %v5699_v56  ;;  %v5811_v12 = vadd.f32 %v5810_v5, %v5776_v0  ;;  %v5791_v48 = vmul.f32 %v5713_v21, %v5713_v21  ;;  %v5715_v5 = vunpack.c.l.bf16 %v9527_v57 }
 0x2f3   : > { %v5720_v57 = vunpack.c.h.bf16 %v9559_v52 }
 0x2f4   : > { %v5735_v30 = vadd.f32 %v5734_v3, %v5700_v19  ;;  %v5812_v15 = vadd.f32 %v5811_v12, %v5777_v44  ;;  %v5792_v3 = vmul.f32 %v5714_v26, %v5714_v26 }
 0x2f6   : > { %v5736_v7 = vadd.f32 %v5735_v30, %v5701_v23  ;;  %v5813_v1 = vadd.f32 %v5812_v15, %v5778_v25  ;;  %v5717_v25 = vunpack.c.l.bf16 %v9525_v36  ;;  %v5793_v30 = vmul.f32 %v5715_v5, %v5715_v5 }
 0x2f7   : > { %v5722_v36 = vunpack.c.h.bf16 %v9556_v40 }
 0x2f8   : > { %v5737_v2 = vadd.f32 %v5736_v7, %v5702_v41  ;;  %v5814_v61 = vadd.f32 %v5813_v1, %v5779_v13 }
 0x2fa   : > { %v5738_v29 = vadd.f32 %v5737_v2, %v5703_v60  ;;  %v5815_v51 = vadd.f32 %v5814_v61, %v5780_v33  ;;  %v5794_v60 = vmul.f32 %v5716_v39, %v5716_v39  ;;  %v5795_v33 = vmul.f32 %v5717_v25, %v5717_v25 }
 0x2fc   : > { %v5739_v54 = vadd.f32 %v5738_v29, %v5704_v63  ;;  %v5816_v18 = vadd.f32 %v5815_v51, %v5781_v24  ;;  %v5719_v63 = vunpack.c.l.bf16 %v9559_v52  ;;  %v5721_v51 = vunpack.c.l.bf16 %v9556_v40 }
 0x2fe   : > { %v5740_v11 = vadd.f32 %v5739_v54, %v5705_v14  ;;  %v5817_v20 = vadd.f32 %v5816_v18, %v5782_v34  ;;  %v5796_v14 = vmul.f32 %v5718_v31, %v5718_v31  ;;  %v5798_v18 = vmul.f32 %v5720_v57, %v5720_v57 }
 0x300   : > { %v5741_v16 = vadd.f32 %v5740_v11, %v5706_v37  ;;  %v5818_v55 = vadd.f32 %v5817_v20, %v5783_v28  ;;  %v5797_v37 = vmul.f32 %v5719_v63, %v5719_v63  ;;  %v5799_v11 = vmul.f32 %v5721_v51, %v5721_v51 }
 0x302   : > { %v5742_v59 = vadd.f32 %v5741_v16, %v5707_v9  ;;  %v5819_v45 = vadd.f32 %v5818_v55, %v5784_v53 }
 0x304   : > { %v5743_v46 = vadd.f32 %v5742_v59, %v5708_v22  ;;  %v5820_v32 = vadd.f32 %v5819_v45, %v5785_v42  ;;  %v5800_v22 = vmul.f32 %v5722_v36, %v5722_v36 }
 0x306   : > { %v5744_v49 = vadd.f32 %v5743_v46, %v5709_v62  ;;  %v5821_v35 = vadd.f32 %v5820_v32, %v5786_v38 }
 0x308   : > { %v5745_v58 = vadd.f32 %v5744_v49, %v5710_v27  ;;  %v5822_v47 = vadd.f32 %v5821_v35, %v5787_v10 }
 0x30a   : > { %v5746_v56 = vadd.f32 %v5745_v58, %v5711_v50  ;;  %v5823_v43 = vadd.f32 %v5822_v47, %v5788_v8 }
 0x30c   : > { %v5747_v0 = vadd.f32 %v5746_v56, %v5712_v6  ;;  %v5824_v19 = vadd.f32 %v5823_v43, %v5789_v4 }
 0x30e   : > { %v5748_v23 = vadd.f32 %v5747_v0, %v5713_v21  ;;  %v5825_v44 = vadd.f32 %v5824_v19, %v5790_v17 }
 0x310   : > { %v5749_v12 = vadd.f32 %v5748_v23, %v5714_v26  ;;  %v5826_v41 = vadd.f32 %v5825_v44, %v5791_v48 }
 0x312   : > { %v5750_v15 = vadd.f32 %v5749_v12, %v5715_v5  ;;  %v5827_v13 = vadd.f32 %v5826_v41, %v5792_v3 }
 0x314   : > { %v5751_v7 = vadd.f32 %v5750_v15, %v5716_v39  ;;  %v5828_v1 = vadd.f32 %v5827_v13, %v5793_v30 }
 0x316   : > { %v5752_v2 = vadd.f32 %v5751_v7, %v5717_v25  ;;  %v5829_v61 = vadd.f32 %v5828_v1, %v5794_v60 }
 0x318   : > { %v5753_v24 = vadd.f32 %v5752_v2, %v5718_v31  ;;  %v5830_v29 = vadd.f32 %v5829_v61, %v5795_v33 }
 0x31a   : > { %v5754_v34 = vadd.f32 %v5753_v24, %v5719_v63  ;;  %v5831_v54 = vadd.f32 %v5830_v29, %v5796_v14 }
 0x31c   : > { %v5755_v28 = vadd.f32 %v5754_v34, %v5720_v57  ;;  %v5832_v9 = vadd.f32 %v5831_v54, %v5797_v37 }
 0x31e   : > { %v5756_v20 = vadd.f32 %v5755_v28, %v5721_v51  ;;  %v5833_v53 = vadd.f32 %v5832_v9, %v5798_v18 }
 0x320   : > { %v5757_v16 = vadd.f32 %v5756_v20, %v5722_v36  ;;  %v5834_v55 = vadd.f32 %v5833_v53, %v5799_v11 }
 0x322   : > { %v5758_v52 = vrot.slane %v5757_v16, 4  ;;  %v5835_v62 = vadd.f32 %v5834_v55, %v5800_v22 }
 0x324   : > { %v5759_v42 = vadd.f32 %v5758_v52, %v5757_v16  ;;  %v5836_v59 = vrot.slane %v5835_v62, 4 }
 0x326   : > { %v5760_v45 = vrot.slane %v5759_v42, 2  ;;  %v5837_v27 = vadd.f32 %v5836_v59, %v5835_v62 }
 0x328   : > { %v5761_v38 = vadd.f32 %v5760_v45, %v5759_v42  ;;  %v5838_v46 = vrot.slane %v5837_v27, 2 }
 0x32a   : > { %v5762_v40 = vrot.slane %v5761_v38, 1  ;;  %v5839_v32 = vadd.f32 %v5838_v46, %v5837_v27 }
 0x32c   : > { %v5763_v10 = vadd.f32 %v5762_v40, %v5761_v38  ;;  %v5840_v50 = vrot.slane %v5839_v32, 1 }
 0x32e   : > { %5764 = vst [vmem:[%s235_s21] sm:$0x1] %v5763_v10  ;;  %v5841_v49 = vadd.f32 %v5840_v50, %v5839_v32 }
 0x330   : > { %5842 = vst [vmem:[%s235_s21 + $0x1] sm:$0x1] %v5841_v49 }
 0x331 PF: > { %s16_s18 = sadd.s32 1, %s7137_s18  }
 0x332   : > { %p13_p4 = scmp.ge.s32.totalorder %s16_s18, 4  }
 0x334   :  { %15 = sbr.rel (!%p13_p4) target bundleno = 1 (0x1), region = 78 }

</bundles_post_ra>
